<compile_context>
chip_gen: v5e
topology: v5e:2x2
jax: 0.10.0
libtpu: 0.0.40
codegen_flags: <defaults>
</compile_context>

<pallas_src>
import functools
import numpy as np
import jax
import jax.numpy as jnp
from jax import lax
from jax.experimental import pallas as pl
from jax.experimental.pallas import tpu as pltpu

HIGHEST = jax.lax.Precision.HIGHEST


def _round_up(x, m):
    return ((x + m - 1) // m) * m


def _cdiv(a, b):
    return -(-a // b)


# --------------------------------------------------------------------------- #
# Kernel
# --------------------------------------------------------------------------- #
def _actor_kernel(action_dim, state_len, lanes_per_action,
                  x_ref, wA_ref, bA_ref, wB_ref, bB_ref, wC_ref, bC_ref,
                  wD_ref, bD_ref, wE_ref, bE_ref, out_ref):
    A, L, Lp = action_dim, state_len, lanes_per_action
    Bt = x_ref.shape[0]

    def dense(h, w_ref, b_ref, relu):
        # bf16 MXU operands with f32 accumulation; bias add + relu stay f32.
        y = jnp.dot(h.astype(jnp.bfloat16), w_ref[...],
                    preferred_element_type=jnp.float32) + b_ref[...]
        return jnp.maximum(y, 0.0) if relu else y

    h = dense(x_ref[...], wA_ref, bA_ref, True)      # conv1 + relu          (Bt, L*32)
    h = dense(h, wB_ref, bB_ref, True)               # pool1∘conv2 + relu    (Bt, L1*64)
    h = dense(h, wC_ref, bC_ref, True)               # pool2∘flat∘linear1    (Bt, 256)
    h = dense(h, wD_ref, bD_ref, True)               # linear2 + relu        (Bt, 256)
    logits = dense(h, wE_ref, bE_ref, False)         # linear3 (f32)         (Bt, A*Lp)

    # softmax over the action axis, argmax over length (first-max index), then
    # scatter ones at the chosen indices — all in f32.  Each action's logits
    # occupy a 128-lane-aligned block of width Lp (columns >= L are zero-padded
    # weights, masked out of the argmax below), so slices/exps/stores are
    # unmasked vector ops.  Static Python loop over the tiny action count.
    lg = [logits[:, a * Lp:(a + 1) * Lp] for a in range(A)]
    m = lg[0]
    for a in range(1, A):
        m = jnp.maximum(m, lg[a])
    es = [jnp.exp(v - m) for v in lg]
    den = es[0]
    for a in range(1, A):
        den = den + es[a]
    # Exact divide on purpose (tie safety); pl.reciprocal(approx=True) would
    # move it to the EUP but its ~2^-12 rel error can flip near-tie argmaxes.
    inv_den = 1.0 / den

    iota_l = lax.broadcasted_iota(jnp.int32, (Bt, Lp), 1)
    valid = iota_l < L
    actions = jnp.zeros((Bt, Lp), jnp.float32)
    for a in range(A):
        p = jnp.where(valid, es[a] * inv_den, -1.0)          # mask pad columns
        pmax = jnp.max(p, axis=-1, keepdims=True)
        idx = jnp.min(jnp.where(p == pmax, iota_l, Lp), axis=-1, keepdims=True)
        actions = jnp.maximum(actions, (iota_l == idx).astype(jnp.float32))

    # Lane-dense packed store: [ logits (A*Lp) | actions (Lp) ] — width is a
    # multiple of 128, single unmasked store.
    out_ref[...] = jnp.concatenate([logits, actions], axis=-1)


# --------------------------------------------------------------------------- #
# Host-side weight folding (exact, one-time)
# --------------------------------------------------------------------------- #
def _build_kernel_weights(params, state_dim, state_len, action_dim, shrink_dim):
    """Fold conv/pool/flatten into dense matrices; cast matmul operands to bf16."""
    w1, b1, w2, b2, W1, B1, W2, B2, W3, B3 = [np.asarray(p, np.float32) for p in params]
    L, K, A = state_len, shrink_dim, action_dim
    L1, L2 = L // K, (L // K) // K
    C1, C2 = w1.shape[0], w2.shape[0]          # 32, 64
    H1 = W1.shape[0]                           # 256
    Lp = _round_up(L, 128)                     # lane-aligned per-action width

    def conv_toeplitz(w, n):
        # w: torch layout (Cout, Cin, 3).  Returns (n*Cin, n*Cout) acting on the
        # length-major flattened activation layout flat[l*Cin + ci].
        wt = np.transpose(w, (2, 1, 0))                        # (3, Cin, Cout)
        l = np.arange(n)[:, None]
        m = np.arange(n)[None, :]
        out = np.zeros((n * w.shape[1], n * w.shape[0]), np.float32)
        for t in range(3):
            S = (l == m + t - 1).astype(np.float32)            # zero-padded "same" conv
            out += np.kron(S, wt[t])
        return out

    def pool_matrix(n_in, k, c):
        # AvgPool1d(k) on the length axis (truncating tail, like torch), identity on channels.
        n_out = n_in // k
        Q = np.zeros((n_in, n_out), np.float32)
        for lpos in range(n_out * k):
            Q[lpos, lpos // k] = 1.0 / k
        return np.kron(Q, np.eye(c, dtype=np.float32))

    W_A = conv_toeplitz(w1, L)                                       # (L*Cin,  L*C1)
    b_A = np.tile(b1, L)[None, :]
    W_B = pool_matrix(L, K, C1) @ conv_toeplitz(w2, L1)              # (L*C1,   L1*C2)
    b_B = np.tile(b2, L1)[None, :]
    # torch's view() flattens (C2, L2) channel-major; fold that permutation,
    # pool2 and linear1 into one matrix.
    Wl1 = W1.reshape(H1, C2, L2).transpose(2, 1, 0).reshape(L2 * C2, H1)
    W_C = pool_matrix(L1, K, C2) @ Wl1                               # (L1*C2,  H1)
    b_C = B1[None, :]
    W_D = W2.T
    b_D = B2[None, :]
    # linear3: each action's L output columns zero-padded to Lp so the kernel's
    # per-action logits slices are 128-lane aligned.
    W_E = np.zeros((H1, A, Lp), np.float32)
    W_E[:, :, :L] = W3.T.reshape(H1, A, L)
    W_E = W_E.reshape(H1, A * Lp)
    b_E = np.zeros((A, Lp), np.float32)
    b_E[:, :L] = B3.reshape(A, L)
    b_E = b_E.reshape(1, A * Lp)

    mats = (W_A, W_B, W_C, W_D, W_E)
    biases = (b_A, b_B, b_C, b_D, b_E)
    out = []
    for Wm, bv in zip(mats, biases):
        out.append(jnp.asarray(Wm, jnp.bfloat16))   # MXU operands in bf16
        out.append(jnp.asarray(bv, jnp.float32))    # bias adds stay f32
    return tuple(out)


# --------------------------------------------------------------------------- #
# Wrapper
# --------------------------------------------------------------------------- #
def _choose_batch_tile(B, block_batch):
    """Multiple of 256 fills the v6e/v7x MXU M dim (128 for mid batches, 8-sublane
    minimum for tiny ones); kept small enough that the grid has >=2 steps when B
    allows it so the 'parallel' batch axis can split across both v7x TensorCores."""
    if B < 128:
        return _round_up(B, 8)
    granule = 256 if B >= 256 else 128
    tiles_needed = _cdiv(B, granule)
    tiles_per_step = max(1, min(block_batch // granule, tiles_needed))
    if tiles_needed >= 2:
        tiles_per_step = min(tiles_per_step, _cdiv(tiles_needed, 2))
    return granule * tiles_per_step


def actor_forward(x_ncl, params, *, state_dim, state_len, action_dim, shrink_dim,
                  block_batch=512):
    """x_ncl: (B, state_dim, state_len) like the PyTorch module. Returns (actions, logits)."""
    L, A = state_len, action_dim
    B = int(x_ncl.shape[0])
    F0 = L * state_dim
    Lp = _round_up(L, 128)
    out_w = (A + 1) * Lp                      # [logits (A*Lp) | actions (Lp)]

    kweights = _build_kernel_weights(params, state_dim, state_len, action_dim, shrink_dim)

    # NCL -> length-major flattened features, bf16 on the wire (MXU operand dtype).
    x_flat = jnp.transpose(x_ncl, (0, 2, 1)).reshape(B, F0).astype(jnp.bfloat16)

    bt = _choose_batch_tile(B, block_batch)
    B_pad = _round_up(B, bt)
    if B_pad != B:
        x_flat = jnp.pad(x_flat, ((0, B_pad - B), (0, 0)))

    kernel = functools.partial(_actor_kernel, A, L, Lp)

    # Explicit VMEM budget: (possibly double-buffered) weights + double-buffered
    # x/out tiles + slack, clamped to the 32 MiB scoped default .. 64 MiB
    # (v7x per-TC physical) range.
    weight_bytes = sum(int(np.prod(w.shape)) * w.dtype.itemsize for w in kweights)
    io_bytes = 2 * (bt * F0 * 2 + bt * out_w * 4)
    vmem_limit = int(min(max(int(1.5 * (2 * weight_bytes + io_bytes)), 32 << 20), 64 << 20))

    def build(single_buffer_weights):
        def wspec(w):
            if single_buffer_weights:
                # Constant index_map -> nothing to pipeline; single buffering
                # halves the weights' VMEM footprint (key for v7x's 64 MiB/TC).
                return pl.BlockSpec(w.shape, lambda b: (0, 0),
                                    pipeline_mode=pl.Buffered(1))
            return pl.BlockSpec(w.shape, lambda b: (0, 0))

        return pl.pallas_call(
            kernel,
            out_shape=jax.ShapeDtypeStruct((B_pad, out_w), jnp.float32),
            grid_spec=pltpu.PrefetchScalarGridSpec(
                num_scalar_prefetch=0,
                grid=(B_pad // bt,),
                in_specs=[pl.BlockSpec((bt, F0), lambda b: (b, 0))]
                         + [wspec(w) for w in kweights],
                out_specs=pl.BlockSpec((bt, out_w), lambda b: (b, 0)),
            ),
            compiler_params=pltpu.CompilerParams(
                dimension_semantics=("parallel",),
                vmem_limit_bytes=vmem_limit,
            ),
        )

    try:
        out = build(True)(x_flat, *kweights)
    except Exception:
        # pipeline_mode=pl.Buffered(1) unsupported on this jax version: fall
        # back to default double-buffered weights (correct, just more VMEM).
        out = build(False)(x_flat, *kweights)

    logits = jnp.concatenate([out[:B, a * Lp:a * Lp + L] for a in range(A)], axis=-1)
    actions = out[:B, A * Lp:A * Lp + L]
    return actions, logits


# --------------------------------------------------------------------------- #
# Params + pure-JAX reference (for validation)
# --------------------------------------------------------------------------- #
def init_params(key, state_dim, state_len, action_dim, shrink_dim):
    """Deterministic PyTorch-default-style init (uniform +- 1/sqrt(fan_in))."""
    L2 = state_len // shrink_dim // shrink_dim
    in1 = L2 * 64
    ks = jax.random.split(key, 10)

    def u(k, shape, fan_in):
        b = 1.0 / np.sqrt(fan_in)
        return jax.random.uniform(k, shape, jnp.float32, -b, b)

    w1 = u(ks[0], (32, state_dim, 3), state_dim * 3)
    b1 = u(ks[1], (32,), state_dim * 3)
    w2 = u(ks[2], (64, 32, 3), 32 * 3)
    b2 = u(ks[3], (64,), 32 * 3)
    W1 = u(ks[4], (256, in1), in1)
    B1 = u(ks[5], (256,), in1)
    W2 = u(ks[6], (256, 256), 256)
    B2 = u(ks[7], (256,), 256)
    W3 = u(ks[8], (action_dim * state_len, 256), 256)
    B3 = u(ks[9], (action_dim * state_len,), 256)
    return (w1, b1, w2, b2, W1, B1, W2, B2, W3, B3)


def actor_reference(x_ncl, params, state_len, action_dim, shrink_dim):
    """Pure-JAX f32 reference mirroring the PyTorch forward."""
    w1, b1, w2, b2, W1, B1, W2, B2, W3, B3 = params
    B = x_ncl.shape[0]
    L = state_len

    def conv1d(x, w, b):
        y = lax.conv_general_dilated(x, w, window_strides=(1,), padding=((1, 1),),
                                     dimension_numbers=("NCH", "OIH", "NCH"),
                                     precision=HIGHEST)
        return y + b[None, :, None]

    def avg_pool(x, k):
        Bq, C, n = x.shape
        no = n // k
        return x[:, :, :no * k].reshape(Bq, C, no, k).mean(-1)

    h = avg_pool(jax.nn.relu(conv1d(x_ncl, w1, b1)), shrink_dim)
    h = avg_pool(jax.nn.relu(conv1d(h, w2, b2)), shrink_dim)
    flat = h.reshape(B, -1)                                    # channel-major, like torch view
    z = jax.nn.relu(jnp.matmul(flat, W1.T, precision=HIGHEST) + B1)
    z = jax.nn.relu(jnp.matmul(z, W2.T, precision=HIGHEST) + B2)
    logits = jnp.matmul(z, W3.T, precision=HIGHEST) + B3
    lg = logits.reshape(B, action_dim, L)
    p = jax.nn.softmax(lg, axis=1)
    idx = jnp.argmax(p, axis=-1)                               # (B, A)
    actions = jnp.zeros((B, L), jnp.float32)
    actions = actions.at[jnp.arange(B)[:, None], idx].set(1.0)
    return actions, logits, p


if __name__ == "__main__":
    # Small shapes consistent with the module (state_len divisible by shrink_dim**2).
    state_dim, state_len, action_dim, shrink_dim = 2, 32, 2, 4
    batch = 2

    key = jax.random.PRNGKey(0)
    kx, kp = jax.random.split(key)
    x = jax.random.normal(kx, (batch, state_dim, state_len), jnp.float32)  # NCL, like torch
    params = init_params(kp, state_dim, state_len, action_dim, shrink_dim)

    actions, logits = actor_forward(x, params, state_dim=state_dim, state_len=state_len,
                                    action_dim=action_dim, shrink_dim=shrink_dim)
    jax.block_until_ready((actions, logits))

    # ----- validation -------------------------------------------------------
    ref_actions, ref_logits, ref_p = actor_reference(x, params, state_len, action_dim, shrink_dim)

    # bf16 MXU operands (f32 accumulation) -> compare against the pure-f32
    # reference with a bf16-scale tolerance.
    np.testing.assert_allclose(np.asarray(logits), np.asarray(ref_logits),
                               rtol=5e-2, atol=2e-2)

    # The softmax/argmax/one-hot tail runs in f32 on the kernel's own logits, so
    # validate it against those exact logits (recomputed in f64 here).
    lgk = np.asarray(logits, np.float64).reshape(batch, action_dim, state_len)
    ex = np.exp(lgk - lgk.max(axis=1, keepdims=True))
    p_k = ex / ex.sum(axis=1, keepdims=True)

    acts_np = np.asarray(actions)
    assert acts_np.shape == (batch, state_len)
    assert set(np.unique(acts_np).tolist()) <= {0.0, 1.0}
    for b in range(batch):
        ones = set(np.where(acts_np[b] == 1.0)[0].tolist())
        assert 1 <= len(ones) <= action_dim
        allowed = set()
        for a in range(action_dim):
            near = set(np.where(p_k[b, a] >= p_k[b, a].max() - 1e-4)[0].tolist())
            assert ones & near          # each action channel hit a (near-)argmax slot
            allowed |= near
        assert ones <= allowed          # no spurious ones

    print("KERNEL_OK")
</pallas_src>

<mosaic_0001>
module attributes {stable_mosaic.version = 11 : i64} {
  func.func @_actor_kernel(%arg0: i32, %arg1: memref<8x64xbf16, #tpu.memory_space<vmem>>, %arg2: memref<64x1024xbf16, #tpu.memory_space<vmem>>, %arg3: memref<1x1024xf32, #tpu.memory_space<vmem>>, %arg4: memref<1024x512xbf16, #tpu.memory_space<vmem>>, %arg5: memref<1x512xf32, #tpu.memory_space<vmem>>, %arg6: memref<512x256xbf16, #tpu.memory_space<vmem>>, %arg7: memref<1x256xf32, #tpu.memory_space<vmem>>, %arg8: memref<256x256xbf16, #tpu.memory_space<vmem>>, %arg9: memref<1x256xf32, #tpu.memory_space<vmem>>, %arg10: memref<256x256xbf16, #tpu.memory_space<vmem>>, %arg11: memref<1x256xf32, #tpu.memory_space<vmem>>, %arg12: memref<8x384xf32, #tpu.memory_space<vmem>>) attributes {dimension_semantics = [#tpu.dimension_semantics<parallel>], iteration_bounds = array<i64: 1>, scalar_prefetch = 0 : i64, scratch_operands = 0 : i64, tpu.core_type = #tpu.core_type<tc>, window_params = [{transform_indices = @transform_0, window_bounds = array<i64: 8, 64>}, {pipeline_mode = #tpu.pipeline_mode<synchronous>, transform_indices = @transform_1, window_bounds = array<i64: 64, 1024>}, {pipeline_mode = #tpu.pipeline_mode<synchronous>, transform_indices = @transform_2, window_bounds = array<i64: 1, 1024>}, {pipeline_mode = #tpu.pipeline_mode<synchronous>, transform_indices = @transform_3, window_bounds = array<i64: 1024, 512>}, {pipeline_mode = #tpu.pipeline_mode<synchronous>, transform_indices = @transform_4, window_bounds = array<i64: 1, 512>}, {pipeline_mode = #tpu.pipeline_mode<synchronous>, transform_indices = @transform_5, window_bounds = array<i64: 512, 256>}, {pipeline_mode = #tpu.pipeline_mode<synchronous>, transform_indices = @transform_6, window_bounds = array<i64: 1, 256>}, {pipeline_mode = #tpu.pipeline_mode<synchronous>, transform_indices = @transform_7, window_bounds = array<i64: 256, 256>}, {pipeline_mode = #tpu.pipeline_mode<synchronous>, transform_indices = @transform_8, window_bounds = array<i64: 1, 256>}, {pipeline_mode = #tpu.pipeline_mode<synchronous>, transform_indices = @transform_9, window_bounds = array<i64: 256, 256>}, {pipeline_mode = #tpu.pipeline_mode<synchronous>, transform_indices = @transform_10, window_bounds = array<i64: 1, 256>}, {transform_indices = @transform_11, window_bounds = array<i64: 8, 384>}]} {
    %c0 = arith.constant 0 : index
    %c0_0 = arith.constant 0 : index
    %0 = vector.load %arg1[%c0, %c0_0] : memref<8x64xbf16, #tpu.memory_space<vmem>>, vector<8x64xbf16>
    %c0_1 = arith.constant 0 : index
    %c0_2 = arith.constant 0 : index
    %1 = vector.load %arg2[%c0_1, %c0_2] : memref<64x1024xbf16, #tpu.memory_space<vmem>>, vector<64x1024xbf16>
    %cst = arith.constant dense<0.000000e+00> : vector<8x1024xf32>
    %2 = tpu.matmul %0, %1, %cst {dimension_numbers = #tpu.dot_dimension_numbers<[1], [0], [0], [1], [0, 0, 1, 1], [], []>} : vector<8x64xbf16>, vector<64x1024xbf16>, vector<8x1024xf32> -> vector<8x1024xf32>
    %c0_3 = arith.constant 0 : index
    %c0_4 = arith.constant 0 : index
    %3 = vector.load %arg3[%c0_3, %c0_4] : memref<1x1024xf32, #tpu.memory_space<vmem>>, vector<1x1024xf32>
    %4 = vector.broadcast %3 : vector<1x1024xf32> to vector<8x1024xf32>
    %5 = arith.addf %2, %4 : vector<8x1024xf32>
    %cst_5 = arith.constant 0.000000e+00 : f32
    %6 = vector.broadcast %cst_5 : f32 to vector<8x1024xf32>
    %7 = arith.maximumf %5, %6 : vector<8x1024xf32>
    %8 = arith.truncf %7 : vector<8x1024xf32> to vector<8x1024xbf16>
    %c0_6 = arith.constant 0 : index
    %c0_7 = arith.constant 0 : index
    %9 = vector.load %arg4[%c0_6, %c0_7] : memref<1024x512xbf16, #tpu.memory_space<vmem>>, vector<1024x512xbf16>
    %cst_8 = arith.constant dense<0.000000e+00> : vector<8x512xf32>
    %10 = tpu.matmul %8, %9, %cst_8 {dimension_numbers = #tpu.dot_dimension_numbers<[1], [0], [0], [1], [0, 0, 1, 1], [], []>} : vector<8x1024xbf16>, vector<1024x512xbf16>, vector<8x512xf32> -> vector<8x512xf32>
    %c0_9 = arith.constant 0 : index
    %c0_10 = arith.constant 0 : index
    %11 = vector.load %arg5[%c0_9, %c0_10] : memref<1x512xf32, #tpu.memory_space<vmem>>, vector<1x512xf32>
    %12 = vector.broadcast %11 : vector<1x512xf32> to vector<8x512xf32>
    %13 = arith.addf %10, %12 : vector<8x512xf32>
    %cst_11 = arith.constant 0.000000e+00 : f32
    %14 = vector.broadcast %cst_11 : f32 to vector<8x512xf32>
    %15 = arith.maximumf %13, %14 : vector<8x512xf32>
    %16 = arith.truncf %15 : vector<8x512xf32> to vector<8x512xbf16>
    %c0_12 = arith.constant 0 : index
    %c0_13 = arith.constant 0 : index
    %17 = vector.load %arg6[%c0_12, %c0_13] : memref<512x256xbf16, #tpu.memory_space<vmem>>, vector<512x256xbf16>
    %cst_14 = arith.constant dense<0.000000e+00> : vector<8x256xf32>
    %18 = tpu.matmul %16, %17, %cst_14 {dimension_numbers = #tpu.dot_dimension_numbers<[1], [0], [0], [1], [0, 0, 1, 1], [], []>} : vector<8x512xbf16>, vector<512x256xbf16>, vector<8x256xf32> -> vector<8x256xf32>
    %c0_15 = arith.constant 0 : index
    %c0_16 = arith.constant 0 : index
    %19 = vector.load %arg7[%c0_15, %c0_16] : memref<1x256xf32, #tpu.memory_space<vmem>>, vector<1x256xf32>
    %20 = vector.broadcast %19 : vector<1x256xf32> to vector<8x256xf32>
    %21 = arith.addf %18, %20 : vector<8x256xf32>
    %cst_17 = arith.constant 0.000000e+00 : f32
    %22 = vector.broadcast %cst_17 : f32 to vector<8x256xf32>
    %23 = arith.maximumf %21, %22 : vector<8x256xf32>
    %24 = arith.truncf %23 : vector<8x256xf32> to vector<8x256xbf16>
    %c0_18 = arith.constant 0 : index
    %c0_19 = arith.constant 0 : index
    %25 = vector.load %arg8[%c0_18, %c0_19] : memref<256x256xbf16, #tpu.memory_space<vmem>>, vector<256x256xbf16>
    %cst_20 = arith.constant dense<0.000000e+00> : vector<8x256xf32>
    %26 = tpu.matmul %24, %25, %cst_20 {dimension_numbers = #tpu.dot_dimension_numbers<[1], [0], [0], [1], [0, 0, 1, 1], [], []>} : vector<8x256xbf16>, vector<256x256xbf16>, vector<8x256xf32> -> vector<8x256xf32>
    %c0_21 = arith.constant 0 : index
    %c0_22 = arith.constant 0 : index
    %27 = vector.load %arg9[%c0_21, %c0_22] : memref<1x256xf32, #tpu.memory_space<vmem>>, vector<1x256xf32>
    %28 = vector.broadcast %27 : vector<1x256xf32> to vector<8x256xf32>
    %29 = arith.addf %26, %28 : vector<8x256xf32>
    %cst_23 = arith.constant 0.000000e+00 : f32
    %30 = vector.broadcast %cst_23 : f32 to vector<8x256xf32>
    %31 = arith.maximumf %29, %30 : vector<8x256xf32>
    %32 = arith.truncf %31 : vector<8x256xf32> to vector<8x256xbf16>
    %c0_24 = arith.constant 0 : index
    %c0_25 = arith.constant 0 : index
    %33 = vector.load %arg10[%c0_24, %c0_25] : memref<256x256xbf16, #tpu.memory_space<vmem>>, vector<256x256xbf16>
    %cst_26 = arith.constant dense<0.000000e+00> : vector<8x256xf32>
    %34 = tpu.matmul %32, %33, %cst_26 {dimension_numbers = #tpu.dot_dimension_numbers<[1], [0], [0], [1], [0, 0, 1, 1], [], []>} : vector<8x256xbf16>, vector<256x256xbf16>, vector<8x256xf32> -> vector<8x256xf32>
    %c0_27 = arith.constant 0 : index
    %c0_28 = arith.constant 0 : index
    %35 = vector.load %arg11[%c0_27, %c0_28] : memref<1x256xf32, #tpu.memory_space<vmem>>, vector<1x256xf32>
    %36 = vector.broadcast %35 : vector<1x256xf32> to vector<8x256xf32>
    %37 = arith.addf %34, %36 : vector<8x256xf32>
    %38 = vector.extract_strided_slice %37 {offsets = [0, 0], sizes = [8, 128], strides = [1, 1]} : vector<8x256xf32> to vector<8x128xf32>
    %39 = vector.extract_strided_slice %37 {offsets = [0, 128], sizes = [8, 128], strides = [1, 1]} : vector<8x256xf32> to vector<8x128xf32>
    %40 = arith.maximumf %38, %39 : vector<8x128xf32>
    %41 = arith.subf %38, %40 : vector<8x128xf32>
    %42 = math.exp %41 : vector<8x128xf32>
    %43 = arith.subf %39, %40 : vector<8x128xf32>
    %44 = math.exp %43 : vector<8x128xf32>
    %45 = arith.addf %42, %44 : vector<8x128xf32>
    %cst_29 = arith.constant 1.000000e+00 : f32
    %46 = vector.broadcast %cst_29 : f32 to vector<8x128xf32>
    %47 = arith.divf %46, %45 : vector<8x128xf32>
    %48 = tpu.iota {dimensions = array<i32: 1>} : vector<8x128xi32>
    %c32_i32 = arith.constant 32 : i32
    %49 = vector.broadcast %c32_i32 : i32 to vector<8x128xi32>
    %50 = arith.cmpi slt, %48, %49 : vector<8x128xi32>
    %cst_30 = arith.constant 0.000000e+00 : f32
    %51 = vector.broadcast %cst_30 : f32 to vector<8x128xf32>
    %52 = arith.mulf %42, %47 : vector<8x128xf32>
    %cst_31 = arith.constant -1.000000e+00 : f32
    %53 = vector.broadcast %cst_31 : f32 to vector<8x128xf32>
    %54 = arith.select %50, %52, %53 : vector<8x128xi1>, vector<8x128xf32>
    %cst_32 = arith.constant dense<0xFF800000> : vector<8xf32>
    %55 = vector.multi_reduction <maximumf>, %54, %cst_32 [1] : vector<8x128xf32> to vector<8xf32>
    %56 = vector.shape_cast %55 : vector<8xf32> to vector<8x1xf32>
    %57 = vector.broadcast %56 : vector<8x1xf32> to vector<8x128xf32>
    %58 = arith.cmpf oeq, %54, %57 : vector<8x128xf32>
    %c128_i32 = arith.constant 128 : i32
    %59 = vector.broadcast %c128_i32 : i32 to vector<8x128xi32>
    %60 = arith.select %58, %48, %59 : vector<8x128xi1>, vector<8x128xi32>
    %cst_33 = arith.constant dense<2147483647> : vector<8xi32>
    %61 = vector.multi_reduction <minsi>, %60, %cst_33 [1] : vector<8x128xi32> to vector<8xi32>
    %62 = vector.shape_cast %61 : vector<8xi32> to vector<8x1xi32>
    %63 = vector.broadcast %62 : vector<8x1xi32> to vector<8x128xi32>
    %64 = arith.cmpi eq, %48, %63 : vector<8x128xi32>
    %65 = arith.extui %64 : vector<8x128xi1> to vector<8x128xi32>
    %66 = arith.sitofp %65 : vector<8x128xi32> to vector<8x128xf32>
    %67 = arith.maximumf %51, %66 : vector<8x128xf32>
    %68 = arith.mulf %44, %47 : vector<8x128xf32>
    %cst_34 = arith.constant -1.000000e+00 : f32
    %69 = vector.broadcast %cst_34 : f32 to vector<8x128xf32>
    %70 = arith.select %50, %68, %69 : vector<8x128xi1>, vector<8x128xf32>
    %cst_35 = arith.constant dense<0xFF800000> : vector<8xf32>
    %71 = vector.multi_reduction <maximumf>, %70, %cst_35 [1] : vector<8x128xf32> to vector<8xf32>
    %72 = vector.shape_cast %71 : vector<8xf32> to vector<8x1xf32>
    %73 = vector.broadcast %72 : vector<8x1xf32> to vector<8x128xf32>
    %74 = arith.cmpf oeq, %70, %73 : vector<8x128xf32>
    %c128_i32_36 = arith.constant 128 : i32
    %75 = vector.broadcast %c128_i32_36 : i32 to vector<8x128xi32>
    %76 = arith.select %74, %48, %75 : vector<8x128xi1>, vector<8x128xi32>
    %cst_37 = arith.constant dense<2147483647> : vector<8xi32>
    %77 = vector.multi_reduction <minsi>, %76, %cst_37 [1] : vector<8x128xi32> to vector<8xi32>
    %78 = vector.shape_cast %77 : vector<8xi32> to vector<8x1xi32>
    %79 = vector.broadcast %78 : vector<8x1xi32> to vector<8x128xi32>
    %80 = arith.cmpi eq, %48, %79 : vector<8x128xi32>
    %81 = arith.extui %80 : vector<8x128xi1> to vector<8x128xi32>
    %82 = arith.sitofp %81 : vector<8x128xi32> to vector<8x128xf32>
    %83 = arith.maximumf %67, %82 : vector<8x128xf32>
    %84 = tpu.concatenate %37, %83 in 1 : vector<8x256xf32>, vector<8x128xf32> -> vector<8x384xf32>
    %c0_38 = arith.constant 0 : index
    %c0_39 = arith.constant 0 : index
    %85 = vector.load %arg12[%c0_38, %c0_39] : memref<8x384xf32, #tpu.memory_space<vmem>>, vector<8x384xf32>
    tpu.vector_store %arg12[%c0_38, %c0_39], %84 {strides = array<i32>} : memref<8x384xf32, #tpu.memory_space<vmem>>, vector<8x384xf32>,
    return
  }
  func.func @transform_0(%arg0: i32) -> (i32, i32) {
    %c0_i32 = arith.constant 0 : i32
    %c0_i32_0 = arith.constant 0 : i32
    return %arg0, %c0_i32 : i32, i32
  }
  func.func @transform_1(%arg0: i32) -> (i32, i32) {
    %c0_i32 = arith.constant 0 : i32
    %c0_i32_0 = arith.constant 0 : i32
    %c0_i32_1 = arith.constant 0 : i32
    return %c0_i32, %c0_i32_0 : i32, i32
  }
  func.func @transform_2(%arg0: i32) -> (i32, i32) {
    %c0_i32 = arith.constant 0 : i32
    %c0_i32_0 = arith.constant 0 : i32
    %c0_i32_1 = arith.constant 0 : i32
    return %c0_i32, %c0_i32_0 : i32, i32
  }
  func.func @transform_3(%arg0: i32) -> (i32, i32) {
    %c0_i32 = arith.constant 0 : i32
    %c0_i32_0 = arith.constant 0 : i32
    %c0_i32_1 = arith.constant 0 : i32
    return %c0_i32, %c0_i32_0 : i32, i32
  }
  func.func @transform_4(%arg0: i32) -> (i32, i32) {
    %c0_i32 = arith.constant 0 : i32
    %c0_i32_0 = arith.constant 0 : i32
    %c0_i32_1 = arith.constant 0 : i32
    return %c0_i32, %c0_i32_0 : i32, i32
  }
  func.func @transform_5(%arg0: i32) -> (i32, i32) {
    %c0_i32 = arith.constant 0 : i32
    %c0_i32_0 = arith.constant 0 : i32
    %c0_i32_1 = arith.constant 0 : i32
    return %c0_i32, %c0_i32_0 : i32, i32
  }
  func.func @transform_6(%arg0: i32) -> (i32, i32) {
    %c0_i32 = arith.constant 0 : i32
    %c0_i32_0 = arith.constant 0 : i32
    %c0_i32_1 = arith.constant 0 : i32
    return %c0_i32, %c0_i32_0 : i32, i32
  }
  func.func @transform_7(%arg0: i32) -> (i32, i32) {
    %c0_i32 = arith.constant 0 : i32
    %c0_i32_0 = arith.constant 0 : i32
    %c0_i32_1 = arith.constant 0 : i32
    return %c0_i32, %c0_i32_0 : i32, i32
  }
  func.func @transform_8(%arg0: i32) -> (i32, i32) {
    %c0_i32 = arith.constant 0 : i32
    %c0_i32_0 = arith.constant 0 : i32
    %c0_i32_1 = arith.constant 0 : i32
    return %c0_i32, %c0_i32_0 : i32, i32
  }
  func.func @transform_9(%arg0: i32) -> (i32, i32) {
    %c0_i32 = arith.constant 0 : i32
    %c0_i32_0 = arith.constant 0 : i32
    %c0_i32_1 = arith.constant 0 : i32
    return %c0_i32, %c0_i32_0 : i32, i32
  }
  func.func @transform_10(%arg0: i32) -> (i32, i32) {
    %c0_i32 = arith.constant 0 : i32
    %c0_i32_0 = arith.constant 0 : i32
    %c0_i32_1 = arith.constant 0 : i32
    return %c0_i32, %c0_i32_0 : i32, i32
  }
  func.func @transform_11(%arg0: i32) -> (i32, i32) {
    %c0_i32 = arith.constant 0 : i32
    %c0_i32_0 = arith.constant 0 : i32
    return %arg0, %c0_i32 : i32, i32
  }
}

module attributes {stable_mosaic.version = 11 : i64} {
  func.func @_actor_kernel(%arg0: i32, %arg1: memref<8x64xbf16, #tpu.memory_space<vmem>>, %arg2: memref<64x1024xbf16, #tpu.memory_space<vmem>>, %arg3: memref<1x1024xf32, #tpu.memory_space<vmem>>, %arg4: memref<1024x512xbf16, #tpu.memory_space<vmem>>, %arg5: memref<1x512xf32, #tpu.memory_space<vmem>>, %arg6: memref<512x256xbf16, #tpu.memory_space<vmem>>, %arg7: memref<1x256xf32, #tpu.memory_space<vmem>>, %arg8: memref<256x256xbf16, #tpu.memory_space<vmem>>, %arg9: memref<1x256xf32, #tpu.memory_space<vmem>>, %arg10: memref<256x256xbf16, #tpu.memory_space<vmem>>, %arg11: memref<1x256xf32, #tpu.memory_space<vmem>>, %arg12: memref<8x384xf32, #tpu.memory_space<vmem>>) attributes {dimension_semantics = [#tpu.dimension_semantics<parallel>], iteration_bounds = array<i64: 1>, scalar_prefetch = 0 : i64, scratch_operands = 0 : i64, tpu.core_type = #tpu.core_type<tc>, window_params = [{transform_indices = @transform_0, window_bounds = array<i64: 8, 64>}, {pipeline_mode = #tpu.pipeline_mode<synchronous>, transform_indices = @transform_1, window_bounds = array<i64: 64, 1024>}, {pipeline_mode = #tpu.pipeline_mode<synchronous>, transform_indices = @transform_2, window_bounds = array<i64: 1, 1024>}, {pipeline_mode = #tpu.pipeline_mode<synchronous>, transform_indices = @transform_3, window_bounds = array<i64: 1024, 512>}, {pipeline_mode = #tpu.pipeline_mode<synchronous>, transform_indices = @transform_4, window_bounds = array<i64: 1, 512>}, {pipeline_mode = #tpu.pipeline_mode<synchronous>, transform_indices = @transform_5, window_bounds = array<i64: 512, 256>}, {pipeline_mode = #tpu.pipeline_mode<synchronous>, transform_indices = @transform_6, window_bounds = array<i64: 1, 256>}, {pipeline_mode = #tpu.pipeline_mode<synchronous>, transform_indices = @transform_7, window_bounds = array<i64: 256, 256>}, {pipeline_mode = #tpu.pipeline_mode<synchronous>, transform_indices = @transform_8, window_bounds = array<i64: 1, 256>}, {pipeline_mode = #tpu.pipeline_mode<synchronous>, transform_indices = @transform_9, window_bounds = array<i64: 256, 256>}, {pipeline_mode = #tpu.pipeline_mode<synchronous>, transform_indices = @transform_10, window_bounds = array<i64: 1, 256>}, {transform_indices = @transform_11, window_bounds = array<i64: 8, 384>}]} {
    %c0 = arith.constant 0 : index
    %c0_0 = arith.constant 0 : index
    %0 = vector.load %arg1[%c0, %c0_0] : memref<8x64xbf16, #tpu.memory_space<vmem>>, vector<8x64xbf16>
    %c0_1 = arith.constant 0 : index
    %c0_2 = arith.constant 0 : index
    %1 = vector.load %arg2[%c0_1, %c0_2] : memref<64x1024xbf16, #tpu.memory_space<vmem>>, vector<64x1024xbf16>
    %cst = arith.constant dense<0.000000e+00> : vector<8x1024xf32>
    %2 = tpu.matmul %0, %1, %cst {dimension_numbers = #tpu.dot_dimension_numbers<[1], [0], [0], [1], [0, 0, 1, 1], [], []>} : vector<8x64xbf16>, vector<64x1024xbf16>, vector<8x1024xf32> -> vector<8x1024xf32>
    %c0_3 = arith.constant 0 : index
    %c0_4 = arith.constant 0 : index
    %3 = vector.load %arg3[%c0_3, %c0_4] : memref<1x1024xf32, #tpu.memory_space<vmem>>, vector<1x1024xf32>
    %4 = vector.broadcast %3 : vector<1x1024xf32> to vector<8x1024xf32>
    %5 = arith.addf %2, %4 : vector<8x1024xf32>
    %cst_5 = arith.constant 0.000000e+00 : f32
    %6 = vector.broadcast %cst_5 : f32 to vector<8x1024xf32>
    %7 = arith.maximumf %5, %6 : vector<8x1024xf32>
    %8 = arith.truncf %7 : vector<8x1024xf32> to vector<8x1024xbf16>
    %c0_6 = arith.constant 0 : index
    %c0_7 = arith.constant 0 : index
    %9 = vector.load %arg4[%c0_6, %c0_7] : memref<1024x512xbf16, #tpu.memory_space<vmem>>, vector<1024x512xbf16>
    %cst_8 = arith.constant dense<0.000000e+00> : vector<8x512xf32>
    %10 = tpu.matmul %8, %9, %cst_8 {dimension_numbers = #tpu.dot_dimension_numbers<[1], [0], [0], [1], [0, 0, 1, 1], [], []>} : vector<8x1024xbf16>, vector<1024x512xbf16>, vector<8x512xf32> -> vector<8x512xf32>
    %c0_9 = arith.constant 0 : index
    %c0_10 = arith.constant 0 : index
    %11 = vector.load %arg5[%c0_9, %c0_10] : memref<1x512xf32, #tpu.memory_space<vmem>>, vector<1x512xf32>
    %12 = vector.broadcast %11 : vector<1x512xf32> to vector<8x512xf32>
    %13 = arith.addf %10, %12 : vector<8x512xf32>
    %cst_11 = arith.constant 0.000000e+00 : f32
    %14 = vector.broadcast %cst_11 : f32 to vector<8x512xf32>
    %15 = arith.maximumf %13, %14 : vector<8x512xf32>
    %16 = arith.truncf %15 : vector<8x512xf32> to vector<8x512xbf16>
    %c0_12 = arith.constant 0 : index
    %c0_13 = arith.constant 0 : index
    %17 = vector.load %arg6[%c0_12, %c0_13] : memref<512x256xbf16, #tpu.memory_space<vmem>>, vector<512x256xbf16>
    %cst_14 = arith.constant dense<0.000000e+00> : vector<8x256xf32>
    %18 = tpu.matmul %16, %17, %cst_14 {dimension_numbers = #tpu.dot_dimension_numbers<[1], [0], [0], [1], [0, 0, 1, 1], [], []>} : vector<8x512xbf16>, vector<512x256xbf16>, vector<8x256xf32> -> vector<8x256xf32>
    %c0_15 = arith.constant 0 : index
    %c0_16 = arith.constant 0 : index
    %19 = vector.load %arg7[%c0_15, %c0_16] : memref<1x256xf32, #tpu.memory_space<vmem>>, vector<1x256xf32>
    %20 = vector.broadcast %19 : vector<1x256xf32> to vector<8x256xf32>
    %21 = arith.addf %18, %20 : vector<8x256xf32>
    %cst_17 = arith.constant 0.000000e+00 : f32
    %22 = vector.broadcast %cst_17 : f32 to vector<8x256xf32>
    %23 = arith.maximumf %21, %22 : vector<8x256xf32>
    %24 = arith.truncf %23 : vector<8x256xf32> to vector<8x256xbf16>
    %c0_18 = arith.constant 0 : index
    %c0_19 = arith.constant 0 : index
    %25 = vector.load %arg8[%c0_18, %c0_19] : memref<256x256xbf16, #tpu.memory_space<vmem>>, vector<256x256xbf16>
    %cst_20 = arith.constant dense<0.000000e+00> : vector<8x256xf32>
    %26 = tpu.matmul %24, %25, %cst_20 {dimension_numbers = #tpu.dot_dimension_numbers<[1], [0], [0], [1], [0, 0, 1, 1], [], []>} : vector<8x256xbf16>, vector<256x256xbf16>, vector<8x256xf32> -> vector<8x256xf32>
    %c0_21 = arith.constant 0 : index
    %c0_22 = arith.constant 0 : index
    %27 = vector.load %arg9[%c0_21, %c0_22] : memref<1x256xf32, #tpu.memory_space<vmem>>, vector<1x256xf32>
    %28 = vector.broadcast %27 : vector<1x256xf32> to vector<8x256xf32>
    %29 = arith.addf %26, %28 : vector<8x256xf32>
    %cst_23 = arith.constant 0.000000e+00 : f32
    %30 = vector.broadcast %cst_23 : f32 to vector<8x256xf32>
    %31 = arith.maximumf %29, %30 : vector<8x256xf32>
    %32 = arith.truncf %31 : vector<8x256xf32> to vector<8x256xbf16>
    %c0_24 = arith.constant 0 : index
    %c0_25 = arith.constant 0 : index
    %33 = vector.load %arg10[%c0_24, %c0_25] : memref<256x256xbf16, #tpu.memory_space<vmem>>, vector<256x256xbf16>
    %cst_26 = arith.constant dense<0.000000e+00> : vector<8x256xf32>
    %34 = tpu.matmul %32, %33, %cst_26 {dimension_numbers = #tpu.dot_dimension_numbers<[1], [0], [0], [1], [0, 0, 1, 1], [], []>} : vector<8x256xbf16>, vector<256x256xbf16>, vector<8x256xf32> -> vector<8x256xf32>
    %c0_27 = arith.constant 0 : index
    %c0_28 = arith.constant 0 : index
    %35 = vector.load %arg11[%c0_27, %c0_28] : memref<1x256xf32, #tpu.memory_space<vmem>>, vector<1x256xf32>
    %36 = vector.broadcast %35 : vector<1x256xf32> to vector<8x256xf32>
    %37 = arith.addf %34, %36 : vector<8x256xf32>
    %38 = vector.extract_strided_slice %37 {offsets = [0, 0], sizes = [8, 128], strides = [1, 1]} : vector<8x256xf32> to vector<8x128xf32>
    %39 = vector.extract_strided_slice %37 {offsets = [0, 128], sizes = [8, 128], strides = [1, 1]} : vector<8x256xf32> to vector<8x128xf32>
    %40 = arith.maximumf %38, %39 : vector<8x128xf32>
    %41 = arith.subf %38, %40 : vector<8x128xf32>
    %42 = math.exp %41 : vector<8x128xf32>
    %43 = arith.subf %39, %40 : vector<8x128xf32>
    %44 = math.exp %43 : vector<8x128xf32>
    %45 = arith.addf %42, %44 : vector<8x128xf32>
    %cst_29 = arith.constant 1.000000e+00 : f32
    %46 = vector.broadcast %cst_29 : f32 to vector<8x128xf32>
    %47 = arith.divf %46, %45 : vector<8x128xf32>
    %48 = tpu.iota {dimensions = array<i32: 1>} : vector<8x128xi32>
    %c32_i32 = arith.constant 32 : i32
    %49 = vector.broadcast %c32_i32 : i32 to vector<8x128xi32>
    %50 = arith.cmpi slt, %48, %49 : vector<8x128xi32>
    %cst_30 = arith.constant 0.000000e+00 : f32
    %51 = vector.broadcast %cst_30 : f32 to vector<8x128xf32>
    %52 = arith.mulf %42, %47 : vector<8x128xf32>
    %cst_31 = arith.constant -1.000000e+00 : f32
    %53 = vector.broadcast %cst_31 : f32 to vector<8x128xf32>
    %54 = arith.select %50, %52, %53 : vector<8x128xi1>, vector<8x128xf32>
    %cst_32 = arith.constant dense<0xFF800000> : vector<8xf32>
    %55 = vector.multi_reduction <maximumf>, %54, %cst_32 [1] : vector<8x128xf32> to vector<8xf32>
    %56 = vector.shape_cast %55 : vector<8xf32> to vector<8x1xf32>
    %57 = vector.broadcast %56 : vector<8x1xf32> to vector<8x128xf32>
    %58 = arith.cmpf oeq, %54, %57 : vector<8x128xf32>
    %c128_i32 = arith.constant 128 : i32
    %59 = vector.broadcast %c128_i32 : i32 to vector<8x128xi32>
    %60 = arith.select %58, %48, %59 : vector<8x128xi1>, vector<8x128xi32>
    %cst_33 = arith.constant dense<2147483647> : vector<8xi32>
    %61 = vector.multi_reduction <minsi>, %60, %cst_33 [1] : vector<8x128xi32> to vector<8xi32>
    %62 = vector.shape_cast %61 : vector<8xi32> to vector<8x1xi32>
    %63 = vector.broadcast %62 : vector<8x1xi32> to vector<8x128xi32>
    %64 = arith.cmpi eq, %48, %63 : vector<8x128xi32>
    %65 = arith.extui %64 : vector<8x128xi1> to vector<8x128xi32>
    %66 = arith.sitofp %65 : vector<8x128xi32> to vector<8x128xf32>
    %67 = arith.maximumf %51, %66 : vector<8x128xf32>
    %68 = arith.mulf %44, %47 : vector<8x128xf32>
    %cst_34 = arith.constant -1.000000e+00 : f32
    %69 = vector.broadcast %cst_34 : f32 to vector<8x128xf32>
    %70 = arith.select %50, %68, %69 : vector<8x128xi1>, vector<8x128xf32>
    %cst_35 = arith.constant dense<0xFF800000> : vector<8xf32>
    %71 = vector.multi_reduction <maximumf>, %70, %cst_35 [1] : vector<8x128xf32> to vector<8xf32>
    %72 = vector.shape_cast %71 : vector<8xf32> to vector<8x1xf32>
    %73 = vector.broadcast %72 : vector<8x1xf32> to vector<8x128xf32>
    %74 = arith.cmpf oeq, %70, %73 : vector<8x128xf32>
    %c128_i32_36 = arith.constant 128 : i32
    %75 = vector.broadcast %c128_i32_36 : i32 to vector<8x128xi32>
    %76 = arith.select %74, %48, %75 : vector<8x128xi1>, vector<8x128xi32>
    %cst_37 = arith.constant dense<2147483647> : vector<8xi32>
    %77 = vector.multi_reduction <minsi>, %76, %cst_37 [1] : vector<8x128xi32> to vector<8xi32>
    %78 = vector.shape_cast %77 : vector<8xi32> to vector<8x1xi32>
    %79 = vector.broadcast %78 : vector<8x1xi32> to vector<8x128xi32>
    %80 = arith.cmpi eq, %48, %79 : vector<8x128xi32>
    %81 = arith.extui %80 : vector<8x128xi1> to vector<8x128xi32>
    %82 = arith.sitofp %81 : vector<8x128xi32> to vector<8x128xf32>
    %83 = arith.maximumf %67, %82 : vector<8x128xf32>
    %84 = tpu.concatenate %37, %83 in 1 : vector<8x256xf32>, vector<8x128xf32> -> vector<8x384xf32>
    %c0_38 = arith.constant 0 : index
    %c0_39 = arith.constant 0 : index
    %85 = vector.load %arg12[%c0_38, %c0_39] : memref<8x384xf32, #tpu.memory_space<vmem>>, vector<8x384xf32>
    tpu.vector_store %arg12[%c0_38, %c0_39], %84 {strides = array<i32>} : memref<8x384xf32, #tpu.memory_space<vmem>>, vector<8x384xf32>,
    return
  }
  func.func @transform_0(%arg0: i32) -> (i32, i32) {
    %c0_i32 = arith.constant 0 : i32
    %c0_i32_0 = arith.constant 0 : i32
    return %arg0, %c0_i32 : i32, i32
  }
  func.func @transform_1(%arg0: i32) -> (i32, i32) {
    %c0_i32 = arith.constant 0 : i32
    %c0_i32_0 = arith.constant 0 : i32
    %c0_i32_1 = arith.constant 0 : i32
    return %c0_i32, %c0_i32_0 : i32, i32
  }
  func.func @transform_2(%arg0: i32) -> (i32, i32) {
    %c0_i32 = arith.constant 0 : i32
    %c0_i32_0 = arith.constant 0 : i32
    %c0_i32_1 = arith.constant 0 : i32
    return %c0_i32, %c0_i32_0 : i32, i32
  }
  func.func @transform_3(%arg0: i32) -> (i32, i32) {
    %c0_i32 = arith.constant 0 : i32
    %c0_i32_0 = arith.constant 0 : i32
    %c0_i32_1 = arith.constant 0 : i32
    return %c0_i32, %c0_i32_0 : i32, i32
  }
  func.func @transform_4(%arg0: i32) -> (i32, i32) {
    %c0_i32 = arith.constant 0 : i32
    %c0_i32_0 = arith.constant 0 : i32
    %c0_i32_1 = arith.constant 0 : i32
    return %c0_i32, %c0_i32_0 : i32, i32
  }
  func.func @transform_5(%arg0: i32) -> (i32, i32) {
    %c0_i32 = arith.constant 0 : i32
    %c0_i32_0 = arith.constant 0 : i32
    %c0_i32_1 = arith.constant 0 : i32
    return %c0_i32, %c0_i32_0 : i32, i32
  }
  func.func @transform_6(%arg0: i32) -> (i32, i32) {
    %c0_i32 = arith.constant 0 : i32
    %c0_i32_0 = arith.constant 0 : i32
    %c0_i32_1 = arith.constant 0 : i32
    return %c0_i32, %c0_i32_0 : i32, i32
  }
  func.func @transform_7(%arg0: i32) -> (i32, i32) {
    %c0_i32 = arith.constant 0 : i32
    %c0_i32_0 = arith.constant 0 : i32
    %c0_i32_1 = arith.constant 0 : i32
    return %c0_i32, %c0_i32_0 : i32, i32
  }
  func.func @transform_8(%arg0: i32) -> (i32, i32) {
    %c0_i32 = arith.constant 0 : i32
    %c0_i32_0 = arith.constant 0 : i32
    %c0_i32_1 = arith.constant 0 : i32
    return %c0_i32, %c0_i32_0 : i32, i32
  }
  func.func @transform_9(%arg0: i32) -> (i32, i32) {
    %c0_i32 = arith.constant 0 : i32
    %c0_i32_0 = arith.constant 0 : i32
    %c0_i32_1 = arith.constant 0 : i32
    return %c0_i32, %c0_i32_0 : i32, i32
  }
  func.func @transform_10(%arg0: i32) -> (i32, i32) {
    %c0_i32 = arith.constant 0 : i32
    %c0_i32_0 = arith.constant 0 : i32
    %c0_i32_1 = arith.constant 0 : i32
    return %c0_i32, %c0_i32_0 : i32, i32
  }
  func.func @transform_11(%arg0: i32) -> (i32, i32) {
    %c0_i32 = arith.constant 0 : i32
    %c0_i32_0 = arith.constant 0 : i32
    return %arg0, %c0_i32 : i32, i32
  }
}

</mosaic_0001>

<bundles_post_ra>
// kernel: tpu_custom_call.1
= control target key start
LH: loop header
LB: loop body
LE: loop exit
PB: predicated region body
PF: predicated region fallthrough
CT: control target
= control target key end

     0   :  { %16 = vsyncpa [#allocation3], 0  ;;  %s6169_s0 = inlined_call_operand.hbm [shape: bf16[8,64], index: 0, kind: input, shape index: {}]   ;;  %s6170_s1 = inlined_call_operand.hbm [shape: bf16[64,1024], index: 1, kind: input, shape index: {}]   ;;  %s6171_s2 = inlined_call_operand.hbm [shape: f32[1,1024], index: 2, kind: input, shape index: {}]   ;;  %s6172_s3 = inlined_call_operand.hbm [shape: bf16[1024,512], index: 3, kind: input, shape index: {}]   ;;  %s6173_s4 = inlined_call_operand.hbm [shape: f32[1,512], index: 4, kind: input, shape index: {}]   ;;  %s6174_s5 = inlined_call_operand.hbm [shape: bf16[512,256], index: 5, kind: input, shape index: {}]   ;;  %s6175_s6 = inlined_call_operand.vmem [shape: f32[1,256], index: 6, kind: input, shape index: {}]   ;;  %s6176_s7 = inlined_call_operand.hbm [shape: bf16[256,256], index: 7, kind: input, shape index: {}]   ;;  %s6177_s8 = inlined_call_operand.vmem [shape: f32[1,256], index: 8, kind: input, shape index: {}]   ;;  %s6178_s9 = inlined_call_operand.hbm [shape: bf16[256,256], index: 9, kind: input, shape index: {}]   ;;  %s6179_s10 = inlined_call_operand.vmem [shape: f32[1,256], index: 10, kind: input, shape index: {}]   ;;  %s6180_s11 = inlined_call_operand.hbm [shape: f32[8,384], index: 11, kind: output, shape index: {}]  }
   0x1   :  { %17 = vsyncpa [#allocation6], 0 }
   0x2   :  { %18 = vsyncpa [#allocation9], 0 }
   0x3   :  { %19 = vsyncpa [#allocation12], 0 }
   0x4   :  { %20 = vsyncpa [#allocation15], 0  ;;  %s37_s19 = sshll.u32 %s6170_s1, 4  ;;  %s38_s19 = int_to_ptr.hbm [resolvable:$true] %s37_s19 }
   0x5   :  { %21 = vsyncpa [#allocation4], 0  ;;  %s5904_s20 = smov [#allocation5]   ;;  %s61_s24 = sshll.u32 %s6172_s3, 4  ;;  %s62_s24 = int_to_ptr.hbm [resolvable:$true] %s61_s24 }
   0x6   :  { %s39_s21 = sshll.u32 %s5904_s20, 4  ;;  %s5905_s25 = smov 512   ;;  %s40_s21 = int_to_ptr.vmem [resolvable:$true] %s39_s21 }
   0x7   :  { %s5906_s26 = smov 32   ;;  %s5907_s27 = smov [#allocation8]  }
   0x8   :  { %45 = dma.hbm_to_vmem [thread:$0]  %s38_s19, 4096, %s40_s21, [#allocation6], %s5905_s25, %s5905_s25, %s5906_s26  }
   0x9   :  { %s63_s28 = sshll.u32 %s5907_s27, 4  ;;  %s5908_s29 = smov 256   ;;  %s64_s28 = int_to_ptr.vmem [resolvable:$true] %s63_s28 }
   0xa   :  { %s5909_s30 = smov 16   ;;  %s85_s13 = sshll.u32 %s6174_s5, 4  ;;  %s86_s13 = int_to_ptr.hbm [resolvable:$true] %s85_s13 }
   0xb   :  { %69 = dma.hbm_to_vmem [thread:$0]  %s62_s24, 32768, %s64_s28, [#allocation9], %s5908_s29, %s5908_s29, %s5909_s30  }
   0xc   :  { %s5910_s14 = smov [#allocation11]   ;;  %s27_s17 = sshll.u32 %s6169_s0, 4  ;;  %s28_s17 = int_to_ptr.hbm [resolvable:$true] %s27_s17 }
   0xd   :  { %s87_s15 = sshll.u32 %s5910_s14, 4  ;;  %s5911_s18 = smov 128   ;;  %s88_s15 = int_to_ptr.vmem [resolvable:$true] %s87_s15 }
   0xe   :  { %s5912_s19 = smov 8   ;;  %s5913_s20 = smov [#allocation2]  }
   0xf   :  { %93 = dma.hbm_to_vmem [thread:$0]  %s86_s13, 8192, %s88_s15, [#allocation12], %s5911_s18, %s5911_s18, %s5912_s19  }
  0x10   :  { %s29_s21 = sshll.u32 %s5913_s20, 4  ;;  %s51_s5 = sshll.u32 %s6171_s2, 4  ;;  %s30_s21 = int_to_ptr.vmem [resolvable:$true] %s29_s21  ;;  %s52_s5 = int_to_ptr.hbm [resolvable:$true] %s51_s5 }
  0x11   :  { %32 = dma.hbm_to_vmem [thread:$0]  %s28_s17, 64, %s30_s21, [#allocation3]  }
  0x12   :  { %s75_s0 = sshll.u32 %s6173_s4, 4  ;;  %s5914_s26 = smov [#allocation7]   ;;  %s76_s0 = int_to_ptr.hbm [resolvable:$true] %s75_s0 }
  0x13   :  { %s53_s27 = sshll.u32 %s5914_s26, 4  ;;  %s5915_s28 = smov [#allocation10]   ;;  %s54_s27 = int_to_ptr.vmem [resolvable:$true] %s53_s27 }
  0x14   :  { %56 = dma.hbm_to_vmem [thread:$0]  %s52_s5, 128, %s54_s27, [#allocation6]  }
  0x15   :  { %s77_s29 = sshll.u32 %s5915_s28, 4  ;;  %s100_s12 = sshll.u32 %s6176_s7, 4  ;;  %s78_s29 = int_to_ptr.vmem [resolvable:$true] %s77_s29  ;;  %s101_s12 = int_to_ptr.hbm [resolvable:$true] %s100_s12 }
  0x16   :  { %80 = dma.hbm_to_vmem [thread:$0]  %s76_s0, 64, %s78_s29, [#allocation9]  }
  0x17   :  { %s115_s14 = sshll.u32 %s6178_s9, 4  ;;  %s5916_s15 = smov [#allocation13]   ;;  %s116_s14 = int_to_ptr.hbm [resolvable:$true] %s115_s14 }
  0x18   :  { %s102_s4 = sshll.u32 %s5916_s15, 4  ;;  %s5917_s16 = smov [#allocation14]   ;;  %s103_s4 = int_to_ptr.vmem [resolvable:$true] %s102_s4 }
  0x19   :  { %108 = dma.hbm_to_vmem [thread:$0]  %s101_s12, 4096, %s103_s4, [#allocation12], %s5911_s18, %s5911_s18, %s5912_s19  }
  0x1a   :  { %s117_s3 = sshll.u32 %s5917_s16, 4  ;;  %s118_s3 = int_to_ptr.vmem [resolvable:$true] %s117_s3 }
  0x1b   :  { %123 = dma.hbm_to_vmem [thread:$0]  %s116_s14, 4096, %s118_s3, [#allocation15], %s5911_s18, %s5911_s18, %s5912_s19  }
  0x1c   :  { %5892 = dma.done.wait [#allocation3], 64  }
  0x1d   :  { %5893 = vsyncadd [#allocation3], 4294967232 }
  0x1e   :  { %5894 = dma.done.wait [#allocation6], 4224  }
  0x1f   :  { %5895 = vsyncadd [#allocation6], 4294963072 }
  0x20   :  { %5896 = dma.done.wait [#allocation9], 32832  }
  0x21   :  { %5897 = vsyncadd [#allocation9], 4294934464 }
  0x22   :  { %5898 = dma.done.wait [#allocation12], 12288  }
  0x23   :  { %5899 = vsyncadd [#allocation12], 4294955008 }
  0x24   :  { %5900 = dma.done.wait [#allocation15], 4096  }
  0x25   :  { %5901 = vsyncadd [#allocation15], 4294963200  ;;  %v3662_v0 = vld [vmem:[#allocation5 + $0xc0] sm:$0xf]  ;;  %v5262_v2 = vld [vmem:[#allocation5 + $0xc4] sm:$0xf] }
  0x26   :  { %v5266_v1 = vld [vmem:[#allocation5 + $0xdc] sm:$0xf0]  ;;  %v3664_v4 = vld [vmem:[#allocation5 + $0xe0] sm:$0xf0]  ;;  %v3670_v5 = vld [vmem:[#allocation5 + $0xc8] sm:$0xf] }
  0x27   :  { %v3663_v3 = vor.u32 %v5266_v1, %v3662_v0  ;;  %v5267_v6 = vld [vmem:[#allocation5 + $0xe4] sm:$0xf0]  ;;  %v3667_v7 = vor.u32 %v5262_v2, %v3664_v4  ;;  %v5263_v9 = vld [vmem:[#allocation5 + $0xcc] sm:$0xf]  ;;  %v3630_v11 = vld [vmem:[#allocation5 + $0x80] sm:$0xf] }
  0x28   :  { %v3671_v8 = vor.u32 %v5267_v6, %v3670_v5  ;;  %v3672_v10 = vld [vmem:[#allocation5 + $0xe8] sm:$0xf0]  ;;  %v5258_v13 = vld [vmem:[#allocation5 + $0x9c] sm:$0xf0]  ;;  %v5254_v14 = vld [vmem:[#allocation5 + $0x84] sm:$0xf] }
  0x29   :  { %378 = vmatpush.bf16.msra.mxu0 %v3663_v3  ;;  %v3675_v12 = vor.u32 %v5263_v9, %v3672_v10  ;;  %v3632_v15 = vld [vmem:[#allocation5 + $0xa0] sm:$0xf0]  ;;  %391 = vmatpush.bf16.msra.mxu1 %v3667_v7  ;;  %v3631_v16 = vor.u32 %v5258_v13, %v3630_v11  ;;  %v3638_v18 = vld [vmem:[#allocation5 + $0x88] sm:$0xf]  ;;  %v5255_v20 = vld [vmem:[#allocation5 + $0x8c] sm:$0xf] }
  0x2a   :  { %404 = vmatpush.bf16.msra.mxu2 %v3671_v8  ;;  %v3635_v17 = vor.u32 %v5254_v14, %v3632_v15  ;;  %v5259_v19 = vld [vmem:[#allocation5 + $0xa4] sm:$0xf0]  ;;  %v3640_v22 = vld [vmem:[#allocation5 + $0xa8] sm:$0xf0]  ;;  %v3598_v23 = vld [vmem:[#allocation5 + $0x40] sm:$0xf] }
  0x2b   :  { %417 = vmatpush.bf16.msra.mxu3 %v3675_v12  ;;  %v3639_v21 = vor.u32 %v5259_v19, %v3638_v18  ;;  %v5250_v24 = vld [vmem:[#allocation5 + $0x5c] sm:$0xf0]  ;;  %v3643_v25 = vor.u32 %v5255_v20, %v3640_v22  ;;  %v5246_v26 = vld [vmem:[#allocation5 + $0x44] sm:$0xf]  ;;  %v3606_v28 = vld [vmem:[#allocation5 + $0x48] sm:$0xf] }
  0x2c   :  { %v3600_v27 = vld [vmem:[#allocation5 + $0x60] sm:$0xf0]  ;;  %v3599_v29 = vor.u32 %v5250_v24, %v3598_v23  ;;  %v5251_v30 = vld [vmem:[#allocation5 + $0x64] sm:$0xf0]  ;;  %v5247_v31 = vld [vmem:[#allocation5 + $0x4c] sm:$0xf] }
  0x2d   :  { %379 = vmatpush.bf16.msra.mxu0 %v3631_v16  ;;  %v3608_v32 = vld [vmem:[#allocation5 + $0x68] sm:$0xf0]  ;;  %392 = vmatpush.bf16.msra.mxu1 %v3635_v17  ;;  %v3603_v33 = vor.u32 %v5246_v26, %v3600_v27  ;;  %v3607_v34 = vor.u32 %v5251_v30, %v3606_v28  ;;  %v3566_v35 = vld [vmem:[#allocation5] sm:$0xf]  ;;  %v5238_v37 = vld [vmem:[#allocation5 + $0x4] sm:$0xf] }
  0x2e   :  { %405 = vmatpush.bf16.msra.mxu2 %v3639_v21  ;;  %v5242_v36 = vld [vmem:[#allocation5 + $0x1c] sm:$0xf0]  ;;  %v3611_v38 = vor.u32 %v5247_v31, %v3608_v32  ;;  %v3568_v39 = vld [vmem:[#allocation5 + $0x20] sm:$0xf0]  ;;  %v3574_v40 = vld [vmem:[#allocation5 + $0x8] sm:$0xf] }
  0x2f   :  { %418 = vmatpush.bf16.msra.mxu3 %v3643_v25  ;;  %v5243_v41 = vld [vmem:[#allocation5 + $0x24] sm:$0xf0]  ;;  %v5239_v42 = vld [vmem:[#allocation5 + $0xc] sm:$0xf]  ;;  %v3567_v44 = vor.u32 %v5242_v36, %v3566_v35  ;;  %v3678_v45 = vld [vmem:[#allocation5 + $0xd0] sm:$0xf]  ;;  %v3571_v48 = vor.u32 %v5238_v37, %v3568_v39 }
  0x30   :  { %v3576_v43 = vld [vmem:[#allocation5 + $0x28] sm:$0xf0]  ;;  %v5268_v46 = vld [vmem:[#allocation5 + $0xec] sm:$0xf0]  ;;  %v5264_v47 = vld [vmem:[#allocation5 + $0xd4] sm:$0xf]  ;;  %v3575_v49 = vor.u32 %v5243_v41, %v3574_v40 }
  0x31   :  { %380 = vmatpush.bf16.msra.mxu0 %v3599_v29  ;;  %393 = vmatpush.bf16.msra.mxu1 %v3603_v33  ;;  %vm370_vm0 = vcmask 523264   ;;  %v3680_v50 = vld [vmem:[#allocation5 + $0xf0] sm:$0xf0]  ;;  %v3579_v51 = vor.u32 %v5239_v42, %v3576_v43  ;;  %v3679_v52 = vor.u32 %v5268_v46, %v3678_v45  ;;  %v3686_v53 = vld [vmem:[#allocation5 + $0xd8] sm:$0xf]  ;;  %s3550_s22 = sshll.u32 %s6180_s11, 4  ;;  %s3551_s22 = int_to_ptr.hbm [resolvable:$true] %s3550_s22 }
  0x32   :  { %406 = vmatpush.bf16.msra.mxu2 %v3607_v34  ;;  %v5269_v54 = vld [vmem:[#allocation5 + $0xf4] sm:$0xf0]  ;;  %v5265_v55 = vld [vmem:[#allocation5 + $0xdc] sm:$0xf]  ;;  %v3683_v56 = vor.u32 %v5264_v47, %v3680_v50  ;;  %v3646_v58 = vld [vmem:[#allocation5 + $0x90] sm:$0xf] }
  0x33   :  { %419 = vmatpush.bf16.msra.mxu3 %v3611_v38  ;;  %v3688_v57 = vld [vmem:[#allocation5 + $0xf8] sm:$0xf0]  ;;  %v5260_v59 = vld [vmem:[#allocation5 + $0xac] sm:$0xf0]  ;;  %v5256_v61 = vld [vmem:[#allocation5 + $0x94] sm:$0xf]  ;;  %v3687_v63 = vor.u32 %v5269_v54, %v3686_v53 }
  0x34   :  { %v6013_v60 = vld [vmem:[#allocation2] sm:$0xf]  ;;  %v3648_v62 = vld [vmem:[#allocation5 + $0xb0] sm:$0xf0]  ;;  %v3691_v0 = vor.u32 %v5265_v55, %v3688_v57  ;;  %v3647_v1 = vor.u32 %v5260_v59, %v3646_v58  ;;  %v3654_v2 = vld [vmem:[#allocation5 + $0x98] sm:$0xf] }
  0x35   :  { %381 = vmatpush.bf16.msra.mxu0 %v3567_v44  ;;  %394 = vmatpush.bf16.msra.mxu1 %v3571_v48  ;;  %v5261_v3 = vld [vmem:[#allocation5 + $0xb4] sm:$0xf0]  ;;  %v5257_v4 = vld [vmem:[#allocation5 + $0x9c] sm:$0xf]  ;;  %v3651_v5 = vor.u32 %v5256_v61, %v3648_v62  ;;  %v3614_v7 = vld [vmem:[#allocation5 + $0x50] sm:$0xf] }
  0x36   :  { %407 = vmatpush.bf16.msra.mxu2 %v3575_v49  ;;  %v3656_v6 = vld [vmem:[#allocation5 + $0xb8] sm:$0xf0]  ;;  %v5252_v8 = vld [vmem:[#allocation5 + $0x6c] sm:$0xf0]  ;;  %v5248_v9 = vld [vmem:[#allocation5 + $0x54] sm:$0xf]  ;;  %v3655_v11 = vor.u32 %v5261_v3, %v3654_v2 }
  0x37   :  { %420 = vmatpush.bf16.msra.mxu3 %v3579_v51  ;;  %v3616_v10 = vld [vmem:[#allocation5 + $0x70] sm:$0xf0]  ;;  %v3622_v12 = vld [vmem:[#allocation5 + $0x58] sm:$0xf]  ;;  %v3659_v13 = vor.u32 %v5257_v4, %v3656_v6  ;;  %v3615_v14 = vor.u32 %v5252_v8, %v3614_v7  ;;  %v5249_v16 = vld [vmem:[#allocation5 + $0x5c] sm:$0xf] }
  0x38   :  { %3692 = vmatmul.msk.bf16.vlgmr.msra.gmra.mxu0 %vm370_vm0, %v6013_v60  ;;  %3693 = vmatmul.msk.bf16.vlgmr.msra.gmra.mxu1 %vm370_vm0, %v6013_v60  ;;  %v5253_v15 = vld [vmem:[#allocation5 + $0x74] sm:$0xf0]  ;;  %v3624_v17 = vld [vmem:[#allocation5 + $0x78] sm:$0xf0]  ;;  %v3619_v18 = vor.u32 %v5248_v9, %v3616_v10  ;;  %v3582_v19 = vld [vmem:[#allocation5 + $0x10] sm:$0xf] }
  0x39   :  { %430 = vmatpush.bf16.msrb.mxu0 %v3679_v52  ;;  %443 = vmatpush.bf16.msrb.mxu1 %v3683_v56  ;;  %v5244_v20 = vld [vmem:[#allocation5 + $0x2c] sm:$0xf0]  ;;  %v5240_v21 = vld [vmem:[#allocation5 + $0x14] sm:$0xf]  ;;  %v3814_v23 = vld [vmem:[#allocation8 + $0xe0] sm:$0xf]  ;;  %v3623_v25 = vor.u32 %v5253_v15, %v3622_v12  ;;  %v3627_v28 = vor.u32 %v5249_v16, %v3624_v17 }
  0x3a   :  { %3694 = vmatmul.msk.bf16.vlgmr.msra.gmra.mxu2 %vm370_vm0, %v6013_v60  ;;  %3695 = vmatmul.msk.bf16.vlgmr.msra.gmra.mxu3 %vm370_vm0, %v6013_v60  ;;  %v3584_v22 = vld [vmem:[#allocation5 + $0x30] sm:$0xf0]  ;;  %v5300_v24 = vld [vmem:[#allocation8 + $0xec] sm:$0xf0]  ;;  %v3942_v26 = vld [vmem:[#allocation8 + $0x1e0] sm:$0xf]  ;;  %v3583_v29 = vor.u32 %v5244_v20, %v3582_v19 }
  0x3b   :  { %456 = vmatpush.bf16.msrb.mxu2 %v3687_v63  ;;  %469 = vmatpush.bf16.msrb.mxu3 %v3691_v0  ;;  %v5332_v27 = vld [vmem:[#allocation8 + $0x1ec] sm:$0xf0]  ;;  %v5241_v32 = vld [vmem:[#allocation5 + $0x1c] sm:$0xf]  ;;  %v3587_v33 = vor.u32 %v5240_v21, %v3584_v22  ;;  %v3815_v35 = vor.u32 %v5300_v24, %v3814_v23  ;;  %v4070_v36 = vld [vmem:[#allocation8 + $0x2e0] sm:$0xf] }
  0x3c   :  { %v3590_v30 = vld [vmem:[#allocation5 + $0x18] sm:$0xf]  ;;  %v3592_v34 = vld [vmem:[#allocation5 + $0x38] sm:$0xf0]  ;;  %v3943_v38 = vor.u32 %v5332_v27, %v3942_v26  ;;  %v4198_v39 = vld [vmem:[#allocation8 + $0x3e0] sm:$0xf] }
  0x3d   :  { %431 = vmatpush.bf16.msrb.mxu0 %v3647_v1  ;;  %444 = vmatpush.bf16.msrb.mxu1 %v3651_v5  ;;  %v5245_v31 = vld [vmem:[#allocation5 + $0x34] sm:$0xf0]  ;;  %v3595_v42 = vor.u32 %v5241_v32, %v3592_v34  ;;  %v3798_v43 = vld [vmem:[#allocation8 + $0xc0] sm:$0xf] }
  0x3e   :  { %v5364_v37 = vld [vmem:[#allocation8 + $0x2ec] sm:$0xf0]  ;;  %v3591_v41 = vor.u32 %v5245_v31, %v3590_v30  ;;  %v3926_v45 = vld [vmem:[#allocation8 + $0x1c0] sm:$0xf] }
  0x3f   :  { %457 = vmatpush.bf16.msrb.mxu2 %v3655_v11  ;;  %470 = vmatpush.bf16.msrb.mxu3 %v3659_v13  ;;  %v5396_v40 = vld [vmem:[#allocation8 + $0x3ec] sm:$0xf0]  ;;  %v4071_v46 = vor.u32 %v5364_v37, %v4070_v36  ;;  %v4054_v49 = vld [vmem:[#allocation8 + $0x2c0] sm:$0xf] }
  0x40   :  { %v5296_v44 = vld [vmem:[#allocation8 + $0xcc] sm:$0xf0]  ;;  %v4199_v48 = vor.u32 %v5396_v40, %v4198_v39  ;;  %v4182_v51 = vld [vmem:[#allocation8 + $0x3c0] sm:$0xf] }
  0x41   :  { %432 = vmatpush.bf16.msrb.mxu0 %v3615_v14  ;;  %445 = vmatpush.bf16.msrb.mxu1 %v3619_v18  ;;  %v5328_v47 = vld [vmem:[#allocation8 + $0x1cc] sm:$0xf0]  ;;  %v3799_v53 = vor.u32 %v5296_v44, %v3798_v43  ;;  %v3782_v55 = vld [vmem:[#allocation8 + $0xa0] sm:$0xf] }
  0x42   :  { %v5360_v50 = vld [vmem:[#allocation8 + $0x2cc] sm:$0xf0]  ;;  %v3927_v54 = vor.u32 %v5328_v47, %v3926_v45  ;;  %v3910_v57 = vld [vmem:[#allocation8 + $0x1a0] sm:$0xf] }
  0x43   :  { %458 = vmatpush.bf16.msrb.mxu2 %v3623_v25  ;;  %471 = vmatpush.bf16.msrb.mxu3 %v3627_v28  ;;  %v5392_v52 = vld [vmem:[#allocation8 + $0x3cc] sm:$0xf0]  ;;  %v4055_v58 = vor.u32 %v5360_v50, %v4054_v49  ;;  %v4038_v62 = vld [vmem:[#allocation8 + $0x2a0] sm:$0xf] }
  0x44   :  { %v5292_v56 = vld [vmem:[#allocation8 + $0xac] sm:$0xf0]  ;;  %v4183_v61 = vor.u32 %v5392_v52, %v4182_v51  ;;  %v4166_v0 = vld [vmem:[#allocation8 + $0x3a0] sm:$0xf] }
  0x45   :  { %433 = vmatpush.bf16.msrb.mxu0 %v3583_v29  ;;  %446 = vmatpush.bf16.msrb.mxu1 %v3587_v33  ;;  %v5324_v59 = vld [vmem:[#allocation8 + $0x1ac] sm:$0xf0]  ;;  %v3783_v2 = vor.u32 %v5292_v56, %v3782_v55  ;;  %v3766_v4 = vld [vmem:[#allocation8 + $0x80] sm:$0xf] }
  0x46   :  { %v5356_v63 = vld [vmem:[#allocation8 + $0x2ac] sm:$0xf0]  ;;  %v3911_v3 = vor.u32 %v5324_v59, %v3910_v57  ;;  %v3894_v6 = vld [vmem:[#allocation8 + $0x180] sm:$0xf] }
  0x47   :  { %459 = vmatpush.bf16.msrb.mxu2 %v3591_v41  ;;  %472 = vmatpush.bf16.msrb.mxu3 %v3595_v42  ;;  %v5388_v1 = vld [vmem:[#allocation8 + $0x3ac] sm:$0xf0]  ;;  %v4039_v7 = vor.u32 %v5356_v63, %v4038_v62  ;;  %v4022_v10 = vld [vmem:[#allocation8 + $0x280] sm:$0xf] }
  0x48   :  { %3696 = vmatmul.msk.bf16.vlgmr.msrb.gmra.mxu0 %vm370_vm0, %v6013_v60  ;;  %3697 = vmatmul.msk.bf16.vlgmr.msrb.gmra.mxu1 %vm370_vm0, %v6013_v60  ;;  %v5288_v5 = vld [vmem:[#allocation8 + $0x8c] sm:$0xf0]  ;;  %v4167_v9 = vor.u32 %v5388_v1, %v4166_v0  ;;  %v4150_v12 = vld [vmem:[#allocation8 + $0x380] sm:$0xf] }
  0x49   :  { %2040 = vmatpush.bf16.msra.mxu0 %v3815_v35  ;;  %2053 = vmatpush.bf16.msra.mxu1 %v3943_v38  ;;  %v5320_v8 = vld [vmem:[#allocation8 + $0x18c] sm:$0xf0]  ;;  %v3767_v14 = vor.u32 %v5288_v5, %v3766_v4  ;;  %v3750_v15 = vld [vmem:[#allocation8 + $0x60] sm:$0xf] }
  0x4a   :  { %3698 = vmatmul.msk.bf16.vlgmr.msrb.gmra.mxu2 %vm370_vm0, %v6013_v60  ;;  %3699 = vmatmul.msk.bf16.vlgmr.msrb.gmra.mxu3 %vm370_vm0, %v6013_v60  ;;  %v5352_v11 = vld [vmem:[#allocation8 + $0x28c] sm:$0xf0]  ;;  %v3895_v60 = vor.u32 %v5320_v8, %v3894_v6  ;;  %v3878_v17 = vld [vmem:[#allocation8 + $0x160] sm:$0xf] }
  0x4b   :  { %2066 = vmatpush.bf16.msra.mxu2 %v4071_v46  ;;  %2079 = vmatpush.bf16.msra.mxu3 %v4199_v48  ;;  %v5384_v13 = vld [vmem:[#allocation8 + $0x38c] sm:$0xf0]  ;;  %v4023_v18 = vor.u32 %v5352_v11, %v4022_v10  ;;  %v4006_v21 = vld [vmem:[#allocation8 + $0x260] sm:$0xf] }
  0x4c   :  { %v5284_v16 = vld [vmem:[#allocation8 + $0x6c] sm:$0xf0]  ;;  %v4151_v20 = vor.u32 %v5384_v13, %v4150_v12  ;;  %v4134_v23 = vld [vmem:[#allocation8 + $0x360] sm:$0xf] }
  0x4d   :  { %2041 = vmatpush.bf16.msra.mxu0 %v3799_v53  ;;  %2054 = vmatpush.bf16.msra.mxu1 %v3927_v54  ;;  %v5316_v19 = vld [vmem:[#allocation8 + $0x16c] sm:$0xf0]  ;;  %v3751_v25 = vor.u32 %v5284_v16, %v3750_v15  ;;  %v3734_v27 = vld [vmem:[#allocation8 + $0x40] sm:$0xf] }
  0x4e   :  { %v5348_v22 = vld [vmem:[#allocation8 + $0x26c] sm:$0xf0]  ;;  %v3879_v26 = vor.u32 %v5316_v19, %v3878_v17  ;;  %v3862_v29 = vld [vmem:[#allocation8 + $0x140] sm:$0xf] }
  0x4f   :  { %2067 = vmatpush.bf16.msra.mxu2 %v4055_v58  ;;  %2080 = vmatpush.bf16.msra.mxu3 %v4183_v61  ;;  %v5380_v24 = vld [vmem:[#allocation8 + $0x36c] sm:$0xf0]  ;;  %v4007_v30 = vor.u32 %v5348_v22, %v4006_v21  ;;  %v3990_v33 = vld [vmem:[#allocation8 + $0x240] sm:$0xf] }
  0x50   :  { %v5280_v28 = vld [vmem:[#allocation8 + $0x4c] sm:$0xf0]  ;;  %v4135_v32 = vor.u32 %v5380_v24, %v4134_v23  ;;  %v4118_v35 = vld [vmem:[#allocation8 + $0x340] sm:$0xf] }
  0x51   :  { %2042 = vmatpush.bf16.msra.mxu0 %v3783_v2  ;;  %2055 = vmatpush.bf16.msra.mxu1 %v3911_v3  ;;  %v5312_v31 = vld [vmem:[#allocation8 + $0x14c] sm:$0xf0]  ;;  %v3735_v37 = vor.u32 %v5280_v28, %v3734_v27  ;;  %v3718_v39 = vld [vmem:[#allocation8 + $0x20] sm:$0xf] }
  0x52   :  { %v5344_v34 = vld [vmem:[#allocation8 + $0x24c] sm:$0xf0]  ;;  %v3863_v38 = vor.u32 %v5312_v31, %v3862_v29  ;;  %v3846_v41 = vld [vmem:[#allocation8 + $0x120] sm:$0xf] }
  0x53   :  { %2068 = vmatpush.bf16.msra.mxu2 %v4039_v7  ;;  %2081 = vmatpush.bf16.msra.mxu3 %v4167_v9  ;;  %v5376_v36 = vld [vmem:[#allocation8 + $0x34c] sm:$0xf0]  ;;  %v3991_v42 = vor.u32 %v5344_v34, %v3990_v33  ;;  %v3974_v45 = vld [vmem:[#allocation8 + $0x220] sm:$0xf] }
  0x54   :  { %v5276_v40 = vld [vmem:[#allocation8 + $0x2c] sm:$0xf0]  ;;  %v4119_v44 = vor.u32 %v5376_v36, %v4118_v35  ;;  %v4102_v47 = vld [vmem:[#allocation8 + $0x320] sm:$0xf] }
  0x55   :  { %2043 = vmatpush.bf16.msra.mxu0 %v3767_v14  ;;  %2056 = vmatpush.bf16.msra.mxu1 %v3895_v60  ;;  %v5308_v43 = vld [vmem:[#allocation8 + $0x12c] sm:$0xf0]  ;;  %v3719_v49 = vor.u32 %v5276_v40, %v3718_v39  ;;  %v3702_v50 = vld [vmem:[#allocation8] sm:$0xf] }
  0x56   :  { %v5340_v46 = vld [vmem:[#allocation8 + $0x22c] sm:$0xf0]  ;;  %v3847_v52 = vor.u32 %v5308_v43, %v3846_v41  ;;  %v3830_v53 = vld [vmem:[#allocation8 + $0x100] sm:$0xf] }
  0x57   :  { %2069 = vmatpush.bf16.msra.mxu2 %v4023_v18  ;;  %2082 = vmatpush.bf16.msra.mxu3 %v4151_v20  ;;  %v5372_v48 = vld [vmem:[#allocation8 + $0x32c] sm:$0xf0]  ;;  %v4326_v55 = vld [vmem:[#allocation8 + $0x4e0] sm:$0xf]  ;;  %v3975_v56 = vor.u32 %v5340_v46, %v3974_v45 }
  0x58   :  { %v5272_v51 = vld [vmem:[#allocation8 + $0xc] sm:$0xf0]  ;;  %v4454_v58 = vld [vmem:[#allocation8 + $0x5e0] sm:$0xf]  ;;  %v4103_v61 = vor.u32 %v5372_v48, %v4102_v47 }
  0x59   :  { %2044 = vmatpush.bf16.msra.mxu0 %v3751_v25  ;;  %2057 = vmatpush.bf16.msra.mxu1 %v3879_v26  ;;  %v5304_v54 = vld [vmem:[#allocation8 + $0x10c] sm:$0xf0]  ;;  %v3958_v62 = vld [vmem:[#allocation8 + $0x200] sm:$0xf]  ;;  %v3703_v1 = vor.u32 %v5272_v51, %v3702_v50 }
  0x5a   :  { %v5428_v57 = vld [vmem:[#allocation8 + $0x4ec] sm:$0xf0]  ;;  %v4086_v0 = vld [vmem:[#allocation8 + $0x300] sm:$0xf]  ;;  %v3831_v5 = vor.u32 %v5304_v54, %v3830_v53 }
  0x5b   :  { %2070 = vmatpush.bf16.msra.mxu2 %v4007_v30  ;;  %2083 = vmatpush.bf16.msra.mxu3 %v4135_v32  ;;  %v5460_v59 = vld [vmem:[#allocation8 + $0x5ec] sm:$0xf0]  ;;  %v4582_v3 = vld [vmem:[#allocation8 + $0x6e0] sm:$0xf]  ;;  %v4327_v6 = vor.u32 %v5428_v57, %v4326_v55 }
  0x5c   :  { %v5336_v63 = vld [vmem:[#allocation8 + $0x20c] sm:$0xf0]  ;;  %v4710_v7 = vld [vmem:[#allocation8 + $0x7e0] sm:$0xf]  ;;  %v4455_v9 = vor.u32 %v5460_v59, %v4454_v58 }
  0x5d   :  { %2045 = vmatpush.bf16.msra.mxu0 %v3735_v37  ;;  %2058 = vmatpush.bf16.msra.mxu1 %v3863_v38  ;;  %v5368_v2 = vld [vmem:[#allocation8 + $0x30c] sm:$0xf0]  ;;  %v4310_v10 = vld [vmem:[#allocation8 + $0x4c0] sm:$0xf]  ;;  %v3959_v12 = vor.u32 %v5336_v63, %v3958_v62 }
  0x5e   :  { %v5492_v4 = vld [vmem:[#allocation8 + $0x6ec] sm:$0xf0]  ;;  %v4438_v13 = vld [vmem:[#allocation8 + $0x5c0] sm:$0xf]  ;;  %v4087_v60 = vor.u32 %v5368_v2, %v4086_v0 }
  0x5f   :  { %2071 = vmatpush.bf16.msra.mxu2 %v3991_v42  ;;  %2084 = vmatpush.bf16.msra.mxu3 %v4119_v44  ;;  %v5524_v8 = vld [vmem:[#allocation8 + $0x7ec] sm:$0xf0]  ;;  %v4583_v15 = vor.u32 %v5492_v4, %v4582_v3  ;;  %v4566_v17 = vld [vmem:[#allocation8 + $0x6c0] sm:$0xf] }
  0x60   :  { %v5424_v11 = vld [vmem:[#allocation8 + $0x4cc] sm:$0xf0]  ;;  %v4711_v16 = vor.u32 %v5524_v8, %v4710_v7  ;;  %v4694_v20 = vld [vmem:[#allocation8 + $0x7c0] sm:$0xf] }
  0x61   :  { %2046 = vmatpush.bf16.msra.mxu0 %v3719_v49  ;;  %2059 = vmatpush.bf16.msra.mxu1 %v3847_v52  ;;  %v5456_v14 = vld [vmem:[#allocation8 + $0x5cc] sm:$0xf0]  ;;  %v4311_v19 = vor.u32 %v5424_v11, %v4310_v10  ;;  %v4294_v23 = vld [vmem:[#allocation8 + $0x4a0] sm:$0xf] }
  0x62   :  { %v5488_v18 = vld [vmem:[#allocation8 + $0x6cc] sm:$0xf0]  ;;  %v4439_v22 = vor.u32 %v5456_v14, %v4438_v13  ;;  %v4422_v25 = vld [vmem:[#allocation8 + $0x5a0] sm:$0xf] }
  0x63   :  { %2072 = vmatpush.bf16.msra.mxu2 %v3975_v56  ;;  %2085 = vmatpush.bf16.msra.mxu3 %v4103_v61  ;;  %v5520_v21 = vld [vmem:[#allocation8 + $0x7cc] sm:$0xf0]  ;;  %v4567_v27 = vor.u32 %v5488_v18, %v4566_v17  ;;  %v4550_v29 = vld [vmem:[#allocation8 + $0x6a0] sm:$0xf] }
  0x64   :  { %v5420_v24 = vld [vmem:[#allocation8 + $0x4ac] sm:$0xf0]  ;;  %v4695_v28 = vor.u32 %v5520_v21, %v4694_v20  ;;  %v4678_v32 = vld [vmem:[#allocation8 + $0x7a0] sm:$0xf] }
  0x65   :  { %2047 = vmatpush.bf16.msra.mxu0 %v3703_v1  ;;  %2060 = vmatpush.bf16.msra.mxu1 %v3831_v5  ;;  %v5452_v26 = vld [vmem:[#allocation8 + $0x5ac] sm:$0xf0]  ;;  %v4295_v31 = vor.u32 %v5420_v24, %v4294_v23  ;;  %v4278_v35 = vld [vmem:[#allocation8 + $0x480] sm:$0xf] }
  0x66   :  { %v5484_v30 = vld [vmem:[#allocation8 + $0x6ac] sm:$0xf0]  ;;  %v4423_v34 = vor.u32 %v5452_v26, %v4422_v25  ;;  %v4406_v37 = vld [vmem:[#allocation8 + $0x580] sm:$0xf] }
  0x67   :  { %2073 = vmatpush.bf16.msra.mxu2 %v3959_v12  ;;  %2086 = vmatpush.bf16.msra.mxu3 %v4087_v60  ;;  %v5516_v33 = vld [vmem:[#allocation8 + $0x7ac] sm:$0xf0]  ;;  %v4551_v39 = vor.u32 %v5484_v30, %v4550_v29  ;;  %v4534_v41 = vld [vmem:[#allocation8 + $0x680] sm:$0xf] }
  0x68   :  { %v5416_v36 = vld [vmem:[#allocation8 + $0x48c] sm:$0xf0]  ;;  %v4679_v40 = vor.u32 %v5516_v33, %v4678_v32  ;;  %v4662_v44 = vld [vmem:[#allocation8 + $0x780] sm:$0xf]  ;;  %v6031_v33 = vld [vmem:[#allocation7] sm:$0xff] }
  0x69   :  { %2092 = vmatpush.bf16.msrb.mxu0 %v4327_v6  ;;  %2105 = vmatpush.bf16.msrb.mxu1 %v4455_v9  ;;  %v5448_v38 = vld [vmem:[#allocation8 + $0x58c] sm:$0xf0]  ;;  %v4279_v43 = vor.u32 %v5416_v36, %v4278_v35  ;;  %v4262_v47 = vld [vmem:[#allocation8 + $0x460] sm:$0xf]  ;;  %v195_v35 = vperm.slane %v6031_v33, 1 }
  0x6a   :  { %v5480_v42 = vld [vmem:[#allocation8 + $0x68c] sm:$0xf0]  ;;  %v4407_v46 = vor.u32 %v5448_v38, %v4406_v37  ;;  %v4390_v49 = vld [vmem:[#allocation8 + $0x560] sm:$0xf] }
  0x6b   :  { %2118 = vmatpush.bf16.msrb.mxu2 %v4583_v15  ;;  %2131 = vmatpush.bf16.msrb.mxu3 %v4711_v16  ;;  %v5512_v45 = vld [vmem:[#allocation8 + $0x78c] sm:$0xf0]  ;;  %v4535_v51 = vor.u32 %v5480_v42, %v4534_v41  ;;  %v4246_v55 = vld [vmem:[#allocation8 + $0x440] sm:$0xf]  ;;  %v5330_v42 = vld [vmem:[#allocation8 + $0x1e4] sm:$0xf] }
  0x6c   :  { %v5412_v48 = vld [vmem:[#allocation8 + $0x46c] sm:$0xf0]  ;;  %v4663_v52 = vor.u32 %v5512_v45, %v4662_v44  ;;  %v4374_v57 = vld [vmem:[#allocation8 + $0x540] sm:$0xf] }
  0x6d   :  { %2093 = vmatpush.bf16.msrb.mxu0 %v4311_v19  ;;  %2106 = vmatpush.bf16.msrb.mxu1 %v4439_v22  ;;  %v5444_v50 = vld [vmem:[#allocation8 + $0x56c] sm:$0xf0]  ;;  %v4263_v53 = vor.u32 %v5412_v48, %v4262_v47  ;;  %v4518_v62 = vld [vmem:[#allocation8 + $0x660] sm:$0xf] }
  0x6e   :  { %v4391_v54 = vor.u32 %v5444_v50, %v4390_v49  ;;  %v5408_v56 = vld [vmem:[#allocation8 + $0x44c] sm:$0xf0]  ;;  %v4646_v0 = vld [vmem:[#allocation8 + $0x760] sm:$0xf]  ;;  %v197_v49 = vperm.slane %v6031_v33, 3 }
  0x6f   :  { %2119 = vmatpush.bf16.msrb.mxu2 %v4567_v27  ;;  %2132 = vmatpush.bf16.msrb.mxu3 %v4695_v28  ;;  %v5440_v58 = vld [vmem:[#allocation8 + $0x54c] sm:$0xf0]  ;;  %v4247_v59 = vor.u32 %v5408_v56, %v4246_v55  ;;  %v4230_v4 = vld [vmem:[#allocation8 + $0x420] sm:$0xf]  ;;  %v3928_v55 = vld [vmem:[#allocation8 + $0x1d0] sm:$0xf0] }
  0x70   :  { %v4375_v61 = vor.u32 %v5440_v58, %v4374_v57  ;;  %v5476_v63 = vld [vmem:[#allocation8 + $0x66c] sm:$0xf0]  ;;  %v4358_v7 = vld [vmem:[#allocation8 + $0x520] sm:$0xf] }
  0x71   :  { %2094 = vmatpush.bf16.msrb.mxu0 %v4295_v31  ;;  %2107 = vmatpush.bf16.msrb.mxu1 %v4423_v34  ;;  %v4519_v1 = vor.u32 %v5476_v63, %v4518_v62  ;;  %v5508_v2 = vld [vmem:[#allocation8 + $0x76c] sm:$0xf0]  ;;  %v4502_v10 = vld [vmem:[#allocation8 + $0x640] sm:$0xf]  ;;  %v194_v34 = vperm.slane %v6031_v33, 0 }
  0x72   :  { %v4647_v3 = vor.u32 %v5508_v2, %v4646_v0  ;;  %v5404_v5 = vld [vmem:[#allocation8 + $0x42c] sm:$0xf0]  ;;  %v4630_v12 = vld [vmem:[#allocation8 + $0x740] sm:$0xf]  ;;  %v5362_v62 = vld [vmem:[#allocation8 + $0x2e4] sm:$0xf] }
  0x73   :  { %2120 = vmatpush.bf16.msrb.mxu2 %v4551_v39  ;;  %2133 = vmatpush.bf16.msrb.mxu3 %v4679_v40  ;;  %v4231_v6 = vor.u32 %v5404_v5, %v4230_v4  ;;  %v5436_v8 = vld [vmem:[#allocation8 + $0x52c] sm:$0xf0]  ;;  %v4214_v15 = vld [vmem:[#allocation8 + $0x400] sm:$0xf]  ;;  %v5298_v39 = vld [vmem:[#allocation8 + $0xe4] sm:$0xf] }
  0x74   :  { %v4359_v9 = vor.u32 %v5436_v8, %v4358_v7  ;;  %v5472_v11 = vld [vmem:[#allocation8 + $0x64c] sm:$0xf0]  ;;  %v4342_v17 = vld [vmem:[#allocation8 + $0x500] sm:$0xf]  ;;  %v3816_v40 = vld [vmem:[#allocation8 + $0xf0] sm:$0xf0] }
  0x75   :  { %2095 = vmatpush.bf16.msrb.mxu0 %v4279_v43  ;;  %2108 = vmatpush.bf16.msrb.mxu1 %v4407_v46  ;;  %v4503_v13 = vor.u32 %v5472_v11, %v4502_v10  ;;  %v5504_v14 = vld [vmem:[#allocation8 + $0x74c] sm:$0xf0]  ;;  %v4486_v21 = vld [vmem:[#allocation8 + $0x620] sm:$0xf]  ;;  %v3944_v43 = vld [vmem:[#allocation8 + $0x1f0] sm:$0xf0]  ;;  %v3819_v47 = vor.u32 %v5298_v39, %v3816_v40 }
  0x76   :  { %v4631_v60 = vor.u32 %v5504_v14, %v4630_v12  ;;  %v5400_v16 = vld [vmem:[#allocation8 + $0x40c] sm:$0xf0]  ;;  %v4614_v24 = vld [vmem:[#allocation8 + $0x720] sm:$0xf]  ;;  %v196_v46 = vperm.slane %v6031_v33, 2  ;;  %v3947_v50 = vor.u32 %v5330_v42, %v3944_v43  ;;  %v198_v12 = vperm.slane %v6031_v33, 4 }
  0x77   :  { %2121 = vmatpush.bf16.msrb.mxu2 %v4535_v51  ;;  %2134 = vmatpush.bf16.msrb.mxu3 %v4663_v52  ;;  %v4215_v18 = vor.u32 %v5400_v16, %v4214_v15  ;;  %v5432_v19 = vld [vmem:[#allocation8 + $0x50c] sm:$0xf0]  ;;  %v4470_v27 = vld [vmem:[#allocation8 + $0x600] sm:$0xf]  ;;  %v5294_v51 = vld [vmem:[#allocation8 + $0xc4] sm:$0xf] }
  0x78   :  { %v4343_v20 = vor.u32 %v5432_v19, %v4342_v17  ;;  %v5468_v22 = vld [vmem:[#allocation8 + $0x62c] sm:$0xf0]  ;;  %v4598_v30 = vld [vmem:[#allocation8 + $0x700] sm:$0xf]  ;;  %v3800_v52 = vld [vmem:[#allocation8 + $0xd0] sm:$0xf0] }
  0x79   :  { %2096 = vmatpush.bf16.msrb.mxu0 %v4263_v53  ;;  %2109 = vmatpush.bf16.msrb.mxu1 %v4391_v54  ;;  %v4487_v23 = vor.u32 %v5468_v22, %v4486_v21  ;;  %v5500_v25 = vld [vmem:[#allocation8 + $0x72c] sm:$0xf0]  ;;  %v5326_v54 = vld [vmem:[#allocation8 + $0x1c4] sm:$0xf]  ;;  %v4072_v63 = vld [vmem:[#allocation8 + $0x2f0] sm:$0xf0] }
  0x7a   :  { %v4615_v26 = vor.u32 %v5500_v25, %v4614_v24  ;;  %v5464_v28 = vld [vmem:[#allocation8 + $0x60c] sm:$0xf0]  ;;  %v5394_v0 = vld [vmem:[#allocation8 + $0x3e4] sm:$0xf]  ;;  %v4200_v4 = vld [vmem:[#allocation8 + $0x3f0] sm:$0xf0]  ;;  %v4075_v11 = vor.u32 %v5362_v62, %v4072_v63 }
  0x7b   :  { %2122 = vmatpush.bf16.msrb.mxu2 %v4519_v1  ;;  %2135 = vmatpush.bf16.msrb.mxu3 %v4647_v3  ;;  %v4471_v29 = vor.u32 %v5464_v28, %v4470_v27  ;;  %v5496_v31 = vld [vmem:[#allocation8 + $0x70c] sm:$0xf0]  ;;  %v3931_v3 = vor.u32 %v5326_v54, %v3928_v55  ;;  %v5290_v5 = vld [vmem:[#allocation8 + $0xa4] sm:$0xf]  ;;  %v4203_v14 = vor.u32 %v5394_v0, %v4200_v4  ;;  %v4056_v16 = vld [vmem:[#allocation8 + $0x2d0] sm:$0xf0] }
  0x7c   :  { %v4599_v32 = vor.u32 %v5496_v31, %v4598_v30  ;;  %v5322_v8 = vld [vmem:[#allocation8 + $0x1a4] sm:$0xf]  ;;  %v3768_v22 = vld [vmem:[#allocation8 + $0x90] sm:$0xf0] }
  0x7d   :  { %2097 = vmatpush.bf16.msrb.mxu0 %v4247_v59  ;;  %2110 = vmatpush.bf16.msrb.mxu1 %v4375_v61  ;;  %v3803_v61 = vor.u32 %v5294_v51, %v3800_v52  ;;  %v5358_v15 = vld [vmem:[#allocation8 + $0x2c4] sm:$0xf]  ;;  %v3896_v25 = vld [vmem:[#allocation8 + $0x190] sm:$0xf0]  ;;  %v201_v51 = vperm.slane %v6031_v33, 7 }
  0x7e   :  { %v5390_v17 = vld [vmem:[#allocation8 + $0x3c4] sm:$0xf]  ;;  %v4059_v27 = vor.u32 %v5358_v15, %v4056_v16  ;;  %v4168_v39 = vld [vmem:[#allocation8 + $0x3b0] sm:$0xf0] }
  0x7f   :  { %2123 = vmatpush.bf16.msrb.mxu2 %v4503_v13  ;;  %2136 = vmatpush.bf16.msrb.mxu3 %v4631_v60  ;;  %v5286_v21 = vld [vmem:[#allocation8 + $0x84] sm:$0xf]  ;;  %v3752_v42 = vld [vmem:[#allocation8 + $0x70] sm:$0xf0] }
  0x80   :  { %v5318_v24 = vld [vmem:[#allocation8 + $0x184] sm:$0xf]  ;;  %v3771_v31 = vor.u32 %v5286_v21, %v3768_v22  ;;  %v4024_v54 = vld [vmem:[#allocation8 + $0x290] sm:$0xf0] }
  0x81   :  { %2098 = vmatpush.bf16.msrb.mxu0 %v4231_v6  ;;  %2111 = vmatpush.bf16.msrb.mxu1 %v4359_v9  ;;  %v3784_v6 = vld [vmem:[#allocation8 + $0xb0] sm:$0xf0]  ;;  %v5282_v40 = vld [vmem:[#allocation8 + $0x64] sm:$0xf] }
  0x82   :  { %v3912_v9 = vld [vmem:[#allocation8 + $0x1b0] sm:$0xf0]  ;;  %v3787_v60 = vor.u32 %v5290_v5, %v3784_v6  ;;  %v5314_v43 = vld [vmem:[#allocation8 + $0x164] sm:$0xf] }
  0x83   :  { %2124 = vmatpush.bf16.msrb.mxu2 %v4487_v23  ;;  %2137 = vmatpush.bf16.msrb.mxu3 %v4615_v26  ;;  %v3915_v19 = vor.u32 %v5322_v8, %v3912_v9  ;;  %v199_v23 = vperm.slane %v6031_v33, 5  ;;  %v5350_v52 = vld [vmem:[#allocation8 + $0x284] sm:$0xf]  ;;  %v3736_v63 = vld [vmem:[#allocation8 + $0x50] sm:$0xf0] }
  0x84   :  { %v5310_v0 = vld [vmem:[#allocation8 + $0x144] sm:$0xf]  ;;  %v3720_v15 = vld [vmem:[#allocation8 + $0x30] sm:$0xf0] }
  0x85   :  { %2099 = vmatpush.bf16.msrb.mxu0 %v4215_v18  ;;  %2112 = vmatpush.bf16.msrb.mxu1 %v4343_v20  ;;  %v4184_v20 = vld [vmem:[#allocation8 + $0x3d0] sm:$0xf0]  ;;  %v5346_v6 = vld [vmem:[#allocation8 + $0x264] sm:$0xf] }
  0x86   :  { %v4187_v30 = vor.u32 %v5390_v17, %v4184_v20  ;;  %v5378_v8 = vld [vmem:[#allocation8 + $0x364] sm:$0xf]  ;;  %v3848_v20 = vld [vmem:[#allocation8 + $0x130] sm:$0xf0] }
  0x87   :  { %2125 = vmatpush.bf16.msrb.mxu2 %v4471_v29  ;;  %2138 = vmatpush.bf16.msrb.mxu3 %v4599_v32  ;;  %v5354_v32 = vld [vmem:[#allocation8 + $0x2a4] sm:$0xf] }
  0xb5   :  { %v383_v36 = vpop.f32.mrf.mxu0  ;;  %v396_v38 = vpop.f32.mrf.mxu1 }
  0xb6   :  { %v384_v37 = vadd.f32 %v383_v36, %v194_v34  ;;  %v397_v41 = vadd.f32 %v396_v38, %v195_v35  ;;  %v4040_v34 = vld [vmem:[#allocation8 + $0x2b0] sm:$0xf0]  ;;  %v5386_v38 = vld [vmem:[#allocation8 + $0x3a4] sm:$0xf] }
  0xb8   :  { %v478_v44 = vmax.f32 %v384_v37, 0.0  ;;  %v479_v45 = vmax.f32 %v397_v41, 0.0  ;;  %v3899_v37 = vor.u32 %v5318_v24, %v3896_v25  ;;  %v5342_v25 = vld [vmem:[#allocation8 + $0x244] sm:$0xf] }
  0xba   :  { %v6036_v48 = vpack.c.bf16 %v478_v44, %v478_v44  ;;  %v6039_v53 = vpack.c.bf16 %v479_v45, %v479_v45  ;;  %v3880_v44 = vld [vmem:[#allocation8 + $0x170] sm:$0xf0] }
  0xbc   :  { %2048 = vmatmul.bf16.vlgmr.msra.gmra.mxu0 %v6036_v48  ;;  %2061 = vmatmul.bf16.vlgmr.msra.gmra.mxu1 %v6039_v53 }
  0xbd   :  { %v409_v56 = vpop.f32.mrf.mxu2  ;;  %v422_v58 = vpop.f32.mrf.mxu3  ;;  %2144 = vmatpush.bf16.msra.mxu0 %v3819_v47  ;;  %2157 = vmatpush.bf16.msra.mxu1 %v3947_v50  ;;  %v200_v47 = vperm.slane %v6031_v33, 6  ;;  %v4171_v50 = vor.u32 %v5386_v38, %v4168_v39  ;;  %v4027_v33 = vor.u32 %v5350_v52, %v4024_v54 }
  0xbe   :  { %v410_v57 = vadd.f32 %v409_v56, %v196_v46  ;;  %v385_v59 = vpop.f32.mrf.mxu0  ;;  %v423_v1 = vadd.f32 %v422_v58, %v197_v49  ;;  %v398_v2 = vpop.f32.mrf.mxu1  ;;  %v4043_v46 = vor.u32 %v5354_v32, %v4040_v34  ;;  %v3755_v56 = vor.u32 %v5282_v40, %v3752_v42  ;;  %v5382_v58 = vld [vmem:[#allocation8 + $0x384] sm:$0xf]  ;;  %v3704_v34 = vld [vmem:[#allocation8 + $0x10] sm:$0xf0] }
  0xbf   :  { %v4152_v59 = vld [vmem:[#allocation8 + $0x390] sm:$0xf0]  ;;  %v5270_v32 = vld [vmem:[#allocation8 + $0x4] sm:$0xf] }
  0xc0   :  { %v480_v7 = vmax.f32 %v410_v57, 0.0  ;;  %v481_v10 = vmax.f32 %v423_v1, 0.0  ;;  %v3883_v57 = vor.u32 %v5314_v43, %v3880_v44  ;;  %v3864_v1 = vld [vmem:[#allocation8 + $0x150] sm:$0xf0]  ;;  %v4155_v5 = vor.u32 %v5382_v58, %v4152_v59  ;;  %v5454_v59 = vld [vmem:[#allocation8 + $0x5c4] sm:$0xf] }
  0xc1   :  { %2145 = vmatpush.bf16.msra.mxu0 %v3803_v61  ;;  %2158 = vmatpush.bf16.msra.mxu1 %v3931_v3  ;;  %v5278_v61 = vld [vmem:[#allocation8 + $0x44] sm:$0xf]  ;;  %v4328_v40 = vld [vmem:[#allocation8 + $0x4f0] sm:$0xf0] }
  0xc2   :  { %v6044_v13 = vpack.c.bf16 %v480_v7, %v480_v7  ;;  %v6046_v18 = vpack.c.bf16 %v481_v10, %v481_v10  ;;  %v4008_v7 = vld [vmem:[#allocation8 + $0x270] sm:$0xf0] }
  0xc3   :  { %v4011_v22 = vor.u32 %v5346_v6, %v4008_v7  ;;  %v4456_v42 = vld [vmem:[#allocation8 + $0x5f0] sm:$0xf0]  ;;  %v5522_v7 = vld [vmem:[#allocation8 + $0x7e4] sm:$0xf] }
  0xc4   :  { %2074 = vmatmul.bf16.vlgmr.msra.gmra.mxu2 %v6044_v13  ;;  %2087 = vmatmul.bf16.vlgmr.msra.gmra.mxu3 %v6046_v18  ;;  %v4312_v58 = vld [vmem:[#allocation8 + $0x4d0] sm:$0xf0] }
  0xc5   :  { %2170 = vmatpush.bf16.msra.mxu2 %v4075_v11  ;;  %v411_v26 = vpop.f32.mrf.mxu2  ;;  %2183 = vmatpush.bf16.msra.mxu3 %v4203_v14  ;;  %v424_v28 = vpop.f32.mrf.mxu3  ;;  %v3739_v11 = vor.u32 %v5278_v61, %v3736_v63  ;;  %v4136_v14 = vld [vmem:[#allocation8 + $0x370] sm:$0xf0] }
  0xc6   :  { %2146 = vmatpush.bf16.msra.mxu0 %v3787_v60  ;;  %v435_v29 = vpop.f32.mrf.mxu0  ;;  %2159 = vmatpush.bf16.msra.mxu1 %v3915_v19  ;;  %v448_v36 = vpop.f32.mrf.mxu1  ;;  %v5274_v60 = vld [vmem:[#allocation8 + $0x24] sm:$0xf]  ;;  %v4139_v24 = vor.u32 %v5378_v8, %v4136_v14  ;;  %v3992_v26 = vld [vmem:[#allocation8 + $0x250] sm:$0xf0] }
  0xc7   :  { %v436_v35 = vadd.f32 %v435_v29, %v198_v12  ;;  %v449_v41 = vadd.f32 %v448_v36, %v199_v23  ;;  %v3867_v12 = vor.u32 %v5310_v0, %v3864_v1  ;;  %v5306_v19 = vld [vmem:[#allocation8 + $0x124] sm:$0xf]  ;;  %v3723_v29 = vor.u32 %v5274_v60, %v3720_v15  ;;  %v3832_v36 = vld [vmem:[#allocation8 + $0x110] sm:$0xf0] }
  0xc8   :  { %v3995_v38 = vor.u32 %v5342_v25, %v3992_v26  ;;  %v4440_v61 = vld [vmem:[#allocation8 + $0x5d0] sm:$0xf0]  ;;  %v5334_v0 = vld [vmem:[#allocation8 + $0x204] sm:$0xf] }
  0xc9   :  { %v482_v45 = vmax.f32 %v436_v35, 0.0  ;;  %2171 = vmatpush.bf16.msra.mxu2 %v4059_v27  ;;  %v483_v49 = vmax.f32 %v449_v41, 0.0  ;;  %2184 = vmatpush.bf16.msra.mxu3 %v4187_v30  ;;  %v5374_v27 = vld [vmem:[#allocation8 + $0x344] sm:$0xf]  ;;  %v3851_v30 = vor.u32 %v5306_v19, %v3848_v20  ;;  %v3960_v1 = vld [vmem:[#allocation8 + $0x210] sm:$0xf0]  ;;  %v4443_v6 = vor.u32 %v5454_v59, %v4440_v61 }
  0xca   :  { %2147 = vmatpush.bf16.msra.mxu0 %v3771_v31  ;;  %2160 = vmatpush.bf16.msra.mxu1 %v3899_v37  ;;  %v4120_v31 = vld [vmem:[#allocation8 + $0x350] sm:$0xf0]  ;;  %v5302_v35 = vld [vmem:[#allocation8 + $0x104] sm:$0xf] }
  0xcb   :  { %v6053_v55 = vpack.c.bf16 %v482_v45, %v482_v45  ;;  %v6055_v62 = vpack.c.bf16 %v483_v49, %v483_v49  ;;  %v5426_v37 = vld [vmem:[#allocation8 + $0x4e4] sm:$0xf]  ;;  %v4123_v43 = vor.u32 %v5374_v27, %v4120_v31  ;;  %v3835_v49 = vor.u32 %v5302_v35, %v3832_v36  ;;  %v4712_v8 = vld [vmem:[#allocation8 + $0x7f0] sm:$0xf0] }
  0xcc   :  { %v5458_v41 = vld [vmem:[#allocation8 + $0x5e4] sm:$0xf]  ;;  %v4331_v52 = vor.u32 %v5426_v37, %v4328_v40  ;;  %v4424_v14 = vld [vmem:[#allocation8 + $0x5b0] sm:$0xf0] }
  0xcd   :  { %2172 = vmatpush.bf16.msra.mxu2 %v4043_v46  ;;  %v461_v2 = vpop.f32.mrf.mxu2  ;;  %2100 = vmatmul.bf16.vlgmr.msrb.gmra.mxu0 %v6053_v55  ;;  %v474_v4 = vpop.f32.mrf.mxu3  ;;  %v5338_v45 = vld [vmem:[#allocation8 + $0x224] sm:$0xf]  ;;  %v3976_v46 = vld [vmem:[#allocation8 + $0x230] sm:$0xf0]  ;;  %v4459_v54 = vor.u32 %v5458_v41, %v4456_v42 }
  0xce   :  { %2185 = vmatpush.bf16.msra.mxu3 %v4171_v50  ;;  %v462_v3 = vadd.f32 %v461_v2, %v200_v47  ;;  %2113 = vmatmul.bf16.vlgmr.msrb.gmra.mxu1 %v6055_v62  ;;  %v437_v9 = vpop.f32.mrf.mxu0  ;;  %v475_v10 = vadd.f32 %v474_v4, %v201_v51  ;;  %v450_v16 = vpop.f32.mrf.mxu1  ;;  %v3707_v47 = vor.u32 %v5270_v32, %v3704_v34  ;;  %v5370_v50 = vld [vmem:[#allocation8 + $0x324] sm:$0xf]  ;;  %v4104_v51 = vld [vmem:[#allocation8 + $0x330] sm:$0xf0] }
  0xcf   :  { %2148 = vmatpush.bf16.msra.mxu0 %v3755_v56  ;;  %2161 = vmatpush.bf16.msra.mxu1 %v3883_v57  ;;  %v5422_v56 = vld [vmem:[#allocation8 + $0x4c4] sm:$0xf]  ;;  %v3979_v57 = vor.u32 %v5338_v45, %v3976_v46  ;;  %v4107_v63 = vor.u32 %v5370_v50, %v4104_v51  ;;  %v4584_v4 = vld [vmem:[#allocation8 + $0x6f0] sm:$0xf0]  ;;  %v4715_v16 = vor.u32 %v5522_v7, %v4712_v8 }
  0xd0   :  { %v484_v17 = vmax.f32 %v462_v3, 0.0  ;;  %v485_v21 = vmax.f32 %v475_v10, 0.0  ;;  %v5366_v2 = vld [vmem:[#allocation8 + $0x304] sm:$0xf]  ;;  %v3963_v10 = vor.u32 %v5334_v0, %v3960_v1  ;;  %v4568_v19 = vld [vmem:[#allocation8 + $0x6d0] sm:$0xf0] }
  0xd1   :  { %2173 = vmatpush.bf16.msra.mxu2 %v4027_v33  ;;  %v4088_v33 = vld [vmem:[#allocation8 + $0x310] sm:$0xf0]  ;;  %v5490_v3 = vld [vmem:[#allocation8 + $0x6e4] sm:$0xf] }
  0xd2   :  { %v6059_v23 = vpack.c.bf16 %v484_v17, %v484_v17  ;;  %2186 = vmatpush.bf16.msra.mxu3 %v4155_v5  ;;  %v6061_v28 = vpack.c.bf16 %v485_v21, %v485_v21  ;;  %v4315_v5 = vor.u32 %v5422_v56, %v4312_v58  ;;  %v5418_v9 = vld [vmem:[#allocation8 + $0x4a4] sm:$0xf]  ;;  %v4091_v60 = vor.u32 %v5366_v2, %v4088_v33  ;;  %v4280_v26 = vld [vmem:[#allocation8 + $0x490] sm:$0xf0] }
  0xd3   :  { %2149 = vmatpush.bf16.msra.mxu0 %v3739_v11  ;;  %2162 = vmatpush.bf16.msra.mxu1 %v3867_v12  ;;  %v4296_v11 = vld [vmem:[#allocation8 + $0x4b0] sm:$0xf0]  ;;  %v5450_v12 = vld [vmem:[#allocation8 + $0x5a4] sm:$0xf]  ;;  %v4587_v15 = vor.u32 %v5490_v3, %v4584_v4 }
  0xd4   :  { %2126 = vmatmul.bf16.vlgmr.msrb.gmra.mxu2 %v6059_v23  ;;  %2139 = vmatmul.bf16.vlgmr.msrb.gmra.mxu3 %v6061_v28  ;;  %v5486_v17 = vld [vmem:[#allocation8 + $0x6c4] sm:$0xf]  ;;  %v4299_v20 = vor.u32 %v5418_v9, %v4296_v11  ;;  %v4427_v21 = vor.u32 %v5450_v12, %v4424_v14  ;;  %v4552_v34 = vld [vmem:[#allocation8 + $0x6b0] sm:$0xf0] }
  0xd5   :  { %2174 = vmatpush.bf16.msra.mxu2 %v4011_v22  ;;  %v463_v39 = vpop.f32.mrf.mxu2  ;;  %v476_v44 = vpop.f32.mrf.mxu3  ;;  %v5518_v22 = vld [vmem:[#allocation8 + $0x7c4] sm:$0xf]  ;;  %v4264_v40 = vld [vmem:[#allocation8 + $0x470] sm:$0xf0] }
  0xd6   :  { %2187 = vmatpush.bf16.msra.mxu3 %v4139_v24  ;;  %v4696_v24 = vld [vmem:[#allocation8 + $0x7d0] sm:$0xf0]  ;;  %v5414_v25 = vld [vmem:[#allocation8 + $0x484] sm:$0xf] }
  0xd7   :  { %2150 = vmatpush.bf16.msra.mxu0 %v3723_v29  ;;  %2163 = vmatpush.bf16.msra.mxu1 %v3851_v30  ;;  %v5446_v27 = vld [vmem:[#allocation8 + $0x584] sm:$0xf]  ;;  %v4408_v29 = vld [vmem:[#allocation8 + $0x590] sm:$0xf0]  ;;  %v4571_v30 = vor.u32 %v5486_v17, %v4568_v19  ;;  %v4699_v31 = vor.u32 %v5518_v22, %v4696_v24  ;;  %v4283_v35 = vor.u32 %v5414_v25, %v4280_v26  ;;  %v5301_v22 = vld [vmem:[#allocation8 + $0xf4] sm:$0xf0] }
  0xd8   :  { %v5482_v32 = vld [vmem:[#allocation8 + $0x6a4] sm:$0xf]  ;;  %v4411_v36 = vor.u32 %v5446_v27, %v4408_v29  ;;  %v4392_v42 = vld [vmem:[#allocation8 + $0x570] sm:$0xf0]  ;;  %v3950_v24 = vld [vmem:[#allocation8 + $0x1e8] sm:$0xf] }
  0xd9   :  { %2175 = vmatpush.bf16.msra.mxu2 %v3995_v38  ;;  %v5514_v37 = vld [vmem:[#allocation8 + $0x7a4] sm:$0xf]  ;;  %v4680_v38 = vld [vmem:[#allocation8 + $0x7b0] sm:$0xf0]  ;;  %v5333_v25 = vld [vmem:[#allocation8 + $0x1f4] sm:$0xf0] }
  0xda   :  { %2188 = vmatpush.bf16.msra.mxu3 %v4123_v43  ;;  %v5410_v39 = vld [vmem:[#allocation8 + $0x464] sm:$0xf]  ;;  %v4555_v43 = vor.u32 %v5482_v32, %v4552_v34  ;;  %v4683_v44 = vor.u32 %v5514_v37, %v4680_v38  ;;  %v4536_v46 = vld [vmem:[#allocation8 + $0x690] sm:$0xf0]  ;;  %v3806_v37 = vld [vmem:[#allocation8 + $0xc8] sm:$0xf] }
  0xdb   :  { %2151 = vmatpush.bf16.msra.mxu0 %v3707_v47  ;;  %2164 = vmatpush.bf16.msra.mxu1 %v3835_v49  ;;  %v5442_v41 = vld [vmem:[#allocation8 + $0x564] sm:$0xf]  ;;  %v4267_v47 = vor.u32 %v5410_v39, %v4264_v40  ;;  %v4664_v51 = vld [vmem:[#allocation8 + $0x790] sm:$0xf0]  ;;  %v5297_v39 = vld [vmem:[#allocation8 + $0xd4] sm:$0xf0] }
  0xdc   :  { %v5478_v45 = vld [vmem:[#allocation8 + $0x684] sm:$0xf]  ;;  %v4395_v49 = vor.u32 %v5442_v41, %v4392_v42  ;;  %v4648_v33 = vld [vmem:[#allocation8 + $0x770] sm:$0xf0]  ;;  %v3934_v40 = vld [vmem:[#allocation8 + $0x1c8] sm:$0xf] }
  0xdd   :  { %2176 = vmatpush.bf16.msra.mxu2 %v3979_v57  ;;  %v5510_v50 = vld [vmem:[#allocation8 + $0x784] sm:$0xf]  ;;  %v4376_v57 = vld [vmem:[#allocation8 + $0x550] sm:$0xf0]  ;;  %v4539_v58 = vor.u32 %v5478_v45, %v4536_v46  ;;  %v5329_v41 = vld [vmem:[#allocation8 + $0x1d4] sm:$0xf0] }
  0xde   :  { %2189 = vmatpush.bf16.msra.mxu3 %v4107_v63  ;;  %2152 = vmatmul.bf16.vlgmr.msra.gmra.mxu0 %v6036_v48  ;;  %v5438_v56 = vld [vmem:[#allocation8 + $0x544] sm:$0xf]  ;;  %v4667_v59 = vor.u32 %v5510_v50, %v4664_v51  ;;  %v4520_v63 = vld [vmem:[#allocation8 + $0x670] sm:$0xf0]  ;;  %v3807_v50 = vor.u32 %v5297_v39, %v3806_v37  ;;  %v3935_v51 = vor.u32 %v5329_v41, %v3934_v40  ;;  %v5313_v39 = vld [vmem:[#allocation8 + $0x154] sm:$0xf0] }
  0xdf   :  { %2196 = vmatpush.bf16.msrb.mxu0 %v4331_v52  ;;  %2209 = vmatpush.bf16.msrb.mxu1 %v4459_v54  ;;  %v5406_v52 = vld [vmem:[#allocation8 + $0x444] sm:$0xf]  ;;  %v4248_v54 = vld [vmem:[#allocation8 + $0x450] sm:$0xf0]  ;;  %v4379_v1 = vor.u32 %v5438_v56, %v4376_v57  ;;  %v3790_v57 = vld [vmem:[#allocation8 + $0xa8] sm:$0xf] }
  0xe0   :  { %2165 = vmatmul.bf16.vlgmr.msra.gmra.mxu1 %v6039_v53  ;;  %v5474_v61 = vld [vmem:[#allocation8 + $0x664] sm:$0xf]  ;;  %v4251_v0 = vor.u32 %v5406_v52, %v4248_v54  ;;  %v4232_v4 = vld [vmem:[#allocation8 + $0x430] sm:$0xf0]  ;;  %v4206_v52 = vld [vmem:[#allocation8 + $0x3e8] sm:$0xf] }
  0xe1   :  { %2177 = vmatpush.bf16.msra.mxu2 %v3963_v10  ;;  %v5506_v2 = vld [vmem:[#allocation8 + $0x764] sm:$0xf]  ;;  %v4523_v7 = vor.u32 %v5474_v61, %v4520_v63  ;;  %v4504_v10 = vld [vmem:[#allocation8 + $0x650] sm:$0xf0]  ;;  %v5397_v54 = vld [vmem:[#allocation8 + $0x3f4] sm:$0xf0] }
  0xe2   :  { %2190 = vmatpush.bf16.msra.mxu3 %v4091_v60  ;;  %v5402_v3 = vld [vmem:[#allocation8 + $0x424] sm:$0xf]  ;;  %v4651_v8 = vor.u32 %v5506_v2, %v4648_v33  ;;  %v4632_v60 = vld [vmem:[#allocation8 + $0x750] sm:$0xf0]  ;;  %v3918_v63 = vld [vmem:[#allocation8 + $0x1a8] sm:$0xf] }
  0xe3   :  { %2197 = vmatpush.bf16.msrb.mxu0 %v4315_v5  ;;  %2210 = vmatpush.bf16.msrb.mxu1 %v4443_v6  ;;  %v5434_v5 = vld [vmem:[#allocation8 + $0x524] sm:$0xf]  ;;  %v4360_v6 = vld [vmem:[#allocation8 + $0x530] sm:$0xf0]  ;;  %v4235_v12 = vor.u32 %v5402_v3, %v4232_v4  ;;  %v4062_v2 = vld [vmem:[#allocation8 + $0x2c8] sm:$0xf] }
  0xe4   :  { %2178 = vmatmul.bf16.vlgmr.msra.gmra.mxu2 %v6044_v13  ;;  %v5470_v9 = vld [vmem:[#allocation8 + $0x644] sm:$0xf]  ;;  %v4363_v14 = vor.u32 %v5434_v5, %v4360_v6  ;;  %v4344_v19 = vld [vmem:[#allocation8 + $0x510] sm:$0xf0]  ;;  %v5361_v33 = vld [vmem:[#allocation8 + $0x2d4] sm:$0xf0] }
  0xe5   :  { %2222 = vmatpush.bf16.msrb.mxu2 %v4587_v15  ;;  %2191 = vmatmul.bf16.vlgmr.msra.gmra.mxu3 %v6046_v18  ;;  %v5502_v11 = vld [vmem:[#allocation8 + $0x744] sm:$0xf]  ;;  %v4488_v29 = vld [vmem:[#allocation8 + $0x630] sm:$0xf0]  ;;  %v4190_v4 = vld [vmem:[#allocation8 + $0x3c8] sm:$0xf] }
  0xe6   :  { %2235 = vmatpush.bf16.msrb.mxu3 %v4715_v16  ;;  %v5398_v15 = vld [vmem:[#allocation8 + $0x404] sm:$0xf]  ;;  %v4216_v16 = vld [vmem:[#allocation8 + $0x410] sm:$0xf0]  ;;  %v4635_v26 = vor.u32 %v5502_v11, %v4632_v60  ;;  %v5393_v5 = vld [vmem:[#allocation8 + $0x3d4] sm:$0xf0] }
  0xe7   :  { %2198 = vmatpush.bf16.msrb.mxu0 %v4299_v20  ;;  %2211 = vmatpush.bf16.msrb.mxu1 %v4427_v21  ;;  %v5430_v17 = vld [vmem:[#allocation8 + $0x504] sm:$0xf]  ;;  %v3822_v20 = vld [vmem:[#allocation8 + $0xe8] sm:$0xf]  ;;  %v4507_v21 = vor.u32 %v5470_v9, %v4504_v10  ;;  %v4616_v34 = vld [vmem:[#allocation8 + $0x730] sm:$0xf0]  ;;  %v4063_v9 = vor.u32 %v5361_v33, %v4062_v2 }
  0xe8   :  { %v5466_v27 = vld [vmem:[#allocation8 + $0x624] sm:$0xf]  ;;  %v4600_v46 = vld [vmem:[#allocation8 + $0x710] sm:$0xf0]  ;;  %v3902_v10 = vld [vmem:[#allocation8 + $0x188] sm:$0xf] }
  0xe9   :  { %2223 = vmatpush.bf16.msrb.mxu2 %v4571_v30  ;;  %v4219_v30 = vor.u32 %v5398_v15, %v4216_v16  ;;  %v5498_v32 = vld [vmem:[#allocation8 + $0x724] sm:$0xf]  ;;  %v4491_v38 = vor.u32 %v5466_v27, %v4488_v29  ;;  %v5321_v11 = vld [vmem:[#allocation8 + $0x194] sm:$0xf0]  ;;  %v4174_v16 = vld [vmem:[#allocation8 + $0x3a8] sm:$0xf] }
  0xea   :  { %2236 = vmatpush.bf16.msrb.mxu3 %v4699_v31  ;;  %v4347_v31 = vor.u32 %v5430_v17, %v4344_v19  ;;  %v4619_v42 = vor.u32 %v5498_v32, %v4616_v34  ;;  %v5494_v45 = vld [vmem:[#allocation8 + $0x704] sm:$0xf]  ;;  %v5357_v60 = vld [vmem:[#allocation8 + $0x2b4] sm:$0xf0]  ;;  %v3903_v19 = vor.u32 %v5321_v11, %v3902_v10  ;;  %v4030_v27 = vld [vmem:[#allocation8 + $0x288] sm:$0xf] }
  0xeb   :  { %2199 = vmatpush.bf16.msrb.mxu0 %v4283_v35  ;;  %2212 = vmatpush.bf16.msrb.mxu1 %v4411_v36  ;;  %v3823_v35 = vor.u32 %v5301_v22, %v3822_v20  ;;  %v3951_v36 = vor.u32 %v5333_v25, %v3950_v24  ;;  %v5389_v17 = vld [vmem:[#allocation8 + $0x3b4] sm:$0xf0]  ;;  %v3758_v20 = vld [vmem:[#allocation8 + $0x68] sm:$0xf] }
  0xec   :  { %v3886_v24 = vld [vmem:[#allocation8 + $0x168] sm:$0xf]  ;;  %v5317_v25 = vld [vmem:[#allocation8 + $0x174] sm:$0xf0] }
  0xed   :  { %2224 = vmatpush.bf16.msrb.mxu2 %v4555_v43  ;;  %v5462_v43 = vld [vmem:[#allocation8 + $0x604] sm:$0xf]  ;;  %v5353_v29 = vld [vmem:[#allocation8 + $0x294] sm:$0xf0]  ;;  %v3887_v34 = vor.u32 %v5317_v25, %v3886_v24  ;;  %v4014_v41 = vld [vmem:[#allocation8 + $0x268] sm:$0xf] }
  0xee   :  { %2237 = vmatpush.bf16.msrb.mxu3 %v4683_v44  ;;  %v4472_v44 = vld [vmem:[#allocation8 + $0x610] sm:$0xf0]  ;;  %v5385_v32 = vld [vmem:[#allocation8 + $0x394] sm:$0xf0]  ;;  %v4031_v37 = vor.u32 %v5353_v29, %v4030_v27  ;;  %v3838_v2 = vld [vmem:[#allocation8 + $0x108] sm:$0xf] }
  0xef   :  { %2200 = vmatpush.bf16.msrb.mxu0 %v4267_v47  ;;  %2213 = vmatpush.bf16.msrb.mxu1 %v4395_v49  ;;  %v4078_v47 = vld [vmem:[#allocation8 + $0x2e8] sm:$0xf]  ;;  %v5365_v49 = vld [vmem:[#allocation8 + $0x2f4] sm:$0xf0]  ;;  %v4475_v56 = vor.u32 %v5462_v43, %v4472_v44 }
  0xf0   :  { %v4079_v61 = vor.u32 %v5365_v49, %v4078_v47  ;;  %v4142_v44 = vld [vmem:[#allocation8 + $0x368] sm:$0xf]  ;;  %v5277_v49 = vld [vmem:[#allocation8 + $0x34] sm:$0xf0] }
  0xf1   :  { %2225 = vmatpush.bf16.msrb.mxu2 %v4539_v58  ;;  %v5293_v58 = vld [vmem:[#allocation8 + $0xb4] sm:$0xf0]  ;;  %v3726_v47 = vld [vmem:[#allocation8 + $0x28] sm:$0xf] }
  0xf2   :  { %2238 = vmatpush.bf16.msrb.mxu3 %v4667_v59  ;;  %v4603_v59 = vor.u32 %v5494_v45, %v4600_v46  ;;  %v3791_v3 = vor.u32 %v5293_v58, %v3790_v57  ;;  %v5381_v45 = vld [vmem:[#allocation8 + $0x374] sm:$0xf0]  ;;  %v3727_v58 = vor.u32 %v5277_v49, %v3726_v47  ;;  %v3966_v25 = vld [vmem:[#allocation8 + $0x208] sm:$0xf] }
  0xf3   :  { %2201 = vmatpush.bf16.msrb.mxu0 %v4251_v0  ;;  %2214 = vmatpush.bf16.msrb.mxu1 %v4379_v1  ;;  %v5325_v0 = vld [vmem:[#allocation8 + $0x1b4] sm:$0xf0]  ;;  %v4207_v1 = vor.u32 %v5397_v54, %v4206_v52  ;;  %v4143_v54 = vor.u32 %v5381_v45, %v4142_v44  ;;  %v4094_v27 = vld [vmem:[#allocation8 + $0x308] sm:$0xf] }
  0xf4   :  { %v3919_v6 = vor.u32 %v5325_v0, %v3918_v63  ;;  %v5309_v52 = vld [vmem:[#allocation8 + $0x134] sm:$0xf0]  ;;  %v3710_v63 = vld [vmem:[#allocation8 + $0x8] sm:$0xf] }
  0xf5   :  { %2226 = vmatpush.bf16.msrb.mxu2 %v4523_v7  ;;  %v3774_v7 = vld [vmem:[#allocation8 + $0x88] sm:$0xf]  ;;  %v5345_v57 = vld [vmem:[#allocation8 + $0x254] sm:$0xf0] }
  0xf6   :  { %2239 = vmatpush.bf16.msrb.mxu3 %v4651_v8  ;;  %v5289_v8 = vld [vmem:[#allocation8 + $0x94] sm:$0xf0]  ;;  %v4574_v45 = vld [vmem:[#allocation8 + $0x6c8] sm:$0xf] }
  0xf7   :  { %2202 = vmatpush.bf16.msrb.mxu0 %v4235_v12  ;;  %2215 = vmatpush.bf16.msrb.mxu1 %v4363_v14  ;;  %v4191_v12 = vor.u32 %v5393_v5, %v4190_v4  ;;  %v4046_v14 = vld [vmem:[#allocation8 + $0x2a8] sm:$0xf]  ;;  %v3775_v15 = vor.u32 %v5289_v8, %v3774_v7  ;;  %v5305_v33 = vld [vmem:[#allocation8 + $0x114] sm:$0xf0] }
  0xf8   :  { %v4047_v22 = vor.u32 %v5357_v60, %v4046_v14  ;;  %v4334_v4 = vld [vmem:[#allocation8 + $0x4e8] sm:$0xf]  ;;  %v5429_v5 = vld [vmem:[#allocation8 + $0x4f4] sm:$0xf0]  ;;  %v3839_v60 = vor.u32 %v5305_v33, %v3838_v2 }
  0xf9   :  { %2227 = vmatpush.bf16.msrb.mxu2 %v4507_v21  ;;  %v5285_v21 = vld [vmem:[#allocation8 + $0x74] sm:$0xf0]  ;;  %v4702_v49 = vld [vmem:[#allocation8 + $0x7c8] sm:$0xf] }
  0xfa   :  { %2240 = vmatpush.bf16.msrb.mxu3 %v4635_v26  ;;  %v4175_v26 = vor.u32 %v5389_v17, %v4174_v16  ;;  %v5461_v8 = vld [vmem:[#allocation8 + $0x5f4] sm:$0xf0]  ;;  %v4318_v16 = vld [vmem:[#allocation8 + $0x4c8] sm:$0xf] }
  0xfb   :  { %2203 = vmatpush.bf16.msrb.mxu0 %v4219_v30  ;;  %2216 = vmatpush.bf16.msrb.mxu1 %v4347_v31  ;;  %v3759_v30 = vor.u32 %v5285_v21, %v3758_v20  ;;  %v4158_v31 = vld [vmem:[#allocation8 + $0x388] sm:$0xf]  ;;  %v5341_v10 = vld [vmem:[#allocation8 + $0x234] sm:$0xf0] }
  0xfc   :  { %v4159_v40 = vor.u32 %v5385_v32, %v4158_v31  ;;  %v5373_v14 = vld [vmem:[#allocation8 + $0x334] sm:$0xf0]  ;;  %v4446_v21 = vld [vmem:[#allocation8 + $0x5c8] sm:$0xf] }
  0xfd   :  { %2228 = vmatpush.bf16.msrb.mxu2 %v4491_v38  ;;  %v3870_v38 = vld [vmem:[#allocation8 + $0x148] sm:$0xf]  ;;  %v5425_v20 = vld [vmem:[#allocation8 + $0x4d4] sm:$0xf0] }
  0xfe   :  { %2241 = vmatpush.bf16.msrb.mxu3 %v4619_v42  ;;  %2204 = vmatmul.bf16.vlgmr.msrb.gmra.mxu0 %v6053_v55  ;;  %v5349_v42 = vld [vmem:[#allocation8 + $0x274] sm:$0xf0]  ;;  %v3871_v46 = vor.u32 %v5313_v39, %v3870_v38  ;;  %v4319_v32 = vor.u32 %v5425_v20, %v4318_v16  ;;  %v4302_v38 = vld [vmem:[#allocation8 + $0x4a8] sm:$0xf] }
  0xff   :  { %2248 = vmatpush.bf16.msra.mxu0 %v3823_v35  ;;  %2261 = vmatpush.bf16.msra.mxu1 %v3951_v36  ;;  %v3742_v35 = vld [vmem:[#allocation8 + $0x48] sm:$0xf]  ;;  %v5281_v36 = vld [vmem:[#allocation8 + $0x54] sm:$0xf0] }
 0x100   :  { %2217 = vmatmul.bf16.vlgmr.msrb.gmra.mxu1 %v6055_v62  ;;  %v3743_v43 = vor.u32 %v5281_v36, %v3742_v35  ;;  %v5369_v29 = vld [vmem:[#allocation8 + $0x314] sm:$0xf0] }
 0x101   :  { %2229 = vmatpush.bf16.msrb.mxu2 %v4475_v56  ;;  %v3998_v56 = vld [vmem:[#allocation8 + $0x248] sm:$0xf]  ;;  %v5493_v31 = vld [vmem:[#allocation8 + $0x6f4] sm:$0xf0] }
 0x102   :  { %2242 = vmatpush.bf16.msrb.mxu3 %v4603_v59  ;;  %v4126_v59 = vld [vmem:[#allocation8 + $0x348] sm:$0xf]  ;;  %v5525_v35 = vld [vmem:[#allocation8 + $0x7f4] sm:$0xf0] }
 0x103   :  { %2249 = vmatpush.bf16.msra.mxu0 %v3807_v50  ;;  %2262 = vmatpush.bf16.msra.mxu1 %v3935_v51  ;;  %v4015_v50 = vor.u32 %v5349_v42, %v4014_v41  ;;  %v3854_v51 = vld [vmem:[#allocation8 + $0x128] sm:$0xf]  ;;  %v5421_v39 = vld [vmem:[#allocation8 + $0x4b4] sm:$0xf0] }
 0x104   :  { %2230 = vmatmul.bf16.vlgmr.msrb.gmra.mxu2 %v6059_v23  ;;  %v3855_v0 = vor.u32 %v5309_v52, %v3854_v51  ;;  %v4430_v42 = vld [vmem:[#allocation8 + $0x5a8] sm:$0xf]  ;;  %v4303_v47 = vor.u32 %v5421_v39, %v4302_v38  ;;  %v5517_v2 = vld [vmem:[#allocation8 + $0x7b4] sm:$0xf0] }
 0x105   :  { %2274 = vmatpush.bf16.msra.mxu2 %v4079_v61  ;;  %2243 = vmatmul.bf16.vlgmr.msrb.gmra.mxu3 %v6061_v28  ;;  %v5377_v61 = vld [vmem:[#allocation8 + $0x354] sm:$0xf0]  ;;  %v4286_v52 = vld [vmem:[#allocation8 + $0x488] sm:$0xf] }
 0x106   :  { %2287 = vmatpush.bf16.msra.mxu3 %v4207_v1  ;;  %v5273_v1 = vld [vmem:[#allocation8 + $0x14] sm:$0xf0]  ;;  %v4127_v7 = vor.u32 %v5377_v61, %v4126_v59  ;;  %v4558_v61 = vld [vmem:[#allocation8 + $0x6a8] sm:$0xf] }
 0x107   :  { %2250 = vmatpush.bf16.msra.mxu0 %v3791_v3  ;;  %2263 = vmatpush.bf16.msra.mxu1 %v3919_v6  ;;  %v3999_v3 = vor.u32 %v5345_v57, %v3998_v56  ;;  %v4462_v6 = vld [vmem:[#allocation8 + $0x5e8] sm:$0xf]  ;;  %v3711_v11 = vor.u32 %v5273_v1, %v3710_v63  ;;  %v5485_v63 = vld [vmem:[#allocation8 + $0x6b4] sm:$0xf0] }
 0x108   :  { %v4463_v17 = vor.u32 %v5461_v8, %v4462_v6  ;;  %v4414_v57 = vld [vmem:[#allocation8 + $0x588] sm:$0xf]  ;;  %v5409_v16 = vld [vmem:[#allocation8 + $0x454] sm:$0xf0] }
 0x109   :  { %2275 = vmatpush.bf16.msra.mxu2 %v4063_v9  ;;  %v3982_v9 = vld [vmem:[#allocation8 + $0x228] sm:$0xf]  ;;  %v5441_v20 = vld [vmem:[#allocation8 + $0x554] sm:$0xf0] }
 0x10a   :  { %2288 = vmatpush.bf16.msra.mxu3 %v4191_v12  ;;  %v4110_v12 = vld [vmem:[#allocation8 + $0x328] sm:$0xf]  ;;  %v5473_v38 = vld [vmem:[#allocation8 + $0x654] sm:$0xf0] }
 0x10b   :  { %2251 = vmatpush.bf16.msra.mxu0 %v3775_v15  ;;  %2264 = vmatpush.bf16.msra.mxu1 %v3903_v19  ;;  %v4335_v15 = vor.u32 %v5429_v5, %v4334_v4  ;;  %v3983_v19 = vor.u32 %v5341_v10, %v3982_v9  ;;  %v4111_v24 = vor.u32 %v5373_v14, %v4110_v12  ;;  %v4686_v1 = vld [vmem:[#allocation8 + $0x7a8] sm:$0xf]  ;;  %v5413_v4 = vld [vmem:[#allocation8 + $0x474] sm:$0xf0] }
 0x10c   :  { %v4559_v5 = vor.u32 %v5485_v63, %v4558_v61  ;;  %v4398_v6 = vld [vmem:[#allocation8 + $0x568] sm:$0xf]  ;;  %v4687_v8 = vor.u32 %v5517_v2, %v4686_v1  ;;  %v5481_v10 = vld [vmem:[#allocation8 + $0x694] sm:$0xf0]  ;;  %v5295_v1 = vld [vmem:[#allocation8 + $0xcc] sm:$0xf] }
 0x10d   :  { %2276 = vmatpush.bf16.msra.mxu2 %v4047_v22  ;;  %v5457_v22 = vld [vmem:[#allocation8 + $0x5d4] sm:$0xf0]  ;;  %v4542_v9 = vld [vmem:[#allocation8 + $0x688] sm:$0xf] }
 0x10e   :  { %2289 = vmatpush.bf16.msra.mxu3 %v4175_v26  ;;  %v5337_v26 = vld [vmem:[#allocation8 + $0x214] sm:$0xf0]  ;;  %v4447_v36 = vor.u32 %v5457_v22, %v4446_v21  ;;  %v4670_v12 = vld [vmem:[#allocation8 + $0x788] sm:$0xf] }
 0x10f   :  { %2252 = vmatpush.bf16.msra.mxu0 %v3759_v30  ;;  %2265 = vmatpush.bf16.msra.mxu1 %v3887_v34  ;;  %v4590_v30 = vld [vmem:[#allocation8 + $0x6e8] sm:$0xf]  ;;  %v5513_v14 = vld [vmem:[#allocation8 + $0x794] sm:$0xf0] }
 0x110   :  { %v4718_v34 = vld [vmem:[#allocation8 + $0x7e8] sm:$0xf]  ;;  %v4591_v41 = vor.u32 %v5493_v31, %v4590_v30  ;;  %v4671_v21 = vor.u32 %v5513_v14, %v4670_v12  ;;  %v5405_v31 = vld [vmem:[#allocation8 + $0x434] sm:$0xf0]  ;;  %v4080_v12 = vld [vmem:[#allocation8 + $0x2f8] sm:$0xf0] }
 0x111   :  { %2277 = vmatpush.bf16.msra.mxu2 %v4031_v37  ;;  %v3967_v37 = vor.u32 %v5337_v26, %v3966_v25  ;;  %v4719_v44 = vor.u32 %v5525_v35, %v4718_v34  ;;  %v4526_v22 = vld [vmem:[#allocation8 + $0x668] sm:$0xf]  ;;  %v5437_v35 = vld [vmem:[#allocation8 + $0x534] sm:$0xf0] }
 0x112   :  { %2290 = vmatpush.bf16.msra.mxu3 %v4159_v40  ;;  %v4095_v40 = vor.u32 %v5369_v29, %v4094_v27  ;;  %v4654_v26 = vld [vmem:[#allocation8 + $0x768] sm:$0xf]  ;;  %v5509_v27 = vld [vmem:[#allocation8 + $0x774] sm:$0xf0] }
 0x113   :  { %2253 = vmatpush.bf16.msra.mxu0 %v3743_v43  ;;  %2266 = vmatpush.bf16.msra.mxu1 %v3871_v46  ;;  %v5453_v43 = vld [vmem:[#allocation8 + $0x5b4] sm:$0xf0]  ;;  %v4238_v30 = vld [vmem:[#allocation8 + $0x428] sm:$0xf] }
 0x114   :  { %v5489_v46 = vld [vmem:[#allocation8 + $0x6d4] sm:$0xf0]  ;;  %v4431_v51 = vor.u32 %v5453_v43, %v4430_v42  ;;  %v4366_v34 = vld [vmem:[#allocation8 + $0x528] sm:$0xf]  ;;  %v4239_v39 = vor.u32 %v5405_v31, %v4238_v30  ;;  %v5391_v31 = vld [vmem:[#allocation8 + $0x3cc] sm:$0xf] }
 0x115   :  { %2278 = vmatpush.bf16.msra.mxu2 %v4015_v50  ;;  %v5521_v50 = vld [vmem:[#allocation8 + $0x7d4] sm:$0xf0]  ;;  %v4575_v56 = vor.u32 %v5489_v46, %v4574_v45  ;;  %v4222_v42 = vld [vmem:[#allocation8 + $0x408] sm:$0xf]  ;;  %v4367_v43 = vor.u32 %v5437_v35, %v4366_v34  ;;  %v5287_v35 = vld [vmem:[#allocation8 + $0x8c] sm:$0xf] }
 0x116   :  { %2291 = vmatpush.bf16.msra.mxu3 %v4143_v54  ;;  %v5417_v54 = vld [vmem:[#allocation8 + $0x494] sm:$0xf0]  ;;  %v4703_v59 = vor.u32 %v5521_v50, %v4702_v49  ;;  %v4350_v45 = vld [vmem:[#allocation8 + $0x508] sm:$0xf]  ;;  %v5299_v49 = vld [vmem:[#allocation8 + $0xec] sm:$0xf] }
 0x117   :  { %2254 = vmatpush.bf16.msra.mxu0 %v3727_v58  ;;  %2267 = vmatpush.bf16.msra.mxu1 %v3855_v0  ;;  %v5449_v58 = vld [vmem:[#allocation8 + $0x594] sm:$0xf0]  ;;  %v4287_v0 = vor.u32 %v5417_v54, %v4286_v52  ;;  %v3824_v50 = vld [vmem:[#allocation8 + $0xf8] sm:$0xf0] }
 0x118   :  { %v4415_v33 = vor.u32 %v5449_v58, %v4414_v57  ;;  %v5433_v46 = vld [vmem:[#allocation8 + $0x514] sm:$0xf0]  ;;  %v3952_v54 = vld [vmem:[#allocation8 + $0x1f8] sm:$0xf0] }
 0x119   :  { %2279 = vmatpush.bf16.msra.mxu2 %v3999_v3  ;;  %v4270_v3 = vld [vmem:[#allocation8 + $0x468] sm:$0xf]  ;;  %v5469_v57 = vld [vmem:[#allocation8 + $0x634] sm:$0xf0]  ;;  %v4351_v63 = vor.u32 %v5433_v46, %v4350_v45  ;;  %v5387_v46 = vld [vmem:[#allocation8 + $0x3ac] sm:$0xf] }
 0x11a   :  { %2292 = vmatpush.bf16.msra.mxu3 %v4127_v7  ;;  %v5445_v7 = vld [vmem:[#allocation8 + $0x574] sm:$0xf0] }
 0x11b   :  { %2255 = vmatpush.bf16.msra.mxu0 %v3711_v11  ;;  %2268 = vmatpush.bf16.msra.mxu1 %v3839_v60  ;;  %v4271_v11 = vor.u32 %v5413_v4, %v4270_v3  ;;  %v4399_v60 = vor.u32 %v5445_v7, %v4398_v6  ;;  %v5501_v61 = vld [vmem:[#allocation8 + $0x734] sm:$0xf0]  ;;  %v3808_v3 = vld [vmem:[#allocation8 + $0xd8] sm:$0xf0]  ;;  %v5327_v4 = vld [vmem:[#allocation8 + $0x1cc] sm:$0xf] }
 0x11c   :  { %v4478_v7 = vld [vmem:[#allocation8 + $0x608] sm:$0xf]  ;;  %v3811_v14 = vor.u32 %v5295_v1, %v3808_v3 }
 0x11d   :  { %2280 = vmatpush.bf16.msra.mxu2 %v3983_v19  ;;  %v4382_v19 = vld [vmem:[#allocation8 + $0x548] sm:$0xf] }
 0x11e   :  { %2293 = vmatpush.bf16.msra.mxu3 %v4111_v24  ;;  %2256 = vmatmul.bf16.vlgmr.msra.gmra.mxu0 %v6036_v48  ;;  %v5477_v24 = vld [vmem:[#allocation8 + $0x674] sm:$0xf0]  ;;  %v4383_v29 = vor.u32 %v5441_v20, %v4382_v19  ;;  %v5291_v19 = vld [vmem:[#allocation8 + $0xac] sm:$0xf]  ;;  %v3792_v20 = vld [vmem:[#allocation8 + $0xb8] sm:$0xf0] }
 0x11f   :  { %2300 = vmatpush.bf16.msrb.mxu0 %v4335_v15  ;;  %2313 = vmatpush.bf16.msrb.mxu1 %v4463_v17  ;;  %v4254_v15 = vld [vmem:[#allocation8 + $0x448] sm:$0xf]  ;;  %v4543_v17 = vor.u32 %v5481_v10, %v4542_v9  ;;  %v5497_v10 = vld [vmem:[#allocation8 + $0x714] sm:$0xf0]  ;;  %v3795_v30 = vor.u32 %v5291_v19, %v3792_v20  ;;  %v5307_v19 = vld [vmem:[#allocation8 + $0x12c] sm:$0xf] }
 0x120   :  { %2269 = vmatmul.bf16.vlgmr.msra.gmra.mxu1 %v6039_v53  ;;  %v4255_v25 = vor.u32 %v5409_v16, %v4254_v15  ;;  %v4606_v9 = vld [vmem:[#allocation8 + $0x708] sm:$0xf]  ;;  %v4208_v15 = vld [vmem:[#allocation8 + $0x3f8] sm:$0xf0] }
 0x121   :  { %2281 = vmatpush.bf16.msra.mxu2 %v3967_v37  ;;  %v4510_v37 = vld [vmem:[#allocation8 + $0x648] sm:$0xf]  ;;  %v3856_v20 = vld [vmem:[#allocation8 + $0x138] sm:$0xf0] }
 0x122   :  { %2294 = vmatpush.bf16.msra.mxu3 %v4095_v40  ;;  %v4638_v40 = vld [vmem:[#allocation8 + $0x748] sm:$0xf] }
 0x123   :  { %2301 = vmatpush.bf16.msrb.mxu0 %v4319_v32  ;;  %2314 = vmatpush.bf16.msrb.mxu1 %v4447_v36  ;;  %v4527_v32 = vor.u32 %v5477_v24, %v4526_v22  ;;  %v4655_v36 = vor.u32 %v5509_v27, %v4654_v26  ;;  %v5323_v24 = vld [vmem:[#allocation8 + $0x1ac] sm:$0xf] }
 0x124   :  { %2282 = vmatmul.bf16.vlgmr.msra.gmra.mxu2 %v6044_v13  ;;  %v5359_v27 = vld [vmem:[#allocation8 + $0x2cc] sm:$0xf] }
 0x125   :  { %2326 = vmatpush.bf16.msrb.mxu2 %v4591_v41  ;;  %2295 = vmatmul.bf16.vlgmr.msra.gmra.mxu3 %v6046_v18  ;;  %v5505_v41 = vld [vmem:[#allocation8 + $0x754] sm:$0xf0] }
 0x126   :  { %2339 = vmatpush.bf16.msrb.mxu3 %v4719_v44  ;;  %v5401_v44 = vld [vmem:[#allocation8 + $0x414] sm:$0xf0]  ;;  %v4639_v52 = vor.u32 %v5505_v41, %v4638_v40 }
 0x127   :  { %2302 = vmatpush.bf16.msrb.mxu0 %v4303_v47  ;;  %2315 = vmatpush.bf16.msrb.mxu1 %v4431_v51  ;;  %v4511_v47 = vor.u32 %v5473_v38, %v4510_v37  ;;  %v5331_v51 = vld [vmem:[#allocation8 + $0x1ec] sm:$0xf]  ;;  %v4223_v58 = vor.u32 %v5401_v44, %v4222_v42 }
 0x128   :  { %v3955_v2 = vor.u32 %v5331_v51, %v3952_v54  ;;  %v5319_v38 = vld [vmem:[#allocation8 + $0x18c] sm:$0xf]  ;;  %v3760_v51 = vld [vmem:[#allocation8 + $0x78] sm:$0xf0] }
 0x129   :  { %2327 = vmatpush.bf16.msrb.mxu2 %v4575_v56  ;;  %v4494_v56 = vld [vmem:[#allocation8 + $0x628] sm:$0xf]  ;;  %v5355_v42 = vld [vmem:[#allocation8 + $0x2ac] sm:$0xf] }
 0x12a   :  { %2340 = vmatpush.bf16.msrb.mxu3 %v4703_v59  ;;  %v4622_v59 = vld [vmem:[#allocation8 + $0x728] sm:$0xf]  ;;  %v5315_v54 = vld [vmem:[#allocation8 + $0x16c] sm:$0xf] }
 0x12b   :  { %2303 = vmatpush.bf16.msrb.mxu0 %v4287_v0  ;;  %2316 = vmatpush.bf16.msrb.mxu1 %v4415_v33  ;;  %v3827_v0 = vor.u32 %v5299_v49, %v3824_v50  ;;  %v4495_v33 = vor.u32 %v5469_v57, %v4494_v56  ;;  %v4623_v6 = vor.u32 %v5501_v61, %v4622_v59  ;;  %v5283_v50 = vld [vmem:[#allocation8 + $0x6c] sm:$0xf]  ;;  %v3888_v56 = vld [vmem:[#allocation8 + $0x178] sm:$0xf0] }
 0x12c   :  { %v4032_v59 = vld [vmem:[#allocation8 + $0x298] sm:$0xf0]  ;;  %v3763_v61 = vor.u32 %v5283_v50, %v3760_v51  ;;  %v3891_v1 = vor.u32 %v5315_v54, %v3888_v56  ;;  %v5371_v51 = vld [vmem:[#allocation8 + $0x32c] sm:$0xf] }
 0x12d   :  { %2328 = vmatpush.bf16.msrb.mxu2 %v4559_v5  ;;  %v3936_v5 = vld [vmem:[#allocation8 + $0x1d8] sm:$0xf0] }
 0x12e   :  { %2341 = vmatpush.bf16.msrb.mxu3 %v4687_v8  ;;  %v5465_v8 = vld [vmem:[#allocation8 + $0x614] sm:$0xf0]  ;;  %v3939_v16 = vor.u32 %v5327_v4, %v3936_v5  ;;  %v5311_v4 = vld [vmem:[#allocation8 + $0x14c] sm:$0xf]  ;;  %v3872_v5 = vld [vmem:[#allocation8 + $0x158] sm:$0xf0] }
 0x12f   :  { %2304 = vmatpush.bf16.msrb.mxu0 %v4271_v11  ;;  %2317 = vmatpush.bf16.msrb.mxu1 %v4399_v60  ;;  %v5363_v11 = vld [vmem:[#allocation8 + $0x2ec] sm:$0xf] }
 0x130   :  { %v5395_v60 = vld [vmem:[#allocation8 + $0x3ec] sm:$0xf]  ;;  %v4083_v22 = vor.u32 %v5363_v11, %v4080_v12 }
 0x131   :  { %2329 = vmatpush.bf16.msrb.mxu2 %v4543_v17  ;;  %v4479_v17 = vor.u32 %v5465_v8, %v4478_v7  ;;  %v4211_v26 = vor.u32 %v5395_v60, %v4208_v15  ;;  %v5347_v8 = vld [vmem:[#allocation8 + $0x26c] sm:$0xf]  ;;  %v3875_v60 = vor.u32 %v5311_v4, %v3872_v5  ;;  %v4096_v5 = vld [vmem:[#allocation8 + $0x318] sm:$0xf0] }
 0x132   :  { %2342 = vmatpush.bf16.msrb.mxu3 %v4671_v21  ;;  %v4607_v21 = vor.u32 %v5497_v10, %v4606_v9  ;;  %v4016_v9 = vld [vmem:[#allocation8 + $0x278] sm:$0xf0]  ;;  %v5379_v12 = vld [vmem:[#allocation8 + $0x36c] sm:$0xf] }
 0x133   :  { %2305 = vmatpush.bf16.msrb.mxu0 %v4255_v25  ;;  %2318 = vmatpush.bf16.msrb.mxu1 %v4383_v29  ;;  %v3920_v25 = vld [vmem:[#allocation8 + $0x1b8] sm:$0xf0]  ;;  %v5275_v15 = vld [vmem:[#allocation8 + $0x2c] sm:$0xf] }
 0x134   :  { %v4064_v29 = vld [vmem:[#allocation8 + $0x2d8] sm:$0xf0]  ;;  %v3923_v34 = vor.u32 %v5323_v24, %v3920_v25 }
 0x135   :  { %2330 = vmatpush.bf16.msrb.mxu2 %v4527_v32  ;;  %v4192_v32 = vld [vmem:[#allocation8 + $0x3d8] sm:$0xf0]  ;;  %v4067_v37 = vor.u32 %v5359_v27, %v4064_v29  ;;  %v5375_v27 = vld [vmem:[#allocation8 + $0x34c] sm:$0xf] }
 0x136   :  { %2343 = vmatpush.bf16.msrb.mxu3 %v4655_v36  ;;  %v3776_v36 = vld [vmem:[#allocation8 + $0x98] sm:$0xf0]  ;;  %v4195_v41 = vor.u32 %v5391_v31, %v4192_v32  ;;  %v3859_v32 = vor.u32 %v5307_v19, %v3856_v20  ;;  %v5451_v20 = vld [vmem:[#allocation8 + $0x5ac] sm:$0xf] }
 0x137   :  { %2306 = vmatpush.bf16.msrb.mxu0 %v4239_v39  ;;  %2319 = vmatpush.bf16.msrb.mxu1 %v4367_v43  ;;  %v3904_v39 = vld [vmem:[#allocation8 + $0x198] sm:$0xf0]  ;;  %v3779_v45 = vor.u32 %v5287_v35, %v3776_v36  ;;  %v5303_v35 = vld [vmem:[#allocation8 + $0x10c] sm:$0xf] }
 0x138   :  { %v4048_v43 = vld [vmem:[#allocation8 + $0x2b8] sm:$0xf0]  ;;  %v3907_v49 = vor.u32 %v5319_v38, %v3904_v39  ;;  %v5427_v38 = vld [vmem:[#allocation8 + $0x4ec] sm:$0xf] }
 0x139   :  { %2331 = vmatpush.bf16.msrb.mxu2 %v4511_v47  ;;  %v6079_v40 = vpop.f32.mrf.mxu0  ;;  %v6082_v44 = vpop.f32.mrf.mxu1  ;;  %v4176_v47 = vld [vmem:[#allocation8 + $0x3b8] sm:$0xf0] }
 0x13a   :  { %2344 = vmatpush.bf16.msrb.mxu3 %v4639_v52  ;;  %v4051_v52 = vor.u32 %v5355_v42, %v4048_v43  ;;  %v4179_v57 = vor.u32 %v5387_v46, %v4176_v47  ;;  %v4000_v24 = vld [vmem:[#allocation8 + $0x258] sm:$0xf0]  ;;  %v5339_v46 = vld [vmem:[#allocation8 + $0x22c] sm:$0xf] }
 0x13b   :  { %2307 = vmatpush.bf16.msrb.mxu0 %v4223_v58  ;;  %2320 = vmatpush.bf16.msrb.mxu1 %v4351_v63  ;;  %v5351_v58 = vld [vmem:[#allocation8 + $0x28c] sm:$0xf]  ;;  %v4128_v29 = vld [vmem:[#allocation8 + $0x358] sm:$0xf0] }
 0x13c   :  { %v5383_v63 = vld [vmem:[#allocation8 + $0x38c] sm:$0xf]  ;;  %v4035_v3 = vor.u32 %v5351_v58, %v4032_v59  ;;  %v3840_v36 = vld [vmem:[#allocation8 + $0x118] sm:$0xf0]  ;;  %v4131_v43 = vor.u32 %v5375_v27, %v4128_v29 }
 0x13d   :  { %2332 = vmatpush.bf16.msrb.mxu2 %v4495_v33  ;;  %v3744_v33 = vld [vmem:[#allocation8 + $0x58] sm:$0xf0]  ;;  %v3843_v54 = vor.u32 %v5303_v35, %v3840_v36  ;;  %v5415_v35 = vld [vmem:[#allocation8 + $0x48c] sm:$0xf] }
 0x13e   :  { %2345 = vmatpush.bf16.msrb.mxu3 %v4623_v6  ;;  %2308 = vmatmul.bf16.vlgmr.msrb.gmra.mxu0 %v6053_v55  ;;  %v4336_v39 = vld [vmem:[#allocation8 + $0x4f8] sm:$0xf0] }
 0x13f   :  { %2352 = vmatpush.bf16.msra.mxu0 %v3827_v0  ;;  %2365 = vmatpush.bf16.msra.mxu1 %v3955_v2  ;;  %v4160_v0 = vld [vmem:[#allocation8 + $0x398] sm:$0xf0]  ;;  %v5279_v2 = vld [vmem:[#allocation8 + $0x4c] sm:$0xf]  ;;  %v4339_v56 = vor.u32 %v5427_v38, %v4336_v39 }
 0x140   :  { %2321 = vmatmul.bf16.vlgmr.msrb.gmra.mxu1 %v6055_v62  ;;  %v4163_v7 = vor.u32 %v5383_v63, %v4160_v0  ;;  %v3747_v11 = vor.u32 %v5279_v2, %v3744_v33  ;;  %v3984_v47 = vld [vmem:[#allocation8 + $0x238] sm:$0xf0]  ;;  %v5455_v63 = vld [vmem:[#allocation8 + $0x5cc] sm:$0xf] }
 0x141   :  { %2333 = vmatpush.bf16.msrb.mxu2 %v4479_v17  ;;  %v2051_v6 = vpop.f32.mrf.mxu0  ;;  %v2064_v10 = vpop.f32.mrf.mxu1  ;;  %v4019_v17 = vor.u32 %v5347_v8, %v4016_v9  ;;  %v3987_v59 = vor.u32 %v5339_v46, %v3984_v47  ;;  %v4448_v0 = vld [vmem:[#allocation8 + $0x5d8] sm:$0xf0]  ;;  %v5335_v2 = vld [vmem:[#allocation8 + $0x20c] sm:$0xf] }
 0x142   :  { %2346 = vmatpush.bf16.msrb.mxu3 %v4607_v21  ;;  %v3968_v33 = vld [vmem:[#allocation8 + $0x218] sm:$0xf0]  ;;  %v5491_v6 = vld [vmem:[#allocation8 + $0x6ec] sm:$0xf] }
 0x143   :  { %2353 = vmatpush.bf16.msra.mxu0 %v3811_v14  ;;  %2366 = vmatpush.bf16.msra.mxu1 %v3939_v16  ;;  %v4144_v14 = vld [vmem:[#allocation8 + $0x378] sm:$0xf0]  ;;  %v5523_v10 = vld [vmem:[#allocation8 + $0x7ec] sm:$0xf] }
 0x144   :  { %2334 = vmatmul.bf16.vlgmr.msrb.gmra.mxu2 %v6059_v23  ;;  %v3728_v16 = vld [vmem:[#allocation8 + $0x38] sm:$0xf0]  ;;  %v4147_v21 = vor.u32 %v5379_v12, %v4144_v14  ;;  %v4451_v12 = vor.u32 %v5455_v63, %v4448_v0  ;;  %v3971_v14 = vor.u32 %v5335_v2, %v3968_v33  ;;  %v5515_v47 = vld [vmem:[#allocation8 + $0x7ac] sm:$0xf] }
 0x145   :  { %2378 = vmatpush.bf16.msra.mxu2 %v4083_v22  ;;  %2347 = vmatmul.bf16.vlgmr.msrb.gmra.mxu3 %v6061_v28  ;;  %v5343_v22 = vld [vmem:[#allocation8 + $0x24c] sm:$0xf]  ;;  %v4576_v27 = vld [vmem:[#allocation8 + $0x6d8] sm:$0xf0] }
 0x146   :  { %2391 = vmatpush.bf16.msra.mxu3 %v4211_v26  ;;  %v3731_v26 = vor.u32 %v5275_v15, %v3728_v16  ;;  %v4304_v15 = vld [vmem:[#allocation8 + $0x4b8] sm:$0xf0]  ;;  %v5479_v63 = vld [vmem:[#allocation8 + $0x68c] sm:$0xf] }
 0x147   :  { %2354 = vmatpush.bf16.msra.mxu0 %v3795_v30  ;;  %2367 = vmatpush.bf16.msra.mxu1 %v3923_v34  ;;  %v6085_v25 = vpop.f32.mrf.mxu2  ;;  %v5271_v30 = vld [vmem:[#allocation8 + $0xc] sm:$0xf]  ;;  %v6087_v31 = vpop.f32.mrf.mxu3  ;;  %v3712_v34 = vld [vmem:[#allocation8 + $0x18] sm:$0xf0] }
 0x148   :  { %v3715_v50 = vor.u32 %v5271_v30, %v3712_v34  ;;  %v5519_v30 = vld [vmem:[#allocation8 + $0x7cc] sm:$0xf]  ;;  %v4416_v38 = vld [vmem:[#allocation8 + $0x598] sm:$0xf0] }
 0x149   :  { %2379 = vmatpush.bf16.msra.mxu2 %v4067_v37  ;;  %v4003_v37 = vor.u32 %v5343_v22, %v4000_v24  ;;  %v5511_v2 = vld [vmem:[#allocation8 + $0x78c] sm:$0xf] }
 0x14a   :  { %2392 = vmatpush.bf16.msra.mxu3 %v4195_v41  ;;  %v5459_v41 = vld [vmem:[#allocation8 + $0x5ec] sm:$0xf]  ;;  %v6089_v42 = vpop.f32.mrf.mxu0 }
 0x14b   :  { %2355 = vmatpush.bf16.msra.mxu0 %v3779_v45  ;;  %2368 = vmatpush.bf16.msra.mxu1 %v3907_v49  ;;  %v4464_v45 = vld [vmem:[#allocation8 + $0x5f8] sm:$0xf0]  ;;  %v6091_v49 = vpop.f32.mrf.mxu1 }
 0x14c   :  { %v4467_v58 = vor.u32 %v5459_v41, %v4464_v45  ;;  %v5483_v41 = vld [vmem:[#allocation8 + $0x6ac] sm:$0xf] }
 0x14d   :  { %2380 = vmatpush.bf16.msra.mxu2 %v4051_v52  ;;  %v4112_v52 = vld [vmem:[#allocation8 + $0x338] sm:$0xf0] }
 0x14e   :  { %2393 = vmatpush.bf16.msra.mxu3 %v4179_v57  ;;  %v5423_v57 = vld [vmem:[#allocation8 + $0x4cc] sm:$0xf] }
 0x14f   :  { %2356 = vmatpush.bf16.msra.mxu0 %v3763_v61  ;;  %2369 = vmatpush.bf16.msra.mxu1 %v3891_v1  ;;  %v4320_v61 = vld [vmem:[#allocation8 + $0x4d8] sm:$0xf0]  ;;  %v4115_v1 = vor.u32 %v5371_v51, %v4112_v52  ;;  %v2077_v4 = vpop.f32.mrf.mxu2  ;;  %v2090_v8 = vpop.f32.mrf.mxu3  ;;  %v5411_v52 = vld [vmem:[#allocation8 + $0x46c] sm:$0xf] }
 0x150   :  { %v4323_v9 = vor.u32 %v5423_v57, %v4320_v61  ;;  %v5443_v57 = vld [vmem:[#allocation8 + $0x56c] sm:$0xf]  ;;  %v4256_v4 = vld [vmem:[#allocation8 + $0x458] sm:$0xf0] }
 0x151   :  { %2381 = vmatpush.bf16.msra.mxu2 %v4035_v3  ;;  %v5367_v3 = vld [vmem:[#allocation8 + $0x30c] sm:$0xf] }
 0x152   :  { %2394 = vmatpush.bf16.msra.mxu3 %v4163_v7  ;;  %v4592_v7 = vld [vmem:[#allocation8 + $0x6f8] sm:$0xf0]  ;;  %v2103_v16 = vpop.f32.mrf.mxu0 }
 0x153   :  { %2357 = vmatpush.bf16.msra.mxu0 %v3747_v11  ;;  %2370 = vmatpush.bf16.msra.mxu1 %v3875_v60  ;;  %v4720_v11 = vld [vmem:[#allocation8 + $0x7f8] sm:$0xf0]  ;;  %v5419_v60 = vld [vmem:[#allocation8 + $0x4ac] sm:$0xf]  ;;  %v4595_v19 = vor.u32 %v5491_v6, %v4592_v7  ;;  %v2116_v22 = vpop.f32.mrf.mxu1 }
 0x154   :  { %v4723_v24 = vor.u32 %v5523_v10, %v4720_v11  ;;  %v4307_v29 = vor.u32 %v5419_v60, %v4304_v15  ;;  %v5439_v6 = vld [vmem:[#allocation8 + $0x54c] sm:$0xf]  ;;  %v4384_v7 = vld [vmem:[#allocation8 + $0x558] sm:$0xf0] }
 0x155   :  { %2382 = vmatpush.bf16.msra.mxu2 %v4019_v17  ;;  %v4099_v17 = vor.u32 %v5367_v3, %v4096_v5  ;;  %v5407_v3 = vld [vmem:[#allocation8 + $0x44c] sm:$0xf]  ;;  %v4528_v11 = vld [vmem:[#allocation8 + $0x678] sm:$0xf0] }
 0x156   :  { %2395 = vmatpush.bf16.msra.mxu3 %v4147_v21  ;;  %v4432_v21 = vld [vmem:[#allocation8 + $0x5b8] sm:$0xf0]  ;;  %v5475_v10 = vld [vmem:[#allocation8 + $0x66c] sm:$0xf]  ;;  %v4259_v60 = vor.u32 %v5407_v3, %v4256_v4 }
 0x157   :  { %2358 = vmatpush.bf16.msra.mxu0 %v3731_v26  ;;  %2371 = vmatpush.bf16.msra.mxu1 %v3859_v32  ;;  %v5487_v26 = vld [vmem:[#allocation8 + $0x6cc] sm:$0xf]  ;;  %v4704_v32 = vld [vmem:[#allocation8 + $0x7d8] sm:$0xf0]  ;;  %v4435_v34 = vor.u32 %v5451_v20, %v4432_v21  ;;  %v6097_v45 = vpop.f32.mrf.mxu3  ;;  %v4531_v21 = vor.u32 %v5475_v10, %v4528_v11 }
 0x158   :  { %v4579_v36 = vor.u32 %v5487_v26, %v4576_v27  ;;  %v4707_v39 = vor.u32 %v5519_v30, %v4704_v32  ;;  %v5507_v15 = vld [vmem:[#allocation8 + $0x76c] sm:$0xf]  ;;  %v4656_v16 = vld [vmem:[#allocation8 + $0x778] sm:$0xf0] }
 0x159   :  { %2383 = vmatpush.bf16.msra.mxu2 %v4003_v37  ;;  %v5447_v37 = vld [vmem:[#allocation8 + $0x58c] sm:$0xf]  ;;  %v4240_v20 = vld [vmem:[#allocation8 + $0x438] sm:$0xf0] }
 0x15a   :  { %2396 = vmatpush.bf16.msra.mxu3 %v4131_v43  ;;  %v4560_v43 = vld [vmem:[#allocation8 + $0x6b8] sm:$0xf0]  ;;  %v4419_v51 = vor.u32 %v5447_v37, %v4416_v38  ;;  %v5435_v22 = vld [vmem:[#allocation8 + $0x52c] sm:$0xf] }
 0x15b   :  { %2359 = vmatpush.bf16.msra.mxu0 %v3715_v50  ;;  %2372 = vmatpush.bf16.msra.mxu1 %v3843_v54  ;;  %v4688_v50 = vld [vmem:[#allocation8 + $0x7b8] sm:$0xf0]  ;;  %v5471_v30 = vld [vmem:[#allocation8 + $0x64c] sm:$0xf] }
 0x15c   :  { %v4272_v54 = vld [vmem:[#allocation8 + $0x478] sm:$0xf0]  ;;  %v4691_v61 = vor.u32 %v5515_v47, %v4688_v50  ;;  %v5399_v37 = vld [vmem:[#allocation8 + $0x40c] sm:$0xf]  ;;  %v4782_v47 = vld [vmem:[#allocation11 + $0x70] sm:$0xf] }
 0x15d   :  { %2384 = vmatpush.bf16.msra.mxu2 %v3987_v59  ;;  %v6101_v59 = vpop.f32.mrf.mxu0  ;;  %v6103_v0 = vpop.f32.mrf.mxu1  ;;  %v4512_v32 = vld [vmem:[#allocation8 + $0x658] sm:$0xf0] }
 0x15e   :  { %2397 = vmatpush.bf16.msra.mxu3 %v4115_v1  ;;  %2360 = vmatmul.bf16.vlgmr.msra.gmra.mxu0 %v6036_v48  ;;  %v4288_v48 = vld [vmem:[#allocation8 + $0x498] sm:$0xf0]  ;;  %v4275_v1 = vor.u32 %v5411_v52, %v4272_v54 }
 0x15f   :  { %2404 = vmatpush.bf16.msrb.mxu0 %v4339_v56  ;;  %2417 = vmatpush.bf16.msrb.mxu1 %v4467_v58  ;;  %v4291_v46 = vor.u32 %v5415_v35, %v4288_v48  ;;  %v4563_v56 = vor.u32 %v5483_v41, %v4560_v43  ;;  %v4400_v58 = vld [vmem:[#allocation8 + $0x578] sm:$0xf0]  ;;  %v5503_v48 = vld [vmem:[#allocation8 + $0x74c] sm:$0xf] }
 0x160   :  { %2373 = vmatmul.bf16.vlgmr.msra.gmra.mxu1 %v6039_v53  ;;  %v6095_v53 = vpop.f32.mrf.mxu2  ;;  %v4403_v33 = vor.u32 %v5443_v57, %v4400_v58  ;;  %v5431_v41 = vld [vmem:[#allocation8 + $0x50c] sm:$0xf]  ;;  %v4352_v43 = vld [vmem:[#allocation8 + $0x518] sm:$0xf0] }
 0x161   :  { %2385 = vmatpush.bf16.msra.mxu2 %v3971_v14  ;;  %v2142_v14 = vpop.f32.mrf.mxu3  ;;  %v5541_v50 = vld [vmem:[#allocation11 + $0x74] sm:$0xf0] }
 0x162   :  { %2398 = vmatpush.bf16.msra.mxu3 %v4099_v17  ;;  %v4387_v17 = vor.u32 %v5439_v6, %v4384_v7  ;;  %v5557_v54 = vld [vmem:[#allocation11 + $0xf4] sm:$0xf0]  ;;  %v5539_v6 = vld [vmem:[#allocation11 + $0x64] sm:$0xf0]  ;;  %v4838_v7 = vld [vmem:[#allocation11 + $0xe0] sm:$0xf] }
 0x163   :  { %2405 = vmatpush.bf16.msrb.mxu0 %v4323_v9  ;;  %2418 = vmatpush.bf16.msrb.mxu1 %v4451_v12  ;;  %v6105_v12 = vld [vmem:[#allocation10] sm:$0xf]  ;;  %v4496_v57 = vld [vmem:[#allocation8 + $0x638] sm:$0xf0]  ;;  %v5495_v14 = vld [vmem:[#allocation8 + $0x70c] sm:$0xf] }
 0x164   :  { %2386 = vmatmul.bf16.vlgmr.msra.gmra.mxu2 %v6044_v13  ;;  %v4544_v13 = vld [vmem:[#allocation8 + $0x698] sm:$0xf0]  ;;  %v752_v26 = vperm.slane %v6105_v12, 0 }
 0x165   :  { %2430 = vmatpush.bf16.msrb.mxu2 %v4595_v19  ;;  %2399 = vmatmul.bf16.vlgmr.msra.gmra.mxu3 %v6046_v18  ;;  %v4672_v18 = vld [vmem:[#allocation8 + $0x798] sm:$0xf0]  ;;  %v4547_v5 = vor.u32 %v5479_v63, %v4544_v13  ;;  %v5403_v19 = vld [vmem:[#allocation8 + $0x42c] sm:$0xf]  ;;  %v2155_v27 = vpop.f32.mrf.mxu0 }
 0x166   :  { %2443 = vmatpush.bf16.msrb.mxu3 %v4723_v24  ;;  %v4675_v9 = vor.u32 %v5511_v2, %v4672_v18  ;;  %v4368_v24 = vld [vmem:[#allocation8 + $0x538] sm:$0xf0]  ;;  %v4243_v35 = vor.u32 %v5403_v19, %v4240_v20  ;;  %v2050_v58 = vadd.f32 %v6079_v40, %v752_v26  ;;  %v4355_v18 = vor.u32 %v5431_v41, %v4352_v43  ;;  %v5555_v40 = vld [vmem:[#allocation11 + $0xe4] sm:$0xf0]  ;;  %v4766_v19 = vld [vmem:[#allocation11 + $0x50] sm:$0xf] }
 0x167   :  { %2406 = vmatpush.bf16.msrb.mxu0 %v4307_v29  ;;  %2419 = vmatpush.bf16.msrb.mxu1 %v4435_v34  ;;  %v4659_v29 = vor.u32 %v5507_v15, %v4656_v16  ;;  %v2168_v34 = vpop.f32.mrf.mxu1  ;;  %v4371_v38 = vor.u32 %v5435_v22, %v4368_v24  ;;  %v4624_v2 = vld [vmem:[#allocation8 + $0x738] sm:$0xf0]  ;;  %v4839_v16 = vor.u32 %v5555_v40, %v4838_v7  ;;  %v4830_v24 = vld [vmem:[#allocation11 + $0xd0] sm:$0xf] }
 0x168   :  { %v2129_v8 = vpop.f32.mrf.mxu2  ;;  %v4480_v10 = vld [vmem:[#allocation8 + $0x618] sm:$0xf0]  ;;  %v2063_v11 = vadd.f32 %v6082_v44, %v2050_v58  ;;  %v4758_v34 = vld [vmem:[#allocation11 + $0x40] sm:$0xf]  ;;  %v4814_v43 = vld [vmem:[#allocation11 + $0xb0] sm:$0xf] }
 0x169   :  { %2431 = vmatpush.bf16.msrb.mxu2 %v4579_v36  ;;  %v4640_v36 = vld [vmem:[#allocation8 + $0x758] sm:$0xf0]  ;;  %v6111_v63 = vpop.f32.mrf.mxu3  ;;  %v4806_v58 = vld [vmem:[#allocation11 + $0xa0] sm:$0xf]  ;;  %v4798_v7 = vld [vmem:[#allocation11 + $0x90] sm:$0xf] }
 0x16a   :  { %2444 = vmatpush.bf16.msrb.mxu3 %v4707_v39  ;;  %v4224_v39 = vld [vmem:[#allocation8 + $0x418] sm:$0xf0]  ;;  %v4643_v52 = vor.u32 %v5503_v48, %v4640_v36  ;;  %v2076_v26 = vadd.f32 %v6085_v25, %v2063_v11  ;;  %v5551_v36 = vld [vmem:[#allocation11 + $0xc4] sm:$0xf0] }
 0x16b   :  { %2407 = vmatpush.bf16.msrb.mxu0 %v4291_v46  ;;  %2420 = vmatpush.bf16.msrb.mxu1 %v4419_v51  ;;  %v4515_v46 = vor.u32 %v5471_v30, %v4512_v32  ;;  %v4846_v51 = vld [vmem:[#allocation11 + $0xf0] sm:$0xf]  ;;  %v4227_v13 = vor.u32 %v5399_v37, %v4224_v39  ;;  %v5537_v20 = vld [vmem:[#allocation11 + $0x54] sm:$0xf0] }
 0x16c   :  { %v4847_v3 = vor.u32 %v5557_v54, %v4846_v51  ;;  %v5553_v44 = vld [vmem:[#allocation11 + $0xd4] sm:$0xf0]  ;;  %v4767_v30 = vor.u32 %v5537_v20, %v4766_v19  ;;  %v2089_v37 = vadd.f32 %v6087_v31, %v2076_v26  ;;  %v4910_v51 = vld [vmem:[#allocation11 + $0x170] sm:$0xf]  ;;  %v4742_v54 = vld [vmem:[#allocation11 + $0x20] sm:$0xf] }
 0x16d   :  { %2432 = vmatpush.bf16.msrb.mxu2 %v4563_v56  ;;  %v5467_v56 = vld [vmem:[#allocation8 + $0x62c] sm:$0xf]  ;;  %v4831_v32 = vor.u32 %v5553_v44, %v4830_v24  ;;  %v5533_v39 = vld [vmem:[#allocation11 + $0x34] sm:$0xf0]  ;;  %v5540_v20 = vld [vmem:[#allocation11 + $0x74] sm:$0xf] }
 0x16e   :  { %2445 = vmatpush.bf16.msrb.mxu3 %v4691_v61  ;;  %v4499_v4 = vor.u32 %v5467_v56, %v4496_v57  ;;  %v5531_v56 = vld [vmem:[#allocation11 + $0x24] sm:$0xf0]  ;;  %v5556_v24 = vld [vmem:[#allocation11 + $0xf4] sm:$0xf]  ;;  %v4848_v44 = vld [vmem:[#allocation11 + $0xf8] sm:$0xf0] }
 0x16f   :  { %2408 = vmatpush.bf16.msrb.mxu0 %v4275_v1  ;;  %2421 = vmatpush.bf16.msrb.mxu1 %v4403_v33  ;;  %v5499_v1 = vld [vmem:[#allocation8 + $0x72c] sm:$0xf]  ;;  %v4783_v33 = vor.u32 %v5541_v50, %v4782_v47 }
 0x170   :  { %v6109_v61 = vpop.f32.mrf.mxu2  ;;  %v4627_v8 = vor.u32 %v5499_v1, %v4624_v2  ;;  %v4743_v1 = vor.u32 %v5531_v56, %v4742_v54  ;;  %v5571_v2 = vld [vmem:[#allocation11 + $0x164] sm:$0xf0]  ;;  %v5552_v56 = vld [vmem:[#allocation11 + $0xd4] sm:$0xf] }
 0x171   :  { %2433 = vmatpush.bf16.msrb.mxu2 %v4547_v5  ;;  %v4774_v5 = vld [vmem:[#allocation11 + $0x60] sm:$0xf]  ;;  %v5543_v19 = vld [vmem:[#allocation11 + $0x84] sm:$0xf0] }
 0x172   :  { %2446 = vmatpush.bf16.msrb.mxu3 %v4675_v9  ;;  %v5463_v9 = vld [vmem:[#allocation8 + $0x60c] sm:$0xf]  ;;  %v4775_v15 = vor.u32 %v5539_v6, %v4774_v5 }
 0x173   :  { %2409 = vmatpush.bf16.msrb.mxu0 %v4259_v60  ;;  %2422 = vmatpush.bf16.msrb.mxu1 %v4387_v17  ;;  %v4608_v60 = vld [vmem:[#allocation8 + $0x718] sm:$0xf0]  ;;  %v4483_v17 = vor.u32 %v5463_v9, %v4480_v10 }
 0x174   :  { %v4611_v22 = vor.u32 %v5495_v14, %v4608_v60  ;;  %v5569_v10 = vld [vmem:[#allocation11 + $0x154] sm:$0xf0]  ;;  %v5527_v60 = vld [vmem:[#allocation11 + $0x4] sm:$0xf0] }
 0x175   :  { %2434 = vmatpush.bf16.msrb.mxu2 %v4531_v21  ;;  %v753_v21 = vperm.slane %v6105_v12, 1 }
 0x176   :  { %2447 = vmatpush.bf16.msrb.mxu3 %v4659_v29  ;;  %v2194_v29 = vpop.f32.mrf.mxu3 }
 0x177   :  { %2410 = vmatpush.bf16.msrb.mxu0 %v4243_v35  ;;  %2423 = vmatpush.bf16.msrb.mxu1 %v4371_v38  ;;  %v5535_v35 = vld [vmem:[#allocation11 + $0x44] sm:$0xf0]  ;;  %v2154_v48 = vadd.f32 %v6101_v59, %v753_v21  ;;  %v4750_v38 = vld [vmem:[#allocation11 + $0x30] sm:$0xf]  ;;  %v2102_v59 = vadd.f32 %v6089_v42, %v2089_v37  ;;  %v4784_v21 = vld [vmem:[#allocation11 + $0x78] sm:$0xf0] }
 0x178   :  { %v2181_v27 = vpop.f32.mrf.mxu2  ;;  %v5538_v37 = vld [vmem:[#allocation11 + $0x64] sm:$0xf] }
 0x179   :  { %2435 = vmatpush.bf16.msrb.mxu2 %v4515_v46  ;;  %v2167_v41 = vadd.f32 %v6103_v0, %v2154_v48  ;;  %v5549_v46 = vld [vmem:[#allocation11 + $0xb4] sm:$0xf0]  ;;  %v2115_v0 = vadd.f32 %v6091_v49, %v2102_v59 }
 0x17a   :  { %2448 = vmatpush.bf16.msrb.mxu3 %v4643_v52  ;;  %v5573_v52 = vld [vmem:[#allocation11 + $0x174] sm:$0xf0] }
 0x17b   :  { %2411 = vmatpush.bf16.msrb.mxu0 %v4227_v13  ;;  %2424 = vmatpush.bf16.msrb.mxu1 %v4355_v18  ;;  %v2205_v47 = vpop.f32.mrf.mxu0  ;;  %v2180_v50 = vadd.f32 %v6109_v61, %v2167_v41  ;;  %v4911_v57 = vor.u32 %v5573_v52, %v4910_v51  ;;  %v5547_v13 = vld [vmem:[#allocation11 + $0xa4] sm:$0xf0]  ;;  %v4902_v61 = vld [vmem:[#allocation11 + $0x160] sm:$0xf]  ;;  %v2128_v18 = vadd.f32 %v6095_v53, %v2115_v0  ;;  %v4878_v41 = vld [vmem:[#allocation11 + $0x130] sm:$0xf] }
 0x17c   :  { %v4903_v5 = vor.u32 %v5571_v2, %v4902_v61  ;;  %v4726_v53 = vld [vmem:[#allocation11] sm:$0xf]  ;;  %v5536_v52 = vld [vmem:[#allocation11 + $0x54] sm:$0xf]  ;;  %v4760_v61 = vld [vmem:[#allocation11 + $0x48] sm:$0xf0] }
 0x17d   :  { %2436 = vmatpush.bf16.msrb.mxu2 %v4499_v4  ;;  %v2218_v31 = vpop.f32.mrf.mxu1  ;;  %v2193_v42 = vadd.f32 %v6111_v63, %v2180_v50  ;;  %v5529_v4 = vld [vmem:[#allocation11 + $0x14] sm:$0xf0]  ;;  %v4894_v63 = vld [vmem:[#allocation11 + $0x150] sm:$0xf]  ;;  %v2141_v11 = vadd.f32 %v6097_v45, %v2128_v18  ;;  %v4727_v29 = vor.u32 %v5527_v60, %v4726_v53  ;;  %v5567_v45 = vld [vmem:[#allocation11 + $0x144] sm:$0xf0] }
 0x17e   :  { %2449 = vmatpush.bf16.msrb.mxu3 %v4627_v8  ;;  %2412 = vmatmul.bf16.vlgmr.msrb.gmra.mxu0 %v6053_v55  ;;  %v4822_v55 = vld [vmem:[#allocation11 + $0xc0] sm:$0xf]  ;;  %v5545_v8 = vld [vmem:[#allocation11 + $0x94] sm:$0xf0]  ;;  %v5550_v2 = vld [vmem:[#allocation11 + $0xc4] sm:$0xf] }
 0x17f   :  { %2854 = vmatpush.bf16.msra.mxu0 %v4783_v33  ;;  %2867 = vmatpush.bf16.msra.mxu1 %v4847_v3  ;;  %v4823_v25 = vor.u32 %v5551_v36, %v4822_v55  ;;  %v4807_v33 = vor.u32 %v5547_v13, %v4806_v58  ;;  %v4734_v3 = vld [vmem:[#allocation11 + $0x10] sm:$0xf]  ;;  %v2206_v6 = vadd.f32 %v2205_v47, %v2193_v42  ;;  %v4870_v50 = vld [vmem:[#allocation11 + $0x120] sm:$0xf]  ;;  %v4824_v18 = vld [vmem:[#allocation11 + $0xc8] sm:$0xf0] }
 0x180   :  { %2425 = vmatmul.bf16.vlgmr.msrb.gmra.mxu1 %v6055_v62  ;;  %v4759_v62 = vor.u32 %v5535_v35, %v4758_v34  ;;  %v4735_v9 = vor.u32 %v5529_v4, %v4734_v3  ;;  %v4799_v14 = vor.u32 %v5545_v8, %v4798_v7  ;;  %v4787_v35 = vor.u32 %v5540_v20, %v4784_v21  ;;  %v5561_v3 = vld [vmem:[#allocation11 + $0x114] sm:$0xf0]  ;;  %v5532_v7 = vld [vmem:[#allocation11 + $0x34] sm:$0xf]  ;;  %v4752_v8 = vld [vmem:[#allocation11 + $0x38] sm:$0xf0] }
 0x181   :  { %2437 = vmatpush.bf16.msrb.mxu2 %v4483_v17  ;;  %v2219_v17 = vadd.f32 %v2218_v31, %v2206_v6  ;;  %v4851_v36 = vor.u32 %v5556_v24, %v4848_v44  ;;  %v5563_v31 = vld [vmem:[#allocation11 + $0x124] sm:$0xf0]  ;;  %v4827_v6 = vor.u32 %v5550_v2, %v4824_v18  ;;  %v4755_v53 = vor.u32 %v5532_v7, %v4752_v8  ;;  %v5546_v21 = vld [vmem:[#allocation11 + $0xa4] sm:$0xf]  ;;  %v5560_v18 = vld [vmem:[#allocation11 + $0x114] sm:$0xf] }
 0x182   :  { %2450 = vmatpush.bf16.msrb.mxu3 %v4611_v22  ;;  %v4871_v58 = vor.u32 %v5563_v31, %v4870_v50  ;;  %v5570_v44 = vld [vmem:[#allocation11 + $0x164] sm:$0xf]  ;;  %v4856_v7 = vld [vmem:[#allocation11 + $0x108] sm:$0xf0]  ;;  %v4974_v8 = vld [vmem:[#allocation11 + $0x1f0] sm:$0xf] }
 0x183   :  { %2855 = vmatpush.bf16.msra.mxu0 %v4775_v15  ;;  %2868 = vmatpush.bf16.msra.mxu1 %v4839_v16  ;;  %v2207_v40 = vpop.f32.mrf.mxu0  ;;  %v4790_v15 = vld [vmem:[#allocation11 + $0x80] sm:$0xf]  ;;  %v4895_v16 = vor.u32 %v5569_v10, %v4894_v63  ;;  %v5559_v10 = vld [vmem:[#allocation11 + $0x104] sm:$0xf0]  ;;  %v5566_v31 = vld [vmem:[#allocation11 + $0x144] sm:$0xf] }
 0x184   :  { %2438 = vmatmul.bf16.vlgmr.msrb.gmra.mxu2 %v6059_v23  ;;  %v4751_v23 = vor.u32 %v5533_v39, %v4750_v38  ;;  %v4791_v34 = vor.u32 %v5543_v19, %v4790_v15  ;;  %v4840_v38 = vld [vmem:[#allocation11 + $0xe8] sm:$0xf0]  ;;  %v5548_v40 = vld [vmem:[#allocation11 + $0xb4] sm:$0xf]  ;;  %v4854_v63 = vld [vmem:[#allocation11 + $0x100] sm:$0xf] }
 0x185   :  { %2451 = vmatmul.bf16.vlgmr.msrb.gmra.mxu3 %v6061_v28  ;;  %v4815_v28 = vor.u32 %v5549_v46, %v4814_v43  ;;  %2880 = vmatpush.bf16.msra.mxu2 %v4911_v57  ;;  %v2220_v49 = vpop.f32.mrf.mxu1  ;;  %v5565_v43 = vld [vmem:[#allocation11 + $0x134] sm:$0xf0]  ;;  %v4832_v57 = vld [vmem:[#allocation11 + $0xd8] sm:$0xf0]  ;;  %v4855_v60 = vor.u32 %v5559_v10, %v4854_v63  ;;  %v4744_v19 = vld [vmem:[#allocation11 + $0x28] sm:$0xf0] }
 0x186   :  { %v4879_v47 = vor.u32 %v5565_v43, %v4878_v41  ;;  %v4835_v42 = vor.u32 %v5552_v56, %v4832_v57  ;;  %v4816_v49 = vld [vmem:[#allocation11 + $0xb8] sm:$0xf0]  ;;  %v5542_v41 = vld [vmem:[#allocation11 + $0x84] sm:$0xf]  ;;  %v4792_v43 = vld [vmem:[#allocation11 + $0x88] sm:$0xf0] }
 0x187   :  { %2856 = vmatpush.bf16.msra.mxu0 %v4767_v30  ;;  %2869 = vmatpush.bf16.msra.mxu1 %v4831_v32  ;;  %v2231_v22 = vpop.f32.mrf.mxu2  ;;  %v4886_v30 = vld [vmem:[#allocation11 + $0x140] sm:$0xf]  ;;  %v2456_v32 = vmax.f32 %v2141_v11, 0.0  ;;  %v5572_v11 = vld [vmem:[#allocation11 + $0x174] sm:$0xf] }
 0x188   :  { %v2232_v26 = vadd.f32 %v2231_v22, %v2219_v17  ;;  %v2244_v27 = vpop.f32.mrf.mxu3  ;;  %v4887_v48 = vor.u32 %v5567_v45, %v4886_v30  ;;  %v4912_v15 = vld [vmem:[#allocation11 + $0x178] sm:$0xf0]  ;;  %v5530_v17 = vld [vmem:[#allocation11 + $0x24] sm:$0xf]  ;;  %v4808_v22 = vld [vmem:[#allocation11 + $0xa8] sm:$0xf0] }
 0x189   :  { %2881 = vmatpush.bf16.msra.mxu2 %v4903_v5  ;;  %v6129_v46 = vpack.c.bf16 %v2456_v32, %v2456_v32  ;;  %v4915_v20 = vor.u32 %v5572_v11, %v4912_v15  ;;  %v4747_v24 = vor.u32 %v5530_v17, %v4744_v19  ;;  %v4736_v30 = vld [vmem:[#allocation11 + $0x18] sm:$0xf0]  ;;  %v5544_v32 = vld [vmem:[#allocation11 + $0x94] sm:$0xf]  ;;  %v5589_v63 = vld [vmem:[#allocation11 + $0x1f4] sm:$0xf0] }
 0x18a   :  { %v2245_v55 = vadd.f32 %v2244_v27, %v2232_v26  ;;  %v4904_v26 = vld [vmem:[#allocation11 + $0x168] sm:$0xf0]  ;;  %v4811_v27 = vor.u32 %v5546_v21, %v4808_v22  ;;  %v4880_v56 = vld [vmem:[#allocation11 + $0x138] sm:$0xf0]  ;;  %v4975_v10 = vor.u32 %v5589_v63, %v4974_v8  ;;  %v5587_v11 = vld [vmem:[#allocation11 + $0x1e4] sm:$0xf0] }
 0x18b   :  { %2857 = vmatpush.bf16.msra.mxu0 %v4759_v62  ;;  %2870 = vmatpush.bf16.msra.mxu1 %v4823_v25  ;;  %v4776_v62 = vld [vmem:[#allocation11 + $0x68] sm:$0xf0]  ;;  %v5554_v25 = vld [vmem:[#allocation11 + $0xe4] sm:$0xf]  ;;  %v4907_v45 = vor.u32 %v5570_v44, %v4904_v26  ;;  %v5585_v17 = vld [vmem:[#allocation11 + $0x1d4] sm:$0xf0] }
 0x18c   :  { %v2457_v39 = vmax.f32 %v2245_v55, 0.0  ;;  %v4779_v59 = vor.u32 %v5538_v37, %v4776_v62  ;;  %v4843_v51 = vor.u32 %v5554_v25, %v4840_v38  ;;  %v4896_v37 = vld [vmem:[#allocation11 + $0x158] sm:$0xf0]  ;;  %v5526_v25 = vld [vmem:[#allocation11 + $0x4] sm:$0xf]  ;;  %2893 = vmatpush.bf16.msra.mxu3 %v4975_v10  ;;  %v755_v8 = vperm.slane %v6105_v12, 3 }
 0x18d   :  { %2882 = vmatpush.bf16.msra.mxu2 %v4895_v16  ;;  %v4819_v16 = vor.u32 %v5548_v40, %v4816_v49  ;;  %v4728_v38 = vld [vmem:[#allocation11 + $0x8] sm:$0xf0]  ;;  %v4950_v22 = vld [vmem:[#allocation11 + $0x1c0] sm:$0xf]  ;;  %v5576_v10 = vld [vmem:[#allocation11 + $0x194] sm:$0xf] }
 0x18e   :  { %v4731_v50 = vor.u32 %v5526_v25, %v4728_v38  ;;  %v4926_v25 = vld [vmem:[#allocation11 + $0x190] sm:$0xf]  ;;  %v5577_v38 = vld [vmem:[#allocation11 + $0x194] sm:$0xf0] }
 0x18f   :  { %2858 = vmatpush.bf16.msra.mxu0 %v4751_v23  ;;  %2871 = vmatpush.bf16.msra.mxu1 %v4815_v28  ;;  %v6131_v23 = vpack.c.bf16 %v2457_v39, %v2457_v39  ;;  %v4768_v28 = vld [vmem:[#allocation11 + $0x58] sm:$0xf0]  ;;  %v2233_v54 = vpop.f32.mrf.mxu2 }
 0x190   :  { %v2246_v13 = vpop.f32.mrf.mxu3  ;;  %v4771_v0 = vor.u32 %v5536_v52, %v4768_v28  ;;  %v4795_v52 = vor.u32 %v5542_v41, %v4792_v43  ;;  %v5564_v54 = vld [vmem:[#allocation11 + $0x134] sm:$0xf]  ;;  %v4918_v43 = vld [vmem:[#allocation11 + $0x180] sm:$0xf] }
 0x191   :  { %2883 = vmatpush.bf16.msra.mxu2 %v4887_v48  ;;  %v4883_v57 = vor.u32 %v5564_v54, %v4880_v56  ;;  %v4872_v13 = vld [vmem:[#allocation11 + $0x128] sm:$0xf0] }
 0x192   :  { %v4968_v54 = vld [vmem:[#allocation11 + $0x1e8] sm:$0xf0] }
 0x193   :  { %2859 = vmatpush.bf16.msra.mxu0 %v4743_v1  ;;  %2872 = vmatpush.bf16.msra.mxu1 %v4807_v33  ;;  %v5534_v1 = vld [vmem:[#allocation11 + $0x44] sm:$0xf]  ;;  %v4862_v33 = vld [vmem:[#allocation11 + $0x110] sm:$0xf] }
 0x194   :  { %v4763_v4 = vor.u32 %v5534_v1, %v4760_v61  ;;  %v4863_v5 = vor.u32 %v5561_v3, %v4862_v33  ;;  %v4864_v33 = vld [vmem:[#allocation11 + $0x118] sm:$0xf0] }
 0x195   :  { %2884 = vmatpush.bf16.msra.mxu2 %v4879_v47  ;;  %v4867_v3 = vor.u32 %v5560_v18, %v4864_v33  ;;  %v4952_v18 = vld [vmem:[#allocation11 + $0x1c8] sm:$0xf0] }
 0x197   :  { %2860 = vmatpush.bf16.msra.mxu0 %v4735_v9  ;;  %2873 = vmatpush.bf16.msra.mxu1 %v4799_v14 }
 0x199   :  { %2885 = vmatpush.bf16.msra.mxu2 %v4871_v58  ;;  %v5562_v58 = vld [vmem:[#allocation11 + $0x124] sm:$0xf] }
 0x19a   :  { %v4875_v1 = vor.u32 %v5562_v58, %v4872_v13  ;;  %v5584_v13 = vld [vmem:[#allocation11 + $0x1d4] sm:$0xf] }
 0x19b   :  { %2861 = vmatpush.bf16.msra.mxu0 %v4727_v29  ;;  %2874 = vmatpush.bf16.msra.mxu1 %v4791_v34  ;;  %v6135_v9 = vpop.f32.mrf.mxu0  ;;  %v5528_v29 = vld [vmem:[#allocation11 + $0x14] sm:$0xf]  ;;  %v4800_v34 = vld [vmem:[#allocation11 + $0x98] sm:$0xf0] }
 0x19c   :  { %v4739_v55 = vor.u32 %v5528_v29, %v4736_v30  ;;  %v4803_v62 = vor.u32 %v5544_v32, %v4800_v34  ;;  %v5581_v32 = vld [vmem:[#allocation11 + $0x1b4] sm:$0xf0] }
 0x19d   :  { %2886 = vmatpush.bf16.msra.mxu2 %v4863_v5  ;;  %v6137_v14 = vpop.f32.mrf.mxu1 }
 0x19e   :  { %2862 = vmatmul.bf16.vlgmr.msra.gmra.mxu0 %v6129_v46  ;;  %2875 = vmatmul.bf16.vlgmr.msra.gmra.mxu1 %v6131_v23 }
 0x19f   :  { %2906 = vmatpush.bf16.msrb.mxu0 %v4787_v35  ;;  %2919 = vmatpush.bf16.msrb.mxu1 %v4851_v36  ;;  %v5568_v36 = vld [vmem:[#allocation11 + $0x154] sm:$0xf] }
 0x1a0   :  { %v4899_v39 = vor.u32 %v5568_v36, %v4896_v37 }
 0x1a1   :  { %2887 = vmatpush.bf16.msra.mxu2 %v4855_v60 }
 0x1a3   :  { %2907 = vmatpush.bf16.msrb.mxu0 %v4779_v59  ;;  %2920 = vmatpush.bf16.msrb.mxu1 %v4843_v51  ;;  %v2259_v35 = vpop.f32.mrf.mxu0  ;;  %v4888_v51 = vld [vmem:[#allocation11 + $0x148] sm:$0xf0] }
 0x1a4   :  { %v4891_v28 = vor.u32 %v5566_v31, %v4888_v51  ;;  %v4934_v35 = vld [vmem:[#allocation11 + $0x1a0] sm:$0xf]  ;;  %v4976_v51 = vld [vmem:[#allocation11 + $0x1f8] sm:$0xf0] }
 0x1a5   :  { %2932 = vmatpush.bf16.msrb.mxu2 %v4915_v20  ;;  %v2272_v48 = vpop.f32.mrf.mxu1 }
 0x1a6   :  { %v5579_v48 = vld [vmem:[#allocation11 + $0x1a4] sm:$0xf0] }
 0x1a7   :  { %2908 = vmatpush.bf16.msrb.mxu0 %v4771_v0  ;;  %2921 = vmatpush.bf16.msrb.mxu1 %v4835_v42  ;;  %v2283_v59 = vpop.f32.mrf.mxu2  ;;  %v754_v0 = vperm.slane %v6105_v12, 2  ;;  %v4935_v37 = vor.u32 %v5579_v48, %v4934_v35 }
 0x1a8   :  { %v2296_v47 = vpop.f32.mrf.mxu3 }
 0x1a9   :  { %2933 = vmatpush.bf16.msrb.mxu2 %v4907_v45  ;;  %v2258_v2 = vadd.f32 %v6135_v9, %v754_v0  ;;  %v4966_v9 = vld [vmem:[#allocation11 + $0x1e0] sm:$0xf]  ;;  %v4942_v45 = vld [vmem:[#allocation11 + $0x1b0] sm:$0xf]  ;;  %v4960_v0 = vld [vmem:[#allocation11 + $0x1d8] sm:$0xf0] }
 0x1aa   :  { %v4943_v34 = vor.u32 %v5581_v32, %v4942_v45 }
 0x1ab   :  { %2909 = vmatpush.bf16.msrb.mxu0 %v4763_v4  ;;  %2922 = vmatpush.bf16.msrb.mxu1 %v4827_v6  ;;  %v2271_v4 = vadd.f32 %v6137_v14, %v2258_v2  ;;  %v5558_v6 = vld [vmem:[#allocation11 + $0x104] sm:$0xf] }
 0x1ac   :  { %v4859_v49 = vor.u32 %v5558_v6, %v4856_v7  ;;  %v5582_v2 = vld [vmem:[#allocation11 + $0x1c4] sm:$0xf]  ;;  %v4936_v7 = vld [vmem:[#allocation11 + $0x1a8] sm:$0xf0] }
 0x1ad   :  { %2934 = vmatpush.bf16.msrb.mxu2 %v4899_v39  ;;  %v2284_v40 = vadd.f32 %v2283_v59, %v2271_v4  ;;  %v4927_v39 = vor.u32 %v5577_v38, %v4926_v25  ;;  %v5575_v59 = vld [vmem:[#allocation11 + $0x184] sm:$0xf0]  ;;  %v4955_v33 = vor.u32 %v5582_v2, %v4952_v18  ;;  %v4944_v4 = vld [vmem:[#allocation11 + $0x1b8] sm:$0xf0]  ;;  %v5578_v6 = vld [vmem:[#allocation11 + $0x1a4] sm:$0xf] }
 0x1ae   :  { %v4919_v31 = vor.u32 %v5575_v59, %v4918_v43  ;;  %v5601_v2 = vld [vmem:[#allocation13 + $0x54] sm:$0xf0]  ;;  %v5600_v18 = vld [vmem:[#allocation13 + $0x54] sm:$0xf] }
 0x1af   :  { %2910 = vmatpush.bf16.msrb.mxu0 %v4755_v53  ;;  %2923 = vmatpush.bf16.msrb.mxu1 %v4819_v16  ;;  %v2285_v42 = vpop.f32.mrf.mxu2  ;;  %v4967_v53 = vor.u32 %v5587_v11, %v4966_v9  ;;  %v4958_v16 = vld [vmem:[#allocation11 + $0x1d0] sm:$0xf] }
 0x1b0   :  { %v2298_v61 = vpop.f32.mrf.mxu3  ;;  %v4959_v19 = vor.u32 %v5585_v17, %v4958_v16  ;;  %v4963_v42 = vor.u32 %v5584_v13, %v4960_v0  ;;  %v5602_v13 = vld [vmem:[#allocation13 + $0x64] sm:$0xf]  ;;  %v5032_v0 = vld [vmem:[#allocation13 + $0x68] sm:$0xf0] }
 0x1b1   :  { %2935 = vmatpush.bf16.msrb.mxu2 %v4891_v28  ;;  %2894 = vmatpush.bf16.msra.mxu3 %v4967_v53  ;;  %v5586_v28 = vld [vmem:[#allocation11 + $0x1e4] sm:$0xf] }
 0x1b2   :  { %v4971_v56 = vor.u32 %v5586_v28, %v4968_v54  ;;  %v5040_v54 = vld [vmem:[#allocation13 + $0x78] sm:$0xf0] }
 0x1b3   :  { %2911 = vmatpush.bf16.msrb.mxu0 %v4747_v24  ;;  %2924 = vmatpush.bf16.msrb.mxu1 %v4811_v27  ;;  %v5583_v24 = vld [vmem:[#allocation11 + $0x1c4] sm:$0xf0] }
 0x1b4   :  { %v4951_v27 = vor.u32 %v5583_v24, %v4950_v22 }
 0x1b5   :  { %2936 = vmatpush.bf16.msrb.mxu2 %v4883_v57  ;;  %2895 = vmatpush.bf16.msra.mxu3 %v4959_v19 }
 0x1b7   :  { %2912 = vmatpush.bf16.msrb.mxu0 %v4739_v55  ;;  %2925 = vmatpush.bf16.msrb.mxu1 %v4803_v62 }
 0x1b9   :  { %2937 = vmatpush.bf16.msrb.mxu2 %v4875_v1  ;;  %2896 = vmatpush.bf16.msra.mxu3 %v4951_v27 }
 0x1bb   :  { %2913 = vmatpush.bf16.msrb.mxu0 %v4731_v50  ;;  %2926 = vmatpush.bf16.msrb.mxu1 %v4795_v52  ;;  %v2309_v5 = vpop.f32.mrf.mxu0 }
 0x1bd   :  { %2938 = vmatpush.bf16.msrb.mxu2 %v4867_v3  ;;  %2897 = vmatpush.bf16.msra.mxu3 %v4943_v34  ;;  %v5580_v3 = vld [vmem:[#allocation11 + $0x1b4] sm:$0xf]  ;;  %v2528_v34 = vld [vmem:[%s6175_s6] sm:$0x3] }
 0x1be   :  { %2914 = vmatmul.bf16.vlgmr.msrb.gmra.mxu0 %v6129_v46  ;;  %2927 = vmatmul.bf16.vlgmr.msrb.gmra.mxu1 %v6131_v23  ;;  %v2322_v46 = vpop.f32.mrf.mxu1  ;;  %v2297_v23 = vadd.f32 %v2296_v47, %v2284_v40  ;;  %v5588_v47 = vld [vmem:[#allocation11 + $0x1f4] sm:$0xf]  ;;  %v2530_v35 = vperm.slane %v2528_v34, 0  ;;  %v2531_v38 = vperm.slane %v2528_v34, 1 }
 0x1bf   :  { %v4979_v52 = vor.u32 %v5588_v47, %v4976_v51  ;;  %v5605_v51 = vld [vmem:[#allocation13 + $0x74] sm:$0xf0] }
 0x1c0   :  { %v2310_v60 = vadd.f32 %v2309_v5, %v2297_v23  ;;  %v4947_v5 = vor.u32 %v5580_v3, %v4944_v4  ;;  %v4928_v23 = vld [vmem:[#allocation11 + $0x198] sm:$0xf0]  ;;  %v5102_v3 = vld [vmem:[#allocation13 + $0xf0] sm:$0xf]  ;;  %v5621_v4 = vld [vmem:[#allocation13 + $0xf4] sm:$0xf0] }
 0x1c1   :  { %2939 = vmatpush.bf16.msrb.mxu2 %v4859_v49  ;;  %2898 = vmatpush.bf16.msra.mxu3 %v4935_v37  ;;  %v4931_v9 = vor.u32 %v5576_v10, %v4928_v23  ;;  %v5094_v23 = vld [vmem:[#allocation13 + $0xe0] sm:$0xf] }
 0x1c2   :  { %v2323_v20 = vadd.f32 %v2322_v46, %v2310_v60  ;;  %v4939_v46 = vor.u32 %v5578_v6, %v4936_v7  ;;  %v5574_v60 = vld [vmem:[#allocation11 + $0x184] sm:$0xf]  ;;  %v5103_v6 = vor.u32 %v5621_v4, %v5102_v3  ;;  %v5620_v7 = vld [vmem:[#allocation13 + $0xf4] sm:$0xf] }
 0x1c3   :  { %v2311_v15 = vpop.f32.mrf.mxu0  ;;  %v5612_v3 = vld [vmem:[#allocation13 + $0xb4] sm:$0xf] }
 0x1c4   :  { %v4920_v15 = vld [vmem:[#allocation11 + $0x188] sm:$0xf0]  ;;  %3173 = vmatpush.bf16.msra.mxu1 %v5103_v6 }
 0x1c5   :  { %2899 = vmatpush.bf16.msra.mxu3 %v4927_v39  ;;  %v4923_v17 = vor.u32 %v5574_v60, %v4920_v15  ;;  %v5618_v15 = vld [vmem:[#allocation13 + $0xe4] sm:$0xf] }
 0x1c6   :  { %v2324_v14 = vpop.f32.mrf.mxu1 }
 0x1c7   :  { %v2335_v21 = vpop.f32.mrf.mxu2 }
 0x1c8   :  { %v2336_v44 = vadd.f32 %v2335_v21, %v2323_v20  ;;  %v2348_v26 = vpop.f32.mrf.mxu3 }
 0x1c9   :  { %2900 = vmatpush.bf16.msra.mxu3 %v4919_v31  ;;  %v5038_v31 = vld [vmem:[#allocation13 + $0x70] sm:$0xf] }
 0x1ca   :  { %v2349_v29 = vadd.f32 %v2348_v26, %v2336_v44  ;;  %v5039_v28 = vor.u32 %v5605_v51, %v5038_v31  ;;  %v5088_v31 = vld [vmem:[#allocation13 + $0xd8] sm:$0xf0] }
 0x1cc   :  { %v2458_v30 = vmax.f32 %v2349_v29, 0.0  ;;  %3160 = vmatpush.bf16.msra.mxu0 %v5039_v28  ;;  %v5591_v28 = vld [vmem:[#allocation13 + $0x4] sm:$0xf0] }
 0x1cd   :  { %2945 = vmatpush.bf16.msrb.mxu3 %v4979_v52  ;;  %v5604_v52 = vld [vmem:[#allocation13 + $0x74] sm:$0xf] }
 0x1ce   :  { %v2462_v55 = vpack.c.bf16 %v2458_v30, %v2458_v30 }
 0x1cf   :  { %v2337_v36 = vpop.f32.mrf.mxu2 }
 0x1d0   :  { %v2350_v62 = vpop.f32.mrf.mxu3  ;;  %2888 = vmatmul.bf16.vlgmr.msra.gmra.mxu2 %v2462_v55 }
 0x1d1   :  { %2946 = vmatpush.bf16.msrb.mxu3 %v4971_v56  ;;  %v5030_v56 = vld [vmem:[#allocation13 + $0x60] sm:$0xf] }
 0x1d5   :  { %2947 = vmatpush.bf16.msrb.mxu3 %v4963_v42 }
 0x1d9   :  { %2948 = vmatpush.bf16.msrb.mxu3 %v4955_v33  ;;  %v5024_v33 = vld [vmem:[#allocation13 + $0x58] sm:$0xf0] }
 0x1db   :  { %v2361_v41 = vpop.f32.mrf.mxu0 }
 0x1dc   :  { %v2362_v63 = vadd.f32 %v2361_v41, %v755_v8  ;;  %v5104_v8 = vld [vmem:[#allocation13 + $0xf8] sm:$0xf0] }
 0x1dd   :  { %v2374_v50 = vpop.f32.mrf.mxu1  ;;  %2949 = vmatpush.bf16.msrb.mxu3 %v4947_v5  ;;  %v5107_v10 = vor.u32 %v5620_v7, %v5104_v8  ;;  %v5062_v7 = vld [vmem:[#allocation13 + $0xa0] sm:$0xf]  ;;  %v5611_v8 = vld [vmem:[#allocation13 + $0xa4] sm:$0xf0] }
 0x1de   :  { %v2375_v11 = vadd.f32 %v2374_v50, %v2362_v63  ;;  %v5599_v63 = vld [vmem:[#allocation13 + $0x44] sm:$0xf0] }
 0x1e0   :  { %2940 = vmatmul.bf16.vlgmr.msrb.gmra.mxu2 %v2462_v55 }
 0x1e1   :  { %2950 = vmatpush.bf16.msrb.mxu3 %v4939_v46  ;;  %v5027_v46 = vor.u32 %v5600_v18, %v5024_v33  ;;  %v5070_v18 = vld [vmem:[#allocation13 + $0xb0] sm:$0xf]  ;;  %v5613_v33 = vld [vmem:[#allocation13 + $0xb4] sm:$0xf0] }
 0x1e2   :  { %v5071_v4 = vor.u32 %v5613_v33, %v5070_v18  ;;  %v5650_v18 = vld [vmem:[#allocation14 + $0xe4] sm:$0xf] }
 0x1e3   :  { %v2363_v57 = vpop.f32.mrf.mxu0 }
 0x1e4   :  { %v5603_v57 = vld [vmem:[#allocation13 + $0x64] sm:$0xf0] }
 0x1e5   :  { %v2376_v58 = vpop.f32.mrf.mxu1  ;;  %2951 = vmatpush.bf16.msrb.mxu3 %v4931_v9  ;;  %v5031_v42 = vor.u32 %v5603_v57, %v5030_v56  ;;  %v5598_v9 = vld [vmem:[#allocation13 + $0x44] sm:$0xf]  ;;  %v5615_v57 = vld [vmem:[#allocation13 + $0xc4] sm:$0xf0] }
 0x1e6   :  { %v5043_v58 = vor.u32 %v5604_v52, %v5040_v54  ;;  %v4982_v52 = vld [vmem:[#allocation13] sm:$0xf] }
 0x1e7   :  { %v2387_v1 = vpop.f32.mrf.mxu2  ;;  %3161 = vmatpush.bf16.msra.mxu0 %v5031_v42  ;;  %v5078_v54 = vld [vmem:[#allocation13 + $0xc0] sm:$0xf]  ;;  %v4983_v56 = vor.u32 %v5591_v28, %v4982_v52 }
 0x1e8   :  { %v2400_v61 = vpop.f32.mrf.mxu3  ;;  %v2388_v14 = vadd.f32 %v2387_v1, %v2375_v11  ;;  %3186 = vmatpush.bf16.msra.mxu2 %v5043_v58  ;;  %v5035_v1 = vor.u32 %v5602_v13, %v5032_v0  ;;  %v5016_v11 = vld [vmem:[#allocation13 + $0x48] sm:$0xf0]  ;;  %v5590_v58 = vld [vmem:[#allocation13 + $0x4] sm:$0xf]  ;;  %v5079_v0 = vor.u32 %v5615_v57, %v5078_v54 }
 0x1e9   :  { %2952 = vmatpush.bf16.msrb.mxu3 %v4923_v17  ;;  %v4984_v13 = vld [vmem:[#allocation13 + $0x8] sm:$0xf0] }
 0x1ea   :  { %v2401_v19 = vadd.f32 %v2400_v61, %v2388_v14  ;;  %v5022_v61 = vld [vmem:[#allocation13 + $0x50] sm:$0xf]  ;;  %v5096_v14 = vld [vmem:[#allocation13 + $0xe8] sm:$0xf0]  ;;  %v4987_v42 = vor.u32 %v5590_v58, %v4984_v13  ;;  %v5632_v13 = vld [vmem:[#allocation14 + $0x54] sm:$0xf] }
 0x1eb   :  { %v5023_v5 = vor.u32 %v5601_v2, %v5022_v61  ;;  %v5099_v17 = vor.u32 %v5618_v15, %v5096_v14  ;;  %v5080_v61 = vld [vmem:[#allocation13 + $0xc8] sm:$0xf0]  ;;  %v5046_v14 = vld [vmem:[#allocation13 + $0x80] sm:$0xf] }
 0x1ec   :  { %3187 = vmatpush.bf16.msra.mxu2 %v5035_v1  ;;  %v5614_v1 = vld [vmem:[#allocation13 + $0xc4] sm:$0xf] }
 0x1ed   :  { %3162 = vmatpush.bf16.msra.mxu0 %v5023_v5  ;;  %v5083_v2 = vor.u32 %v5614_v1, %v5080_v61  ;;  %v5072_v5 = vld [vmem:[#allocation13 + $0xb8] sm:$0xf0]  ;;  %v5222_v61 = vld [vmem:[#allocation14 + $0xe0] sm:$0xf] }
 0x1ee   :  { %v5075_v6 = vor.u32 %v5612_v3, %v5072_v5  ;;  %v5224_v3 = vld [vmem:[#allocation14 + $0xe8] sm:$0xf0] }
 0x1ef   :  { %v2389_v40 = vpop.f32.mrf.mxu2 }
 0x1f0   :  { %v2402_v49 = vpop.f32.mrf.mxu3  ;;  %3188 = vmatpush.bf16.msra.mxu2 %v5027_v46  ;;  %v5610_v46 = vld [vmem:[#allocation13 + $0xa4] sm:$0xf] }
 0x1f1   :  { %v5014_v49 = vld [vmem:[#allocation13 + $0x40] sm:$0xf] }
 0x1fb   :  { %v2413_v53 = vpop.f32.mrf.mxu0 }
 0x1fc   :  { %v2414_v12 = vadd.f32 %v2413_v53, %v2401_v19  ;;  %v5619_v53 = vld [vmem:[#allocation13 + $0xe4] sm:$0xf0]  ;;  %v5019_v19 = vor.u32 %v5598_v9, %v5016_v11  ;;  %v5609_v9 = vld [vmem:[#allocation13 + $0x94] sm:$0xf0]  ;;  %v5608_v11 = vld [vmem:[#allocation13 + $0x94] sm:$0xf] }
 0x1fd   :  { %v2426_v16 = vpop.f32.mrf.mxu1  ;;  %v5095_v60 = vor.u32 %v5619_v53, %v5094_v23  ;;  %v5054_v23 = vld [vmem:[#allocation13 + $0x90] sm:$0xf] }
 0x1fe   :  { %v2427_v22 = vadd.f32 %v2426_v16, %v2414_v12  ;;  %v5015_v16 = vor.u32 %v5599_v63, %v5014_v49  ;;  %v5006_v12 = vld [vmem:[#allocation13 + $0x30] sm:$0xf]  ;;  %3189 = vmatpush.bf16.msra.mxu2 %v5019_v19  ;;  %v5064_v49 = vld [vmem:[#allocation13 + $0xa8] sm:$0xf0]  ;;  %v5063_v63 = vor.u32 %v5611_v8, %v5062_v7  ;;  %v5055_v53 = vor.u32 %v5609_v9, %v5054_v23  ;;  %v5216_v23 = vld [vmem:[#allocation14 + $0xd8] sm:$0xf0] }
 0x1ff   :  { %3174 = vmatpush.bf16.msra.mxu1 %v5095_v60  ;;  %v5056_v60 = vld [vmem:[#allocation13 + $0x98] sm:$0xf0]  ;;  %v5144_v7 = vld [vmem:[#allocation14 + $0x48] sm:$0xf0] }
 0x200   :  { %3163 = vmatpush.bf16.msra.mxu0 %v5015_v16  ;;  %v5059_v15 = vor.u32 %v5608_v11, %v5056_v60  ;;  %v5607_v16 = vld [vmem:[#allocation13 + $0x84] sm:$0xf0]  ;;  %v5134_v11 = vld [vmem:[#allocation14 + $0x30] sm:$0xf]  ;;  %v5628_v60 = vld [vmem:[#allocation14 + $0x34] sm:$0xf] }
 0x201   :  { %v5047_v19 = vor.u32 %v5607_v16, %v5046_v14  ;;  %v5136_v14 = vld [vmem:[#allocation14 + $0x38] sm:$0xf0] }
 0x202   :  { %v5139_v16 = vor.u32 %v5628_v60, %v5136_v14 }
 0x203   :  { %v2415_v20 = vpop.f32.mrf.mxu0 }
 0x204   :  { %v5597_v20 = vld [vmem:[#allocation13 + $0x34] sm:$0xf0] }
 0x205   :  { %v2428_v21 = vpop.f32.mrf.mxu1 }
 0x206   :  { %v5596_v21 = vld [vmem:[#allocation13 + $0x34] sm:$0xf] }
 0x207   :  { %v2439_v24 = vpop.f32.mrf.mxu2 }
 0x208   :  { %v2440_v44 = vadd.f32 %v2439_v24, %v2427_v22  ;;  %v2452_v26 = vpop.f32.mrf.mxu3  ;;  %v5008_v22 = vld [vmem:[#allocation13 + $0x38] sm:$0xf0]  ;;  %v5007_v24 = vor.u32 %v5597_v20, %v5006_v12  ;;  %v5048_v12 = vld [vmem:[#allocation13 + $0x88] sm:$0xf0] }
 0x20a   :  { %v2453_v27 = vadd.f32 %v2452_v26, %v2440_v44  ;;  %v5011_v26 = vor.u32 %v5596_v21, %v5008_v22  ;;  %3164 = vmatpush.bf16.msra.mxu0 %v5007_v24  ;;  %v5166_v21 = vld [vmem:[#allocation14 + $0x70] sm:$0xf]  ;;  %v5637_v22 = vld [vmem:[#allocation14 + $0x74] sm:$0xf0]  ;;  %v5636_v24 = vld [vmem:[#allocation14 + $0x74] sm:$0xf] }
 0x20c   :  { %v2459_v29 = vmax.f32 %v2453_v27, 0.0  ;;  %v4998_v27 = vld [vmem:[#allocation13 + $0x20] sm:$0xf]  ;;  %3190 = vmatpush.bf16.msra.mxu2 %v5011_v26  ;;  %v5168_v26 = vld [vmem:[#allocation14 + $0x78] sm:$0xf0] }
 0x20e   :  { %v2463_v30 = vpack.c.bf16 %v2459_v29, %v2459_v29  ;;  %v5595_v29 = vld [vmem:[#allocation13 + $0x24] sm:$0xf0] }
 0x20f   :  { %v2441_v45 = vpop.f32.mrf.mxu2 }
 0x210   :  { %v2454_v32 = vpop.f32.mrf.mxu3  ;;  %2901 = vmatmul.bf16.vlgmr.msra.gmra.mxu3 %v2463_v30  ;;  %v5000_v45 = vld [vmem:[#allocation13 + $0x28] sm:$0xf0] }
 0x211   :  { %3199 = vmatpush.bf16.msra.mxu3 %v5107_v10  ;;  %v4999_v32 = vor.u32 %v5595_v29, %v4998_v27  ;;  %v5067_v10 = vor.u32 %v5610_v46, %v5064_v49  ;;  %v5158_v27 = vld [vmem:[#allocation14 + $0x60] sm:$0xf]  ;;  %v5635_v29 = vld [vmem:[#allocation14 + $0x64] sm:$0xf0]  ;;  %v5214_v46 = vld [vmem:[#allocation14 + $0xd0] sm:$0xf] }
 0x212   :  { %v5649_v49 = vld [vmem:[#allocation14 + $0xd4] sm:$0xf0] }
 0x213   :  { %3165 = vmatpush.bf16.msra.mxu0 %v4999_v32  ;;  %v5160_v32 = vld [vmem:[#allocation14 + $0x68] sm:$0xf0] }
 0x215   :  { %3200 = vmatpush.bf16.msra.mxu3 %v5099_v17  ;;  %v5606_v17 = vld [vmem:[#allocation13 + $0x84] sm:$0xf] }
 0x216   :  { %v5051_v20 = vor.u32 %v5606_v17, %v5048_v12  ;;  %v5206_v17 = vld [vmem:[#allocation14 + $0xc0] sm:$0xf]  ;;  %v5646_v12 = vld [vmem:[#allocation14 + $0xc4] sm:$0xf] }
 0x21b   :  { %v2863_v48 = vpop.f32.mrf.mxu0  ;;  %v2876_v36 = vpop.f32.mrf.mxu1 }
 0x21c   :  { %v2864_v55 = vadd.f32 %v2863_v48, %v2530_v35 }
 0x21e   :  { %v6148_v37 = vadd.f32 %v2876_v36, %v2864_v55  ;;  %v4990_v55 = vld [vmem:[#allocation13 + $0x10] sm:$0xf]  ;;  %v5593_v36 = vld [vmem:[#allocation13 + $0x14] sm:$0xf0] }
 0x220   :  { %2953 = vmatmul.bf16.vlgmr.msrb.gmra.mxu3 %v2463_v30  ;;  %v5594_v30 = vld [vmem:[#allocation13 + $0x24] sm:$0xf] }
 0x221   :  { %v5003_v34 = vor.u32 %v5594_v30, %v5000_v45  ;;  %v5171_v30 = vor.u32 %v5636_v24, %v5168_v26  ;;  %v5634_v45 = vld [vmem:[#allocation14 + $0x64] sm:$0xf]  ;;  %v5627_v24 = vld [vmem:[#allocation14 + $0x24] sm:$0xf0] }
 0x223   :  { %v2865_v62 = vpop.f32.mrf.mxu0  ;;  %v2878_v25 = vpop.f32.mrf.mxu1  ;;  %3191 = vmatpush.bf16.msra.mxu2 %v5003_v34  ;;  %v5230_v34 = vld [vmem:[#allocation14 + $0xf0] sm:$0xf] }
 0x224   :  { %v5086_v62 = vld [vmem:[#allocation13 + $0xd0] sm:$0xf]  ;;  %v4991_v25 = vor.u32 %v5593_v36, %v4990_v55  ;;  %v5653_v55 = vld [vmem:[#allocation14 + $0xf4] sm:$0xf0]  ;;  %v5652_v36 = vld [vmem:[#allocation14 + $0xf4] sm:$0xf] }
 0x226   :  { %3166 = vmatpush.bf16.msra.mxu0 %v4991_v25  ;;  %v5163_v25 = vor.u32 %v5634_v45, %v5160_v32  ;;  %v5198_v45 = vld [vmem:[#allocation14 + $0xb0] sm:$0xf]  ;;  %v5645_v32 = vld [vmem:[#allocation14 + $0xb4] sm:$0xf0] }
 0x22a   :  { %3167 = vmatpush.bf16.msra.mxu0 %v4983_v56 }
 0x23b   :  { %v2915_v39 = vpop.f32.mrf.mxu0  ;;  %v2928_v43 = vpop.f32.mrf.mxu1 }
 0x23c   :  { %v2916_v41 = vadd.f32 %v2915_v39, %v2531_v38  ;;  %v5617_v38 = vld [vmem:[#allocation13 + $0xd4] sm:$0xf0]  ;;  %v5592_v39 = vld [vmem:[#allocation13 + $0x14] sm:$0xf] }
 0x23e   :  { %v6150_v59 = vadd.f32 %v2928_v43, %v2916_v41  ;;  %v4992_v41 = vld [vmem:[#allocation13 + $0x18] sm:$0xf0]  ;;  %v5087_v43 = vor.u32 %v5617_v38, %v5086_v62  ;;  %v5231_v38 = vor.u32 %v5653_v55, %v5230_v34  ;;  %v5644_v34 = vld [vmem:[#allocation14 + $0xb4] sm:$0xf] }
 0x23f   :  { %v5232_v62 = vld [vmem:[#allocation14 + $0xf8] sm:$0xf0] }
 0x240   :  { %3175 = vmatpush.bf16.msra.mxu1 %v5087_v43  ;;  %v5200_v55 = vld [vmem:[#allocation14 + $0xb8] sm:$0xf0] }
 0x243   :  { %v2917_v47 = vpop.f32.mrf.mxu0  ;;  %v2930_v50 = vpop.f32.mrf.mxu1 }
 0x244   :  { %v4995_v47 = vor.u32 %v5592_v39, %v4992_v41  ;;  %v5616_v50 = vld [vmem:[#allocation13 + $0xd4] sm:$0xf]  ;;  %3176 = vmatpush.bf16.msra.mxu1 %v5079_v0  ;;  %v5235_v39 = vor.u32 %v5652_v36, %v5232_v62  ;;  %v5203_v36 = vor.u32 %v5644_v34, %v5200_v55  ;;  %v5118_v62 = vld [vmem:[#allocation14 + $0x10] sm:$0xf] }
 0x245   :  { %v5091_v51 = vor.u32 %v5616_v50, %v5088_v31 }
 0x246   :  { %3192 = vmatpush.bf16.msra.mxu2 %v4995_v47 }
 0x247   :  { %3201 = vmatpush.bf16.msra.mxu3 %v5091_v51 }
 0x248   :  { %3177 = vmatpush.bf16.msra.mxu1 %v5071_v4  ;;  %v5227_v4 = vor.u32 %v5650_v18, %v5224_v3  ;;  %v5174_v18 = vld [vmem:[#allocation14 + $0x80] sm:$0xf]  ;;  %v5638_v3 = vld [vmem:[#allocation14 + $0x84] sm:$0xf] }
 0x24a   :  { %3193 = vmatpush.bf16.msra.mxu2 %v4987_v42  ;;  %v5152_v42 = vld [vmem:[#allocation14 + $0x58] sm:$0xf0] }
 0x24b   :  { %3202 = vmatpush.bf16.msra.mxu3 %v5083_v2  ;;  %v5155_v1 = vor.u32 %v5632_v13, %v5152_v42  ;;  %v5651_v2 = vld [vmem:[#allocation14 + $0xe4] sm:$0xf0]  ;;  %v5182_v13 = vld [vmem:[#allocation14 + $0x90] sm:$0xf]  ;;  %v5640_v42 = vld [vmem:[#allocation14 + $0x94] sm:$0xf] }
 0x24c   :  { %3178 = vmatpush.bf16.msra.mxu1 %v5063_v63  ;;  %v5223_v33 = vor.u32 %v5651_v2, %v5222_v61  ;;  %v5648_v63 = vld [vmem:[#allocation14 + $0xd4] sm:$0xf]  ;;  %v5184_v61 = vld [vmem:[#allocation14 + $0x98] sm:$0xf0] }
 0x24d   :  { %v5219_v9 = vor.u32 %v5648_v63, %v5216_v23  ;;  %v5187_v2 = vor.u32 %v5640_v42, %v5184_v61 }
 0x24e   :  { %3440 = vmatpush.bf16.msrb.mxu2 %v5171_v30 }
 0x24f   :  { %3203 = vmatpush.bf16.msra.mxu3 %v5075_v6  ;;  %v5630_v6 = vld [vmem:[#allocation14 + $0x44] sm:$0xf] }
 0x250   :  { %3179 = vmatpush.bf16.msra.mxu1 %v5055_v53  ;;  %v5147_v8 = vor.u32 %v5630_v6, %v5144_v7  ;;  %v5629_v53 = vld [vmem:[#allocation14 + $0x34] sm:$0xf0]  ;;  %v2994_v7 = vld [vmem:[%s6177_s8] sm:$0x3] }
 0x251   :  { %v2997_v23 = vperm.slane %v2994_v7, 1 }
 0x252   :  { %3441 = vmatpush.bf16.msrb.mxu2 %v5163_v25  ;;  %v5625_v25 = vld [vmem:[#allocation14 + $0x14] sm:$0xf0] }
 0x253   :  { %v6152_v40 = vpop.f32.mrf.mxu2  ;;  %3204 = vmatpush.bf16.msra.mxu3 %v5067_v10  ;;  %v5215_v10 = vor.u32 %v5649_v49, %v5214_v46  ;;  %v2996_v46 = vperm.slane %v2994_v7, 0 }
 0x254   :  { %3180 = vmatpush.bf16.msra.mxu1 %v5047_v19  ;;  %v2890_v41 = vadd.f32 %v6152_v40, %v6148_v37  ;;  %v5150_v37 = vld [vmem:[#allocation14 + $0x50] sm:$0xf]  ;;  %v5633_v40 = vld [vmem:[#allocation14 + $0x54] sm:$0xf0]  ;;  %v5647_v19 = vld [vmem:[#allocation14 + $0xc4] sm:$0xf0] }
 0x255   :  { %v5151_v0 = vor.u32 %v5633_v40, %v5150_v37  ;;  %v5112_v37 = vld [vmem:[#allocation14 + $0x8] sm:$0xf0] }
 0x256   :  { %3442 = vmatpush.bf16.msrb.mxu2 %v5155_v1 }
 0x257   :  { %3205 = vmatpush.bf16.msra.mxu3 %v5059_v15  ;;  %v5135_v15 = vor.u32 %v5629_v53, %v5134_v11 }
 0x258   :  { %3427 = vmatpush.bf16.msrb.mxu1 %v5231_v38  ;;  %v5624_v38 = vld [vmem:[#allocation14 + $0x14] sm:$0xf] }
 0x25a   :  { %3443 = vmatpush.bf16.msrb.mxu2 %v5147_v8 }
 0x25b   :  { %v2891_v44 = vpop.f32.mrf.mxu2  ;;  %3206 = vmatpush.bf16.msra.mxu3 %v5051_v20  ;;  %v5207_v20 = vor.u32 %v5647_v19, %v5206_v17 }
 0x25c   :  { %v5167_v44 = vor.u32 %v5637_v22, %v5166_v21  ;;  %3428 = vmatpush.bf16.msrb.mxu1 %v5223_v33  ;;  %v5208_v21 = vld [vmem:[#allocation14 + $0xc8] sm:$0xf0]  ;;  %v5126_v22 = vld [vmem:[#allocation14 + $0x20] sm:$0xf]  ;;  %v5639_v33 = vld [vmem:[#allocation14 + $0x84] sm:$0xf0] }
 0x25d   :  { %v5127_v26 = vor.u32 %v5627_v24, %v5126_v22 }
 0x25e   :  { %3414 = vmatpush.bf16.msrb.mxu0 %v5167_v44  ;;  %3444 = vmatpush.bf16.msrb.mxu2 %v5139_v16  ;;  %v5211_v44 = vor.u32 %v5646_v12, %v5208_v21 }
 0x25f   :  { %3453 = vmatpush.bf16.msrb.mxu3 %v5235_v39  ;;  %v5119_v39 = vor.u32 %v5625_v25, %v5118_v62 }
 0x260   :  { %3429 = vmatpush.bf16.msrb.mxu1 %v5215_v10 }
 0x263   :  { %v6154_v35 = vpop.f32.mrf.mxu2  ;;  %3454 = vmatpush.bf16.msrb.mxu3 %v5227_v4 }
 0x264   :  { %v2942_v52 = vadd.f32 %v6154_v35, %v6150_v59  ;;  %v5142_v59 = vld [vmem:[#allocation14 + $0x40] sm:$0xf]  ;;  %v5631_v35 = vld [vmem:[#allocation14 + $0x44] sm:$0xf0]  ;;  %3430 = vmatpush.bf16.msrb.mxu1 %v5207_v20  ;;  %v3248_v20 = vld [vmem:[%s6179_s10] sm:$0x3] }
 0x265   :  { %v5143_v5 = vor.u32 %v5631_v35, %v5142_v59  ;;  %v5175_v59 = vor.u32 %v5639_v33, %v5174_v18  ;;  %v5176_v35 = vld [vmem:[#allocation14 + $0x88] sm:$0xf0]  ;;  %v3250_v22 = vperm.slane %v3248_v20, 0  ;;  %s5919_s10 = smov [#allocation16]  }
 0x266   :  { %v5179_v4 = vor.u32 %v5638_v3, %v5176_v35  ;;  %s3548_s19 = sshll.u32 %s5919_s10, 4  ;;  %s3549_s19 = int_to_ptr.vmem [resolvable:$true] %s3548_s19 }
 0x267   :  { %3455 = vmatpush.bf16.msrb.mxu3 %v5219_v9 }
 0x26b   :  { %v2943_v48 = vpop.f32.mrf.mxu2  ;;  %3456 = vmatpush.bf16.msrb.mxu3 %v5211_v44 }
 0x26c   :  { %v5159_v48 = vor.u32 %v5635_v29, %v5158_v27  ;;  %v5626_v27 = vld [vmem:[#allocation14 + $0x24] sm:$0xf]  ;;  %v5128_v29 = vld [vmem:[#allocation14 + $0x28] sm:$0xf0] }
 0x26d   :  { %v5131_v30 = vor.u32 %v5626_v27, %v5128_v29  ;;  %v3251_v29 = vperm.slane %v3248_v20, 1  ;;  %v5918_v20 = vmov 0.0  }
 0x26e   :  { %3415 = vmatpush.bf16.msrb.mxu0 %v5159_v48  ;;  %v5199_v48 = vor.u32 %v5645_v32, %v5198_v45 }
 0x26f   :  { %3445 = vmatpush.bf16.msrb.mxu2 %v5131_v30  ;;  %3457 = vmatpush.bf16.msrb.mxu3 %v5203_v36 }
 0x270   :  { %3431 = vmatpush.bf16.msrb.mxu1 %v5199_v48 }
 0x272   :  { %3416 = vmatpush.bf16.msrb.mxu0 %v5151_v0  ;;  %v5641_v0 = vld [vmem:[#allocation14 + $0x94] sm:$0xf0] }
 0x273   :  { %v5183_v1 = vor.u32 %v5641_v0, %v5182_v13 }
 0x276   :  { %3417 = vmatpush.bf16.msrb.mxu0 %v5143_v5 }
 0x27a   :  { %3418 = vmatpush.bf16.msrb.mxu0 %v5135_v15 }
 0x27e   :  { %3419 = vmatpush.bf16.msrb.mxu0 %v5127_v26 }
 0x282   :  { %3420 = vmatpush.bf16.msrb.mxu0 %v5119_v39 }
 0x293   :  { %v2902_v43 = vpop.f32.mrf.mxu3 }
 0x294   :  { %v2903_v47 = vadd.f32 %v2902_v43, %v2890_v41  ;;  %v5120_v41 = vld [vmem:[#allocation14 + $0x18] sm:$0xf0] }
 0x295   :  { %v5123_v43 = vor.u32 %v5624_v38, %v5120_v41 }
 0x296   :  { %v2958_v50 = vmax.f32 %v2903_v47, 0.0  ;;  %v5190_v47 = vld [vmem:[#allocation14 + $0xa0] sm:$0xf] }
 0x297   :  { %3446 = vmatpush.bf16.msrb.mxu2 %v5123_v43 }
 0x298   :  { %v2960_v31 = vpack.c.bf16 %v2958_v50, %v2958_v50  ;;  %v5643_v50 = vld [vmem:[#allocation14 + $0xa4] sm:$0xf0] }
 0x29a   :  { %3168 = vmatmul.bf16.vlgmr.msra.gmra.mxu0 %v2960_v31  ;;  %3194 = vmatmul.bf16.vlgmr.msra.gmra.mxu2 %v2960_v31  ;;  %v5642_v31 = vld [vmem:[#allocation14 + $0xa4] sm:$0xf] }
 0x29b   :  { %v2904_v51 = vpop.f32.mrf.mxu3 }
 0x29c   :  { %v5191_v51 = vor.u32 %v5643_v50, %v5190_v47 }
 0x29e   :  { %3432 = vmatpush.bf16.msrb.mxu1 %v5191_v51 }
 0x2a2   :  { %3433 = vmatpush.bf16.msrb.mxu1 %v5183_v1 }
 0x2a3   :  { %v2954_v28 = vpop.f32.mrf.mxu3 }
 0x2a4   :  { %v2955_v54 = vadd.f32 %v2954_v28, %v2942_v52  ;;  %v5192_v52 = vld [vmem:[#allocation14 + $0xa8] sm:$0xf0] }
 0x2a5   :  { %v5195_v28 = vor.u32 %v5642_v31, %v5192_v52  ;;  %v3489_v52 = vlaneseq }
 0x2a6   :  { %v2959_v56 = vmax.f32 %v2955_v54, 0.0  ;;  %v5110_v54 = vld [vmem:[#allocation14] sm:$0xf]  ;;  %3434 = vmatpush.bf16.msrb.mxu1 %v5175_v59 }
 0x2a7   :  { %3458 = vmatpush.bf16.msrb.mxu3 %v5195_v28 }
 0x2a8   :  { %v2961_v57 = vpack.c.bf16 %v2959_v56, %v2959_v56  ;;  %v5623_v56 = vld [vmem:[#allocation14 + $0x4] sm:$0xf0] }
 0x2aa   :  { %3181 = vmatmul.bf16.vlgmr.msra.gmra.mxu1 %v2961_v57  ;;  %3207 = vmatmul.bf16.vlgmr.msra.gmra.mxu3 %v2961_v57  ;;  %v5622_v57 = vld [vmem:[#allocation14 + $0x4] sm:$0xf] }
 0x2ab   :  { %v2956_v58 = vpop.f32.mrf.mxu3  ;;  %v5115_v40 = vor.u32 %v5622_v57, %v5112_v37  ;;  %3459 = vmatpush.bf16.msrb.mxu3 %v5187_v2 }
 0x2ac   :  { %v5111_v58 = vor.u32 %v5623_v56, %v5110_v54 }
 0x2ad   :  { %3447 = vmatpush.bf16.msrb.mxu2 %v5115_v40 }
 0x2ae   :  { %3421 = vmatpush.bf16.msrb.mxu0 %v5111_v58  ;;  %v3490_v58 = vand.u32 127, %v3489_v52 }
 0x2af   :  { %3460 = vmatpush.bf16.msrb.mxu3 %v5179_v4 }
 0x2b0   :  { %vm3491_vm5 = vcmp.lt.s32.totalorder %v3490_v58, 32 }
 0x317   :  { %v3169_v5 = vpop.f32.mrf.mxu0 }
 0x318   :  { %v3170_v63 = vadd.f32 %v3169_v5, %v2996_v46 }
 0x31d   :  { %v3195_v6 = vpop.f32.mrf.mxu2 }
 0x31e   :  { %v3196_v53 = vadd.f32 %v3195_v6, %v2997_v23 }
 0x31f   :  { %v3171_v8 = vpop.f32.mrf.mxu0 }
 0x325   :  { %v3197_v49 = vpop.f32.mrf.mxu2 }
 0x327   :  { %v3182_v10 = vpop.f32.mrf.mxu1 }
 0x328   :  { %v3183_v9 = vadd.f32 %v3182_v10, %v3170_v63 }
 0x32a   :  { %v3212_v11 = vmax.f32 %v3183_v9, 0.0 }
 0x32c   :  { %v3214_v60 = vpack.c.bf16 %v3212_v11, %v3212_v11 }
 0x32d   :  { %v3208_v15 = vpop.f32.mrf.mxu3 }
 0x32e   :  { %v3209_v14 = vadd.f32 %v3208_v15, %v3196_v53  ;;  %3422 = vmatmul.bf16.vlgmr.msrb.gmra.mxu0 %v3214_v60  ;;  %3448 = vmatmul.bf16.vlgmr.msrb.gmra.mxu2 %v3214_v60 }
 0x32f   :  { %v3184_v16 = vpop.f32.mrf.mxu1 }
 0x330   :  { %v3213_v17 = vmax.f32 %v3209_v14, 0.0 }
 0x332   :  { %v3215_v19 = vpack.c.bf16 %v3213_v17, %v3213_v17 }
 0x334   :  { %3435 = vmatmul.bf16.vlgmr.msrb.gmra.mxu1 %v3215_v19  ;;  %3461 = vmatmul.bf16.vlgmr.msrb.gmra.mxu3 %v3215_v19 }
 0x335   :  { %v3210_v12 = vpop.f32.mrf.mxu3 }
 0x3ab   :  { %v3423_v21 = vpop.f32.mrf.mxu0 }
 0x3ac   :  { %v3424_v24 = vadd.f32 %v3423_v21, %v3250_v22 }
 0x3b1   :  { %v3436_v44 = vpop.f32.mrf.mxu1  ;;  %v3449_v26 = vpop.f32.mrf.mxu2 }
 0x3b2   :  { %v3437_v27 = vadd.f32 %v3436_v44, %v3424_v24  ;;  %v3450_v45 = vadd.f32 %v3449_v26, %v3251_v29 }
 0x3b3   :  { %v3425_v30 = vpop.f32.mrf.mxu0 }
 0x3b4   :  { %3540 = vst [vmem:[#allocation16] sm:$0xff] %v3437_v27 }
 0x3b7   :  { %v3462_v32 = vpop.f32.mrf.mxu3 }
 0x3b8   :  { %v3463_v34 = vadd.f32 %v3462_v32, %v3450_v45 }
 0x3b9   :  { %v3438_v48 = vpop.f32.mrf.mxu1  ;;  %v3451_v55 = vpop.f32.mrf.mxu2 }
 0x3ba   :  { %v3466_v36 = vmax.f32 %v3437_v27, %v3463_v34  ;;  %3541 = vst [vmem:[#allocation16 + $0x8] sm:$0xff] %v3463_v34 }
 0x3bc   :  { %v3467_v62 = vsub.f32 %v3437_v27, %v3466_v36  ;;  %v3470_v25 = vsub.f32 %v3463_v34, %v3466_v36 }
 0x3be   :  { %v3468_v38 = vmul.f32 1.442695, %v3467_v62  ;;  %v3471_v39 = vmul.f32 1.442695, %v3470_v25 }
 0x3bf   :  { %v3464_v41 = vpop.f32.mrf.mxu3 }
 0x3c0   :  { %5670 = vpow2.f32 %v3468_v38 }
 0x3c1   :  { %5672 = vpow2.f32 %v3471_v39 }
 0x3c6   :  { %v5671_v43 = vpop.eup %5670 }
 0x3c7   :  { %v5673_v47 = vpop.eup %5672 }
 0x3c8   :  { %v3473_v50 = vadd.f32 %v5673_v47, %v5671_v43 }
 0x3ca   :  { %5674 = vrcp.f32 %v3473_v50  ;;  %v3485_v54 = vand.u32 2147483648, %v3473_v50  ;;  %v3483_v57 = vand.u32 2147483647, %v3473_v50  ;;  %vm3479_vm2 = vweird.f32 %v3473_v50 }
 0x3cc   :  { %v3486_v40 = vor.u32 1.1754944e-38, %v3485_v54  ;;  %vm3484_vm4 = vcmp.eq.f32.partialorder %v3483_v57, 8.507059e+37 }
 0x3d0   :  { %v5675_v31 = vpop.eup %5674 }
 0x3d1   :  { %v3475_v51 = vmul.f32 %v5675_v31, %v3473_v50  ;;  %vm3480_vm1 = vweird.f32 %v5675_v31 }
 0x3d2   :  { %vm3481_vm3 = vmor %vm3479_vm2, %vm3480_vm1 }
 0x3d3   :  { %v3476_v28 = vsub.f32 1.0, %v3475_v51 }
 0x3d5   :  { %v3477_v56 = vmul.f32 %v5675_v31, %v3476_v28 }
 0x3d7   :  { %v3478_v37 = vadd.f32 %v5675_v31, %v3477_v56 }
 0x3d9   :  { %v3482_v13 = vsel %vm3481_vm3, %v5675_v31, %v3478_v37 }
 0x3da   :  { %v3487_v0 = vsel %vm3484_vm4, %v3486_v40, %v3482_v13 }
 0x3db   :  { %v3492_v42 = vmul.f32 %v5671_v43, %v3487_v0  ;;  %v3516_v61 = vmul.f32 %v5673_v47, %v3487_v0 }
 0x3dd   :  { %v3493_v1 = vsel %vm3491_vm5, %v3492_v42, -1.0  ;;  %v3517_v2 = vsel %vm3491_vm5, %v3516_v61, -1.0 }
 0x3de   :  { %3494 = vmax.xlane.f32.xlu0 %v3493_v1 }
 0x3e6   :  { %3518 = vmax.xlane.f32.xlu0 %v3517_v2 }
 0x451   :  { %v3495_v18 = vpop.xlane.xlu0 %3494 }
 0x452   :  { %vm3496_vm6 = vcmp.eq.f32.partialorder %v3493_v1, %v3495_v18 }
 0x453   :  { %v3497_v33 = vsel %vm3496_vm6, %v3490_v58, 128 }
 0x454   :  { %v3499_v3 = vshra.s32 %v3497_v33, 16  ;;  %v3498_v7 = vand.u32 65535, %v3497_v33 }
 0x456   :  { %v3501_v59 = vcvt.s32.f32 %v3499_v3  ;;  %v3500_v46 = vcvt.s32.f32 %v3498_v7 }
 0x458   :  { %3502 = vmin.xlane.f32.xlu1 %v3501_v59 }
 0x459   :  { %v3519_v35 = vpop.xlane.xlu0 %3518 }
 0x45a   :  { %vm3520_vm7 = vcmp.eq.f32.partialorder %v3517_v2, %v3519_v35 }
 0x45b   :  { %v3521_v4 = vsel %vm3520_vm7, %v3490_v58, 128 }
 0x45c   :  { %v3523_v5 = vshra.s32 %v3521_v4, 16  ;;  %v3522_v63 = vand.u32 65535, %v3521_v4 }
 0x45e   :  { %v3525_v6 = vcvt.s32.f32 %v3523_v5  ;;  %v3524_v23 = vcvt.s32.f32 %v3522_v63 }
 0x460   :  { %3526 = vmin.xlane.f32.xlu1 %v3525_v6 }
 0x4cb   :  { %v3503_v8 = vpop.xlane.xlu1 %3502 }
 0x4cc   :  { %vm3504_vm8 = vcmp.eq.f32.partialorder %v3501_v59, %v3503_v8  ;;  %v3509_v11 = vcvt.f32.s32 %v3503_v8 }
 0x4cd   :  { %v3505_v49 = vsel %vm3504_vm8, %v3500_v46, inf }
 0x4ce   :  { %3506 = vmin.xlane.f32.xlu2 %v3505_v49  ;;  %v3510_v60 = vshll.u32 %v3509_v11, 16 }
 0x4d3   :  { %v3527_v10 = vpop.xlane.xlu1 %3526 }
 0x4d4   :  { %vm3528_vm9 = vcmp.eq.f32.partialorder %v3525_v6, %v3527_v10  ;;  %v3533_v16 = vcvt.f32.s32 %v3527_v10 }
 0x4d5   :  { %v3529_v9 = vsel %vm3528_vm9, %v3524_v23, inf }
 0x4d6   :  { %3530 = vmin.xlane.f32.xlu2 %v3529_v9  ;;  %v3534_v19 = vshll.u32 %v3533_v16, 16 }
 0x541   :  { %v3507_v53 = vpop.xlane.xlu2 %3506 }
 0x542   :  { %v3508_v15 = vcvt.f32.s32 %v3507_v53 }
 0x544   :  { %v3511_v14 = vadd.s32 %v3510_v60, %v3508_v15 }
 0x546   :  { %vm3512_vm10 = vcmp.eq.s32.totalorder %v3490_v58, %v3511_v14 }
 0x547   :  { %v5236_v21 = vsel %vm3512_vm10, 1.0, %v5918_v20 }
 0x548   :  { %v3515_v24 = vmax.f32 %v5236_v21, 0.0 }
 0x549   :  { %v3531_v17 = vpop.xlane.xlu2 %3530 }
 0x54a   :  { %v3532_v12 = vcvt.f32.s32 %v3531_v17 }
 0x54c   :  { %v3535_v22 = vadd.s32 %v3534_v19, %v3532_v12 }
 0x54e   :  { %vm3536_vm11 = vcmp.eq.s32.totalorder %v3490_v58, %v3535_v22 }
 0x54f   :  { %v5237_v44 = vsel %vm3536_vm11, 1.0, %v5918_v20 }
 0x550   :  { %v3539_v26 = vmax.f32 %v3515_v24, %v5237_v44 }
 0x552   :  { %3542 = vst [vmem:[#allocation16 + $0x10] sm:$0xff] %v3539_v26 }
 0x553   :  { %3553 = dma.vmem_to_hbm [thread:$0]  %s3549_s19, 384, %s3551_s22, [#allocation4]  }
 0x554   :  { %5902 = dma.done.wait [#allocation4], 384  }
 0x555   :  { %5903 = vsyncadd [#allocation4], 4294966912 }
 0x556   :  { %3558 = vsyncpa [#allocation3], 1 }
 0x557   :  { %3559 = vsyncpa [#allocation6], 1 }
 0x558   :  { %3560 = vsyncpa [#allocation9], 1 }
 0x559   :  { %3561 = vsyncpa [#allocation12], 1 }
 0x55a   :  { %3562 = vsyncpa [#allocation15], 1 }
 0x55b   :  { %3563 = vsyncpa [#allocation4], 1 }

// kernel: tpu_custom_call.1
= control target key start
LH: loop header
LB: loop body
LE: loop exit
PB: predicated region body
PF: predicated region fallthrough
CT: control target
= control target key end

     0   :  { %16 = vsyncpa [#allocation3], 0  ;;  %s6169_s0 = inlined_call_operand.hbm [shape: bf16[8,64], index: 0, kind: input, shape index: {}]   ;;  %s6170_s1 = inlined_call_operand.hbm [shape: bf16[64,1024], index: 1, kind: input, shape index: {}]   ;;  %s6171_s2 = inlined_call_operand.hbm [shape: f32[1,1024], index: 2, kind: input, shape index: {}]   ;;  %s6172_s3 = inlined_call_operand.hbm [shape: bf16[1024,512], index: 3, kind: input, shape index: {}]   ;;  %s6173_s4 = inlined_call_operand.hbm [shape: f32[1,512], index: 4, kind: input, shape index: {}]   ;;  %s6174_s5 = inlined_call_operand.hbm [shape: bf16[512,256], index: 5, kind: input, shape index: {}]   ;;  %s6175_s6 = inlined_call_operand.vmem [shape: f32[1,256], index: 6, kind: input, shape index: {}]   ;;  %s6176_s7 = inlined_call_operand.hbm [shape: bf16[256,256], index: 7, kind: input, shape index: {}]   ;;  %s6177_s8 = inlined_call_operand.vmem [shape: f32[1,256], index: 8, kind: input, shape index: {}]   ;;  %s6178_s9 = inlined_call_operand.hbm [shape: bf16[256,256], index: 9, kind: input, shape index: {}]   ;;  %s6179_s10 = inlined_call_operand.vmem [shape: f32[1,256], index: 10, kind: input, shape index: {}]   ;;  %s6180_s11 = inlined_call_operand.hbm [shape: f32[8,384], index: 11, kind: output, shape index: {}]  }
   0x1   :  { %17 = vsyncpa [#allocation6], 0 }
   0x2   :  { %18 = vsyncpa [#allocation9], 0 }
   0x3   :  { %19 = vsyncpa [#allocation12], 0 }
   0x4   :  { %20 = vsyncpa [#allocation15], 0  ;;  %s37_s19 = sshll.u32 %s6170_s1, 4  ;;  %s38_s19 = int_to_ptr.hbm [resolvable:$true] %s37_s19 }
   0x5   :  { %21 = vsyncpa [#allocation4], 0  ;;  %s5904_s20 = smov [#allocation5]   ;;  %s61_s24 = sshll.u32 %s6172_s3, 4  ;;  %s62_s24 = int_to_ptr.hbm [resolvable:$true] %s61_s24 }
   0x6   :  { %s39_s21 = sshll.u32 %s5904_s20, 4  ;;  %s5905_s25 = smov 512   ;;  %s40_s21 = int_to_ptr.vmem [resolvable:$true] %s39_s21 }
   0x7   :  { %s5906_s26 = smov 32   ;;  %s5907_s27 = smov [#allocation8]  }
   0x8   :  { %45 = dma.hbm_to_vmem [thread:$0]  %s38_s19, 4096, %s40_s21, [#allocation6], %s5905_s25, %s5905_s25, %s5906_s26  }
   0x9   :  { %s63_s28 = sshll.u32 %s5907_s27, 4  ;;  %s5908_s29 = smov 256   ;;  %s64_s28 = int_to_ptr.vmem [resolvable:$true] %s63_s28 }
   0xa   :  { %s5909_s30 = smov 16   ;;  %s85_s13 = sshll.u32 %s6174_s5, 4  ;;  %s86_s13 = int_to_ptr.hbm [resolvable:$true] %s85_s13 }
   0xb   :  { %69 = dma.hbm_to_vmem [thread:$0]  %s62_s24, 32768, %s64_s28, [#allocation9], %s5908_s29, %s5908_s29, %s5909_s30  }
   0xc   :  { %s5910_s14 = smov [#allocation11]   ;;  %s27_s17 = sshll.u32 %s6169_s0, 4  ;;  %s28_s17 = int_to_ptr.hbm [resolvable:$true] %s27_s17 }
   0xd   :  { %s87_s15 = sshll.u32 %s5910_s14, 4  ;;  %s5911_s18 = smov 128   ;;  %s88_s15 = int_to_ptr.vmem [resolvable:$true] %s87_s15 }
   0xe   :  { %s5912_s19 = smov 8   ;;  %s5913_s20 = smov [#allocation2]  }
   0xf   :  { %93 = dma.hbm_to_vmem [thread:$0]  %s86_s13, 8192, %s88_s15, [#allocation12], %s5911_s18, %s5911_s18, %s5912_s19  }
  0x10   :  { %s29_s21 = sshll.u32 %s5913_s20, 4  ;;  %s51_s5 = sshll.u32 %s6171_s2, 4  ;;  %s30_s21 = int_to_ptr.vmem [resolvable:$true] %s29_s21  ;;  %s52_s5 = int_to_ptr.hbm [resolvable:$true] %s51_s5 }
  0x11   :  { %32 = dma.hbm_to_vmem [thread:$0]  %s28_s17, 64, %s30_s21, [#allocation3]  }
  0x12   :  { %s75_s0 = sshll.u32 %s6173_s4, 4  ;;  %s5914_s26 = smov [#allocation7]   ;;  %s76_s0 = int_to_ptr.hbm [resolvable:$true] %s75_s0 }
  0x13   :  { %s53_s27 = sshll.u32 %s5914_s26, 4  ;;  %s5915_s28 = smov [#allocation10]   ;;  %s54_s27 = int_to_ptr.vmem [resolvable:$true] %s53_s27 }
  0x14   :  { %56 = dma.hbm_to_vmem [thread:$0]  %s52_s5, 128, %s54_s27, [#allocation6]  }
  0x15   :  { %s77_s29 = sshll.u32 %s5915_s28, 4  ;;  %s100_s12 = sshll.u32 %s6176_s7, 4  ;;  %s78_s29 = int_to_ptr.vmem [resolvable:$true] %s77_s29  ;;  %s101_s12 = int_to_ptr.hbm [resolvable:$true] %s100_s12 }
  0x16   :  { %80 = dma.hbm_to_vmem [thread:$0]  %s76_s0, 64, %s78_s29, [#allocation9]  }
  0x17   :  { %s115_s14 = sshll.u32 %s6178_s9, 4  ;;  %s5916_s15 = smov [#allocation13]   ;;  %s116_s14 = int_to_ptr.hbm [resolvable:$true] %s115_s14 }
  0x18   :  { %s102_s4 = sshll.u32 %s5916_s15, 4  ;;  %s5917_s16 = smov [#allocation14]   ;;  %s103_s4 = int_to_ptr.vmem [resolvable:$true] %s102_s4 }
  0x19   :  { %108 = dma.hbm_to_vmem [thread:$0]  %s101_s12, 4096, %s103_s4, [#allocation12], %s5911_s18, %s5911_s18, %s5912_s19  }
  0x1a   :  { %s117_s3 = sshll.u32 %s5917_s16, 4  ;;  %s118_s3 = int_to_ptr.vmem [resolvable:$true] %s117_s3 }
  0x1b   :  { %123 = dma.hbm_to_vmem [thread:$0]  %s116_s14, 4096, %s118_s3, [#allocation15], %s5911_s18, %s5911_s18, %s5912_s19  }
  0x1c   :  { %5892 = dma.done.wait [#allocation3], 64  }
  0x1d   :  { %5893 = vsyncadd [#allocation3], 4294967232 }
  0x1e   :  { %5894 = dma.done.wait [#allocation6], 4224  }
  0x1f   :  { %5895 = vsyncadd [#allocation6], 4294963072 }
  0x20   :  { %5896 = dma.done.wait [#allocation9], 32832  }
  0x21   :  { %5897 = vsyncadd [#allocation9], 4294934464 }
  0x22   :  { %5898 = dma.done.wait [#allocation12], 12288  }
  0x23   :  { %5899 = vsyncadd [#allocation12], 4294955008 }
  0x24   :  { %5900 = dma.done.wait [#allocation15], 4096  }
  0x25   :  { %5901 = vsyncadd [#allocation15], 4294963200  ;;  %v3662_v0 = vld [vmem:[#allocation5 + $0xc0] sm:$0xf]  ;;  %v5262_v2 = vld [vmem:[#allocation5 + $0xc4] sm:$0xf] }
  0x26   :  { %v5266_v1 = vld [vmem:[#allocation5 + $0xdc] sm:$0xf0]  ;;  %v3664_v4 = vld [vmem:[#allocation5 + $0xe0] sm:$0xf0]  ;;  %v3670_v5 = vld [vmem:[#allocation5 + $0xc8] sm:$0xf] }
  0x27   :  { %v3663_v3 = vor.u32 %v5266_v1, %v3662_v0  ;;  %v5267_v6 = vld [vmem:[#allocation5 + $0xe4] sm:$0xf0]  ;;  %v3667_v7 = vor.u32 %v5262_v2, %v3664_v4  ;;  %v5263_v9 = vld [vmem:[#allocation5 + $0xcc] sm:$0xf]  ;;  %v3630_v11 = vld [vmem:[#allocation5 + $0x80] sm:$0xf] }
  0x28   :  { %v3671_v8 = vor.u32 %v5267_v6, %v3670_v5  ;;  %v3672_v10 = vld [vmem:[#allocation5 + $0xe8] sm:$0xf0]  ;;  %v5258_v13 = vld [vmem:[#allocation5 + $0x9c] sm:$0xf0]  ;;  %v5254_v14 = vld [vmem:[#allocation5 + $0x84] sm:$0xf] }
  0x29   :  { %378 = vmatpush.bf16.msra.mxu0 %v3663_v3  ;;  %v3675_v12 = vor.u32 %v5263_v9, %v3672_v10  ;;  %v3632_v15 = vld [vmem:[#allocation5 + $0xa0] sm:$0xf0]  ;;  %391 = vmatpush.bf16.msra.mxu1 %v3667_v7  ;;  %v3631_v16 = vor.u32 %v5258_v13, %v3630_v11  ;;  %v3638_v18 = vld [vmem:[#allocation5 + $0x88] sm:$0xf]  ;;  %v5255_v20 = vld [vmem:[#allocation5 + $0x8c] sm:$0xf] }
  0x2a   :  { %404 = vmatpush.bf16.msra.mxu2 %v3671_v8  ;;  %v3635_v17 = vor.u32 %v5254_v14, %v3632_v15  ;;  %v5259_v19 = vld [vmem:[#allocation5 + $0xa4] sm:$0xf0]  ;;  %v3640_v22 = vld [vmem:[#allocation5 + $0xa8] sm:$0xf0]  ;;  %v3598_v23 = vld [vmem:[#allocation5 + $0x40] sm:$0xf] }
  0x2b   :  { %417 = vmatpush.bf16.msra.mxu3 %v3675_v12  ;;  %v3639_v21 = vor.u32 %v5259_v19, %v3638_v18  ;;  %v5250_v24 = vld [vmem:[#allocation5 + $0x5c] sm:$0xf0]  ;;  %v3643_v25 = vor.u32 %v5255_v20, %v3640_v22  ;;  %v5246_v26 = vld [vmem:[#allocation5 + $0x44] sm:$0xf]  ;;  %v3606_v28 = vld [vmem:[#allocation5 + $0x48] sm:$0xf] }
  0x2c   :  { %v3600_v27 = vld [vmem:[#allocation5 + $0x60] sm:$0xf0]  ;;  %v3599_v29 = vor.u32 %v5250_v24, %v3598_v23  ;;  %v5251_v30 = vld [vmem:[#allocation5 + $0x64] sm:$0xf0]  ;;  %v5247_v31 = vld [vmem:[#allocation5 + $0x4c] sm:$0xf] }
  0x2d   :  { %379 = vmatpush.bf16.msra.mxu0 %v3631_v16  ;;  %v3608_v32 = vld [vmem:[#allocation5 + $0x68] sm:$0xf0]  ;;  %392 = vmatpush.bf16.msra.mxu1 %v3635_v17  ;;  %v3603_v33 = vor.u32 %v5246_v26, %v3600_v27  ;;  %v3607_v34 = vor.u32 %v5251_v30, %v3606_v28  ;;  %v3566_v35 = vld [vmem:[#allocation5] sm:$0xf]  ;;  %v5238_v37 = vld [vmem:[#allocation5 + $0x4] sm:$0xf] }
  0x2e   :  { %405 = vmatpush.bf16.msra.mxu2 %v3639_v21  ;;  %v5242_v36 = vld [vmem:[#allocation5 + $0x1c] sm:$0xf0]  ;;  %v3611_v38 = vor.u32 %v5247_v31, %v3608_v32  ;;  %v3568_v39 = vld [vmem:[#allocation5 + $0x20] sm:$0xf0]  ;;  %v3574_v40 = vld [vmem:[#allocation5 + $0x8] sm:$0xf] }
  0x2f   :  { %418 = vmatpush.bf16.msra.mxu3 %v3643_v25  ;;  %v5243_v41 = vld [vmem:[#allocation5 + $0x24] sm:$0xf0]  ;;  %v5239_v42 = vld [vmem:[#allocation5 + $0xc] sm:$0xf]  ;;  %v3567_v44 = vor.u32 %v5242_v36, %v3566_v35  ;;  %v3678_v45 = vld [vmem:[#allocation5 + $0xd0] sm:$0xf]  ;;  %v3571_v48 = vor.u32 %v5238_v37, %v3568_v39 }
  0x30   :  { %v3576_v43 = vld [vmem:[#allocation5 + $0x28] sm:$0xf0]  ;;  %v5268_v46 = vld [vmem:[#allocation5 + $0xec] sm:$0xf0]  ;;  %v5264_v47 = vld [vmem:[#allocation5 + $0xd4] sm:$0xf]  ;;  %v3575_v49 = vor.u32 %v5243_v41, %v3574_v40 }
  0x31   :  { %380 = vmatpush.bf16.msra.mxu0 %v3599_v29  ;;  %393 = vmatpush.bf16.msra.mxu1 %v3603_v33  ;;  %vm370_vm0 = vcmask 523264   ;;  %v3680_v50 = vld [vmem:[#allocation5 + $0xf0] sm:$0xf0]  ;;  %v3579_v51 = vor.u32 %v5239_v42, %v3576_v43  ;;  %v3679_v52 = vor.u32 %v5268_v46, %v3678_v45  ;;  %v3686_v53 = vld [vmem:[#allocation5 + $0xd8] sm:$0xf]  ;;  %s3550_s22 = sshll.u32 %s6180_s11, 4  ;;  %s3551_s22 = int_to_ptr.hbm [resolvable:$true] %s3550_s22 }
  0x32   :  { %406 = vmatpush.bf16.msra.mxu2 %v3607_v34  ;;  %v5269_v54 = vld [vmem:[#allocation5 + $0xf4] sm:$0xf0]  ;;  %v5265_v55 = vld [vmem:[#allocation5 + $0xdc] sm:$0xf]  ;;  %v3683_v56 = vor.u32 %v5264_v47, %v3680_v50  ;;  %v3646_v58 = vld [vmem:[#allocation5 + $0x90] sm:$0xf] }
  0x33   :  { %419 = vmatpush.bf16.msra.mxu3 %v3611_v38  ;;  %v3688_v57 = vld [vmem:[#allocation5 + $0xf8] sm:$0xf0]  ;;  %v5260_v59 = vld [vmem:[#allocation5 + $0xac] sm:$0xf0]  ;;  %v5256_v61 = vld [vmem:[#allocation5 + $0x94] sm:$0xf]  ;;  %v3687_v63 = vor.u32 %v5269_v54, %v3686_v53 }
  0x34   :  { %v6013_v60 = vld [vmem:[#allocation2] sm:$0xf]  ;;  %v3648_v62 = vld [vmem:[#allocation5 + $0xb0] sm:$0xf0]  ;;  %v3691_v0 = vor.u32 %v5265_v55, %v3688_v57  ;;  %v3647_v1 = vor.u32 %v5260_v59, %v3646_v58  ;;  %v3654_v2 = vld [vmem:[#allocation5 + $0x98] sm:$0xf] }
  0x35   :  { %381 = vmatpush.bf16.msra.mxu0 %v3567_v44  ;;  %394 = vmatpush.bf16.msra.mxu1 %v3571_v48  ;;  %v5261_v3 = vld [vmem:[#allocation5 + $0xb4] sm:$0xf0]  ;;  %v5257_v4 = vld [vmem:[#allocation5 + $0x9c] sm:$0xf]  ;;  %v3651_v5 = vor.u32 %v5256_v61, %v3648_v62  ;;  %v3614_v7 = vld [vmem:[#allocation5 + $0x50] sm:$0xf] }
  0x36   :  { %407 = vmatpush.bf16.msra.mxu2 %v3575_v49  ;;  %v3656_v6 = vld [vmem:[#allocation5 + $0xb8] sm:$0xf0]  ;;  %v5252_v8 = vld [vmem:[#allocation5 + $0x6c] sm:$0xf0]  ;;  %v5248_v9 = vld [vmem:[#allocation5 + $0x54] sm:$0xf]  ;;  %v3655_v11 = vor.u32 %v5261_v3, %v3654_v2 }
  0x37   :  { %420 = vmatpush.bf16.msra.mxu3 %v3579_v51  ;;  %v3616_v10 = vld [vmem:[#allocation5 + $0x70] sm:$0xf0]  ;;  %v3622_v12 = vld [vmem:[#allocation5 + $0x58] sm:$0xf]  ;;  %v3659_v13 = vor.u32 %v5257_v4, %v3656_v6  ;;  %v3615_v14 = vor.u32 %v5252_v8, %v3614_v7  ;;  %v5249_v16 = vld [vmem:[#allocation5 + $0x5c] sm:$0xf] }
  0x38   :  { %3692 = vmatmul.msk.bf16.vlgmr.msra.gmra.mxu0 %vm370_vm0, %v6013_v60  ;;  %3693 = vmatmul.msk.bf16.vlgmr.msra.gmra.mxu1 %vm370_vm0, %v6013_v60  ;;  %v5253_v15 = vld [vmem:[#allocation5 + $0x74] sm:$0xf0]  ;;  %v3624_v17 = vld [vmem:[#allocation5 + $0x78] sm:$0xf0]  ;;  %v3619_v18 = vor.u32 %v5248_v9, %v3616_v10  ;;  %v3582_v19 = vld [vmem:[#allocation5 + $0x10] sm:$0xf] }
  0x39   :  { %430 = vmatpush.bf16.msrb.mxu0 %v3679_v52  ;;  %443 = vmatpush.bf16.msrb.mxu1 %v3683_v56  ;;  %v5244_v20 = vld [vmem:[#allocation5 + $0x2c] sm:$0xf0]  ;;  %v5240_v21 = vld [vmem:[#allocation5 + $0x14] sm:$0xf]  ;;  %v3814_v23 = vld [vmem:[#allocation8 + $0xe0] sm:$0xf]  ;;  %v3623_v25 = vor.u32 %v5253_v15, %v3622_v12  ;;  %v3627_v28 = vor.u32 %v5249_v16, %v3624_v17 }
  0x3a   :  { %3694 = vmatmul.msk.bf16.vlgmr.msra.gmra.mxu2 %vm370_vm0, %v6013_v60  ;;  %3695 = vmatmul.msk.bf16.vlgmr.msra.gmra.mxu3 %vm370_vm0, %v6013_v60  ;;  %v3584_v22 = vld [vmem:[#allocation5 + $0x30] sm:$0xf0]  ;;  %v5300_v24 = vld [vmem:[#allocation8 + $0xec] sm:$0xf0]  ;;  %v3942_v26 = vld [vmem:[#allocation8 + $0x1e0] sm:$0xf]  ;;  %v3583_v29 = vor.u32 %v5244_v20, %v3582_v19 }
  0x3b   :  { %456 = vmatpush.bf16.msrb.mxu2 %v3687_v63  ;;  %469 = vmatpush.bf16.msrb.mxu3 %v3691_v0  ;;  %v5332_v27 = vld [vmem:[#allocation8 + $0x1ec] sm:$0xf0]  ;;  %v5241_v32 = vld [vmem:[#allocation5 + $0x1c] sm:$0xf]  ;;  %v3587_v33 = vor.u32 %v5240_v21, %v3584_v22  ;;  %v3815_v35 = vor.u32 %v5300_v24, %v3814_v23  ;;  %v4070_v36 = vld [vmem:[#allocation8 + $0x2e0] sm:$0xf] }
  0x3c   :  { %v3590_v30 = vld [vmem:[#allocation5 + $0x18] sm:$0xf]  ;;  %v3592_v34 = vld [vmem:[#allocation5 + $0x38] sm:$0xf0]  ;;  %v3943_v38 = vor.u32 %v5332_v27, %v3942_v26  ;;  %v4198_v39 = vld [vmem:[#allocation8 + $0x3e0] sm:$0xf] }
  0x3d   :  { %431 = vmatpush.bf16.msrb.mxu0 %v3647_v1  ;;  %444 = vmatpush.bf16.msrb.mxu1 %v3651_v5  ;;  %v5245_v31 = vld [vmem:[#allocation5 + $0x34] sm:$0xf0]  ;;  %v3595_v42 = vor.u32 %v5241_v32, %v3592_v34  ;;  %v3798_v43 = vld [vmem:[#allocation8 + $0xc0] sm:$0xf] }
  0x3e   :  { %v5364_v37 = vld [vmem:[#allocation8 + $0x2ec] sm:$0xf0]  ;;  %v3591_v41 = vor.u32 %v5245_v31, %v3590_v30  ;;  %v3926_v45 = vld [vmem:[#allocation8 + $0x1c0] sm:$0xf] }
  0x3f   :  { %457 = vmatpush.bf16.msrb.mxu2 %v3655_v11  ;;  %470 = vmatpush.bf16.msrb.mxu3 %v3659_v13  ;;  %v5396_v40 = vld [vmem:[#allocation8 + $0x3ec] sm:$0xf0]  ;;  %v4071_v46 = vor.u32 %v5364_v37, %v4070_v36  ;;  %v4054_v49 = vld [vmem:[#allocation8 + $0x2c0] sm:$0xf] }
  0x40   :  { %v5296_v44 = vld [vmem:[#allocation8 + $0xcc] sm:$0xf0]  ;;  %v4199_v48 = vor.u32 %v5396_v40, %v4198_v39  ;;  %v4182_v51 = vld [vmem:[#allocation8 + $0x3c0] sm:$0xf] }
  0x41   :  { %432 = vmatpush.bf16.msrb.mxu0 %v3615_v14  ;;  %445 = vmatpush.bf16.msrb.mxu1 %v3619_v18  ;;  %v5328_v47 = vld [vmem:[#allocation8 + $0x1cc] sm:$0xf0]  ;;  %v3799_v53 = vor.u32 %v5296_v44, %v3798_v43  ;;  %v3782_v55 = vld [vmem:[#allocation8 + $0xa0] sm:$0xf] }
  0x42   :  { %v5360_v50 = vld [vmem:[#allocation8 + $0x2cc] sm:$0xf0]  ;;  %v3927_v54 = vor.u32 %v5328_v47, %v3926_v45  ;;  %v3910_v57 = vld [vmem:[#allocation8 + $0x1a0] sm:$0xf] }
  0x43   :  { %458 = vmatpush.bf16.msrb.mxu2 %v3623_v25  ;;  %471 = vmatpush.bf16.msrb.mxu3 %v3627_v28  ;;  %v5392_v52 = vld [vmem:[#allocation8 + $0x3cc] sm:$0xf0]  ;;  %v4055_v58 = vor.u32 %v5360_v50, %v4054_v49  ;;  %v4038_v62 = vld [vmem:[#allocation8 + $0x2a0] sm:$0xf] }
  0x44   :  { %v5292_v56 = vld [vmem:[#allocation8 + $0xac] sm:$0xf0]  ;;  %v4183_v61 = vor.u32 %v5392_v52, %v4182_v51  ;;  %v4166_v0 = vld [vmem:[#allocation8 + $0x3a0] sm:$0xf] }
  0x45   :  { %433 = vmatpush.bf16.msrb.mxu0 %v3583_v29  ;;  %446 = vmatpush.bf16.msrb.mxu1 %v3587_v33  ;;  %v5324_v59 = vld [vmem:[#allocation8 + $0x1ac] sm:$0xf0]  ;;  %v3783_v2 = vor.u32 %v5292_v56, %v3782_v55  ;;  %v3766_v4 = vld [vmem:[#allocation8 + $0x80] sm:$0xf] }
  0x46   :  { %v5356_v63 = vld [vmem:[#allocation8 + $0x2ac] sm:$0xf0]  ;;  %v3911_v3 = vor.u32 %v5324_v59, %v3910_v57  ;;  %v3894_v6 = vld [vmem:[#allocation8 + $0x180] sm:$0xf] }
  0x47   :  { %459 = vmatpush.bf16.msrb.mxu2 %v3591_v41  ;;  %472 = vmatpush.bf16.msrb.mxu3 %v3595_v42  ;;  %v5388_v1 = vld [vmem:[#allocation8 + $0x3ac] sm:$0xf0]  ;;  %v4039_v7 = vor.u32 %v5356_v63, %v4038_v62  ;;  %v4022_v10 = vld [vmem:[#allocation8 + $0x280] sm:$0xf] }
  0x48   :  { %3696 = vmatmul.msk.bf16.vlgmr.msrb.gmra.mxu0 %vm370_vm0, %v6013_v60  ;;  %3697 = vmatmul.msk.bf16.vlgmr.msrb.gmra.mxu1 %vm370_vm0, %v6013_v60  ;;  %v5288_v5 = vld [vmem:[#allocation8 + $0x8c] sm:$0xf0]  ;;  %v4167_v9 = vor.u32 %v5388_v1, %v4166_v0  ;;  %v4150_v12 = vld [vmem:[#allocation8 + $0x380] sm:$0xf] }
  0x49   :  { %2040 = vmatpush.bf16.msra.mxu0 %v3815_v35  ;;  %2053 = vmatpush.bf16.msra.mxu1 %v3943_v38  ;;  %v5320_v8 = vld [vmem:[#allocation8 + $0x18c] sm:$0xf0]  ;;  %v3767_v14 = vor.u32 %v5288_v5, %v3766_v4  ;;  %v3750_v15 = vld [vmem:[#allocation8 + $0x60] sm:$0xf] }
  0x4a   :  { %3698 = vmatmul.msk.bf16.vlgmr.msrb.gmra.mxu2 %vm370_vm0, %v6013_v60  ;;  %3699 = vmatmul.msk.bf16.vlgmr.msrb.gmra.mxu3 %vm370_vm0, %v6013_v60  ;;  %v5352_v11 = vld [vmem:[#allocation8 + $0x28c] sm:$0xf0]  ;;  %v3895_v60 = vor.u32 %v5320_v8, %v3894_v6  ;;  %v3878_v17 = vld [vmem:[#allocation8 + $0x160] sm:$0xf] }
  0x4b   :  { %2066 = vmatpush.bf16.msra.mxu2 %v4071_v46  ;;  %2079 = vmatpush.bf16.msra.mxu3 %v4199_v48  ;;  %v5384_v13 = vld [vmem:[#allocation8 + $0x38c] sm:$0xf0]  ;;  %v4023_v18 = vor.u32 %v5352_v11, %v4022_v10  ;;  %v4006_v21 = vld [vmem:[#allocation8 + $0x260] sm:$0xf] }
  0x4c   :  { %v5284_v16 = vld [vmem:[#allocation8 + $0x6c] sm:$0xf0]  ;;  %v4151_v20 = vor.u32 %v5384_v13, %v4150_v12  ;;  %v4134_v23 = vld [vmem:[#allocation8 + $0x360] sm:$0xf] }
  0x4d   :  { %2041 = vmatpush.bf16.msra.mxu0 %v3799_v53  ;;  %2054 = vmatpush.bf16.msra.mxu1 %v3927_v54  ;;  %v5316_v19 = vld [vmem:[#allocation8 + $0x16c] sm:$0xf0]  ;;  %v3751_v25 = vor.u32 %v5284_v16, %v3750_v15  ;;  %v3734_v27 = vld [vmem:[#allocation8 + $0x40] sm:$0xf] }
  0x4e   :  { %v5348_v22 = vld [vmem:[#allocation8 + $0x26c] sm:$0xf0]  ;;  %v3879_v26 = vor.u32 %v5316_v19, %v3878_v17  ;;  %v3862_v29 = vld [vmem:[#allocation8 + $0x140] sm:$0xf] }
  0x4f   :  { %2067 = vmatpush.bf16.msra.mxu2 %v4055_v58  ;;  %2080 = vmatpush.bf16.msra.mxu3 %v4183_v61  ;;  %v5380_v24 = vld [vmem:[#allocation8 + $0x36c] sm:$0xf0]  ;;  %v4007_v30 = vor.u32 %v5348_v22, %v4006_v21  ;;  %v3990_v33 = vld [vmem:[#allocation8 + $0x240] sm:$0xf] }
  0x50   :  { %v5280_v28 = vld [vmem:[#allocation8 + $0x4c] sm:$0xf0]  ;;  %v4135_v32 = vor.u32 %v5380_v24, %v4134_v23  ;;  %v4118_v35 = vld [vmem:[#allocation8 + $0x340] sm:$0xf] }
  0x51   :  { %2042 = vmatpush.bf16.msra.mxu0 %v3783_v2  ;;  %2055 = vmatpush.bf16.msra.mxu1 %v3911_v3  ;;  %v5312_v31 = vld [vmem:[#allocation8 + $0x14c] sm:$0xf0]  ;;  %v3735_v37 = vor.u32 %v5280_v28, %v3734_v27  ;;  %v3718_v39 = vld [vmem:[#allocation8 + $0x20] sm:$0xf] }
  0x52   :  { %v5344_v34 = vld [vmem:[#allocation8 + $0x24c] sm:$0xf0]  ;;  %v3863_v38 = vor.u32 %v5312_v31, %v3862_v29  ;;  %v3846_v41 = vld [vmem:[#allocation8 + $0x120] sm:$0xf] }
  0x53   :  { %2068 = vmatpush.bf16.msra.mxu2 %v4039_v7  ;;  %2081 = vmatpush.bf16.msra.mxu3 %v4167_v9  ;;  %v5376_v36 = vld [vmem:[#allocation8 + $0x34c] sm:$0xf0]  ;;  %v3991_v42 = vor.u32 %v5344_v34, %v3990_v33  ;;  %v3974_v45 = vld [vmem:[#allocation8 + $0x220] sm:$0xf] }
  0x54   :  { %v5276_v40 = vld [vmem:[#allocation8 + $0x2c] sm:$0xf0]  ;;  %v4119_v44 = vor.u32 %v5376_v36, %v4118_v35  ;;  %v4102_v47 = vld [vmem:[#allocation8 + $0x320] sm:$0xf] }
  0x55   :  { %2043 = vmatpush.bf16.msra.mxu0 %v3767_v14  ;;  %2056 = vmatpush.bf16.msra.mxu1 %v3895_v60  ;;  %v5308_v43 = vld [vmem:[#allocation8 + $0x12c] sm:$0xf0]  ;;  %v3719_v49 = vor.u32 %v5276_v40, %v3718_v39  ;;  %v3702_v50 = vld [vmem:[#allocation8] sm:$0xf] }
  0x56   :  { %v5340_v46 = vld [vmem:[#allocation8 + $0x22c] sm:$0xf0]  ;;  %v3847_v52 = vor.u32 %v5308_v43, %v3846_v41  ;;  %v3830_v53 = vld [vmem:[#allocation8 + $0x100] sm:$0xf] }
  0x57   :  { %2069 = vmatpush.bf16.msra.mxu2 %v4023_v18  ;;  %2082 = vmatpush.bf16.msra.mxu3 %v4151_v20  ;;  %v5372_v48 = vld [vmem:[#allocation8 + $0x32c] sm:$0xf0]  ;;  %v4326_v55 = vld [vmem:[#allocation8 + $0x4e0] sm:$0xf]  ;;  %v3975_v56 = vor.u32 %v5340_v46, %v3974_v45 }
  0x58   :  { %v5272_v51 = vld [vmem:[#allocation8 + $0xc] sm:$0xf0]  ;;  %v4454_v58 = vld [vmem:[#allocation8 + $0x5e0] sm:$0xf]  ;;  %v4103_v61 = vor.u32 %v5372_v48, %v4102_v47 }
  0x59   :  { %2044 = vmatpush.bf16.msra.mxu0 %v3751_v25  ;;  %2057 = vmatpush.bf16.msra.mxu1 %v3879_v26  ;;  %v5304_v54 = vld [vmem:[#allocation8 + $0x10c] sm:$0xf0]  ;;  %v3958_v62 = vld [vmem:[#allocation8 + $0x200] sm:$0xf]  ;;  %v3703_v1 = vor.u32 %v5272_v51, %v3702_v50 }
  0x5a   :  { %v5428_v57 = vld [vmem:[#allocation8 + $0x4ec] sm:$0xf0]  ;;  %v4086_v0 = vld [vmem:[#allocation8 + $0x300] sm:$0xf]  ;;  %v3831_v5 = vor.u32 %v5304_v54, %v3830_v53 }
  0x5b   :  { %2070 = vmatpush.bf16.msra.mxu2 %v4007_v30  ;;  %2083 = vmatpush.bf16.msra.mxu3 %v4135_v32  ;;  %v5460_v59 = vld [vmem:[#allocation8 + $0x5ec] sm:$0xf0]  ;;  %v4582_v3 = vld [vmem:[#allocation8 + $0x6e0] sm:$0xf]  ;;  %v4327_v6 = vor.u32 %v5428_v57, %v4326_v55 }
  0x5c   :  { %v5336_v63 = vld [vmem:[#allocation8 + $0x20c] sm:$0xf0]  ;;  %v4710_v7 = vld [vmem:[#allocation8 + $0x7e0] sm:$0xf]  ;;  %v4455_v9 = vor.u32 %v5460_v59, %v4454_v58 }
  0x5d   :  { %2045 = vmatpush.bf16.msra.mxu0 %v3735_v37  ;;  %2058 = vmatpush.bf16.msra.mxu1 %v3863_v38  ;;  %v5368_v2 = vld [vmem:[#allocation8 + $0x30c] sm:$0xf0]  ;;  %v4310_v10 = vld [vmem:[#allocation8 + $0x4c0] sm:$0xf]  ;;  %v3959_v12 = vor.u32 %v5336_v63, %v3958_v62 }
  0x5e   :  { %v5492_v4 = vld [vmem:[#allocation8 + $0x6ec] sm:$0xf0]  ;;  %v4438_v13 = vld [vmem:[#allocation8 + $0x5c0] sm:$0xf]  ;;  %v4087_v60 = vor.u32 %v5368_v2, %v4086_v0 }
  0x5f   :  { %2071 = vmatpush.bf16.msra.mxu2 %v3991_v42  ;;  %2084 = vmatpush.bf16.msra.mxu3 %v4119_v44  ;;  %v5524_v8 = vld [vmem:[#allocation8 + $0x7ec] sm:$0xf0]  ;;  %v4583_v15 = vor.u32 %v5492_v4, %v4582_v3  ;;  %v4566_v17 = vld [vmem:[#allocation8 + $0x6c0] sm:$0xf] }
  0x60   :  { %v5424_v11 = vld [vmem:[#allocation8 + $0x4cc] sm:$0xf0]  ;;  %v4711_v16 = vor.u32 %v5524_v8, %v4710_v7  ;;  %v4694_v20 = vld [vmem:[#allocation8 + $0x7c0] sm:$0xf] }
  0x61   :  { %2046 = vmatpush.bf16.msra.mxu0 %v3719_v49  ;;  %2059 = vmatpush.bf16.msra.mxu1 %v3847_v52  ;;  %v5456_v14 = vld [vmem:[#allocation8 + $0x5cc] sm:$0xf0]  ;;  %v4311_v19 = vor.u32 %v5424_v11, %v4310_v10  ;;  %v4294_v23 = vld [vmem:[#allocation8 + $0x4a0] sm:$0xf] }
  0x62   :  { %v5488_v18 = vld [vmem:[#allocation8 + $0x6cc] sm:$0xf0]  ;;  %v4439_v22 = vor.u32 %v5456_v14, %v4438_v13  ;;  %v4422_v25 = vld [vmem:[#allocation8 + $0x5a0] sm:$0xf] }
  0x63   :  { %2072 = vmatpush.bf16.msra.mxu2 %v3975_v56  ;;  %2085 = vmatpush.bf16.msra.mxu3 %v4103_v61  ;;  %v5520_v21 = vld [vmem:[#allocation8 + $0x7cc] sm:$0xf0]  ;;  %v4567_v27 = vor.u32 %v5488_v18, %v4566_v17  ;;  %v4550_v29 = vld [vmem:[#allocation8 + $0x6a0] sm:$0xf] }
  0x64   :  { %v5420_v24 = vld [vmem:[#allocation8 + $0x4ac] sm:$0xf0]  ;;  %v4695_v28 = vor.u32 %v5520_v21, %v4694_v20  ;;  %v4678_v32 = vld [vmem:[#allocation8 + $0x7a0] sm:$0xf] }
  0x65   :  { %2047 = vmatpush.bf16.msra.mxu0 %v3703_v1  ;;  %2060 = vmatpush.bf16.msra.mxu1 %v3831_v5  ;;  %v5452_v26 = vld [vmem:[#allocation8 + $0x5ac] sm:$0xf0]  ;;  %v4295_v31 = vor.u32 %v5420_v24, %v4294_v23  ;;  %v4278_v35 = vld [vmem:[#allocation8 + $0x480] sm:$0xf] }
  0x66   :  { %v5484_v30 = vld [vmem:[#allocation8 + $0x6ac] sm:$0xf0]  ;;  %v4423_v34 = vor.u32 %v5452_v26, %v4422_v25  ;;  %v4406_v37 = vld [vmem:[#allocation8 + $0x580] sm:$0xf] }
  0x67   :  { %2073 = vmatpush.bf16.msra.mxu2 %v3959_v12  ;;  %2086 = vmatpush.bf16.msra.mxu3 %v4087_v60  ;;  %v5516_v33 = vld [vmem:[#allocation8 + $0x7ac] sm:$0xf0]  ;;  %v4551_v39 = vor.u32 %v5484_v30, %v4550_v29  ;;  %v4534_v41 = vld [vmem:[#allocation8 + $0x680] sm:$0xf] }
  0x68   :  { %v5416_v36 = vld [vmem:[#allocation8 + $0x48c] sm:$0xf0]  ;;  %v4679_v40 = vor.u32 %v5516_v33, %v4678_v32  ;;  %v4662_v44 = vld [vmem:[#allocation8 + $0x780] sm:$0xf]  ;;  %v6031_v33 = vld [vmem:[#allocation7] sm:$0xff] }
  0x69   :  { %2092 = vmatpush.bf16.msrb.mxu0 %v4327_v6  ;;  %2105 = vmatpush.bf16.msrb.mxu1 %v4455_v9  ;;  %v5448_v38 = vld [vmem:[#allocation8 + $0x58c] sm:$0xf0]  ;;  %v4279_v43 = vor.u32 %v5416_v36, %v4278_v35  ;;  %v4262_v47 = vld [vmem:[#allocation8 + $0x460] sm:$0xf]  ;;  %v195_v35 = vperm.slane %v6031_v33, 1 }
  0x6a   :  { %v5480_v42 = vld [vmem:[#allocation8 + $0x68c] sm:$0xf0]  ;;  %v4407_v46 = vor.u32 %v5448_v38, %v4406_v37  ;;  %v4390_v49 = vld [vmem:[#allocation8 + $0x560] sm:$0xf] }
  0x6b   :  { %2118 = vmatpush.bf16.msrb.mxu2 %v4583_v15  ;;  %2131 = vmatpush.bf16.msrb.mxu3 %v4711_v16  ;;  %v5512_v45 = vld [vmem:[#allocation8 + $0x78c] sm:$0xf0]  ;;  %v4535_v51 = vor.u32 %v5480_v42, %v4534_v41  ;;  %v4246_v55 = vld [vmem:[#allocation8 + $0x440] sm:$0xf]  ;;  %v5330_v42 = vld [vmem:[#allocation8 + $0x1e4] sm:$0xf] }
  0x6c   :  { %v5412_v48 = vld [vmem:[#allocation8 + $0x46c] sm:$0xf0]  ;;  %v4663_v52 = vor.u32 %v5512_v45, %v4662_v44  ;;  %v4374_v57 = vld [vmem:[#allocation8 + $0x540] sm:$0xf] }
  0x6d   :  { %2093 = vmatpush.bf16.msrb.mxu0 %v4311_v19  ;;  %2106 = vmatpush.bf16.msrb.mxu1 %v4439_v22  ;;  %v5444_v50 = vld [vmem:[#allocation8 + $0x56c] sm:$0xf0]  ;;  %v4263_v53 = vor.u32 %v5412_v48, %v4262_v47  ;;  %v4518_v62 = vld [vmem:[#allocation8 + $0x660] sm:$0xf] }
  0x6e   :  { %v4391_v54 = vor.u32 %v5444_v50, %v4390_v49  ;;  %v5408_v56 = vld [vmem:[#allocation8 + $0x44c] sm:$0xf0]  ;;  %v4646_v0 = vld [vmem:[#allocation8 + $0x760] sm:$0xf]  ;;  %v197_v49 = vperm.slane %v6031_v33, 3 }
  0x6f   :  { %2119 = vmatpush.bf16.msrb.mxu2 %v4567_v27  ;;  %2132 = vmatpush.bf16.msrb.mxu3 %v4695_v28  ;;  %v5440_v58 = vld [vmem:[#allocation8 + $0x54c] sm:$0xf0]  ;;  %v4247_v59 = vor.u32 %v5408_v56, %v4246_v55  ;;  %v4230_v4 = vld [vmem:[#allocation8 + $0x420] sm:$0xf]  ;;  %v3928_v55 = vld [vmem:[#allocation8 + $0x1d0] sm:$0xf0] }
  0x70   :  { %v4375_v61 = vor.u32 %v5440_v58, %v4374_v57  ;;  %v5476_v63 = vld [vmem:[#allocation8 + $0x66c] sm:$0xf0]  ;;  %v4358_v7 = vld [vmem:[#allocation8 + $0x520] sm:$0xf] }
  0x71   :  { %2094 = vmatpush.bf16.msrb.mxu0 %v4295_v31  ;;  %2107 = vmatpush.bf16.msrb.mxu1 %v4423_v34  ;;  %v4519_v1 = vor.u32 %v5476_v63, %v4518_v62  ;;  %v5508_v2 = vld [vmem:[#allocation8 + $0x76c] sm:$0xf0]  ;;  %v4502_v10 = vld [vmem:[#allocation8 + $0x640] sm:$0xf]  ;;  %v194_v34 = vperm.slane %v6031_v33, 0 }
  0x72   :  { %v4647_v3 = vor.u32 %v5508_v2, %v4646_v0  ;;  %v5404_v5 = vld [vmem:[#allocation8 + $0x42c] sm:$0xf0]  ;;  %v4630_v12 = vld [vmem:[#allocation8 + $0x740] sm:$0xf]  ;;  %v5362_v62 = vld [vmem:[#allocation8 + $0x2e4] sm:$0xf] }
  0x73   :  { %2120 = vmatpush.bf16.msrb.mxu2 %v4551_v39  ;;  %2133 = vmatpush.bf16.msrb.mxu3 %v4679_v40  ;;  %v4231_v6 = vor.u32 %v5404_v5, %v4230_v4  ;;  %v5436_v8 = vld [vmem:[#allocation8 + $0x52c] sm:$0xf0]  ;;  %v4214_v15 = vld [vmem:[#allocation8 + $0x400] sm:$0xf]  ;;  %v5298_v39 = vld [vmem:[#allocation8 + $0xe4] sm:$0xf] }
  0x74   :  { %v4359_v9 = vor.u32 %v5436_v8, %v4358_v7  ;;  %v5472_v11 = vld [vmem:[#allocation8 + $0x64c] sm:$0xf0]  ;;  %v4342_v17 = vld [vmem:[#allocation8 + $0x500] sm:$0xf]  ;;  %v3816_v40 = vld [vmem:[#allocation8 + $0xf0] sm:$0xf0] }
  0x75   :  { %2095 = vmatpush.bf16.msrb.mxu0 %v4279_v43  ;;  %2108 = vmatpush.bf16.msrb.mxu1 %v4407_v46  ;;  %v4503_v13 = vor.u32 %v5472_v11, %v4502_v10  ;;  %v5504_v14 = vld [vmem:[#allocation8 + $0x74c] sm:$0xf0]  ;;  %v4486_v21 = vld [vmem:[#allocation8 + $0x620] sm:$0xf]  ;;  %v3944_v43 = vld [vmem:[#allocation8 + $0x1f0] sm:$0xf0]  ;;  %v3819_v47 = vor.u32 %v5298_v39, %v3816_v40 }
  0x76   :  { %v4631_v60 = vor.u32 %v5504_v14, %v4630_v12  ;;  %v5400_v16 = vld [vmem:[#allocation8 + $0x40c] sm:$0xf0]  ;;  %v4614_v24 = vld [vmem:[#allocation8 + $0x720] sm:$0xf]  ;;  %v196_v46 = vperm.slane %v6031_v33, 2  ;;  %v3947_v50 = vor.u32 %v5330_v42, %v3944_v43  ;;  %v198_v12 = vperm.slane %v6031_v33, 4 }
  0x77   :  { %2121 = vmatpush.bf16.msrb.mxu2 %v4535_v51  ;;  %2134 = vmatpush.bf16.msrb.mxu3 %v4663_v52  ;;  %v4215_v18 = vor.u32 %v5400_v16, %v4214_v15  ;;  %v5432_v19 = vld [vmem:[#allocation8 + $0x50c] sm:$0xf0]  ;;  %v4470_v27 = vld [vmem:[#allocation8 + $0x600] sm:$0xf]  ;;  %v5294_v51 = vld [vmem:[#allocation8 + $0xc4] sm:$0xf] }
  0x78   :  { %v4343_v20 = vor.u32 %v5432_v19, %v4342_v17  ;;  %v5468_v22 = vld [vmem:[#allocation8 + $0x62c] sm:$0xf0]  ;;  %v4598_v30 = vld [vmem:[#allocation8 + $0x700] sm:$0xf]  ;;  %v3800_v52 = vld [vmem:[#allocation8 + $0xd0] sm:$0xf0] }
  0x79   :  { %2096 = vmatpush.bf16.msrb.mxu0 %v4263_v53  ;;  %2109 = vmatpush.bf16.msrb.mxu1 %v4391_v54  ;;  %v4487_v23 = vor.u32 %v5468_v22, %v4486_v21  ;;  %v5500_v25 = vld [vmem:[#allocation8 + $0x72c] sm:$0xf0]  ;;  %v5326_v54 = vld [vmem:[#allocation8 + $0x1c4] sm:$0xf]  ;;  %v4072_v63 = vld [vmem:[#allocation8 + $0x2f0] sm:$0xf0] }
  0x7a   :  { %v4615_v26 = vor.u32 %v5500_v25, %v4614_v24  ;;  %v5464_v28 = vld [vmem:[#allocation8 + $0x60c] sm:$0xf0]  ;;  %v5394_v0 = vld [vmem:[#allocation8 + $0x3e4] sm:$0xf]  ;;  %v4200_v4 = vld [vmem:[#allocation8 + $0x3f0] sm:$0xf0]  ;;  %v4075_v11 = vor.u32 %v5362_v62, %v4072_v63 }
  0x7b   :  { %2122 = vmatpush.bf16.msrb.mxu2 %v4519_v1  ;;  %2135 = vmatpush.bf16.msrb.mxu3 %v4647_v3  ;;  %v4471_v29 = vor.u32 %v5464_v28, %v4470_v27  ;;  %v5496_v31 = vld [vmem:[#allocation8 + $0x70c] sm:$0xf0]  ;;  %v3931_v3 = vor.u32 %v5326_v54, %v3928_v55  ;;  %v5290_v5 = vld [vmem:[#allocation8 + $0xa4] sm:$0xf]  ;;  %v4203_v14 = vor.u32 %v5394_v0, %v4200_v4  ;;  %v4056_v16 = vld [vmem:[#allocation8 + $0x2d0] sm:$0xf0] }
  0x7c   :  { %v4599_v32 = vor.u32 %v5496_v31, %v4598_v30  ;;  %v5322_v8 = vld [vmem:[#allocation8 + $0x1a4] sm:$0xf]  ;;  %v3768_v22 = vld [vmem:[#allocation8 + $0x90] sm:$0xf0] }
  0x7d   :  { %2097 = vmatpush.bf16.msrb.mxu0 %v4247_v59  ;;  %2110 = vmatpush.bf16.msrb.mxu1 %v4375_v61  ;;  %v3803_v61 = vor.u32 %v5294_v51, %v3800_v52  ;;  %v5358_v15 = vld [vmem:[#allocation8 + $0x2c4] sm:$0xf]  ;;  %v3896_v25 = vld [vmem:[#allocation8 + $0x190] sm:$0xf0]  ;;  %v201_v51 = vperm.slane %v6031_v33, 7 }
  0x7e   :  { %v5390_v17 = vld [vmem:[#allocation8 + $0x3c4] sm:$0xf]  ;;  %v4059_v27 = vor.u32 %v5358_v15, %v4056_v16  ;;  %v4168_v39 = vld [vmem:[#allocation8 + $0x3b0] sm:$0xf0] }
  0x7f   :  { %2123 = vmatpush.bf16.msrb.mxu2 %v4503_v13  ;;  %2136 = vmatpush.bf16.msrb.mxu3 %v4631_v60  ;;  %v5286_v21 = vld [vmem:[#allocation8 + $0x84] sm:$0xf]  ;;  %v3752_v42 = vld [vmem:[#allocation8 + $0x70] sm:$0xf0] }
  0x80   :  { %v5318_v24 = vld [vmem:[#allocation8 + $0x184] sm:$0xf]  ;;  %v3771_v31 = vor.u32 %v5286_v21, %v3768_v22  ;;  %v4024_v54 = vld [vmem:[#allocation8 + $0x290] sm:$0xf0] }
  0x81   :  { %2098 = vmatpush.bf16.msrb.mxu0 %v4231_v6  ;;  %2111 = vmatpush.bf16.msrb.mxu1 %v4359_v9  ;;  %v3784_v6 = vld [vmem:[#allocation8 + $0xb0] sm:$0xf0]  ;;  %v5282_v40 = vld [vmem:[#allocation8 + $0x64] sm:$0xf] }
  0x82   :  { %v3912_v9 = vld [vmem:[#allocation8 + $0x1b0] sm:$0xf0]  ;;  %v3787_v60 = vor.u32 %v5290_v5, %v3784_v6  ;;  %v5314_v43 = vld [vmem:[#allocation8 + $0x164] sm:$0xf] }
  0x83   :  { %2124 = vmatpush.bf16.msrb.mxu2 %v4487_v23  ;;  %2137 = vmatpush.bf16.msrb.mxu3 %v4615_v26  ;;  %v3915_v19 = vor.u32 %v5322_v8, %v3912_v9  ;;  %v199_v23 = vperm.slane %v6031_v33, 5  ;;  %v5350_v52 = vld [vmem:[#allocation8 + $0x284] sm:$0xf]  ;;  %v3736_v63 = vld [vmem:[#allocation8 + $0x50] sm:$0xf0] }
  0x84   :  { %v5310_v0 = vld [vmem:[#allocation8 + $0x144] sm:$0xf]  ;;  %v3720_v15 = vld [vmem:[#allocation8 + $0x30] sm:$0xf0] }
  0x85   :  { %2099 = vmatpush.bf16.msrb.mxu0 %v4215_v18  ;;  %2112 = vmatpush.bf16.msrb.mxu1 %v4343_v20  ;;  %v4184_v20 = vld [vmem:[#allocation8 + $0x3d0] sm:$0xf0]  ;;  %v5346_v6 = vld [vmem:[#allocation8 + $0x264] sm:$0xf] }
  0x86   :  { %v4187_v30 = vor.u32 %v5390_v17, %v4184_v20  ;;  %v5378_v8 = vld [vmem:[#allocation8 + $0x364] sm:$0xf]  ;;  %v3848_v20 = vld [vmem:[#allocation8 + $0x130] sm:$0xf0] }
  0x87   :  { %2125 = vmatpush.bf16.msrb.mxu2 %v4471_v29  ;;  %2138 = vmatpush.bf16.msrb.mxu3 %v4599_v32  ;;  %v5354_v32 = vld [vmem:[#allocation8 + $0x2a4] sm:$0xf] }
  0xb5   :  { %v383_v36 = vpop.f32.mrf.mxu0  ;;  %v396_v38 = vpop.f32.mrf.mxu1 }
  0xb6   :  { %v384_v37 = vadd.f32 %v383_v36, %v194_v34  ;;  %v397_v41 = vadd.f32 %v396_v38, %v195_v35  ;;  %v4040_v34 = vld [vmem:[#allocation8 + $0x2b0] sm:$0xf0]  ;;  %v5386_v38 = vld [vmem:[#allocation8 + $0x3a4] sm:$0xf] }
  0xb8   :  { %v478_v44 = vmax.f32 %v384_v37, 0.0  ;;  %v479_v45 = vmax.f32 %v397_v41, 0.0  ;;  %v3899_v37 = vor.u32 %v5318_v24, %v3896_v25  ;;  %v5342_v25 = vld [vmem:[#allocation8 + $0x244] sm:$0xf] }
  0xba   :  { %v6036_v48 = vpack.c.bf16 %v478_v44, %v478_v44  ;;  %v6039_v53 = vpack.c.bf16 %v479_v45, %v479_v45  ;;  %v3880_v44 = vld [vmem:[#allocation8 + $0x170] sm:$0xf0] }
  0xbc   :  { %2048 = vmatmul.bf16.vlgmr.msra.gmra.mxu0 %v6036_v48  ;;  %2061 = vmatmul.bf16.vlgmr.msra.gmra.mxu1 %v6039_v53 }
  0xbd   :  { %v409_v56 = vpop.f32.mrf.mxu2  ;;  %v422_v58 = vpop.f32.mrf.mxu3  ;;  %2144 = vmatpush.bf16.msra.mxu0 %v3819_v47  ;;  %2157 = vmatpush.bf16.msra.mxu1 %v3947_v50  ;;  %v200_v47 = vperm.slane %v6031_v33, 6  ;;  %v4171_v50 = vor.u32 %v5386_v38, %v4168_v39  ;;  %v4027_v33 = vor.u32 %v5350_v52, %v4024_v54 }
  0xbe   :  { %v410_v57 = vadd.f32 %v409_v56, %v196_v46  ;;  %v385_v59 = vpop.f32.mrf.mxu0  ;;  %v423_v1 = vadd.f32 %v422_v58, %v197_v49  ;;  %v398_v2 = vpop.f32.mrf.mxu1  ;;  %v4043_v46 = vor.u32 %v5354_v32, %v4040_v34  ;;  %v3755_v56 = vor.u32 %v5282_v40, %v3752_v42  ;;  %v5382_v58 = vld [vmem:[#allocation8 + $0x384] sm:$0xf]  ;;  %v3704_v34 = vld [vmem:[#allocation8 + $0x10] sm:$0xf0] }
  0xbf   :  { %v4152_v59 = vld [vmem:[#allocation8 + $0x390] sm:$0xf0]  ;;  %v5270_v32 = vld [vmem:[#allocation8 + $0x4] sm:$0xf] }
  0xc0   :  { %v480_v7 = vmax.f32 %v410_v57, 0.0  ;;  %v481_v10 = vmax.f32 %v423_v1, 0.0  ;;  %v3883_v57 = vor.u32 %v5314_v43, %v3880_v44  ;;  %v3864_v1 = vld [vmem:[#allocation8 + $0x150] sm:$0xf0]  ;;  %v4155_v5 = vor.u32 %v5382_v58, %v4152_v59  ;;  %v5454_v59 = vld [vmem:[#allocation8 + $0x5c4] sm:$0xf] }
  0xc1   :  { %2145 = vmatpush.bf16.msra.mxu0 %v3803_v61  ;;  %2158 = vmatpush.bf16.msra.mxu1 %v3931_v3  ;;  %v5278_v61 = vld [vmem:[#allocation8 + $0x44] sm:$0xf]  ;;  %v4328_v40 = vld [vmem:[#allocation8 + $0x4f0] sm:$0xf0] }
  0xc2   :  { %v6044_v13 = vpack.c.bf16 %v480_v7, %v480_v7  ;;  %v6046_v18 = vpack.c.bf16 %v481_v10, %v481_v10  ;;  %v4008_v7 = vld [vmem:[#allocation8 + $0x270] sm:$0xf0] }
  0xc3   :  { %v4011_v22 = vor.u32 %v5346_v6, %v4008_v7  ;;  %v4456_v42 = vld [vmem:[#allocation8 + $0x5f0] sm:$0xf0]  ;;  %v5522_v7 = vld [vmem:[#allocation8 + $0x7e4] sm:$0xf] }
  0xc4   :  { %2074 = vmatmul.bf16.vlgmr.msra.gmra.mxu2 %v6044_v13  ;;  %2087 = vmatmul.bf16.vlgmr.msra.gmra.mxu3 %v6046_v18  ;;  %v4312_v58 = vld [vmem:[#allocation8 + $0x4d0] sm:$0xf0] }
  0xc5   :  { %2170 = vmatpush.bf16.msra.mxu2 %v4075_v11  ;;  %v411_v26 = vpop.f32.mrf.mxu2  ;;  %2183 = vmatpush.bf16.msra.mxu3 %v4203_v14  ;;  %v424_v28 = vpop.f32.mrf.mxu3  ;;  %v3739_v11 = vor.u32 %v5278_v61, %v3736_v63  ;;  %v4136_v14 = vld [vmem:[#allocation8 + $0x370] sm:$0xf0] }
  0xc6   :  { %2146 = vmatpush.bf16.msra.mxu0 %v3787_v60  ;;  %v435_v29 = vpop.f32.mrf.mxu0  ;;  %2159 = vmatpush.bf16.msra.mxu1 %v3915_v19  ;;  %v448_v36 = vpop.f32.mrf.mxu1  ;;  %v5274_v60 = vld [vmem:[#allocation8 + $0x24] sm:$0xf]  ;;  %v4139_v24 = vor.u32 %v5378_v8, %v4136_v14  ;;  %v3992_v26 = vld [vmem:[#allocation8 + $0x250] sm:$0xf0] }
  0xc7   :  { %v436_v35 = vadd.f32 %v435_v29, %v198_v12  ;;  %v449_v41 = vadd.f32 %v448_v36, %v199_v23  ;;  %v3867_v12 = vor.u32 %v5310_v0, %v3864_v1  ;;  %v5306_v19 = vld [vmem:[#allocation8 + $0x124] sm:$0xf]  ;;  %v3723_v29 = vor.u32 %v5274_v60, %v3720_v15  ;;  %v3832_v36 = vld [vmem:[#allocation8 + $0x110] sm:$0xf0] }
  0xc8   :  { %v3995_v38 = vor.u32 %v5342_v25, %v3992_v26  ;;  %v4440_v61 = vld [vmem:[#allocation8 + $0x5d0] sm:$0xf0]  ;;  %v5334_v0 = vld [vmem:[#allocation8 + $0x204] sm:$0xf] }
  0xc9   :  { %v482_v45 = vmax.f32 %v436_v35, 0.0  ;;  %2171 = vmatpush.bf16.msra.mxu2 %v4059_v27  ;;  %v483_v49 = vmax.f32 %v449_v41, 0.0  ;;  %2184 = vmatpush.bf16.msra.mxu3 %v4187_v30  ;;  %v5374_v27 = vld [vmem:[#allocation8 + $0x344] sm:$0xf]  ;;  %v3851_v30 = vor.u32 %v5306_v19, %v3848_v20  ;;  %v3960_v1 = vld [vmem:[#allocation8 + $0x210] sm:$0xf0]  ;;  %v4443_v6 = vor.u32 %v5454_v59, %v4440_v61 }
  0xca   :  { %2147 = vmatpush.bf16.msra.mxu0 %v3771_v31  ;;  %2160 = vmatpush.bf16.msra.mxu1 %v3899_v37  ;;  %v4120_v31 = vld [vmem:[#allocation8 + $0x350] sm:$0xf0]  ;;  %v5302_v35 = vld [vmem:[#allocation8 + $0x104] sm:$0xf] }
  0xcb   :  { %v6053_v55 = vpack.c.bf16 %v482_v45, %v482_v45  ;;  %v6055_v62 = vpack.c.bf16 %v483_v49, %v483_v49  ;;  %v5426_v37 = vld [vmem:[#allocation8 + $0x4e4] sm:$0xf]  ;;  %v4123_v43 = vor.u32 %v5374_v27, %v4120_v31  ;;  %v3835_v49 = vor.u32 %v5302_v35, %v3832_v36  ;;  %v4712_v8 = vld [vmem:[#allocation8 + $0x7f0] sm:$0xf0] }
  0xcc   :  { %v5458_v41 = vld [vmem:[#allocation8 + $0x5e4] sm:$0xf]  ;;  %v4331_v52 = vor.u32 %v5426_v37, %v4328_v40  ;;  %v4424_v14 = vld [vmem:[#allocation8 + $0x5b0] sm:$0xf0] }
  0xcd   :  { %2172 = vmatpush.bf16.msra.mxu2 %v4043_v46  ;;  %v461_v2 = vpop.f32.mrf.mxu2  ;;  %2100 = vmatmul.bf16.vlgmr.msrb.gmra.mxu0 %v6053_v55  ;;  %v474_v4 = vpop.f32.mrf.mxu3  ;;  %v5338_v45 = vld [vmem:[#allocation8 + $0x224] sm:$0xf]  ;;  %v3976_v46 = vld [vmem:[#allocation8 + $0x230] sm:$0xf0]  ;;  %v4459_v54 = vor.u32 %v5458_v41, %v4456_v42 }
  0xce   :  { %2185 = vmatpush.bf16.msra.mxu3 %v4171_v50  ;;  %v462_v3 = vadd.f32 %v461_v2, %v200_v47  ;;  %2113 = vmatmul.bf16.vlgmr.msrb.gmra.mxu1 %v6055_v62  ;;  %v437_v9 = vpop.f32.mrf.mxu0  ;;  %v475_v10 = vadd.f32 %v474_v4, %v201_v51  ;;  %v450_v16 = vpop.f32.mrf.mxu1  ;;  %v3707_v47 = vor.u32 %v5270_v32, %v3704_v34  ;;  %v5370_v50 = vld [vmem:[#allocation8 + $0x324] sm:$0xf]  ;;  %v4104_v51 = vld [vmem:[#allocation8 + $0x330] sm:$0xf0] }
  0xcf   :  { %2148 = vmatpush.bf16.msra.mxu0 %v3755_v56  ;;  %2161 = vmatpush.bf16.msra.mxu1 %v3883_v57  ;;  %v5422_v56 = vld [vmem:[#allocation8 + $0x4c4] sm:$0xf]  ;;  %v3979_v57 = vor.u32 %v5338_v45, %v3976_v46  ;;  %v4107_v63 = vor.u32 %v5370_v50, %v4104_v51  ;;  %v4584_v4 = vld [vmem:[#allocation8 + $0x6f0] sm:$0xf0]  ;;  %v4715_v16 = vor.u32 %v5522_v7, %v4712_v8 }
  0xd0   :  { %v484_v17 = vmax.f32 %v462_v3, 0.0  ;;  %v485_v21 = vmax.f32 %v475_v10, 0.0  ;;  %v5366_v2 = vld [vmem:[#allocation8 + $0x304] sm:$0xf]  ;;  %v3963_v10 = vor.u32 %v5334_v0, %v3960_v1  ;;  %v4568_v19 = vld [vmem:[#allocation8 + $0x6d0] sm:$0xf0] }
  0xd1   :  { %2173 = vmatpush.bf16.msra.mxu2 %v4027_v33  ;;  %v4088_v33 = vld [vmem:[#allocation8 + $0x310] sm:$0xf0]  ;;  %v5490_v3 = vld [vmem:[#allocation8 + $0x6e4] sm:$0xf] }
  0xd2   :  { %v6059_v23 = vpack.c.bf16 %v484_v17, %v484_v17  ;;  %2186 = vmatpush.bf16.msra.mxu3 %v4155_v5  ;;  %v6061_v28 = vpack.c.bf16 %v485_v21, %v485_v21  ;;  %v4315_v5 = vor.u32 %v5422_v56, %v4312_v58  ;;  %v5418_v9 = vld [vmem:[#allocation8 + $0x4a4] sm:$0xf]  ;;  %v4091_v60 = vor.u32 %v5366_v2, %v4088_v33  ;;  %v4280_v26 = vld [vmem:[#allocation8 + $0x490] sm:$0xf0] }
  0xd3   :  { %2149 = vmatpush.bf16.msra.mxu0 %v3739_v11  ;;  %2162 = vmatpush.bf16.msra.mxu1 %v3867_v12  ;;  %v4296_v11 = vld [vmem:[#allocation8 + $0x4b0] sm:$0xf0]  ;;  %v5450_v12 = vld [vmem:[#allocation8 + $0x5a4] sm:$0xf]  ;;  %v4587_v15 = vor.u32 %v5490_v3, %v4584_v4 }
  0xd4   :  { %2126 = vmatmul.bf16.vlgmr.msrb.gmra.mxu2 %v6059_v23  ;;  %2139 = vmatmul.bf16.vlgmr.msrb.gmra.mxu3 %v6061_v28  ;;  %v5486_v17 = vld [vmem:[#allocation8 + $0x6c4] sm:$0xf]  ;;  %v4299_v20 = vor.u32 %v5418_v9, %v4296_v11  ;;  %v4427_v21 = vor.u32 %v5450_v12, %v4424_v14  ;;  %v4552_v34 = vld [vmem:[#allocation8 + $0x6b0] sm:$0xf0] }
  0xd5   :  { %2174 = vmatpush.bf16.msra.mxu2 %v4011_v22  ;;  %v463_v39 = vpop.f32.mrf.mxu2  ;;  %v476_v44 = vpop.f32.mrf.mxu3  ;;  %v5518_v22 = vld [vmem:[#allocation8 + $0x7c4] sm:$0xf]  ;;  %v4264_v40 = vld [vmem:[#allocation8 + $0x470] sm:$0xf0] }
  0xd6   :  { %2187 = vmatpush.bf16.msra.mxu3 %v4139_v24  ;;  %v4696_v24 = vld [vmem:[#allocation8 + $0x7d0] sm:$0xf0]  ;;  %v5414_v25 = vld [vmem:[#allocation8 + $0x484] sm:$0xf] }
  0xd7   :  { %2150 = vmatpush.bf16.msra.mxu0 %v3723_v29  ;;  %2163 = vmatpush.bf16.msra.mxu1 %v3851_v30  ;;  %v5446_v27 = vld [vmem:[#allocation8 + $0x584] sm:$0xf]  ;;  %v4408_v29 = vld [vmem:[#allocation8 + $0x590] sm:$0xf0]  ;;  %v4571_v30 = vor.u32 %v5486_v17, %v4568_v19  ;;  %v4699_v31 = vor.u32 %v5518_v22, %v4696_v24  ;;  %v4283_v35 = vor.u32 %v5414_v25, %v4280_v26  ;;  %v5301_v22 = vld [vmem:[#allocation8 + $0xf4] sm:$0xf0] }
  0xd8   :  { %v5482_v32 = vld [vmem:[#allocation8 + $0x6a4] sm:$0xf]  ;;  %v4411_v36 = vor.u32 %v5446_v27, %v4408_v29  ;;  %v4392_v42 = vld [vmem:[#allocation8 + $0x570] sm:$0xf0]  ;;  %v3950_v24 = vld [vmem:[#allocation8 + $0x1e8] sm:$0xf] }
  0xd9   :  { %2175 = vmatpush.bf16.msra.mxu2 %v3995_v38  ;;  %v5514_v37 = vld [vmem:[#allocation8 + $0x7a4] sm:$0xf]  ;;  %v4680_v38 = vld [vmem:[#allocation8 + $0x7b0] sm:$0xf0]  ;;  %v5333_v25 = vld [vmem:[#allocation8 + $0x1f4] sm:$0xf0] }
  0xda   :  { %2188 = vmatpush.bf16.msra.mxu3 %v4123_v43  ;;  %v5410_v39 = vld [vmem:[#allocation8 + $0x464] sm:$0xf]  ;;  %v4555_v43 = vor.u32 %v5482_v32, %v4552_v34  ;;  %v4683_v44 = vor.u32 %v5514_v37, %v4680_v38  ;;  %v4536_v46 = vld [vmem:[#allocation8 + $0x690] sm:$0xf0]  ;;  %v3806_v37 = vld [vmem:[#allocation8 + $0xc8] sm:$0xf] }
  0xdb   :  { %2151 = vmatpush.bf16.msra.mxu0 %v3707_v47  ;;  %2164 = vmatpush.bf16.msra.mxu1 %v3835_v49  ;;  %v5442_v41 = vld [vmem:[#allocation8 + $0x564] sm:$0xf]  ;;  %v4267_v47 = vor.u32 %v5410_v39, %v4264_v40  ;;  %v4664_v51 = vld [vmem:[#allocation8 + $0x790] sm:$0xf0]  ;;  %v5297_v39 = vld [vmem:[#allocation8 + $0xd4] sm:$0xf0] }
  0xdc   :  { %v5478_v45 = vld [vmem:[#allocation8 + $0x684] sm:$0xf]  ;;  %v4395_v49 = vor.u32 %v5442_v41, %v4392_v42  ;;  %v4648_v33 = vld [vmem:[#allocation8 + $0x770] sm:$0xf0]  ;;  %v3934_v40 = vld [vmem:[#allocation8 + $0x1c8] sm:$0xf] }
  0xdd   :  { %2176 = vmatpush.bf16.msra.mxu2 %v3979_v57  ;;  %v5510_v50 = vld [vmem:[#allocation8 + $0x784] sm:$0xf]  ;;  %v4376_v57 = vld [vmem:[#allocation8 + $0x550] sm:$0xf0]  ;;  %v4539_v58 = vor.u32 %v5478_v45, %v4536_v46  ;;  %v5329_v41 = vld [vmem:[#allocation8 + $0x1d4] sm:$0xf0] }
  0xde   :  { %2189 = vmatpush.bf16.msra.mxu3 %v4107_v63  ;;  %2152 = vmatmul.bf16.vlgmr.msra.gmra.mxu0 %v6036_v48  ;;  %v5438_v56 = vld [vmem:[#allocation8 + $0x544] sm:$0xf]  ;;  %v4667_v59 = vor.u32 %v5510_v50, %v4664_v51  ;;  %v4520_v63 = vld [vmem:[#allocation8 + $0x670] sm:$0xf0]  ;;  %v3807_v50 = vor.u32 %v5297_v39, %v3806_v37  ;;  %v3935_v51 = vor.u32 %v5329_v41, %v3934_v40  ;;  %v5313_v39 = vld [vmem:[#allocation8 + $0x154] sm:$0xf0] }
  0xdf   :  { %2196 = vmatpush.bf16.msrb.mxu0 %v4331_v52  ;;  %2209 = vmatpush.bf16.msrb.mxu1 %v4459_v54  ;;  %v5406_v52 = vld [vmem:[#allocation8 + $0x444] sm:$0xf]  ;;  %v4248_v54 = vld [vmem:[#allocation8 + $0x450] sm:$0xf0]  ;;  %v4379_v1 = vor.u32 %v5438_v56, %v4376_v57  ;;  %v3790_v57 = vld [vmem:[#allocation8 + $0xa8] sm:$0xf] }
  0xe0   :  { %2165 = vmatmul.bf16.vlgmr.msra.gmra.mxu1 %v6039_v53  ;;  %v5474_v61 = vld [vmem:[#allocation8 + $0x664] sm:$0xf]  ;;  %v4251_v0 = vor.u32 %v5406_v52, %v4248_v54  ;;  %v4232_v4 = vld [vmem:[#allocation8 + $0x430] sm:$0xf0]  ;;  %v4206_v52 = vld [vmem:[#allocation8 + $0x3e8] sm:$0xf] }
  0xe1   :  { %2177 = vmatpush.bf16.msra.mxu2 %v3963_v10  ;;  %v5506_v2 = vld [vmem:[#allocation8 + $0x764] sm:$0xf]  ;;  %v4523_v7 = vor.u32 %v5474_v61, %v4520_v63  ;;  %v4504_v10 = vld [vmem:[#allocation8 + $0x650] sm:$0xf0]  ;;  %v5397_v54 = vld [vmem:[#allocation8 + $0x3f4] sm:$0xf0] }
  0xe2   :  { %2190 = vmatpush.bf16.msra.mxu3 %v4091_v60  ;;  %v5402_v3 = vld [vmem:[#allocation8 + $0x424] sm:$0xf]  ;;  %v4651_v8 = vor.u32 %v5506_v2, %v4648_v33  ;;  %v4632_v60 = vld [vmem:[#allocation8 + $0x750] sm:$0xf0]  ;;  %v3918_v63 = vld [vmem:[#allocation8 + $0x1a8] sm:$0xf] }
  0xe3   :  { %2197 = vmatpush.bf16.msrb.mxu0 %v4315_v5  ;;  %2210 = vmatpush.bf16.msrb.mxu1 %v4443_v6  ;;  %v5434_v5 = vld [vmem:[#allocation8 + $0x524] sm:$0xf]  ;;  %v4360_v6 = vld [vmem:[#allocation8 + $0x530] sm:$0xf0]  ;;  %v4235_v12 = vor.u32 %v5402_v3, %v4232_v4  ;;  %v4062_v2 = vld [vmem:[#allocation8 + $0x2c8] sm:$0xf] }
  0xe4   :  { %2178 = vmatmul.bf16.vlgmr.msra.gmra.mxu2 %v6044_v13  ;;  %v5470_v9 = vld [vmem:[#allocation8 + $0x644] sm:$0xf]  ;;  %v4363_v14 = vor.u32 %v5434_v5, %v4360_v6  ;;  %v4344_v19 = vld [vmem:[#allocation8 + $0x510] sm:$0xf0]  ;;  %v5361_v33 = vld [vmem:[#allocation8 + $0x2d4] sm:$0xf0] }
  0xe5   :  { %2222 = vmatpush.bf16.msrb.mxu2 %v4587_v15  ;;  %2191 = vmatmul.bf16.vlgmr.msra.gmra.mxu3 %v6046_v18  ;;  %v5502_v11 = vld [vmem:[#allocation8 + $0x744] sm:$0xf]  ;;  %v4488_v29 = vld [vmem:[#allocation8 + $0x630] sm:$0xf0]  ;;  %v4190_v4 = vld [vmem:[#allocation8 + $0x3c8] sm:$0xf] }
  0xe6   :  { %2235 = vmatpush.bf16.msrb.mxu3 %v4715_v16  ;;  %v5398_v15 = vld [vmem:[#allocation8 + $0x404] sm:$0xf]  ;;  %v4216_v16 = vld [vmem:[#allocation8 + $0x410] sm:$0xf0]  ;;  %v4635_v26 = vor.u32 %v5502_v11, %v4632_v60  ;;  %v5393_v5 = vld [vmem:[#allocation8 + $0x3d4] sm:$0xf0] }
  0xe7   :  { %2198 = vmatpush.bf16.msrb.mxu0 %v4299_v20  ;;  %2211 = vmatpush.bf16.msrb.mxu1 %v4427_v21  ;;  %v5430_v17 = vld [vmem:[#allocation8 + $0x504] sm:$0xf]  ;;  %v3822_v20 = vld [vmem:[#allocation8 + $0xe8] sm:$0xf]  ;;  %v4507_v21 = vor.u32 %v5470_v9, %v4504_v10  ;;  %v4616_v34 = vld [vmem:[#allocation8 + $0x730] sm:$0xf0]  ;;  %v4063_v9 = vor.u32 %v5361_v33, %v4062_v2 }
  0xe8   :  { %v5466_v27 = vld [vmem:[#allocation8 + $0x624] sm:$0xf]  ;;  %v4600_v46 = vld [vmem:[#allocation8 + $0x710] sm:$0xf0]  ;;  %v3902_v10 = vld [vmem:[#allocation8 + $0x188] sm:$0xf] }
  0xe9   :  { %2223 = vmatpush.bf16.msrb.mxu2 %v4571_v30  ;;  %v4219_v30 = vor.u32 %v5398_v15, %v4216_v16  ;;  %v5498_v32 = vld [vmem:[#allocation8 + $0x724] sm:$0xf]  ;;  %v4491_v38 = vor.u32 %v5466_v27, %v4488_v29  ;;  %v5321_v11 = vld [vmem:[#allocation8 + $0x194] sm:$0xf0]  ;;  %v4174_v16 = vld [vmem:[#allocation8 + $0x3a8] sm:$0xf] }
  0xea   :  { %2236 = vmatpush.bf16.msrb.mxu3 %v4699_v31  ;;  %v4347_v31 = vor.u32 %v5430_v17, %v4344_v19  ;;  %v4619_v42 = vor.u32 %v5498_v32, %v4616_v34  ;;  %v5494_v45 = vld [vmem:[#allocation8 + $0x704] sm:$0xf]  ;;  %v5357_v60 = vld [vmem:[#allocation8 + $0x2b4] sm:$0xf0]  ;;  %v3903_v19 = vor.u32 %v5321_v11, %v3902_v10  ;;  %v4030_v27 = vld [vmem:[#allocation8 + $0x288] sm:$0xf] }
  0xeb   :  { %2199 = vmatpush.bf16.msrb.mxu0 %v4283_v35  ;;  %2212 = vmatpush.bf16.msrb.mxu1 %v4411_v36  ;;  %v3823_v35 = vor.u32 %v5301_v22, %v3822_v20  ;;  %v3951_v36 = vor.u32 %v5333_v25, %v3950_v24  ;;  %v5389_v17 = vld [vmem:[#allocation8 + $0x3b4] sm:$0xf0]  ;;  %v3758_v20 = vld [vmem:[#allocation8 + $0x68] sm:$0xf] }
  0xec   :  { %v3886_v24 = vld [vmem:[#allocation8 + $0x168] sm:$0xf]  ;;  %v5317_v25 = vld [vmem:[#allocation8 + $0x174] sm:$0xf0] }
  0xed   :  { %2224 = vmatpush.bf16.msrb.mxu2 %v4555_v43  ;;  %v5462_v43 = vld [vmem:[#allocation8 + $0x604] sm:$0xf]  ;;  %v5353_v29 = vld [vmem:[#allocation8 + $0x294] sm:$0xf0]  ;;  %v3887_v34 = vor.u32 %v5317_v25, %v3886_v24  ;;  %v4014_v41 = vld [vmem:[#allocation8 + $0x268] sm:$0xf] }
  0xee   :  { %2237 = vmatpush.bf16.msrb.mxu3 %v4683_v44  ;;  %v4472_v44 = vld [vmem:[#allocation8 + $0x610] sm:$0xf0]  ;;  %v5385_v32 = vld [vmem:[#allocation8 + $0x394] sm:$0xf0]  ;;  %v4031_v37 = vor.u32 %v5353_v29, %v4030_v27  ;;  %v3838_v2 = vld [vmem:[#allocation8 + $0x108] sm:$0xf] }
  0xef   :  { %2200 = vmatpush.bf16.msrb.mxu0 %v4267_v47  ;;  %2213 = vmatpush.bf16.msrb.mxu1 %v4395_v49  ;;  %v4078_v47 = vld [vmem:[#allocation8 + $0x2e8] sm:$0xf]  ;;  %v5365_v49 = vld [vmem:[#allocation8 + $0x2f4] sm:$0xf0]  ;;  %v4475_v56 = vor.u32 %v5462_v43, %v4472_v44 }
  0xf0   :  { %v4079_v61 = vor.u32 %v5365_v49, %v4078_v47  ;;  %v4142_v44 = vld [vmem:[#allocation8 + $0x368] sm:$0xf]  ;;  %v5277_v49 = vld [vmem:[#allocation8 + $0x34] sm:$0xf0] }
  0xf1   :  { %2225 = vmatpush.bf16.msrb.mxu2 %v4539_v58  ;;  %v5293_v58 = vld [vmem:[#allocation8 + $0xb4] sm:$0xf0]  ;;  %v3726_v47 = vld [vmem:[#allocation8 + $0x28] sm:$0xf] }
  0xf2   :  { %2238 = vmatpush.bf16.msrb.mxu3 %v4667_v59  ;;  %v4603_v59 = vor.u32 %v5494_v45, %v4600_v46  ;;  %v3791_v3 = vor.u32 %v5293_v58, %v3790_v57  ;;  %v5381_v45 = vld [vmem:[#allocation8 + $0x374] sm:$0xf0]  ;;  %v3727_v58 = vor.u32 %v5277_v49, %v3726_v47  ;;  %v3966_v25 = vld [vmem:[#allocation8 + $0x208] sm:$0xf] }
  0xf3   :  { %2201 = vmatpush.bf16.msrb.mxu0 %v4251_v0  ;;  %2214 = vmatpush.bf16.msrb.mxu1 %v4379_v1  ;;  %v5325_v0 = vld [vmem:[#allocation8 + $0x1b4] sm:$0xf0]  ;;  %v4207_v1 = vor.u32 %v5397_v54, %v4206_v52  ;;  %v4143_v54 = vor.u32 %v5381_v45, %v4142_v44  ;;  %v4094_v27 = vld [vmem:[#allocation8 + $0x308] sm:$0xf] }
  0xf4   :  { %v3919_v6 = vor.u32 %v5325_v0, %v3918_v63  ;;  %v5309_v52 = vld [vmem:[#allocation8 + $0x134] sm:$0xf0]  ;;  %v3710_v63 = vld [vmem:[#allocation8 + $0x8] sm:$0xf] }
  0xf5   :  { %2226 = vmatpush.bf16.msrb.mxu2 %v4523_v7  ;;  %v3774_v7 = vld [vmem:[#allocation8 + $0x88] sm:$0xf]  ;;  %v5345_v57 = vld [vmem:[#allocation8 + $0x254] sm:$0xf0] }
  0xf6   :  { %2239 = vmatpush.bf16.msrb.mxu3 %v4651_v8  ;;  %v5289_v8 = vld [vmem:[#allocation8 + $0x94] sm:$0xf0]  ;;  %v4574_v45 = vld [vmem:[#allocation8 + $0x6c8] sm:$0xf] }
  0xf7   :  { %2202 = vmatpush.bf16.msrb.mxu0 %v4235_v12  ;;  %2215 = vmatpush.bf16.msrb.mxu1 %v4363_v14  ;;  %v4191_v12 = vor.u32 %v5393_v5, %v4190_v4  ;;  %v4046_v14 = vld [vmem:[#allocation8 + $0x2a8] sm:$0xf]  ;;  %v3775_v15 = vor.u32 %v5289_v8, %v3774_v7  ;;  %v5305_v33 = vld [vmem:[#allocation8 + $0x114] sm:$0xf0] }
  0xf8   :  { %v4047_v22 = vor.u32 %v5357_v60, %v4046_v14  ;;  %v4334_v4 = vld [vmem:[#allocation8 + $0x4e8] sm:$0xf]  ;;  %v5429_v5 = vld [vmem:[#allocation8 + $0x4f4] sm:$0xf0]  ;;  %v3839_v60 = vor.u32 %v5305_v33, %v3838_v2 }
  0xf9   :  { %2227 = vmatpush.bf16.msrb.mxu2 %v4507_v21  ;;  %v5285_v21 = vld [vmem:[#allocation8 + $0x74] sm:$0xf0]  ;;  %v4702_v49 = vld [vmem:[#allocation8 + $0x7c8] sm:$0xf] }
  0xfa   :  { %2240 = vmatpush.bf16.msrb.mxu3 %v4635_v26  ;;  %v4175_v26 = vor.u32 %v5389_v17, %v4174_v16  ;;  %v5461_v8 = vld [vmem:[#allocation8 + $0x5f4] sm:$0xf0]  ;;  %v4318_v16 = vld [vmem:[#allocation8 + $0x4c8] sm:$0xf] }
  0xfb   :  { %2203 = vmatpush.bf16.msrb.mxu0 %v4219_v30  ;;  %2216 = vmatpush.bf16.msrb.mxu1 %v4347_v31  ;;  %v3759_v30 = vor.u32 %v5285_v21, %v3758_v20  ;;  %v4158_v31 = vld [vmem:[#allocation8 + $0x388] sm:$0xf]  ;;  %v5341_v10 = vld [vmem:[#allocation8 + $0x234] sm:$0xf0] }
  0xfc   :  { %v4159_v40 = vor.u32 %v5385_v32, %v4158_v31  ;;  %v5373_v14 = vld [vmem:[#allocation8 + $0x334] sm:$0xf0]  ;;  %v4446_v21 = vld [vmem:[#allocation8 + $0x5c8] sm:$0xf] }
  0xfd   :  { %2228 = vmatpush.bf16.msrb.mxu2 %v4491_v38  ;;  %v3870_v38 = vld [vmem:[#allocation8 + $0x148] sm:$0xf]  ;;  %v5425_v20 = vld [vmem:[#allocation8 + $0x4d4] sm:$0xf0] }
  0xfe   :  { %2241 = vmatpush.bf16.msrb.mxu3 %v4619_v42  ;;  %2204 = vmatmul.bf16.vlgmr.msrb.gmra.mxu0 %v6053_v55  ;;  %v5349_v42 = vld [vmem:[#allocation8 + $0x274] sm:$0xf0]  ;;  %v3871_v46 = vor.u32 %v5313_v39, %v3870_v38  ;;  %v4319_v32 = vor.u32 %v5425_v20, %v4318_v16  ;;  %v4302_v38 = vld [vmem:[#allocation8 + $0x4a8] sm:$0xf] }
  0xff   :  { %2248 = vmatpush.bf16.msra.mxu0 %v3823_v35  ;;  %2261 = vmatpush.bf16.msra.mxu1 %v3951_v36  ;;  %v3742_v35 = vld [vmem:[#allocation8 + $0x48] sm:$0xf]  ;;  %v5281_v36 = vld [vmem:[#allocation8 + $0x54] sm:$0xf0] }
 0x100   :  { %2217 = vmatmul.bf16.vlgmr.msrb.gmra.mxu1 %v6055_v62  ;;  %v3743_v43 = vor.u32 %v5281_v36, %v3742_v35  ;;  %v5369_v29 = vld [vmem:[#allocation8 + $0x314] sm:$0xf0] }
 0x101   :  { %2229 = vmatpush.bf16.msrb.mxu2 %v4475_v56  ;;  %v3998_v56 = vld [vmem:[#allocation8 + $0x248] sm:$0xf]  ;;  %v5493_v31 = vld [vmem:[#allocation8 + $0x6f4] sm:$0xf0] }
 0x102   :  { %2242 = vmatpush.bf16.msrb.mxu3 %v4603_v59  ;;  %v4126_v59 = vld [vmem:[#allocation8 + $0x348] sm:$0xf]  ;;  %v5525_v35 = vld [vmem:[#allocation8 + $0x7f4] sm:$0xf0] }
 0x103   :  { %2249 = vmatpush.bf16.msra.mxu0 %v3807_v50  ;;  %2262 = vmatpush.bf16.msra.mxu1 %v3935_v51  ;;  %v4015_v50 = vor.u32 %v5349_v42, %v4014_v41  ;;  %v3854_v51 = vld [vmem:[#allocation8 + $0x128] sm:$0xf]  ;;  %v5421_v39 = vld [vmem:[#allocation8 + $0x4b4] sm:$0xf0] }
 0x104   :  { %2230 = vmatmul.bf16.vlgmr.msrb.gmra.mxu2 %v6059_v23  ;;  %v3855_v0 = vor.u32 %v5309_v52, %v3854_v51  ;;  %v4430_v42 = vld [vmem:[#allocation8 + $0x5a8] sm:$0xf]  ;;  %v4303_v47 = vor.u32 %v5421_v39, %v4302_v38  ;;  %v5517_v2 = vld [vmem:[#allocation8 + $0x7b4] sm:$0xf0] }
 0x105   :  { %2274 = vmatpush.bf16.msra.mxu2 %v4079_v61  ;;  %2243 = vmatmul.bf16.vlgmr.msrb.gmra.mxu3 %v6061_v28  ;;  %v5377_v61 = vld [vmem:[#allocation8 + $0x354] sm:$0xf0]  ;;  %v4286_v52 = vld [vmem:[#allocation8 + $0x488] sm:$0xf] }
 0x106   :  { %2287 = vmatpush.bf16.msra.mxu3 %v4207_v1  ;;  %v5273_v1 = vld [vmem:[#allocation8 + $0x14] sm:$0xf0]  ;;  %v4127_v7 = vor.u32 %v5377_v61, %v4126_v59  ;;  %v4558_v61 = vld [vmem:[#allocation8 + $0x6a8] sm:$0xf] }
 0x107   :  { %2250 = vmatpush.bf16.msra.mxu0 %v3791_v3  ;;  %2263 = vmatpush.bf16.msra.mxu1 %v3919_v6  ;;  %v3999_v3 = vor.u32 %v5345_v57, %v3998_v56  ;;  %v4462_v6 = vld [vmem:[#allocation8 + $0x5e8] sm:$0xf]  ;;  %v3711_v11 = vor.u32 %v5273_v1, %v3710_v63  ;;  %v5485_v63 = vld [vmem:[#allocation8 + $0x6b4] sm:$0xf0] }
 0x108   :  { %v4463_v17 = vor.u32 %v5461_v8, %v4462_v6  ;;  %v4414_v57 = vld [vmem:[#allocation8 + $0x588] sm:$0xf]  ;;  %v5409_v16 = vld [vmem:[#allocation8 + $0x454] sm:$0xf0] }
 0x109   :  { %2275 = vmatpush.bf16.msra.mxu2 %v4063_v9  ;;  %v3982_v9 = vld [vmem:[#allocation8 + $0x228] sm:$0xf]  ;;  %v5441_v20 = vld [vmem:[#allocation8 + $0x554] sm:$0xf0] }
 0x10a   :  { %2288 = vmatpush.bf16.msra.mxu3 %v4191_v12  ;;  %v4110_v12 = vld [vmem:[#allocation8 + $0x328] sm:$0xf]  ;;  %v5473_v38 = vld [vmem:[#allocation8 + $0x654] sm:$0xf0] }
 0x10b   :  { %2251 = vmatpush.bf16.msra.mxu0 %v3775_v15  ;;  %2264 = vmatpush.bf16.msra.mxu1 %v3903_v19  ;;  %v4335_v15 = vor.u32 %v5429_v5, %v4334_v4  ;;  %v3983_v19 = vor.u32 %v5341_v10, %v3982_v9  ;;  %v4111_v24 = vor.u32 %v5373_v14, %v4110_v12  ;;  %v4686_v1 = vld [vmem:[#allocation8 + $0x7a8] sm:$0xf]  ;;  %v5413_v4 = vld [vmem:[#allocation8 + $0x474] sm:$0xf0] }
 0x10c   :  { %v4559_v5 = vor.u32 %v5485_v63, %v4558_v61  ;;  %v4398_v6 = vld [vmem:[#allocation8 + $0x568] sm:$0xf]  ;;  %v4687_v8 = vor.u32 %v5517_v2, %v4686_v1  ;;  %v5481_v10 = vld [vmem:[#allocation8 + $0x694] sm:$0xf0]  ;;  %v5295_v1 = vld [vmem:[#allocation8 + $0xcc] sm:$0xf] }
 0x10d   :  { %2276 = vmatpush.bf16.msra.mxu2 %v4047_v22  ;;  %v5457_v22 = vld [vmem:[#allocation8 + $0x5d4] sm:$0xf0]  ;;  %v4542_v9 = vld [vmem:[#allocation8 + $0x688] sm:$0xf] }
 0x10e   :  { %2289 = vmatpush.bf16.msra.mxu3 %v4175_v26  ;;  %v5337_v26 = vld [vmem:[#allocation8 + $0x214] sm:$0xf0]  ;;  %v4447_v36 = vor.u32 %v5457_v22, %v4446_v21  ;;  %v4670_v12 = vld [vmem:[#allocation8 + $0x788] sm:$0xf] }
 0x10f   :  { %2252 = vmatpush.bf16.msra.mxu0 %v3759_v30  ;;  %2265 = vmatpush.bf16.msra.mxu1 %v3887_v34  ;;  %v4590_v30 = vld [vmem:[#allocation8 + $0x6e8] sm:$0xf]  ;;  %v5513_v14 = vld [vmem:[#allocation8 + $0x794] sm:$0xf0] }
 0x110   :  { %v4718_v34 = vld [vmem:[#allocation8 + $0x7e8] sm:$0xf]  ;;  %v4591_v41 = vor.u32 %v5493_v31, %v4590_v30  ;;  %v4671_v21 = vor.u32 %v5513_v14, %v4670_v12  ;;  %v5405_v31 = vld [vmem:[#allocation8 + $0x434] sm:$0xf0]  ;;  %v4080_v12 = vld [vmem:[#allocation8 + $0x2f8] sm:$0xf0] }
 0x111   :  { %2277 = vmatpush.bf16.msra.mxu2 %v4031_v37  ;;  %v3967_v37 = vor.u32 %v5337_v26, %v3966_v25  ;;  %v4719_v44 = vor.u32 %v5525_v35, %v4718_v34  ;;  %v4526_v22 = vld [vmem:[#allocation8 + $0x668] sm:$0xf]  ;;  %v5437_v35 = vld [vmem:[#allocation8 + $0x534] sm:$0xf0] }
 0x112   :  { %2290 = vmatpush.bf16.msra.mxu3 %v4159_v40  ;;  %v4095_v40 = vor.u32 %v5369_v29, %v4094_v27  ;;  %v4654_v26 = vld [vmem:[#allocation8 + $0x768] sm:$0xf]  ;;  %v5509_v27 = vld [vmem:[#allocation8 + $0x774] sm:$0xf0] }
 0x113   :  { %2253 = vmatpush.bf16.msra.mxu0 %v3743_v43  ;;  %2266 = vmatpush.bf16.msra.mxu1 %v3871_v46  ;;  %v5453_v43 = vld [vmem:[#allocation8 + $0x5b4] sm:$0xf0]  ;;  %v4238_v30 = vld [vmem:[#allocation8 + $0x428] sm:$0xf] }
 0x114   :  { %v5489_v46 = vld [vmem:[#allocation8 + $0x6d4] sm:$0xf0]  ;;  %v4431_v51 = vor.u32 %v5453_v43, %v4430_v42  ;;  %v4366_v34 = vld [vmem:[#allocation8 + $0x528] sm:$0xf]  ;;  %v4239_v39 = vor.u32 %v5405_v31, %v4238_v30  ;;  %v5391_v31 = vld [vmem:[#allocation8 + $0x3cc] sm:$0xf] }
 0x115   :  { %2278 = vmatpush.bf16.msra.mxu2 %v4015_v50  ;;  %v5521_v50 = vld [vmem:[#allocation8 + $0x7d4] sm:$0xf0]  ;;  %v4575_v56 = vor.u32 %v5489_v46, %v4574_v45  ;;  %v4222_v42 = vld [vmem:[#allocation8 + $0x408] sm:$0xf]  ;;  %v4367_v43 = vor.u32 %v5437_v35, %v4366_v34  ;;  %v5287_v35 = vld [vmem:[#allocation8 + $0x8c] sm:$0xf] }
 0x116   :  { %2291 = vmatpush.bf16.msra.mxu3 %v4143_v54  ;;  %v5417_v54 = vld [vmem:[#allocation8 + $0x494] sm:$0xf0]  ;;  %v4703_v59 = vor.u32 %v5521_v50, %v4702_v49  ;;  %v4350_v45 = vld [vmem:[#allocation8 + $0x508] sm:$0xf]  ;;  %v5299_v49 = vld [vmem:[#allocation8 + $0xec] sm:$0xf] }
 0x117   :  { %2254 = vmatpush.bf16.msra.mxu0 %v3727_v58  ;;  %2267 = vmatpush.bf16.msra.mxu1 %v3855_v0  ;;  %v5449_v58 = vld [vmem:[#allocation8 + $0x594] sm:$0xf0]  ;;  %v4287_v0 = vor.u32 %v5417_v54, %v4286_v52  ;;  %v3824_v50 = vld [vmem:[#allocation8 + $0xf8] sm:$0xf0] }
 0x118   :  { %v4415_v33 = vor.u32 %v5449_v58, %v4414_v57  ;;  %v5433_v46 = vld [vmem:[#allocation8 + $0x514] sm:$0xf0]  ;;  %v3952_v54 = vld [vmem:[#allocation8 + $0x1f8] sm:$0xf0] }
 0x119   :  { %2279 = vmatpush.bf16.msra.mxu2 %v3999_v3  ;;  %v4270_v3 = vld [vmem:[#allocation8 + $0x468] sm:$0xf]  ;;  %v5469_v57 = vld [vmem:[#allocation8 + $0x634] sm:$0xf0]  ;;  %v4351_v63 = vor.u32 %v5433_v46, %v4350_v45  ;;  %v5387_v46 = vld [vmem:[#allocation8 + $0x3ac] sm:$0xf] }
 0x11a   :  { %2292 = vmatpush.bf16.msra.mxu3 %v4127_v7  ;;  %v5445_v7 = vld [vmem:[#allocation8 + $0x574] sm:$0xf0] }
 0x11b   :  { %2255 = vmatpush.bf16.msra.mxu0 %v3711_v11  ;;  %2268 = vmatpush.bf16.msra.mxu1 %v3839_v60  ;;  %v4271_v11 = vor.u32 %v5413_v4, %v4270_v3  ;;  %v4399_v60 = vor.u32 %v5445_v7, %v4398_v6  ;;  %v5501_v61 = vld [vmem:[#allocation8 + $0x734] sm:$0xf0]  ;;  %v3808_v3 = vld [vmem:[#allocation8 + $0xd8] sm:$0xf0]  ;;  %v5327_v4 = vld [vmem:[#allocation8 + $0x1cc] sm:$0xf] }
 0x11c   :  { %v4478_v7 = vld [vmem:[#allocation8 + $0x608] sm:$0xf]  ;;  %v3811_v14 = vor.u32 %v5295_v1, %v3808_v3 }
 0x11d   :  { %2280 = vmatpush.bf16.msra.mxu2 %v3983_v19  ;;  %v4382_v19 = vld [vmem:[#allocation8 + $0x548] sm:$0xf] }
 0x11e   :  { %2293 = vmatpush.bf16.msra.mxu3 %v4111_v24  ;;  %2256 = vmatmul.bf16.vlgmr.msra.gmra.mxu0 %v6036_v48  ;;  %v5477_v24 = vld [vmem:[#allocation8 + $0x674] sm:$0xf0]  ;;  %v4383_v29 = vor.u32 %v5441_v20, %v4382_v19  ;;  %v5291_v19 = vld [vmem:[#allocation8 + $0xac] sm:$0xf]  ;;  %v3792_v20 = vld [vmem:[#allocation8 + $0xb8] sm:$0xf0] }
 0x11f   :  { %2300 = vmatpush.bf16.msrb.mxu0 %v4335_v15  ;;  %2313 = vmatpush.bf16.msrb.mxu1 %v4463_v17  ;;  %v4254_v15 = vld [vmem:[#allocation8 + $0x448] sm:$0xf]  ;;  %v4543_v17 = vor.u32 %v5481_v10, %v4542_v9  ;;  %v5497_v10 = vld [vmem:[#allocation8 + $0x714] sm:$0xf0]  ;;  %v3795_v30 = vor.u32 %v5291_v19, %v3792_v20  ;;  %v5307_v19 = vld [vmem:[#allocation8 + $0x12c] sm:$0xf] }
 0x120   :  { %2269 = vmatmul.bf16.vlgmr.msra.gmra.mxu1 %v6039_v53  ;;  %v4255_v25 = vor.u32 %v5409_v16, %v4254_v15  ;;  %v4606_v9 = vld [vmem:[#allocation8 + $0x708] sm:$0xf]  ;;  %v4208_v15 = vld [vmem:[#allocation8 + $0x3f8] sm:$0xf0] }
 0x121   :  { %2281 = vmatpush.bf16.msra.mxu2 %v3967_v37  ;;  %v4510_v37 = vld [vmem:[#allocation8 + $0x648] sm:$0xf]  ;;  %v3856_v20 = vld [vmem:[#allocation8 + $0x138] sm:$0xf0] }
 0x122   :  { %2294 = vmatpush.bf16.msra.mxu3 %v4095_v40  ;;  %v4638_v40 = vld [vmem:[#allocation8 + $0x748] sm:$0xf] }
 0x123   :  { %2301 = vmatpush.bf16.msrb.mxu0 %v4319_v32  ;;  %2314 = vmatpush.bf16.msrb.mxu1 %v4447_v36  ;;  %v4527_v32 = vor.u32 %v5477_v24, %v4526_v22  ;;  %v4655_v36 = vor.u32 %v5509_v27, %v4654_v26  ;;  %v5323_v24 = vld [vmem:[#allocation8 + $0x1ac] sm:$0xf] }
 0x124   :  { %2282 = vmatmul.bf16.vlgmr.msra.gmra.mxu2 %v6044_v13  ;;  %v5359_v27 = vld [vmem:[#allocation8 + $0x2cc] sm:$0xf] }
 0x125   :  { %2326 = vmatpush.bf16.msrb.mxu2 %v4591_v41  ;;  %2295 = vmatmul.bf16.vlgmr.msra.gmra.mxu3 %v6046_v18  ;;  %v5505_v41 = vld [vmem:[#allocation8 + $0x754] sm:$0xf0] }
 0x126   :  { %2339 = vmatpush.bf16.msrb.mxu3 %v4719_v44  ;;  %v5401_v44 = vld [vmem:[#allocation8 + $0x414] sm:$0xf0]  ;;  %v4639_v52 = vor.u32 %v5505_v41, %v4638_v40 }
 0x127   :  { %2302 = vmatpush.bf16.msrb.mxu0 %v4303_v47  ;;  %2315 = vmatpush.bf16.msrb.mxu1 %v4431_v51  ;;  %v4511_v47 = vor.u32 %v5473_v38, %v4510_v37  ;;  %v5331_v51 = vld [vmem:[#allocation8 + $0x1ec] sm:$0xf]  ;;  %v4223_v58 = vor.u32 %v5401_v44, %v4222_v42 }
 0x128   :  { %v3955_v2 = vor.u32 %v5331_v51, %v3952_v54  ;;  %v5319_v38 = vld [vmem:[#allocation8 + $0x18c] sm:$0xf]  ;;  %v3760_v51 = vld [vmem:[#allocation8 + $0x78] sm:$0xf0] }
 0x129   :  { %2327 = vmatpush.bf16.msrb.mxu2 %v4575_v56  ;;  %v4494_v56 = vld [vmem:[#allocation8 + $0x628] sm:$0xf]  ;;  %v5355_v42 = vld [vmem:[#allocation8 + $0x2ac] sm:$0xf] }
 0x12a   :  { %2340 = vmatpush.bf16.msrb.mxu3 %v4703_v59  ;;  %v4622_v59 = vld [vmem:[#allocation8 + $0x728] sm:$0xf]  ;;  %v5315_v54 = vld [vmem:[#allocation8 + $0x16c] sm:$0xf] }
 0x12b   :  { %2303 = vmatpush.bf16.msrb.mxu0 %v4287_v0  ;;  %2316 = vmatpush.bf16.msrb.mxu1 %v4415_v33  ;;  %v3827_v0 = vor.u32 %v5299_v49, %v3824_v50  ;;  %v4495_v33 = vor.u32 %v5469_v57, %v4494_v56  ;;  %v4623_v6 = vor.u32 %v5501_v61, %v4622_v59  ;;  %v5283_v50 = vld [vmem:[#allocation8 + $0x6c] sm:$0xf]  ;;  %v3888_v56 = vld [vmem:[#allocation8 + $0x178] sm:$0xf0] }
 0x12c   :  { %v4032_v59 = vld [vmem:[#allocation8 + $0x298] sm:$0xf0]  ;;  %v3763_v61 = vor.u32 %v5283_v50, %v3760_v51  ;;  %v3891_v1 = vor.u32 %v5315_v54, %v3888_v56  ;;  %v5371_v51 = vld [vmem:[#allocation8 + $0x32c] sm:$0xf] }
 0x12d   :  { %2328 = vmatpush.bf16.msrb.mxu2 %v4559_v5  ;;  %v3936_v5 = vld [vmem:[#allocation8 + $0x1d8] sm:$0xf0] }
 0x12e   :  { %2341 = vmatpush.bf16.msrb.mxu3 %v4687_v8  ;;  %v5465_v8 = vld [vmem:[#allocation8 + $0x614] sm:$0xf0]  ;;  %v3939_v16 = vor.u32 %v5327_v4, %v3936_v5  ;;  %v5311_v4 = vld [vmem:[#allocation8 + $0x14c] sm:$0xf]  ;;  %v3872_v5 = vld [vmem:[#allocation8 + $0x158] sm:$0xf0] }
 0x12f   :  { %2304 = vmatpush.bf16.msrb.mxu0 %v4271_v11  ;;  %2317 = vmatpush.bf16.msrb.mxu1 %v4399_v60  ;;  %v5363_v11 = vld [vmem:[#allocation8 + $0x2ec] sm:$0xf] }
 0x130   :  { %v5395_v60 = vld [vmem:[#allocation8 + $0x3ec] sm:$0xf]  ;;  %v4083_v22 = vor.u32 %v5363_v11, %v4080_v12 }
 0x131   :  { %2329 = vmatpush.bf16.msrb.mxu2 %v4543_v17  ;;  %v4479_v17 = vor.u32 %v5465_v8, %v4478_v7  ;;  %v4211_v26 = vor.u32 %v5395_v60, %v4208_v15  ;;  %v5347_v8 = vld [vmem:[#allocation8 + $0x26c] sm:$0xf]  ;;  %v3875_v60 = vor.u32 %v5311_v4, %v3872_v5  ;;  %v4096_v5 = vld [vmem:[#allocation8 + $0x318] sm:$0xf0] }
 0x132   :  { %2342 = vmatpush.bf16.msrb.mxu3 %v4671_v21  ;;  %v4607_v21 = vor.u32 %v5497_v10, %v4606_v9  ;;  %v4016_v9 = vld [vmem:[#allocation8 + $0x278] sm:$0xf0]  ;;  %v5379_v12 = vld [vmem:[#allocation8 + $0x36c] sm:$0xf] }
 0x133   :  { %2305 = vmatpush.bf16.msrb.mxu0 %v4255_v25  ;;  %2318 = vmatpush.bf16.msrb.mxu1 %v4383_v29  ;;  %v3920_v25 = vld [vmem:[#allocation8 + $0x1b8] sm:$0xf0]  ;;  %v5275_v15 = vld [vmem:[#allocation8 + $0x2c] sm:$0xf] }
 0x134   :  { %v4064_v29 = vld [vmem:[#allocation8 + $0x2d8] sm:$0xf0]  ;;  %v3923_v34 = vor.u32 %v5323_v24, %v3920_v25 }
 0x135   :  { %2330 = vmatpush.bf16.msrb.mxu2 %v4527_v32  ;;  %v4192_v32 = vld [vmem:[#allocation8 + $0x3d8] sm:$0xf0]  ;;  %v4067_v37 = vor.u32 %v5359_v27, %v4064_v29  ;;  %v5375_v27 = vld [vmem:[#allocation8 + $0x34c] sm:$0xf] }
 0x136   :  { %2343 = vmatpush.bf16.msrb.mxu3 %v4655_v36  ;;  %v3776_v36 = vld [vmem:[#allocation8 + $0x98] sm:$0xf0]  ;;  %v4195_v41 = vor.u32 %v5391_v31, %v4192_v32  ;;  %v3859_v32 = vor.u32 %v5307_v19, %v3856_v20  ;;  %v5451_v20 = vld [vmem:[#allocation8 + $0x5ac] sm:$0xf] }
 0x137   :  { %2306 = vmatpush.bf16.msrb.mxu0 %v4239_v39  ;;  %2319 = vmatpush.bf16.msrb.mxu1 %v4367_v43  ;;  %v3904_v39 = vld [vmem:[#allocation8 + $0x198] sm:$0xf0]  ;;  %v3779_v45 = vor.u32 %v5287_v35, %v3776_v36  ;;  %v5303_v35 = vld [vmem:[#allocation8 + $0x10c] sm:$0xf] }
 0x138   :  { %v4048_v43 = vld [vmem:[#allocation8 + $0x2b8] sm:$0xf0]  ;;  %v3907_v49 = vor.u32 %v5319_v38, %v3904_v39  ;;  %v5427_v38 = vld [vmem:[#allocation8 + $0x4ec] sm:$0xf] }
 0x139   :  { %2331 = vmatpush.bf16.msrb.mxu2 %v4511_v47  ;;  %v6079_v40 = vpop.f32.mrf.mxu0  ;;  %v6082_v44 = vpop.f32.mrf.mxu1  ;;  %v4176_v47 = vld [vmem:[#allocation8 + $0x3b8] sm:$0xf0] }
 0x13a   :  { %2344 = vmatpush.bf16.msrb.mxu3 %v4639_v52  ;;  %v4051_v52 = vor.u32 %v5355_v42, %v4048_v43  ;;  %v4179_v57 = vor.u32 %v5387_v46, %v4176_v47  ;;  %v4000_v24 = vld [vmem:[#allocation8 + $0x258] sm:$0xf0]  ;;  %v5339_v46 = vld [vmem:[#allocation8 + $0x22c] sm:$0xf] }
 0x13b   :  { %2307 = vmatpush.bf16.msrb.mxu0 %v4223_v58  ;;  %2320 = vmatpush.bf16.msrb.mxu1 %v4351_v63  ;;  %v5351_v58 = vld [vmem:[#allocation8 + $0x28c] sm:$0xf]  ;;  %v4128_v29 = vld [vmem:[#allocation8 + $0x358] sm:$0xf0] }
 0x13c   :  { %v5383_v63 = vld [vmem:[#allocation8 + $0x38c] sm:$0xf]  ;;  %v4035_v3 = vor.u32 %v5351_v58, %v4032_v59  ;;  %v3840_v36 = vld [vmem:[#allocation8 + $0x118] sm:$0xf0]  ;;  %v4131_v43 = vor.u32 %v5375_v27, %v4128_v29 }
 0x13d   :  { %2332 = vmatpush.bf16.msrb.mxu2 %v4495_v33  ;;  %v3744_v33 = vld [vmem:[#allocation8 + $0x58] sm:$0xf0]  ;;  %v3843_v54 = vor.u32 %v5303_v35, %v3840_v36  ;;  %v5415_v35 = vld [vmem:[#allocation8 + $0x48c] sm:$0xf] }
 0x13e   :  { %2345 = vmatpush.bf16.msrb.mxu3 %v4623_v6  ;;  %2308 = vmatmul.bf16.vlgmr.msrb.gmra.mxu0 %v6053_v55  ;;  %v4336_v39 = vld [vmem:[#allocation8 + $0x4f8] sm:$0xf0] }
 0x13f   :  { %2352 = vmatpush.bf16.msra.mxu0 %v3827_v0  ;;  %2365 = vmatpush.bf16.msra.mxu1 %v3955_v2  ;;  %v4160_v0 = vld [vmem:[#allocation8 + $0x398] sm:$0xf0]  ;;  %v5279_v2 = vld [vmem:[#allocation8 + $0x4c] sm:$0xf]  ;;  %v4339_v56 = vor.u32 %v5427_v38, %v4336_v39 }
 0x140   :  { %2321 = vmatmul.bf16.vlgmr.msrb.gmra.mxu1 %v6055_v62  ;;  %v4163_v7 = vor.u32 %v5383_v63, %v4160_v0  ;;  %v3747_v11 = vor.u32 %v5279_v2, %v3744_v33  ;;  %v3984_v47 = vld [vmem:[#allocation8 + $0x238] sm:$0xf0]  ;;  %v5455_v63 = vld [vmem:[#allocation8 + $0x5cc] sm:$0xf] }
 0x141   :  { %2333 = vmatpush.bf16.msrb.mxu2 %v4479_v17  ;;  %v2051_v6 = vpop.f32.mrf.mxu0  ;;  %v2064_v10 = vpop.f32.mrf.mxu1  ;;  %v4019_v17 = vor.u32 %v5347_v8, %v4016_v9  ;;  %v3987_v59 = vor.u32 %v5339_v46, %v3984_v47  ;;  %v4448_v0 = vld [vmem:[#allocation8 + $0x5d8] sm:$0xf0]  ;;  %v5335_v2 = vld [vmem:[#allocation8 + $0x20c] sm:$0xf] }
 0x142   :  { %2346 = vmatpush.bf16.msrb.mxu3 %v4607_v21  ;;  %v3968_v33 = vld [vmem:[#allocation8 + $0x218] sm:$0xf0]  ;;  %v5491_v6 = vld [vmem:[#allocation8 + $0x6ec] sm:$0xf] }
 0x143   :  { %2353 = vmatpush.bf16.msra.mxu0 %v3811_v14  ;;  %2366 = vmatpush.bf16.msra.mxu1 %v3939_v16  ;;  %v4144_v14 = vld [vmem:[#allocation8 + $0x378] sm:$0xf0]  ;;  %v5523_v10 = vld [vmem:[#allocation8 + $0x7ec] sm:$0xf] }
 0x144   :  { %2334 = vmatmul.bf16.vlgmr.msrb.gmra.mxu2 %v6059_v23  ;;  %v3728_v16 = vld [vmem:[#allocation8 + $0x38] sm:$0xf0]  ;;  %v4147_v21 = vor.u32 %v5379_v12, %v4144_v14  ;;  %v4451_v12 = vor.u32 %v5455_v63, %v4448_v0  ;;  %v3971_v14 = vor.u32 %v5335_v2, %v3968_v33  ;;  %v5515_v47 = vld [vmem:[#allocation8 + $0x7ac] sm:$0xf] }
 0x145   :  { %2378 = vmatpush.bf16.msra.mxu2 %v4083_v22  ;;  %2347 = vmatmul.bf16.vlgmr.msrb.gmra.mxu3 %v6061_v28  ;;  %v5343_v22 = vld [vmem:[#allocation8 + $0x24c] sm:$0xf]  ;;  %v4576_v27 = vld [vmem:[#allocation8 + $0x6d8] sm:$0xf0] }
 0x146   :  { %2391 = vmatpush.bf16.msra.mxu3 %v4211_v26  ;;  %v3731_v26 = vor.u32 %v5275_v15, %v3728_v16  ;;  %v4304_v15 = vld [vmem:[#allocation8 + $0x4b8] sm:$0xf0]  ;;  %v5479_v63 = vld [vmem:[#allocation8 + $0x68c] sm:$0xf] }
 0x147   :  { %2354 = vmatpush.bf16.msra.mxu0 %v3795_v30  ;;  %2367 = vmatpush.bf16.msra.mxu1 %v3923_v34  ;;  %v6085_v25 = vpop.f32.mrf.mxu2  ;;  %v5271_v30 = vld [vmem:[#allocation8 + $0xc] sm:$0xf]  ;;  %v6087_v31 = vpop.f32.mrf.mxu3  ;;  %v3712_v34 = vld [vmem:[#allocation8 + $0x18] sm:$0xf0] }
 0x148   :  { %v3715_v50 = vor.u32 %v5271_v30, %v3712_v34  ;;  %v5519_v30 = vld [vmem:[#allocation8 + $0x7cc] sm:$0xf]  ;;  %v4416_v38 = vld [vmem:[#allocation8 + $0x598] sm:$0xf0] }
 0x149   :  { %2379 = vmatpush.bf16.msra.mxu2 %v4067_v37  ;;  %v4003_v37 = vor.u32 %v5343_v22, %v4000_v24  ;;  %v5511_v2 = vld [vmem:[#allocation8 + $0x78c] sm:$0xf] }
 0x14a   :  { %2392 = vmatpush.bf16.msra.mxu3 %v4195_v41  ;;  %v5459_v41 = vld [vmem:[#allocation8 + $0x5ec] sm:$0xf]  ;;  %v6089_v42 = vpop.f32.mrf.mxu0 }
 0x14b   :  { %2355 = vmatpush.bf16.msra.mxu0 %v3779_v45  ;;  %2368 = vmatpush.bf16.msra.mxu1 %v3907_v49  ;;  %v4464_v45 = vld [vmem:[#allocation8 + $0x5f8] sm:$0xf0]  ;;  %v6091_v49 = vpop.f32.mrf.mxu1 }
 0x14c   :  { %v4467_v58 = vor.u32 %v5459_v41, %v4464_v45  ;;  %v5483_v41 = vld [vmem:[#allocation8 + $0x6ac] sm:$0xf] }
 0x14d   :  { %2380 = vmatpush.bf16.msra.mxu2 %v4051_v52  ;;  %v4112_v52 = vld [vmem:[#allocation8 + $0x338] sm:$0xf0] }
 0x14e   :  { %2393 = vmatpush.bf16.msra.mxu3 %v4179_v57  ;;  %v5423_v57 = vld [vmem:[#allocation8 + $0x4cc] sm:$0xf] }
 0x14f   :  { %2356 = vmatpush.bf16.msra.mxu0 %v3763_v61  ;;  %2369 = vmatpush.bf16.msra.mxu1 %v3891_v1  ;;  %v4320_v61 = vld [vmem:[#allocation8 + $0x4d8] sm:$0xf0]  ;;  %v4115_v1 = vor.u32 %v5371_v51, %v4112_v52  ;;  %v2077_v4 = vpop.f32.mrf.mxu2  ;;  %v2090_v8 = vpop.f32.mrf.mxu3  ;;  %v5411_v52 = vld [vmem:[#allocation8 + $0x46c] sm:$0xf] }
 0x150   :  { %v4323_v9 = vor.u32 %v5423_v57, %v4320_v61  ;;  %v5443_v57 = vld [vmem:[#allocation8 + $0x56c] sm:$0xf]  ;;  %v4256_v4 = vld [vmem:[#allocation8 + $0x458] sm:$0xf0] }
 0x151   :  { %2381 = vmatpush.bf16.msra.mxu2 %v4035_v3  ;;  %v5367_v3 = vld [vmem:[#allocation8 + $0x30c] sm:$0xf] }
 0x152   :  { %2394 = vmatpush.bf16.msra.mxu3 %v4163_v7  ;;  %v4592_v7 = vld [vmem:[#allocation8 + $0x6f8] sm:$0xf0]  ;;  %v2103_v16 = vpop.f32.mrf.mxu0 }
 0x153   :  { %2357 = vmatpush.bf16.msra.mxu0 %v3747_v11  ;;  %2370 = vmatpush.bf16.msra.mxu1 %v3875_v60  ;;  %v4720_v11 = vld [vmem:[#allocation8 + $0x7f8] sm:$0xf0]  ;;  %v5419_v60 = vld [vmem:[#allocation8 + $0x4ac] sm:$0xf]  ;;  %v4595_v19 = vor.u32 %v5491_v6, %v4592_v7  ;;  %v2116_v22 = vpop.f32.mrf.mxu1 }
 0x154   :  { %v4723_v24 = vor.u32 %v5523_v10, %v4720_v11  ;;  %v4307_v29 = vor.u32 %v5419_v60, %v4304_v15  ;;  %v5439_v6 = vld [vmem:[#allocation8 + $0x54c] sm:$0xf]  ;;  %v4384_v7 = vld [vmem:[#allocation8 + $0x558] sm:$0xf0] }
 0x155   :  { %2382 = vmatpush.bf16.msra.mxu2 %v4019_v17  ;;  %v4099_v17 = vor.u32 %v5367_v3, %v4096_v5  ;;  %v5407_v3 = vld [vmem:[#allocation8 + $0x44c] sm:$0xf]  ;;  %v4528_v11 = vld [vmem:[#allocation8 + $0x678] sm:$0xf0] }
 0x156   :  { %2395 = vmatpush.bf16.msra.mxu3 %v4147_v21  ;;  %v4432_v21 = vld [vmem:[#allocation8 + $0x5b8] sm:$0xf0]  ;;  %v5475_v10 = vld [vmem:[#allocation8 + $0x66c] sm:$0xf]  ;;  %v4259_v60 = vor.u32 %v5407_v3, %v4256_v4 }
 0x157   :  { %2358 = vmatpush.bf16.msra.mxu0 %v3731_v26  ;;  %2371 = vmatpush.bf16.msra.mxu1 %v3859_v32  ;;  %v5487_v26 = vld [vmem:[#allocation8 + $0x6cc] sm:$0xf]  ;;  %v4704_v32 = vld [vmem:[#allocation8 + $0x7d8] sm:$0xf0]  ;;  %v4435_v34 = vor.u32 %v5451_v20, %v4432_v21  ;;  %v6097_v45 = vpop.f32.mrf.mxu3  ;;  %v4531_v21 = vor.u32 %v5475_v10, %v4528_v11 }
 0x158   :  { %v4579_v36 = vor.u32 %v5487_v26, %v4576_v27  ;;  %v4707_v39 = vor.u32 %v5519_v30, %v4704_v32  ;;  %v5507_v15 = vld [vmem:[#allocation8 + $0x76c] sm:$0xf]  ;;  %v4656_v16 = vld [vmem:[#allocation8 + $0x778] sm:$0xf0] }
 0x159   :  { %2383 = vmatpush.bf16.msra.mxu2 %v4003_v37  ;;  %v5447_v37 = vld [vmem:[#allocation8 + $0x58c] sm:$0xf]  ;;  %v4240_v20 = vld [vmem:[#allocation8 + $0x438] sm:$0xf0] }
 0x15a   :  { %2396 = vmatpush.bf16.msra.mxu3 %v4131_v43  ;;  %v4560_v43 = vld [vmem:[#allocation8 + $0x6b8] sm:$0xf0]  ;;  %v4419_v51 = vor.u32 %v5447_v37, %v4416_v38  ;;  %v5435_v22 = vld [vmem:[#allocation8 + $0x52c] sm:$0xf] }
 0x15b   :  { %2359 = vmatpush.bf16.msra.mxu0 %v3715_v50  ;;  %2372 = vmatpush.bf16.msra.mxu1 %v3843_v54  ;;  %v4688_v50 = vld [vmem:[#allocation8 + $0x7b8] sm:$0xf0]  ;;  %v5471_v30 = vld [vmem:[#allocation8 + $0x64c] sm:$0xf] }
 0x15c   :  { %v4272_v54 = vld [vmem:[#allocation8 + $0x478] sm:$0xf0]  ;;  %v4691_v61 = vor.u32 %v5515_v47, %v4688_v50  ;;  %v5399_v37 = vld [vmem:[#allocation8 + $0x40c] sm:$0xf]  ;;  %v4782_v47 = vld [vmem:[#allocation11 + $0x70] sm:$0xf] }
 0x15d   :  { %2384 = vmatpush.bf16.msra.mxu2 %v3987_v59  ;;  %v6101_v59 = vpop.f32.mrf.mxu0  ;;  %v6103_v0 = vpop.f32.mrf.mxu1  ;;  %v4512_v32 = vld [vmem:[#allocation8 + $0x658] sm:$0xf0] }
 0x15e   :  { %2397 = vmatpush.bf16.msra.mxu3 %v4115_v1  ;;  %2360 = vmatmul.bf16.vlgmr.msra.gmra.mxu0 %v6036_v48  ;;  %v4288_v48 = vld [vmem:[#allocation8 + $0x498] sm:$0xf0]  ;;  %v4275_v1 = vor.u32 %v5411_v52, %v4272_v54 }
 0x15f   :  { %2404 = vmatpush.bf16.msrb.mxu0 %v4339_v56  ;;  %2417 = vmatpush.bf16.msrb.mxu1 %v4467_v58  ;;  %v4291_v46 = vor.u32 %v5415_v35, %v4288_v48  ;;  %v4563_v56 = vor.u32 %v5483_v41, %v4560_v43  ;;  %v4400_v58 = vld [vmem:[#allocation8 + $0x578] sm:$0xf0]  ;;  %v5503_v48 = vld [vmem:[#allocation8 + $0x74c] sm:$0xf] }
 0x160   :  { %2373 = vmatmul.bf16.vlgmr.msra.gmra.mxu1 %v6039_v53  ;;  %v6095_v53 = vpop.f32.mrf.mxu2  ;;  %v4403_v33 = vor.u32 %v5443_v57, %v4400_v58  ;;  %v5431_v41 = vld [vmem:[#allocation8 + $0x50c] sm:$0xf]  ;;  %v4352_v43 = vld [vmem:[#allocation8 + $0x518] sm:$0xf0] }
 0x161   :  { %2385 = vmatpush.bf16.msra.mxu2 %v3971_v14  ;;  %v2142_v14 = vpop.f32.mrf.mxu3  ;;  %v5541_v50 = vld [vmem:[#allocation11 + $0x74] sm:$0xf0] }
 0x162   :  { %2398 = vmatpush.bf16.msra.mxu3 %v4099_v17  ;;  %v4387_v17 = vor.u32 %v5439_v6, %v4384_v7  ;;  %v5557_v54 = vld [vmem:[#allocation11 + $0xf4] sm:$0xf0]  ;;  %v5539_v6 = vld [vmem:[#allocation11 + $0x64] sm:$0xf0]  ;;  %v4838_v7 = vld [vmem:[#allocation11 + $0xe0] sm:$0xf] }
 0x163   :  { %2405 = vmatpush.bf16.msrb.mxu0 %v4323_v9  ;;  %2418 = vmatpush.bf16.msrb.mxu1 %v4451_v12  ;;  %v6105_v12 = vld [vmem:[#allocation10] sm:$0xf]  ;;  %v4496_v57 = vld [vmem:[#allocation8 + $0x638] sm:$0xf0]  ;;  %v5495_v14 = vld [vmem:[#allocation8 + $0x70c] sm:$0xf] }
 0x164   :  { %2386 = vmatmul.bf16.vlgmr.msra.gmra.mxu2 %v6044_v13  ;;  %v4544_v13 = vld [vmem:[#allocation8 + $0x698] sm:$0xf0]  ;;  %v752_v26 = vperm.slane %v6105_v12, 0 }
 0x165   :  { %2430 = vmatpush.bf16.msrb.mxu2 %v4595_v19  ;;  %2399 = vmatmul.bf16.vlgmr.msra.gmra.mxu3 %v6046_v18  ;;  %v4672_v18 = vld [vmem:[#allocation8 + $0x798] sm:$0xf0]  ;;  %v4547_v5 = vor.u32 %v5479_v63, %v4544_v13  ;;  %v5403_v19 = vld [vmem:[#allocation8 + $0x42c] sm:$0xf]  ;;  %v2155_v27 = vpop.f32.mrf.mxu0 }
 0x166   :  { %2443 = vmatpush.bf16.msrb.mxu3 %v4723_v24  ;;  %v4675_v9 = vor.u32 %v5511_v2, %v4672_v18  ;;  %v4368_v24 = vld [vmem:[#allocation8 + $0x538] sm:$0xf0]  ;;  %v4243_v35 = vor.u32 %v5403_v19, %v4240_v20  ;;  %v2050_v58 = vadd.f32 %v6079_v40, %v752_v26  ;;  %v4355_v18 = vor.u32 %v5431_v41, %v4352_v43  ;;  %v5555_v40 = vld [vmem:[#allocation11 + $0xe4] sm:$0xf0]  ;;  %v4766_v19 = vld [vmem:[#allocation11 + $0x50] sm:$0xf] }
 0x167   :  { %2406 = vmatpush.bf16.msrb.mxu0 %v4307_v29  ;;  %2419 = vmatpush.bf16.msrb.mxu1 %v4435_v34  ;;  %v4659_v29 = vor.u32 %v5507_v15, %v4656_v16  ;;  %v2168_v34 = vpop.f32.mrf.mxu1  ;;  %v4371_v38 = vor.u32 %v5435_v22, %v4368_v24  ;;  %v4624_v2 = vld [vmem:[#allocation8 + $0x738] sm:$0xf0]  ;;  %v4839_v16 = vor.u32 %v5555_v40, %v4838_v7  ;;  %v4830_v24 = vld [vmem:[#allocation11 + $0xd0] sm:$0xf] }
 0x168   :  { %v2129_v8 = vpop.f32.mrf.mxu2  ;;  %v4480_v10 = vld [vmem:[#allocation8 + $0x618] sm:$0xf0]  ;;  %v2063_v11 = vadd.f32 %v6082_v44, %v2050_v58  ;;  %v4758_v34 = vld [vmem:[#allocation11 + $0x40] sm:$0xf]  ;;  %v4814_v43 = vld [vmem:[#allocation11 + $0xb0] sm:$0xf] }
 0x169   :  { %2431 = vmatpush.bf16.msrb.mxu2 %v4579_v36  ;;  %v4640_v36 = vld [vmem:[#allocation8 + $0x758] sm:$0xf0]  ;;  %v6111_v63 = vpop.f32.mrf.mxu3  ;;  %v4806_v58 = vld [vmem:[#allocation11 + $0xa0] sm:$0xf]  ;;  %v4798_v7 = vld [vmem:[#allocation11 + $0x90] sm:$0xf] }
 0x16a   :  { %2444 = vmatpush.bf16.msrb.mxu3 %v4707_v39  ;;  %v4224_v39 = vld [vmem:[#allocation8 + $0x418] sm:$0xf0]  ;;  %v4643_v52 = vor.u32 %v5503_v48, %v4640_v36  ;;  %v2076_v26 = vadd.f32 %v6085_v25, %v2063_v11  ;;  %v5551_v36 = vld [vmem:[#allocation11 + $0xc4] sm:$0xf0] }
 0x16b   :  { %2407 = vmatpush.bf16.msrb.mxu0 %v4291_v46  ;;  %2420 = vmatpush.bf16.msrb.mxu1 %v4419_v51  ;;  %v4515_v46 = vor.u32 %v5471_v30, %v4512_v32  ;;  %v4846_v51 = vld [vmem:[#allocation11 + $0xf0] sm:$0xf]  ;;  %v4227_v13 = vor.u32 %v5399_v37, %v4224_v39  ;;  %v5537_v20 = vld [vmem:[#allocation11 + $0x54] sm:$0xf0] }
 0x16c   :  { %v4847_v3 = vor.u32 %v5557_v54, %v4846_v51  ;;  %v5553_v44 = vld [vmem:[#allocation11 + $0xd4] sm:$0xf0]  ;;  %v4767_v30 = vor.u32 %v5537_v20, %v4766_v19  ;;  %v2089_v37 = vadd.f32 %v6087_v31, %v2076_v26  ;;  %v4910_v51 = vld [vmem:[#allocation11 + $0x170] sm:$0xf]  ;;  %v4742_v54 = vld [vmem:[#allocation11 + $0x20] sm:$0xf] }
 0x16d   :  { %2432 = vmatpush.bf16.msrb.mxu2 %v4563_v56  ;;  %v5467_v56 = vld [vmem:[#allocation8 + $0x62c] sm:$0xf]  ;;  %v4831_v32 = vor.u32 %v5553_v44, %v4830_v24  ;;  %v5533_v39 = vld [vmem:[#allocation11 + $0x34] sm:$0xf0]  ;;  %v5540_v20 = vld [vmem:[#allocation11 + $0x74] sm:$0xf] }
 0x16e   :  { %2445 = vmatpush.bf16.msrb.mxu3 %v4691_v61  ;;  %v4499_v4 = vor.u32 %v5467_v56, %v4496_v57  ;;  %v5531_v56 = vld [vmem:[#allocation11 + $0x24] sm:$0xf0]  ;;  %v5556_v24 = vld [vmem:[#allocation11 + $0xf4] sm:$0xf]  ;;  %v4848_v44 = vld [vmem:[#allocation11 + $0xf8] sm:$0xf0] }
 0x16f   :  { %2408 = vmatpush.bf16.msrb.mxu0 %v4275_v1  ;;  %2421 = vmatpush.bf16.msrb.mxu1 %v4403_v33  ;;  %v5499_v1 = vld [vmem:[#allocation8 + $0x72c] sm:$0xf]  ;;  %v4783_v33 = vor.u32 %v5541_v50, %v4782_v47 }
 0x170   :  { %v6109_v61 = vpop.f32.mrf.mxu2  ;;  %v4627_v8 = vor.u32 %v5499_v1, %v4624_v2  ;;  %v4743_v1 = vor.u32 %v5531_v56, %v4742_v54  ;;  %v5571_v2 = vld [vmem:[#allocation11 + $0x164] sm:$0xf0]  ;;  %v5552_v56 = vld [vmem:[#allocation11 + $0xd4] sm:$0xf] }
 0x171   :  { %2433 = vmatpush.bf16.msrb.mxu2 %v4547_v5  ;;  %v4774_v5 = vld [vmem:[#allocation11 + $0x60] sm:$0xf]  ;;  %v5543_v19 = vld [vmem:[#allocation11 + $0x84] sm:$0xf0] }
 0x172   :  { %2446 = vmatpush.bf16.msrb.mxu3 %v4675_v9  ;;  %v5463_v9 = vld [vmem:[#allocation8 + $0x60c] sm:$0xf]  ;;  %v4775_v15 = vor.u32 %v5539_v6, %v4774_v5 }
 0x173   :  { %2409 = vmatpush.bf16.msrb.mxu0 %v4259_v60  ;;  %2422 = vmatpush.bf16.msrb.mxu1 %v4387_v17  ;;  %v4608_v60 = vld [vmem:[#allocation8 + $0x718] sm:$0xf0]  ;;  %v4483_v17 = vor.u32 %v5463_v9, %v4480_v10 }
 0x174   :  { %v4611_v22 = vor.u32 %v5495_v14, %v4608_v60  ;;  %v5569_v10 = vld [vmem:[#allocation11 + $0x154] sm:$0xf0]  ;;  %v5527_v60 = vld [vmem:[#allocation11 + $0x4] sm:$0xf0] }
 0x175   :  { %2434 = vmatpush.bf16.msrb.mxu2 %v4531_v21  ;;  %v753_v21 = vperm.slane %v6105_v12, 1 }
 0x176   :  { %2447 = vmatpush.bf16.msrb.mxu3 %v4659_v29  ;;  %v2194_v29 = vpop.f32.mrf.mxu3 }
 0x177   :  { %2410 = vmatpush.bf16.msrb.mxu0 %v4243_v35  ;;  %2423 = vmatpush.bf16.msrb.mxu1 %v4371_v38  ;;  %v5535_v35 = vld [vmem:[#allocation11 + $0x44] sm:$0xf0]  ;;  %v2154_v48 = vadd.f32 %v6101_v59, %v753_v21  ;;  %v4750_v38 = vld [vmem:[#allocation11 + $0x30] sm:$0xf]  ;;  %v2102_v59 = vadd.f32 %v6089_v42, %v2089_v37  ;;  %v4784_v21 = vld [vmem:[#allocation11 + $0x78] sm:$0xf0] }
 0x178   :  { %v2181_v27 = vpop.f32.mrf.mxu2  ;;  %v5538_v37 = vld [vmem:[#allocation11 + $0x64] sm:$0xf] }
 0x179   :  { %2435 = vmatpush.bf16.msrb.mxu2 %v4515_v46  ;;  %v2167_v41 = vadd.f32 %v6103_v0, %v2154_v48  ;;  %v5549_v46 = vld [vmem:[#allocation11 + $0xb4] sm:$0xf0]  ;;  %v2115_v0 = vadd.f32 %v6091_v49, %v2102_v59 }
 0x17a   :  { %2448 = vmatpush.bf16.msrb.mxu3 %v4643_v52  ;;  %v5573_v52 = vld [vmem:[#allocation11 + $0x174] sm:$0xf0] }
 0x17b   :  { %2411 = vmatpush.bf16.msrb.mxu0 %v4227_v13  ;;  %2424 = vmatpush.bf16.msrb.mxu1 %v4355_v18  ;;  %v2205_v47 = vpop.f32.mrf.mxu0  ;;  %v2180_v50 = vadd.f32 %v6109_v61, %v2167_v41  ;;  %v4911_v57 = vor.u32 %v5573_v52, %v4910_v51  ;;  %v5547_v13 = vld [vmem:[#allocation11 + $0xa4] sm:$0xf0]  ;;  %v4902_v61 = vld [vmem:[#allocation11 + $0x160] sm:$0xf]  ;;  %v2128_v18 = vadd.f32 %v6095_v53, %v2115_v0  ;;  %v4878_v41 = vld [vmem:[#allocation11 + $0x130] sm:$0xf] }
 0x17c   :  { %v4903_v5 = vor.u32 %v5571_v2, %v4902_v61  ;;  %v4726_v53 = vld [vmem:[#allocation11] sm:$0xf]  ;;  %v5536_v52 = vld [vmem:[#allocation11 + $0x54] sm:$0xf]  ;;  %v4760_v61 = vld [vmem:[#allocation11 + $0x48] sm:$0xf0] }
 0x17d   :  { %2436 = vmatpush.bf16.msrb.mxu2 %v4499_v4  ;;  %v2218_v31 = vpop.f32.mrf.mxu1  ;;  %v2193_v42 = vadd.f32 %v6111_v63, %v2180_v50  ;;  %v5529_v4 = vld [vmem:[#allocation11 + $0x14] sm:$0xf0]  ;;  %v4894_v63 = vld [vmem:[#allocation11 + $0x150] sm:$0xf]  ;;  %v2141_v11 = vadd.f32 %v6097_v45, %v2128_v18  ;;  %v4727_v29 = vor.u32 %v5527_v60, %v4726_v53  ;;  %v5567_v45 = vld [vmem:[#allocation11 + $0x144] sm:$0xf0] }
 0x17e   :  { %2449 = vmatpush.bf16.msrb.mxu3 %v4627_v8  ;;  %2412 = vmatmul.bf16.vlgmr.msrb.gmra.mxu0 %v6053_v55  ;;  %v4822_v55 = vld [vmem:[#allocation11 + $0xc0] sm:$0xf]  ;;  %v5545_v8 = vld [vmem:[#allocation11 + $0x94] sm:$0xf0]  ;;  %v5550_v2 = vld [vmem:[#allocation11 + $0xc4] sm:$0xf] }
 0x17f   :  { %2854 = vmatpush.bf16.msra.mxu0 %v4783_v33  ;;  %2867 = vmatpush.bf16.msra.mxu1 %v4847_v3  ;;  %v4823_v25 = vor.u32 %v5551_v36, %v4822_v55  ;;  %v4807_v33 = vor.u32 %v5547_v13, %v4806_v58  ;;  %v4734_v3 = vld [vmem:[#allocation11 + $0x10] sm:$0xf]  ;;  %v2206_v6 = vadd.f32 %v2205_v47, %v2193_v42  ;;  %v4870_v50 = vld [vmem:[#allocation11 + $0x120] sm:$0xf]  ;;  %v4824_v18 = vld [vmem:[#allocation11 + $0xc8] sm:$0xf0] }
 0x180   :  { %2425 = vmatmul.bf16.vlgmr.msrb.gmra.mxu1 %v6055_v62  ;;  %v4759_v62 = vor.u32 %v5535_v35, %v4758_v34  ;;  %v4735_v9 = vor.u32 %v5529_v4, %v4734_v3  ;;  %v4799_v14 = vor.u32 %v5545_v8, %v4798_v7  ;;  %v4787_v35 = vor.u32 %v5540_v20, %v4784_v21  ;;  %v5561_v3 = vld [vmem:[#allocation11 + $0x114] sm:$0xf0]  ;;  %v5532_v7 = vld [vmem:[#allocation11 + $0x34] sm:$0xf]  ;;  %v4752_v8 = vld [vmem:[#allocation11 + $0x38] sm:$0xf0] }
 0x181   :  { %2437 = vmatpush.bf16.msrb.mxu2 %v4483_v17  ;;  %v2219_v17 = vadd.f32 %v2218_v31, %v2206_v6  ;;  %v4851_v36 = vor.u32 %v5556_v24, %v4848_v44  ;;  %v5563_v31 = vld [vmem:[#allocation11 + $0x124] sm:$0xf0]  ;;  %v4827_v6 = vor.u32 %v5550_v2, %v4824_v18  ;;  %v4755_v53 = vor.u32 %v5532_v7, %v4752_v8  ;;  %v5546_v21 = vld [vmem:[#allocation11 + $0xa4] sm:$0xf]  ;;  %v5560_v18 = vld [vmem:[#allocation11 + $0x114] sm:$0xf] }
 0x182   :  { %2450 = vmatpush.bf16.msrb.mxu3 %v4611_v22  ;;  %v4871_v58 = vor.u32 %v5563_v31, %v4870_v50  ;;  %v5570_v44 = vld [vmem:[#allocation11 + $0x164] sm:$0xf]  ;;  %v4856_v7 = vld [vmem:[#allocation11 + $0x108] sm:$0xf0]  ;;  %v4974_v8 = vld [vmem:[#allocation11 + $0x1f0] sm:$0xf] }
 0x183   :  { %2855 = vmatpush.bf16.msra.mxu0 %v4775_v15  ;;  %2868 = vmatpush.bf16.msra.mxu1 %v4839_v16  ;;  %v2207_v40 = vpop.f32.mrf.mxu0  ;;  %v4790_v15 = vld [vmem:[#allocation11 + $0x80] sm:$0xf]  ;;  %v4895_v16 = vor.u32 %v5569_v10, %v4894_v63  ;;  %v5559_v10 = vld [vmem:[#allocation11 + $0x104] sm:$0xf0]  ;;  %v5566_v31 = vld [vmem:[#allocation11 + $0x144] sm:$0xf] }
 0x184   :  { %2438 = vmatmul.bf16.vlgmr.msrb.gmra.mxu2 %v6059_v23  ;;  %v4751_v23 = vor.u32 %v5533_v39, %v4750_v38  ;;  %v4791_v34 = vor.u32 %v5543_v19, %v4790_v15  ;;  %v4840_v38 = vld [vmem:[#allocation11 + $0xe8] sm:$0xf0]  ;;  %v5548_v40 = vld [vmem:[#allocation11 + $0xb4] sm:$0xf]  ;;  %v4854_v63 = vld [vmem:[#allocation11 + $0x100] sm:$0xf] }
 0x185   :  { %2451 = vmatmul.bf16.vlgmr.msrb.gmra.mxu3 %v6061_v28  ;;  %v4815_v28 = vor.u32 %v5549_v46, %v4814_v43  ;;  %2880 = vmatpush.bf16.msra.mxu2 %v4911_v57  ;;  %v2220_v49 = vpop.f32.mrf.mxu1  ;;  %v5565_v43 = vld [vmem:[#allocation11 + $0x134] sm:$0xf0]  ;;  %v4832_v57 = vld [vmem:[#allocation11 + $0xd8] sm:$0xf0]  ;;  %v4855_v60 = vor.u32 %v5559_v10, %v4854_v63  ;;  %v4744_v19 = vld [vmem:[#allocation11 + $0x28] sm:$0xf0] }
 0x186   :  { %v4879_v47 = vor.u32 %v5565_v43, %v4878_v41  ;;  %v4835_v42 = vor.u32 %v5552_v56, %v4832_v57  ;;  %v4816_v49 = vld [vmem:[#allocation11 + $0xb8] sm:$0xf0]  ;;  %v5542_v41 = vld [vmem:[#allocation11 + $0x84] sm:$0xf]  ;;  %v4792_v43 = vld [vmem:[#allocation11 + $0x88] sm:$0xf0] }
 0x187   :  { %2856 = vmatpush.bf16.msra.mxu0 %v4767_v30  ;;  %2869 = vmatpush.bf16.msra.mxu1 %v4831_v32  ;;  %v2231_v22 = vpop.f32.mrf.mxu2  ;;  %v4886_v30 = vld [vmem:[#allocation11 + $0x140] sm:$0xf]  ;;  %v2456_v32 = vmax.f32 %v2141_v11, 0.0  ;;  %v5572_v11 = vld [vmem:[#allocation11 + $0x174] sm:$0xf] }
 0x188   :  { %v2232_v26 = vadd.f32 %v2231_v22, %v2219_v17  ;;  %v2244_v27 = vpop.f32.mrf.mxu3  ;;  %v4887_v48 = vor.u32 %v5567_v45, %v4886_v30  ;;  %v4912_v15 = vld [vmem:[#allocation11 + $0x178] sm:$0xf0]  ;;  %v5530_v17 = vld [vmem:[#allocation11 + $0x24] sm:$0xf]  ;;  %v4808_v22 = vld [vmem:[#allocation11 + $0xa8] sm:$0xf0] }
 0x189   :  { %2881 = vmatpush.bf16.msra.mxu2 %v4903_v5  ;;  %v6129_v46 = vpack.c.bf16 %v2456_v32, %v2456_v32  ;;  %v4915_v20 = vor.u32 %v5572_v11, %v4912_v15  ;;  %v4747_v24 = vor.u32 %v5530_v17, %v4744_v19  ;;  %v4736_v30 = vld [vmem:[#allocation11 + $0x18] sm:$0xf0]  ;;  %v5544_v32 = vld [vmem:[#allocation11 + $0x94] sm:$0xf]  ;;  %v5589_v63 = vld [vmem:[#allocation11 + $0x1f4] sm:$0xf0] }
 0x18a   :  { %v2245_v55 = vadd.f32 %v2244_v27, %v2232_v26  ;;  %v4904_v26 = vld [vmem:[#allocation11 + $0x168] sm:$0xf0]  ;;  %v4811_v27 = vor.u32 %v5546_v21, %v4808_v22  ;;  %v4880_v56 = vld [vmem:[#allocation11 + $0x138] sm:$0xf0]  ;;  %v4975_v10 = vor.u32 %v5589_v63, %v4974_v8  ;;  %v5587_v11 = vld [vmem:[#allocation11 + $0x1e4] sm:$0xf0] }
 0x18b   :  { %2857 = vmatpush.bf16.msra.mxu0 %v4759_v62  ;;  %2870 = vmatpush.bf16.msra.mxu1 %v4823_v25  ;;  %v4776_v62 = vld [vmem:[#allocation11 + $0x68] sm:$0xf0]  ;;  %v5554_v25 = vld [vmem:[#allocation11 + $0xe4] sm:$0xf]  ;;  %v4907_v45 = vor.u32 %v5570_v44, %v4904_v26  ;;  %v5585_v17 = vld [vmem:[#allocation11 + $0x1d4] sm:$0xf0] }
 0x18c   :  { %v2457_v39 = vmax.f32 %v2245_v55, 0.0  ;;  %v4779_v59 = vor.u32 %v5538_v37, %v4776_v62  ;;  %v4843_v51 = vor.u32 %v5554_v25, %v4840_v38  ;;  %v4896_v37 = vld [vmem:[#allocation11 + $0x158] sm:$0xf0]  ;;  %v5526_v25 = vld [vmem:[#allocation11 + $0x4] sm:$0xf]  ;;  %2893 = vmatpush.bf16.msra.mxu3 %v4975_v10  ;;  %v755_v8 = vperm.slane %v6105_v12, 3 }
 0x18d   :  { %2882 = vmatpush.bf16.msra.mxu2 %v4895_v16  ;;  %v4819_v16 = vor.u32 %v5548_v40, %v4816_v49  ;;  %v4728_v38 = vld [vmem:[#allocation11 + $0x8] sm:$0xf0]  ;;  %v4950_v22 = vld [vmem:[#allocation11 + $0x1c0] sm:$0xf]  ;;  %v5576_v10 = vld [vmem:[#allocation11 + $0x194] sm:$0xf] }
 0x18e   :  { %v4731_v50 = vor.u32 %v5526_v25, %v4728_v38  ;;  %v4926_v25 = vld [vmem:[#allocation11 + $0x190] sm:$0xf]  ;;  %v5577_v38 = vld [vmem:[#allocation11 + $0x194] sm:$0xf0] }
 0x18f   :  { %2858 = vmatpush.bf16.msra.mxu0 %v4751_v23  ;;  %2871 = vmatpush.bf16.msra.mxu1 %v4815_v28  ;;  %v6131_v23 = vpack.c.bf16 %v2457_v39, %v2457_v39  ;;  %v4768_v28 = vld [vmem:[#allocation11 + $0x58] sm:$0xf0]  ;;  %v2233_v54 = vpop.f32.mrf.mxu2 }
 0x190   :  { %v2246_v13 = vpop.f32.mrf.mxu3  ;;  %v4771_v0 = vor.u32 %v5536_v52, %v4768_v28  ;;  %v4795_v52 = vor.u32 %v5542_v41, %v4792_v43  ;;  %v5564_v54 = vld [vmem:[#allocation11 + $0x134] sm:$0xf]  ;;  %v4918_v43 = vld [vmem:[#allocation11 + $0x180] sm:$0xf] }
 0x191   :  { %2883 = vmatpush.bf16.msra.mxu2 %v4887_v48  ;;  %v4883_v57 = vor.u32 %v5564_v54, %v4880_v56  ;;  %v4872_v13 = vld [vmem:[#allocation11 + $0x128] sm:$0xf0] }
 0x192   :  { %v4968_v54 = vld [vmem:[#allocation11 + $0x1e8] sm:$0xf0] }
 0x193   :  { %2859 = vmatpush.bf16.msra.mxu0 %v4743_v1  ;;  %2872 = vmatpush.bf16.msra.mxu1 %v4807_v33  ;;  %v5534_v1 = vld [vmem:[#allocation11 + $0x44] sm:$0xf]  ;;  %v4862_v33 = vld [vmem:[#allocation11 + $0x110] sm:$0xf] }
 0x194   :  { %v4763_v4 = vor.u32 %v5534_v1, %v4760_v61  ;;  %v4863_v5 = vor.u32 %v5561_v3, %v4862_v33  ;;  %v4864_v33 = vld [vmem:[#allocation11 + $0x118] sm:$0xf0] }
 0x195   :  { %2884 = vmatpush.bf16.msra.mxu2 %v4879_v47  ;;  %v4867_v3 = vor.u32 %v5560_v18, %v4864_v33  ;;  %v4952_v18 = vld [vmem:[#allocation11 + $0x1c8] sm:$0xf0] }
 0x197   :  { %2860 = vmatpush.bf16.msra.mxu0 %v4735_v9  ;;  %2873 = vmatpush.bf16.msra.mxu1 %v4799_v14 }
 0x199   :  { %2885 = vmatpush.bf16.msra.mxu2 %v4871_v58  ;;  %v5562_v58 = vld [vmem:[#allocation11 + $0x124] sm:$0xf] }
 0x19a   :  { %v4875_v1 = vor.u32 %v5562_v58, %v4872_v13  ;;  %v5584_v13 = vld [vmem:[#allocation11 + $0x1d4] sm:$0xf] }
 0x19b   :  { %2861 = vmatpush.bf16.msra.mxu0 %v4727_v29  ;;  %2874 = vmatpush.bf16.msra.mxu1 %v4791_v34  ;;  %v6135_v9 = vpop.f32.mrf.mxu0  ;;  %v5528_v29 = vld [vmem:[#allocation11 + $0x14] sm:$0xf]  ;;  %v4800_v34 = vld [vmem:[#allocation11 + $0x98] sm:$0xf0] }
 0x19c   :  { %v4739_v55 = vor.u32 %v5528_v29, %v4736_v30  ;;  %v4803_v62 = vor.u32 %v5544_v32, %v4800_v34  ;;  %v5581_v32 = vld [vmem:[#allocation11 + $0x1b4] sm:$0xf0] }
 0x19d   :  { %2886 = vmatpush.bf16.msra.mxu2 %v4863_v5  ;;  %v6137_v14 = vpop.f32.mrf.mxu1 }
 0x19e   :  { %2862 = vmatmul.bf16.vlgmr.msra.gmra.mxu0 %v6129_v46  ;;  %2875 = vmatmul.bf16.vlgmr.msra.gmra.mxu1 %v6131_v23 }
 0x19f   :  { %2906 = vmatpush.bf16.msrb.mxu0 %v4787_v35  ;;  %2919 = vmatpush.bf16.msrb.mxu1 %v4851_v36  ;;  %v5568_v36 = vld [vmem:[#allocation11 + $0x154] sm:$0xf] }
 0x1a0   :  { %v4899_v39 = vor.u32 %v5568_v36, %v4896_v37 }
 0x1a1   :  { %2887 = vmatpush.bf16.msra.mxu2 %v4855_v60 }
 0x1a3   :  { %2907 = vmatpush.bf16.msrb.mxu0 %v4779_v59  ;;  %2920 = vmatpush.bf16.msrb.mxu1 %v4843_v51  ;;  %v2259_v35 = vpop.f32.mrf.mxu0  ;;  %v4888_v51 = vld [vmem:[#allocation11 + $0x148] sm:$0xf0] }
 0x1a4   :  { %v4891_v28 = vor.u32 %v5566_v31, %v4888_v51  ;;  %v4934_v35 = vld [vmem:[#allocation11 + $0x1a0] sm:$0xf]  ;;  %v4976_v51 = vld [vmem:[#allocation11 + $0x1f8] sm:$0xf0] }
 0x1a5   :  { %2932 = vmatpush.bf16.msrb.mxu2 %v4915_v20  ;;  %v2272_v48 = vpop.f32.mrf.mxu1 }
 0x1a6   :  { %v5579_v48 = vld [vmem:[#allocation11 + $0x1a4] sm:$0xf0] }
 0x1a7   :  { %2908 = vmatpush.bf16.msrb.mxu0 %v4771_v0  ;;  %2921 = vmatpush.bf16.msrb.mxu1 %v4835_v42  ;;  %v2283_v59 = vpop.f32.mrf.mxu2  ;;  %v754_v0 = vperm.slane %v6105_v12, 2  ;;  %v4935_v37 = vor.u32 %v5579_v48, %v4934_v35 }
 0x1a8   :  { %v2296_v47 = vpop.f32.mrf.mxu3 }
 0x1a9   :  { %2933 = vmatpush.bf16.msrb.mxu2 %v4907_v45  ;;  %v2258_v2 = vadd.f32 %v6135_v9, %v754_v0  ;;  %v4966_v9 = vld [vmem:[#allocation11 + $0x1e0] sm:$0xf]  ;;  %v4942_v45 = vld [vmem:[#allocation11 + $0x1b0] sm:$0xf]  ;;  %v4960_v0 = vld [vmem:[#allocation11 + $0x1d8] sm:$0xf0] }
 0x1aa   :  { %v4943_v34 = vor.u32 %v5581_v32, %v4942_v45 }
 0x1ab   :  { %2909 = vmatpush.bf16.msrb.mxu0 %v4763_v4  ;;  %2922 = vmatpush.bf16.msrb.mxu1 %v4827_v6  ;;  %v2271_v4 = vadd.f32 %v6137_v14, %v2258_v2  ;;  %v5558_v6 = vld [vmem:[#allocation11 + $0x104] sm:$0xf] }
 0x1ac   :  { %v4859_v49 = vor.u32 %v5558_v6, %v4856_v7  ;;  %v5582_v2 = vld [vmem:[#allocation11 + $0x1c4] sm:$0xf]  ;;  %v4936_v7 = vld [vmem:[#allocation11 + $0x1a8] sm:$0xf0] }
 0x1ad   :  { %2934 = vmatpush.bf16.msrb.mxu2 %v4899_v39  ;;  %v2284_v40 = vadd.f32 %v2283_v59, %v2271_v4  ;;  %v4927_v39 = vor.u32 %v5577_v38, %v4926_v25  ;;  %v5575_v59 = vld [vmem:[#allocation11 + $0x184] sm:$0xf0]  ;;  %v4955_v33 = vor.u32 %v5582_v2, %v4952_v18  ;;  %v4944_v4 = vld [vmem:[#allocation11 + $0x1b8] sm:$0xf0]  ;;  %v5578_v6 = vld [vmem:[#allocation11 + $0x1a4] sm:$0xf] }
 0x1ae   :  { %v4919_v31 = vor.u32 %v5575_v59, %v4918_v43  ;;  %v5601_v2 = vld [vmem:[#allocation13 + $0x54] sm:$0xf0]  ;;  %v5600_v18 = vld [vmem:[#allocation13 + $0x54] sm:$0xf] }
 0x1af   :  { %2910 = vmatpush.bf16.msrb.mxu0 %v4755_v53  ;;  %2923 = vmatpush.bf16.msrb.mxu1 %v4819_v16  ;;  %v2285_v42 = vpop.f32.mrf.mxu2  ;;  %v4967_v53 = vor.u32 %v5587_v11, %v4966_v9  ;;  %v4958_v16 = vld [vmem:[#allocation11 + $0x1d0] sm:$0xf] }
 0x1b0   :  { %v2298_v61 = vpop.f32.mrf.mxu3  ;;  %v4959_v19 = vor.u32 %v5585_v17, %v4958_v16  ;;  %v4963_v42 = vor.u32 %v5584_v13, %v4960_v0  ;;  %v5602_v13 = vld [vmem:[#allocation13 + $0x64] sm:$0xf]  ;;  %v5032_v0 = vld [vmem:[#allocation13 + $0x68] sm:$0xf0] }
 0x1b1   :  { %2935 = vmatpush.bf16.msrb.mxu2 %v4891_v28  ;;  %2894 = vmatpush.bf16.msra.mxu3 %v4967_v53  ;;  %v5586_v28 = vld [vmem:[#allocation11 + $0x1e4] sm:$0xf] }
 0x1b2   :  { %v4971_v56 = vor.u32 %v5586_v28, %v4968_v54  ;;  %v5040_v54 = vld [vmem:[#allocation13 + $0x78] sm:$0xf0] }
 0x1b3   :  { %2911 = vmatpush.bf16.msrb.mxu0 %v4747_v24  ;;  %2924 = vmatpush.bf16.msrb.mxu1 %v4811_v27  ;;  %v5583_v24 = vld [vmem:[#allocation11 + $0x1c4] sm:$0xf0] }
 0x1b4   :  { %v4951_v27 = vor.u32 %v5583_v24, %v4950_v22 }
 0x1b5   :  { %2936 = vmatpush.bf16.msrb.mxu2 %v4883_v57  ;;  %2895 = vmatpush.bf16.msra.mxu3 %v4959_v19 }
 0x1b7   :  { %2912 = vmatpush.bf16.msrb.mxu0 %v4739_v55  ;;  %2925 = vmatpush.bf16.msrb.mxu1 %v4803_v62 }
 0x1b9   :  { %2937 = vmatpush.bf16.msrb.mxu2 %v4875_v1  ;;  %2896 = vmatpush.bf16.msra.mxu3 %v4951_v27 }
 0x1bb   :  { %2913 = vmatpush.bf16.msrb.mxu0 %v4731_v50  ;;  %2926 = vmatpush.bf16.msrb.mxu1 %v4795_v52  ;;  %v2309_v5 = vpop.f32.mrf.mxu0 }
 0x1bd   :  { %2938 = vmatpush.bf16.msrb.mxu2 %v4867_v3  ;;  %2897 = vmatpush.bf16.msra.mxu3 %v4943_v34  ;;  %v5580_v3 = vld [vmem:[#allocation11 + $0x1b4] sm:$0xf]  ;;  %v2528_v34 = vld [vmem:[%s6175_s6] sm:$0x3] }
 0x1be   :  { %2914 = vmatmul.bf16.vlgmr.msrb.gmra.mxu0 %v6129_v46  ;;  %2927 = vmatmul.bf16.vlgmr.msrb.gmra.mxu1 %v6131_v23  ;;  %v2322_v46 = vpop.f32.mrf.mxu1  ;;  %v2297_v23 = vadd.f32 %v2296_v47, %v2284_v40  ;;  %v5588_v47 = vld [vmem:[#allocation11 + $0x1f4] sm:$0xf]  ;;  %v2530_v35 = vperm.slane %v2528_v34, 0  ;;  %v2531_v38 = vperm.slane %v2528_v34, 1 }
 0x1bf   :  { %v4979_v52 = vor.u32 %v5588_v47, %v4976_v51  ;;  %v5605_v51 = vld [vmem:[#allocation13 + $0x74] sm:$0xf0] }
 0x1c0   :  { %v2310_v60 = vadd.f32 %v2309_v5, %v2297_v23  ;;  %v4947_v5 = vor.u32 %v5580_v3, %v4944_v4  ;;  %v4928_v23 = vld [vmem:[#allocation11 + $0x198] sm:$0xf0]  ;;  %v5102_v3 = vld [vmem:[#allocation13 + $0xf0] sm:$0xf]  ;;  %v5621_v4 = vld [vmem:[#allocation13 + $0xf4] sm:$0xf0] }
 0x1c1   :  { %2939 = vmatpush.bf16.msrb.mxu2 %v4859_v49  ;;  %2898 = vmatpush.bf16.msra.mxu3 %v4935_v37  ;;  %v4931_v9 = vor.u32 %v5576_v10, %v4928_v23  ;;  %v5094_v23 = vld [vmem:[#allocation13 + $0xe0] sm:$0xf] }
 0x1c2   :  { %v2323_v20 = vadd.f32 %v2322_v46, %v2310_v60  ;;  %v4939_v46 = vor.u32 %v5578_v6, %v4936_v7  ;;  %v5574_v60 = vld [vmem:[#allocation11 + $0x184] sm:$0xf]  ;;  %v5103_v6 = vor.u32 %v5621_v4, %v5102_v3  ;;  %v5620_v7 = vld [vmem:[#allocation13 + $0xf4] sm:$0xf] }
 0x1c3   :  { %v2311_v15 = vpop.f32.mrf.mxu0  ;;  %v5612_v3 = vld [vmem:[#allocation13 + $0xb4] sm:$0xf] }
 0x1c4   :  { %v4920_v15 = vld [vmem:[#allocation11 + $0x188] sm:$0xf0]  ;;  %3173 = vmatpush.bf16.msra.mxu1 %v5103_v6 }
 0x1c5   :  { %2899 = vmatpush.bf16.msra.mxu3 %v4927_v39  ;;  %v4923_v17 = vor.u32 %v5574_v60, %v4920_v15  ;;  %v5618_v15 = vld [vmem:[#allocation13 + $0xe4] sm:$0xf] }
 0x1c6   :  { %v2324_v14 = vpop.f32.mrf.mxu1 }
 0x1c7   :  { %v2335_v21 = vpop.f32.mrf.mxu2 }
 0x1c8   :  { %v2336_v44 = vadd.f32 %v2335_v21, %v2323_v20  ;;  %v2348_v26 = vpop.f32.mrf.mxu3 }
 0x1c9   :  { %2900 = vmatpush.bf16.msra.mxu3 %v4919_v31  ;;  %v5038_v31 = vld [vmem:[#allocation13 + $0x70] sm:$0xf] }
 0x1ca   :  { %v2349_v29 = vadd.f32 %v2348_v26, %v2336_v44  ;;  %v5039_v28 = vor.u32 %v5605_v51, %v5038_v31  ;;  %v5088_v31 = vld [vmem:[#allocation13 + $0xd8] sm:$0xf0] }
 0x1cc   :  { %v2458_v30 = vmax.f32 %v2349_v29, 0.0  ;;  %3160 = vmatpush.bf16.msra.mxu0 %v5039_v28  ;;  %v5591_v28 = vld [vmem:[#allocation13 + $0x4] sm:$0xf0] }
 0x1cd   :  { %2945 = vmatpush.bf16.msrb.mxu3 %v4979_v52  ;;  %v5604_v52 = vld [vmem:[#allocation13 + $0x74] sm:$0xf] }
 0x1ce   :  { %v2462_v55 = vpack.c.bf16 %v2458_v30, %v2458_v30 }
 0x1cf   :  { %v2337_v36 = vpop.f32.mrf.mxu2 }
 0x1d0   :  { %v2350_v62 = vpop.f32.mrf.mxu3  ;;  %2888 = vmatmul.bf16.vlgmr.msra.gmra.mxu2 %v2462_v55 }
 0x1d1   :  { %2946 = vmatpush.bf16.msrb.mxu3 %v4971_v56  ;;  %v5030_v56 = vld [vmem:[#allocation13 + $0x60] sm:$0xf] }
 0x1d5   :  { %2947 = vmatpush.bf16.msrb.mxu3 %v4963_v42 }
 0x1d9   :  { %2948 = vmatpush.bf16.msrb.mxu3 %v4955_v33  ;;  %v5024_v33 = vld [vmem:[#allocation13 + $0x58] sm:$0xf0] }
 0x1db   :  { %v2361_v41 = vpop.f32.mrf.mxu0 }
 0x1dc   :  { %v2362_v63 = vadd.f32 %v2361_v41, %v755_v8  ;;  %v5104_v8 = vld [vmem:[#allocation13 + $0xf8] sm:$0xf0] }
 0x1dd   :  { %v2374_v50 = vpop.f32.mrf.mxu1  ;;  %2949 = vmatpush.bf16.msrb.mxu3 %v4947_v5  ;;  %v5107_v10 = vor.u32 %v5620_v7, %v5104_v8  ;;  %v5062_v7 = vld [vmem:[#allocation13 + $0xa0] sm:$0xf]  ;;  %v5611_v8 = vld [vmem:[#allocation13 + $0xa4] sm:$0xf0] }
 0x1de   :  { %v2375_v11 = vadd.f32 %v2374_v50, %v2362_v63  ;;  %v5599_v63 = vld [vmem:[#allocation13 + $0x44] sm:$0xf0] }
 0x1e0   :  { %2940 = vmatmul.bf16.vlgmr.msrb.gmra.mxu2 %v2462_v55 }
 0x1e1   :  { %2950 = vmatpush.bf16.msrb.mxu3 %v4939_v46  ;;  %v5027_v46 = vor.u32 %v5600_v18, %v5024_v33  ;;  %v5070_v18 = vld [vmem:[#allocation13 + $0xb0] sm:$0xf]  ;;  %v5613_v33 = vld [vmem:[#allocation13 + $0xb4] sm:$0xf0] }
 0x1e2   :  { %v5071_v4 = vor.u32 %v5613_v33, %v5070_v18  ;;  %v5650_v18 = vld [vmem:[#allocation14 + $0xe4] sm:$0xf] }
 0x1e3   :  { %v2363_v57 = vpop.f32.mrf.mxu0 }
 0x1e4   :  { %v5603_v57 = vld [vmem:[#allocation13 + $0x64] sm:$0xf0] }
 0x1e5   :  { %v2376_v58 = vpop.f32.mrf.mxu1  ;;  %2951 = vmatpush.bf16.msrb.mxu3 %v4931_v9  ;;  %v5031_v42 = vor.u32 %v5603_v57, %v5030_v56  ;;  %v5598_v9 = vld [vmem:[#allocation13 + $0x44] sm:$0xf]  ;;  %v5615_v57 = vld [vmem:[#allocation13 + $0xc4] sm:$0xf0] }
 0x1e6   :  { %v5043_v58 = vor.u32 %v5604_v52, %v5040_v54  ;;  %v4982_v52 = vld [vmem:[#allocation13] sm:$0xf] }
 0x1e7   :  { %v2387_v1 = vpop.f32.mrf.mxu2  ;;  %3161 = vmatpush.bf16.msra.mxu0 %v5031_v42  ;;  %v5078_v54 = vld [vmem:[#allocation13 + $0xc0] sm:$0xf]  ;;  %v4983_v56 = vor.u32 %v5591_v28, %v4982_v52 }
 0x1e8   :  { %v2400_v61 = vpop.f32.mrf.mxu3  ;;  %v2388_v14 = vadd.f32 %v2387_v1, %v2375_v11  ;;  %3186 = vmatpush.bf16.msra.mxu2 %v5043_v58  ;;  %v5035_v1 = vor.u32 %v5602_v13, %v5032_v0  ;;  %v5016_v11 = vld [vmem:[#allocation13 + $0x48] sm:$0xf0]  ;;  %v5590_v58 = vld [vmem:[#allocation13 + $0x4] sm:$0xf]  ;;  %v5079_v0 = vor.u32 %v5615_v57, %v5078_v54 }
 0x1e9   :  { %2952 = vmatpush.bf16.msrb.mxu3 %v4923_v17  ;;  %v4984_v13 = vld [vmem:[#allocation13 + $0x8] sm:$0xf0] }
 0x1ea   :  { %v2401_v19 = vadd.f32 %v2400_v61, %v2388_v14  ;;  %v5022_v61 = vld [vmem:[#allocation13 + $0x50] sm:$0xf]  ;;  %v5096_v14 = vld [vmem:[#allocation13 + $0xe8] sm:$0xf0]  ;;  %v4987_v42 = vor.u32 %v5590_v58, %v4984_v13  ;;  %v5632_v13 = vld [vmem:[#allocation14 + $0x54] sm:$0xf] }
 0x1eb   :  { %v5023_v5 = vor.u32 %v5601_v2, %v5022_v61  ;;  %v5099_v17 = vor.u32 %v5618_v15, %v5096_v14  ;;  %v5080_v61 = vld [vmem:[#allocation13 + $0xc8] sm:$0xf0]  ;;  %v5046_v14 = vld [vmem:[#allocation13 + $0x80] sm:$0xf] }
 0x1ec   :  { %3187 = vmatpush.bf16.msra.mxu2 %v5035_v1  ;;  %v5614_v1 = vld [vmem:[#allocation13 + $0xc4] sm:$0xf] }
 0x1ed   :  { %3162 = vmatpush.bf16.msra.mxu0 %v5023_v5  ;;  %v5083_v2 = vor.u32 %v5614_v1, %v5080_v61  ;;  %v5072_v5 = vld [vmem:[#allocation13 + $0xb8] sm:$0xf0]  ;;  %v5222_v61 = vld [vmem:[#allocation14 + $0xe0] sm:$0xf] }
 0x1ee   :  { %v5075_v6 = vor.u32 %v5612_v3, %v5072_v5  ;;  %v5224_v3 = vld [vmem:[#allocation14 + $0xe8] sm:$0xf0] }
 0x1ef   :  { %v2389_v40 = vpop.f32.mrf.mxu2 }
 0x1f0   :  { %v2402_v49 = vpop.f32.mrf.mxu3  ;;  %3188 = vmatpush.bf16.msra.mxu2 %v5027_v46  ;;  %v5610_v46 = vld [vmem:[#allocation13 + $0xa4] sm:$0xf] }
 0x1f1   :  { %v5014_v49 = vld [vmem:[#allocation13 + $0x40] sm:$0xf] }
 0x1fb   :  { %v2413_v53 = vpop.f32.mrf.mxu0 }
 0x1fc   :  { %v2414_v12 = vadd.f32 %v2413_v53, %v2401_v19  ;;  %v5619_v53 = vld [vmem:[#allocation13 + $0xe4] sm:$0xf0]  ;;  %v5019_v19 = vor.u32 %v5598_v9, %v5016_v11  ;;  %v5609_v9 = vld [vmem:[#allocation13 + $0x94] sm:$0xf0]  ;;  %v5608_v11 = vld [vmem:[#allocation13 + $0x94] sm:$0xf] }
 0x1fd   :  { %v2426_v16 = vpop.f32.mrf.mxu1  ;;  %v5095_v60 = vor.u32 %v5619_v53, %v5094_v23  ;;  %v5054_v23 = vld [vmem:[#allocation13 + $0x90] sm:$0xf] }
 0x1fe   :  { %v2427_v22 = vadd.f32 %v2426_v16, %v2414_v12  ;;  %v5015_v16 = vor.u32 %v5599_v63, %v5014_v49  ;;  %v5006_v12 = vld [vmem:[#allocation13 + $0x30] sm:$0xf]  ;;  %3189 = vmatpush.bf16.msra.mxu2 %v5019_v19  ;;  %v5064_v49 = vld [vmem:[#allocation13 + $0xa8] sm:$0xf0]  ;;  %v5063_v63 = vor.u32 %v5611_v8, %v5062_v7  ;;  %v5055_v53 = vor.u32 %v5609_v9, %v5054_v23  ;;  %v5216_v23 = vld [vmem:[#allocation14 + $0xd8] sm:$0xf0] }
 0x1ff   :  { %3174 = vmatpush.bf16.msra.mxu1 %v5095_v60  ;;  %v5056_v60 = vld [vmem:[#allocation13 + $0x98] sm:$0xf0]  ;;  %v5144_v7 = vld [vmem:[#allocation14 + $0x48] sm:$0xf0] }
 0x200   :  { %3163 = vmatpush.bf16.msra.mxu0 %v5015_v16  ;;  %v5059_v15 = vor.u32 %v5608_v11, %v5056_v60  ;;  %v5607_v16 = vld [vmem:[#allocation13 + $0x84] sm:$0xf0]  ;;  %v5134_v11 = vld [vmem:[#allocation14 + $0x30] sm:$0xf]  ;;  %v5628_v60 = vld [vmem:[#allocation14 + $0x34] sm:$0xf] }
 0x201   :  { %v5047_v19 = vor.u32 %v5607_v16, %v5046_v14  ;;  %v5136_v14 = vld [vmem:[#allocation14 + $0x38] sm:$0xf0] }
 0x202   :  { %v5139_v16 = vor.u32 %v5628_v60, %v5136_v14 }
 0x203   :  { %v2415_v20 = vpop.f32.mrf.mxu0 }
 0x204   :  { %v5597_v20 = vld [vmem:[#allocation13 + $0x34] sm:$0xf0] }
 0x205   :  { %v2428_v21 = vpop.f32.mrf.mxu1 }
 0x206   :  { %v5596_v21 = vld [vmem:[#allocation13 + $0x34] sm:$0xf] }
 0x207   :  { %v2439_v24 = vpop.f32.mrf.mxu2 }
 0x208   :  { %v2440_v44 = vadd.f32 %v2439_v24, %v2427_v22  ;;  %v2452_v26 = vpop.f32.mrf.mxu3  ;;  %v5008_v22 = vld [vmem:[#allocation13 + $0x38] sm:$0xf0]  ;;  %v5007_v24 = vor.u32 %v5597_v20, %v5006_v12  ;;  %v5048_v12 = vld [vmem:[#allocation13 + $0x88] sm:$0xf0] }
 0x20a   :  { %v2453_v27 = vadd.f32 %v2452_v26, %v2440_v44  ;;  %v5011_v26 = vor.u32 %v5596_v21, %v5008_v22  ;;  %3164 = vmatpush.bf16.msra.mxu0 %v5007_v24  ;;  %v5166_v21 = vld [vmem:[#allocation14 + $0x70] sm:$0xf]  ;;  %v5637_v22 = vld [vmem:[#allocation14 + $0x74] sm:$0xf0]  ;;  %v5636_v24 = vld [vmem:[#allocation14 + $0x74] sm:$0xf] }
 0x20c   :  { %v2459_v29 = vmax.f32 %v2453_v27, 0.0  ;;  %v4998_v27 = vld [vmem:[#allocation13 + $0x20] sm:$0xf]  ;;  %3190 = vmatpush.bf16.msra.mxu2 %v5011_v26  ;;  %v5168_v26 = vld [vmem:[#allocation14 + $0x78] sm:$0xf0] }
 0x20e   :  { %v2463_v30 = vpack.c.bf16 %v2459_v29, %v2459_v29  ;;  %v5595_v29 = vld [vmem:[#allocation13 + $0x24] sm:$0xf0] }
 0x20f   :  { %v2441_v45 = vpop.f32.mrf.mxu2 }
 0x210   :  { %v2454_v32 = vpop.f32.mrf.mxu3  ;;  %2901 = vmatmul.bf16.vlgmr.msra.gmra.mxu3 %v2463_v30  ;;  %v5000_v45 = vld [vmem:[#allocation13 + $0x28] sm:$0xf0] }
 0x211   :  { %3199 = vmatpush.bf16.msra.mxu3 %v5107_v10  ;;  %v4999_v32 = vor.u32 %v5595_v29, %v4998_v27  ;;  %v5067_v10 = vor.u32 %v5610_v46, %v5064_v49  ;;  %v5158_v27 = vld [vmem:[#allocation14 + $0x60] sm:$0xf]  ;;  %v5635_v29 = vld [vmem:[#allocation14 + $0x64] sm:$0xf0]  ;;  %v5214_v46 = vld [vmem:[#allocation14 + $0xd0] sm:$0xf] }
 0x212   :  { %v5649_v49 = vld [vmem:[#allocation14 + $0xd4] sm:$0xf0] }
 0x213   :  { %3165 = vmatpush.bf16.msra.mxu0 %v4999_v32  ;;  %v5160_v32 = vld [vmem:[#allocation14 + $0x68] sm:$0xf0] }
 0x215   :  { %3200 = vmatpush.bf16.msra.mxu3 %v5099_v17  ;;  %v5606_v17 = vld [vmem:[#allocation13 + $0x84] sm:$0xf] }
 0x216   :  { %v5051_v20 = vor.u32 %v5606_v17, %v5048_v12  ;;  %v5206_v17 = vld [vmem:[#allocation14 + $0xc0] sm:$0xf]  ;;  %v5646_v12 = vld [vmem:[#allocation14 + $0xc4] sm:$0xf] }
 0x21b   :  { %v2863_v48 = vpop.f32.mrf.mxu0  ;;  %v2876_v36 = vpop.f32.mrf.mxu1 }
 0x21c   :  { %v2864_v55 = vadd.f32 %v2863_v48, %v2530_v35 }
 0x21e   :  { %v6148_v37 = vadd.f32 %v2876_v36, %v2864_v55  ;;  %v4990_v55 = vld [vmem:[#allocation13 + $0x10] sm:$0xf]  ;;  %v5593_v36 = vld [vmem:[#allocation13 + $0x14] sm:$0xf0] }
 0x220   :  { %2953 = vmatmul.bf16.vlgmr.msrb.gmra.mxu3 %v2463_v30  ;;  %v5594_v30 = vld [vmem:[#allocation13 + $0x24] sm:$0xf] }
 0x221   :  { %v5003_v34 = vor.u32 %v5594_v30, %v5000_v45  ;;  %v5171_v30 = vor.u32 %v5636_v24, %v5168_v26  ;;  %v5634_v45 = vld [vmem:[#allocation14 + $0x64] sm:$0xf]  ;;  %v5627_v24 = vld [vmem:[#allocation14 + $0x24] sm:$0xf0] }
 0x223   :  { %v2865_v62 = vpop.f32.mrf.mxu0  ;;  %v2878_v25 = vpop.f32.mrf.mxu1  ;;  %3191 = vmatpush.bf16.msra.mxu2 %v5003_v34  ;;  %v5230_v34 = vld [vmem:[#allocation14 + $0xf0] sm:$0xf] }
 0x224   :  { %v5086_v62 = vld [vmem:[#allocation13 + $0xd0] sm:$0xf]  ;;  %v4991_v25 = vor.u32 %v5593_v36, %v4990_v55  ;;  %v5653_v55 = vld [vmem:[#allocation14 + $0xf4] sm:$0xf0]  ;;  %v5652_v36 = vld [vmem:[#allocation14 + $0xf4] sm:$0xf] }
 0x226   :  { %3166 = vmatpush.bf16.msra.mxu0 %v4991_v25  ;;  %v5163_v25 = vor.u32 %v5634_v45, %v5160_v32  ;;  %v5198_v45 = vld [vmem:[#allocation14 + $0xb0] sm:$0xf]  ;;  %v5645_v32 = vld [vmem:[#allocation14 + $0xb4] sm:$0xf0] }
 0x22a   :  { %3167 = vmatpush.bf16.msra.mxu0 %v4983_v56 }
 0x23b   :  { %v2915_v39 = vpop.f32.mrf.mxu0  ;;  %v2928_v43 = vpop.f32.mrf.mxu1 }
 0x23c   :  { %v2916_v41 = vadd.f32 %v2915_v39, %v2531_v38  ;;  %v5617_v38 = vld [vmem:[#allocation13 + $0xd4] sm:$0xf0]  ;;  %v5592_v39 = vld [vmem:[#allocation13 + $0x14] sm:$0xf] }
 0x23e   :  { %v6150_v59 = vadd.f32 %v2928_v43, %v2916_v41  ;;  %v4992_v41 = vld [vmem:[#allocation13 + $0x18] sm:$0xf0]  ;;  %v5087_v43 = vor.u32 %v5617_v38, %v5086_v62  ;;  %v5231_v38 = vor.u32 %v5653_v55, %v5230_v34  ;;  %v5644_v34 = vld [vmem:[#allocation14 + $0xb4] sm:$0xf] }
 0x23f   :  { %v5232_v62 = vld [vmem:[#allocation14 + $0xf8] sm:$0xf0] }
 0x240   :  { %3175 = vmatpush.bf16.msra.mxu1 %v5087_v43  ;;  %v5200_v55 = vld [vmem:[#allocation14 + $0xb8] sm:$0xf0] }
 0x243   :  { %v2917_v47 = vpop.f32.mrf.mxu0  ;;  %v2930_v50 = vpop.f32.mrf.mxu1 }
 0x244   :  { %v4995_v47 = vor.u32 %v5592_v39, %v4992_v41  ;;  %v5616_v50 = vld [vmem:[#allocation13 + $0xd4] sm:$0xf]  ;;  %3176 = vmatpush.bf16.msra.mxu1 %v5079_v0  ;;  %v5235_v39 = vor.u32 %v5652_v36, %v5232_v62  ;;  %v5203_v36 = vor.u32 %v5644_v34, %v5200_v55  ;;  %v5118_v62 = vld [vmem:[#allocation14 + $0x10] sm:$0xf] }
 0x245   :  { %v5091_v51 = vor.u32 %v5616_v50, %v5088_v31 }
 0x246   :  { %3192 = vmatpush.bf16.msra.mxu2 %v4995_v47 }
 0x247   :  { %3201 = vmatpush.bf16.msra.mxu3 %v5091_v51 }
 0x248   :  { %3177 = vmatpush.bf16.msra.mxu1 %v5071_v4  ;;  %v5227_v4 = vor.u32 %v5650_v18, %v5224_v3  ;;  %v5174_v18 = vld [vmem:[#allocation14 + $0x80] sm:$0xf]  ;;  %v5638_v3 = vld [vmem:[#allocation14 + $0x84] sm:$0xf] }
 0x24a   :  { %3193 = vmatpush.bf16.msra.mxu2 %v4987_v42  ;;  %v5152_v42 = vld [vmem:[#allocation14 + $0x58] sm:$0xf0] }
 0x24b   :  { %3202 = vmatpush.bf16.msra.mxu3 %v5083_v2  ;;  %v5155_v1 = vor.u32 %v5632_v13, %v5152_v42  ;;  %v5651_v2 = vld [vmem:[#allocation14 + $0xe4] sm:$0xf0]  ;;  %v5182_v13 = vld [vmem:[#allocation14 + $0x90] sm:$0xf]  ;;  %v5640_v42 = vld [vmem:[#allocation14 + $0x94] sm:$0xf] }
 0x24c   :  { %3178 = vmatpush.bf16.msra.mxu1 %v5063_v63  ;;  %v5223_v33 = vor.u32 %v5651_v2, %v5222_v61  ;;  %v5648_v63 = vld [vmem:[#allocation14 + $0xd4] sm:$0xf]  ;;  %v5184_v61 = vld [vmem:[#allocation14 + $0x98] sm:$0xf0] }
 0x24d   :  { %v5219_v9 = vor.u32 %v5648_v63, %v5216_v23  ;;  %v5187_v2 = vor.u32 %v5640_v42, %v5184_v61 }
 0x24e   :  { %3440 = vmatpush.bf16.msrb.mxu2 %v5171_v30 }
 0x24f   :  { %3203 = vmatpush.bf16.msra.mxu3 %v5075_v6  ;;  %v5630_v6 = vld [vmem:[#allocation14 + $0x44] sm:$0xf] }
 0x250   :  { %3179 = vmatpush.bf16.msra.mxu1 %v5055_v53  ;;  %v5147_v8 = vor.u32 %v5630_v6, %v5144_v7  ;;  %v5629_v53 = vld [vmem:[#allocation14 + $0x34] sm:$0xf0]  ;;  %v2994_v7 = vld [vmem:[%s6177_s8] sm:$0x3] }
 0x251   :  { %v2997_v23 = vperm.slane %v2994_v7, 1 }
 0x252   :  { %3441 = vmatpush.bf16.msrb.mxu2 %v5163_v25  ;;  %v5625_v25 = vld [vmem:[#allocation14 + $0x14] sm:$0xf0] }
 0x253   :  { %v6152_v40 = vpop.f32.mrf.mxu2  ;;  %3204 = vmatpush.bf16.msra.mxu3 %v5067_v10  ;;  %v5215_v10 = vor.u32 %v5649_v49, %v5214_v46  ;;  %v2996_v46 = vperm.slane %v2994_v7, 0 }
 0x254   :  { %3180 = vmatpush.bf16.msra.mxu1 %v5047_v19  ;;  %v2890_v41 = vadd.f32 %v6152_v40, %v6148_v37  ;;  %v5150_v37 = vld [vmem:[#allocation14 + $0x50] sm:$0xf]  ;;  %v5633_v40 = vld [vmem:[#allocation14 + $0x54] sm:$0xf0]  ;;  %v5647_v19 = vld [vmem:[#allocation14 + $0xc4] sm:$0xf0] }
 0x255   :  { %v5151_v0 = vor.u32 %v5633_v40, %v5150_v37  ;;  %v5112_v37 = vld [vmem:[#allocation14 + $0x8] sm:$0xf0] }
 0x256   :  { %3442 = vmatpush.bf16.msrb.mxu2 %v5155_v1 }
 0x257   :  { %3205 = vmatpush.bf16.msra.mxu3 %v5059_v15  ;;  %v5135_v15 = vor.u32 %v5629_v53, %v5134_v11 }
 0x258   :  { %3427 = vmatpush.bf16.msrb.mxu1 %v5231_v38  ;;  %v5624_v38 = vld [vmem:[#allocation14 + $0x14] sm:$0xf] }
 0x25a   :  { %3443 = vmatpush.bf16.msrb.mxu2 %v5147_v8 }
 0x25b   :  { %v2891_v44 = vpop.f32.mrf.mxu2  ;;  %3206 = vmatpush.bf16.msra.mxu3 %v5051_v20  ;;  %v5207_v20 = vor.u32 %v5647_v19, %v5206_v17 }
 0x25c   :  { %v5167_v44 = vor.u32 %v5637_v22, %v5166_v21  ;;  %3428 = vmatpush.bf16.msrb.mxu1 %v5223_v33  ;;  %v5208_v21 = vld [vmem:[#allocation14 + $0xc8] sm:$0xf0]  ;;  %v5126_v22 = vld [vmem:[#allocation14 + $0x20] sm:$0xf]  ;;  %v5639_v33 = vld [vmem:[#allocation14 + $0x84] sm:$0xf0] }
 0x25d   :  { %v5127_v26 = vor.u32 %v5627_v24, %v5126_v22 }
 0x25e   :  { %3414 = vmatpush.bf16.msrb.mxu0 %v5167_v44  ;;  %3444 = vmatpush.bf16.msrb.mxu2 %v5139_v16  ;;  %v5211_v44 = vor.u32 %v5646_v12, %v5208_v21 }
 0x25f   :  { %3453 = vmatpush.bf16.msrb.mxu3 %v5235_v39  ;;  %v5119_v39 = vor.u32 %v5625_v25, %v5118_v62 }
 0x260   :  { %3429 = vmatpush.bf16.msrb.mxu1 %v5215_v10 }
 0x263   :  { %v6154_v35 = vpop.f32.mrf.mxu2  ;;  %3454 = vmatpush.bf16.msrb.mxu3 %v5227_v4 }
 0x264   :  { %v2942_v52 = vadd.f32 %v6154_v35, %v6150_v59  ;;  %v5142_v59 = vld [vmem:[#allocation14 + $0x40] sm:$0xf]  ;;  %v5631_v35 = vld [vmem:[#allocation14 + $0x44] sm:$0xf0]  ;;  %3430 = vmatpush.bf16.msrb.mxu1 %v5207_v20  ;;  %v3248_v20 = vld [vmem:[%s6179_s10] sm:$0x3] }
 0x265   :  { %v5143_v5 = vor.u32 %v5631_v35, %v5142_v59  ;;  %v5175_v59 = vor.u32 %v5639_v33, %v5174_v18  ;;  %v5176_v35 = vld [vmem:[#allocation14 + $0x88] sm:$0xf0]  ;;  %v3250_v22 = vperm.slane %v3248_v20, 0  ;;  %s5919_s10 = smov [#allocation16]  }
 0x266   :  { %v5179_v4 = vor.u32 %v5638_v3, %v5176_v35  ;;  %s3548_s19 = sshll.u32 %s5919_s10, 4  ;;  %s3549_s19 = int_to_ptr.vmem [resolvable:$true] %s3548_s19 }
 0x267   :  { %3455 = vmatpush.bf16.msrb.mxu3 %v5219_v9 }
 0x26b   :  { %v2943_v48 = vpop.f32.mrf.mxu2  ;;  %3456 = vmatpush.bf16.msrb.mxu3 %v5211_v44 }
 0x26c   :  { %v5159_v48 = vor.u32 %v5635_v29, %v5158_v27  ;;  %v5626_v27 = vld [vmem:[#allocation14 + $0x24] sm:$0xf]  ;;  %v5128_v29 = vld [vmem:[#allocation14 + $0x28] sm:$0xf0] }
 0x26d   :  { %v5131_v30 = vor.u32 %v5626_v27, %v5128_v29  ;;  %v3251_v29 = vperm.slane %v3248_v20, 1  ;;  %v5918_v20 = vmov 0.0  }
 0x26e   :  { %3415 = vmatpush.bf16.msrb.mxu0 %v5159_v48  ;;  %v5199_v48 = vor.u32 %v5645_v32, %v5198_v45 }
 0x26f   :  { %3445 = vmatpush.bf16.msrb.mxu2 %v5131_v30  ;;  %3457 = vmatpush.bf16.msrb.mxu3 %v5203_v36 }
 0x270   :  { %3431 = vmatpush.bf16.msrb.mxu1 %v5199_v48 }
 0x272   :  { %3416 = vmatpush.bf16.msrb.mxu0 %v5151_v0  ;;  %v5641_v0 = vld [vmem:[#allocation14 + $0x94] sm:$0xf0] }
 0x273   :  { %v5183_v1 = vor.u32 %v5641_v0, %v5182_v13 }
 0x276   :  { %3417 = vmatpush.bf16.msrb.mxu0 %v5143_v5 }
 0x27a   :  { %3418 = vmatpush.bf16.msrb.mxu0 %v5135_v15 }
 0x27e   :  { %3419 = vmatpush.bf16.msrb.mxu0 %v5127_v26 }
 0x282   :  { %3420 = vmatpush.bf16.msrb.mxu0 %v5119_v39 }
 0x293   :  { %v2902_v43 = vpop.f32.mrf.mxu3 }
 0x294   :  { %v2903_v47 = vadd.f32 %v2902_v43, %v2890_v41  ;;  %v5120_v41 = vld [vmem:[#allocation14 + $0x18] sm:$0xf0] }
 0x295   :  { %v5123_v43 = vor.u32 %v5624_v38, %v5120_v41 }
 0x296   :  { %v2958_v50 = vmax.f32 %v2903_v47, 0.0  ;;  %v5190_v47 = vld [vmem:[#allocation14 + $0xa0] sm:$0xf] }
 0x297   :  { %3446 = vmatpush.bf16.msrb.mxu2 %v5123_v43 }
 0x298   :  { %v2960_v31 = vpack.c.bf16 %v2958_v50, %v2958_v50  ;;  %v5643_v50 = vld [vmem:[#allocation14 + $0xa4] sm:$0xf0] }
 0x29a   :  { %3168 = vmatmul.bf16.vlgmr.msra.gmra.mxu0 %v2960_v31  ;;  %3194 = vmatmul.bf16.vlgmr.msra.gmra.mxu2 %v2960_v31  ;;  %v5642_v31 = vld [vmem:[#allocation14 + $0xa4] sm:$0xf] }
 0x29b   :  { %v2904_v51 = vpop.f32.mrf.mxu3 }
 0x29c   :  { %v5191_v51 = vor.u32 %v5643_v50, %v5190_v47 }
 0x29e   :  { %3432 = vmatpush.bf16.msrb.mxu1 %v5191_v51 }
 0x2a2   :  { %3433 = vmatpush.bf16.msrb.mxu1 %v5183_v1 }
 0x2a3   :  { %v2954_v28 = vpop.f32.mrf.mxu3 }
 0x2a4   :  { %v2955_v54 = vadd.f32 %v2954_v28, %v2942_v52  ;;  %v5192_v52 = vld [vmem:[#allocation14 + $0xa8] sm:$0xf0] }
 0x2a5   :  { %v5195_v28 = vor.u32 %v5642_v31, %v5192_v52  ;;  %v3489_v52 = vlaneseq }
 0x2a6   :  { %v2959_v56 = vmax.f32 %v2955_v54, 0.0  ;;  %v5110_v54 = vld [vmem:[#allocation14] sm:$0xf]  ;;  %3434 = vmatpush.bf16.msrb.mxu1 %v5175_v59 }
 0x2a7   :  { %3458 = vmatpush.bf16.msrb.mxu3 %v5195_v28 }
 0x2a8   :  { %v2961_v57 = vpack.c.bf16 %v2959_v56, %v2959_v56  ;;  %v5623_v56 = vld [vmem:[#allocation14 + $0x4] sm:$0xf0] }
 0x2aa   :  { %3181 = vmatmul.bf16.vlgmr.msra.gmra.mxu1 %v2961_v57  ;;  %3207 = vmatmul.bf16.vlgmr.msra.gmra.mxu3 %v2961_v57  ;;  %v5622_v57 = vld [vmem:[#allocation14 + $0x4] sm:$0xf] }
 0x2ab   :  { %v2956_v58 = vpop.f32.mrf.mxu3  ;;  %v5115_v40 = vor.u32 %v5622_v57, %v5112_v37  ;;  %3459 = vmatpush.bf16.msrb.mxu3 %v5187_v2 }
 0x2ac   :  { %v5111_v58 = vor.u32 %v5623_v56, %v5110_v54 }
 0x2ad   :  { %3447 = vmatpush.bf16.msrb.mxu2 %v5115_v40 }
 0x2ae   :  { %3421 = vmatpush.bf16.msrb.mxu0 %v5111_v58  ;;  %v3490_v58 = vand.u32 127, %v3489_v52 }
 0x2af   :  { %3460 = vmatpush.bf16.msrb.mxu3 %v5179_v4 }
 0x2b0   :  { %vm3491_vm5 = vcmp.lt.s32.totalorder %v3490_v58, 32 }
 0x317   :  { %v3169_v5 = vpop.f32.mrf.mxu0 }
 0x318   :  { %v3170_v63 = vadd.f32 %v3169_v5, %v2996_v46 }
 0x31d   :  { %v3195_v6 = vpop.f32.mrf.mxu2 }
 0x31e   :  { %v3196_v53 = vadd.f32 %v3195_v6, %v2997_v23 }
 0x31f   :  { %v3171_v8 = vpop.f32.mrf.mxu0 }
 0x325   :  { %v3197_v49 = vpop.f32.mrf.mxu2 }
 0x327   :  { %v3182_v10 = vpop.f32.mrf.mxu1 }
 0x328   :  { %v3183_v9 = vadd.f32 %v3182_v10, %v3170_v63 }
 0x32a   :  { %v3212_v11 = vmax.f32 %v3183_v9, 0.0 }
 0x32c   :  { %v3214_v60 = vpack.c.bf16 %v3212_v11, %v3212_v11 }
 0x32d   :  { %v3208_v15 = vpop.f32.mrf.mxu3 }
 0x32e   :  { %v3209_v14 = vadd.f32 %v3208_v15, %v3196_v53  ;;  %3422 = vmatmul.bf16.vlgmr.msrb.gmra.mxu0 %v3214_v60  ;;  %3448 = vmatmul.bf16.vlgmr.msrb.gmra.mxu2 %v3214_v60 }
 0x32f   :  { %v3184_v16 = vpop.f32.mrf.mxu1 }
 0x330   :  { %v3213_v17 = vmax.f32 %v3209_v14, 0.0 }
 0x332   :  { %v3215_v19 = vpack.c.bf16 %v3213_v17, %v3213_v17 }
 0x334   :  { %3435 = vmatmul.bf16.vlgmr.msrb.gmra.mxu1 %v3215_v19  ;;  %3461 = vmatmul.bf16.vlgmr.msrb.gmra.mxu3 %v3215_v19 }
 0x335   :  { %v3210_v12 = vpop.f32.mrf.mxu3 }
 0x3ab   :  { %v3423_v21 = vpop.f32.mrf.mxu0 }
 0x3ac   :  { %v3424_v24 = vadd.f32 %v3423_v21, %v3250_v22 }
 0x3b1   :  { %v3436_v44 = vpop.f32.mrf.mxu1  ;;  %v3449_v26 = vpop.f32.mrf.mxu2 }
 0x3b2   :  { %v3437_v27 = vadd.f32 %v3436_v44, %v3424_v24  ;;  %v3450_v45 = vadd.f32 %v3449_v26, %v3251_v29 }
 0x3b3   :  { %v3425_v30 = vpop.f32.mrf.mxu0 }
 0x3b4   :  { %3540 = vst [vmem:[#allocation16] sm:$0xff] %v3437_v27 }
 0x3b7   :  { %v3462_v32 = vpop.f32.mrf.mxu3 }
 0x3b8   :  { %v3463_v34 = vadd.f32 %v3462_v32, %v3450_v45 }
 0x3b9   :  { %v3438_v48 = vpop.f32.mrf.mxu1  ;;  %v3451_v55 = vpop.f32.mrf.mxu2 }
 0x3ba   :  { %v3466_v36 = vmax.f32 %v3437_v27, %v3463_v34  ;;  %3541 = vst [vmem:[#allocation16 + $0x8] sm:$0xff] %v3463_v34 }
 0x3bc   :  { %v3467_v62 = vsub.f32 %v3437_v27, %v3466_v36  ;;  %v3470_v25 = vsub.f32 %v3463_v34, %v3466_v36 }
 0x3be   :  { %v3468_v38 = vmul.f32 1.442695, %v3467_v62  ;;  %v3471_v39 = vmul.f32 1.442695, %v3470_v25 }
 0x3bf   :  { %v3464_v41 = vpop.f32.mrf.mxu3 }
 0x3c0   :  { %5670 = vpow2.f32 %v3468_v38 }
 0x3c1   :  { %5672 = vpow2.f32 %v3471_v39 }
 0x3c6   :  { %v5671_v43 = vpop.eup %5670 }
 0x3c7   :  { %v5673_v47 = vpop.eup %5672 }
 0x3c8   :  { %v3473_v50 = vadd.f32 %v5673_v47, %v5671_v43 }
 0x3ca   :  { %5674 = vrcp.f32 %v3473_v50  ;;  %v3485_v54 = vand.u32 2147483648, %v3473_v50  ;;  %v3483_v57 = vand.u32 2147483647, %v3473_v50  ;;  %vm3479_vm2 = vweird.f32 %v3473_v50 }
 0x3cc   :  { %v3486_v40 = vor.u32 1.1754944e-38, %v3485_v54  ;;  %vm3484_vm4 = vcmp.eq.f32.partialorder %v3483_v57, 8.507059e+37 }
 0x3d0   :  { %v5675_v31 = vpop.eup %5674 }
 0x3d1   :  { %v3475_v51 = vmul.f32 %v5675_v31, %v3473_v50  ;;  %vm3480_vm1 = vweird.f32 %v5675_v31 }
 0x3d2   :  { %vm3481_vm3 = vmor %vm3479_vm2, %vm3480_vm1 }
 0x3d3   :  { %v3476_v28 = vsub.f32 1.0, %v3475_v51 }
 0x3d5   :  { %v3477_v56 = vmul.f32 %v5675_v31, %v3476_v28 }
 0x3d7   :  { %v3478_v37 = vadd.f32 %v5675_v31, %v3477_v56 }
 0x3d9   :  { %v3482_v13 = vsel %vm3481_vm3, %v5675_v31, %v3478_v37 }
 0x3da   :  { %v3487_v0 = vsel %vm3484_vm4, %v3486_v40, %v3482_v13 }
 0x3db   :  { %v3492_v42 = vmul.f32 %v5671_v43, %v3487_v0  ;;  %v3516_v61 = vmul.f32 %v5673_v47, %v3487_v0 }
 0x3dd   :  { %v3493_v1 = vsel %vm3491_vm5, %v3492_v42, -1.0  ;;  %v3517_v2 = vsel %vm3491_vm5, %v3516_v61, -1.0 }
 0x3de   :  { %3494 = vmax.xlane.f32.xlu0 %v3493_v1 }
 0x3e6   :  { %3518 = vmax.xlane.f32.xlu0 %v3517_v2 }
 0x451   :  { %v3495_v18 = vpop.xlane.xlu0 %3494 }
 0x452   :  { %vm3496_vm6 = vcmp.eq.f32.partialorder %v3493_v1, %v3495_v18 }
 0x453   :  { %v3497_v33 = vsel %vm3496_vm6, %v3490_v58, 128 }
 0x454   :  { %v3499_v3 = vshra.s32 %v3497_v33, 16  ;;  %v3498_v7 = vand.u32 65535, %v3497_v33 }
 0x456   :  { %v3501_v59 = vcvt.s32.f32 %v3499_v3  ;;  %v3500_v46 = vcvt.s32.f32 %v3498_v7 }
 0x458   :  { %3502 = vmin.xlane.f32.xlu1 %v3501_v59 }
 0x459   :  { %v3519_v35 = vpop.xlane.xlu0 %3518 }
 0x45a   :  { %vm3520_vm7 = vcmp.eq.f32.partialorder %v3517_v2, %v3519_v35 }
 0x45b   :  { %v3521_v4 = vsel %vm3520_vm7, %v3490_v58, 128 }
 0x45c   :  { %v3523_v5 = vshra.s32 %v3521_v4, 16  ;;  %v3522_v63 = vand.u32 65535, %v3521_v4 }
 0x45e   :  { %v3525_v6 = vcvt.s32.f32 %v3523_v5  ;;  %v3524_v23 = vcvt.s32.f32 %v3522_v63 }
 0x460   :  { %3526 = vmin.xlane.f32.xlu1 %v3525_v6 }
 0x4cb   :  { %v3503_v8 = vpop.xlane.xlu1 %3502 }
 0x4cc   :  { %vm3504_vm8 = vcmp.eq.f32.partialorder %v3501_v59, %v3503_v8  ;;  %v3509_v11 = vcvt.f32.s32 %v3503_v8 }
 0x4cd   :  { %v3505_v49 = vsel %vm3504_vm8, %v3500_v46, inf }
 0x4ce   :  { %3506 = vmin.xlane.f32.xlu2 %v3505_v49  ;;  %v3510_v60 = vshll.u32 %v3509_v11, 16 }
 0x4d3   :  { %v3527_v10 = vpop.xlane.xlu1 %3526 }
 0x4d4   :  { %vm3528_vm9 = vcmp.eq.f32.partialorder %v3525_v6, %v3527_v10  ;;  %v3533_v16 = vcvt.f32.s32 %v3527_v10 }
 0x4d5   :  { %v3529_v9 = vsel %vm3528_vm9, %v3524_v23, inf }
 0x4d6   :  { %3530 = vmin.xlane.f32.xlu2 %v3529_v9  ;;  %v3534_v19 = vshll.u32 %v3533_v16, 16 }
 0x541   :  { %v3507_v53 = vpop.xlane.xlu2 %3506 }
 0x542   :  { %v3508_v15 = vcvt.f32.s32 %v3507_v53 }
 0x544   :  { %v3511_v14 = vadd.s32 %v3510_v60, %v3508_v15 }
 0x546   :  { %vm3512_vm10 = vcmp.eq.s32.totalorder %v3490_v58, %v3511_v14 }
 0x547   :  { %v5236_v21 = vsel %vm3512_vm10, 1.0, %v5918_v20 }
 0x548   :  { %v3515_v24 = vmax.f32 %v5236_v21, 0.0 }
 0x549   :  { %v3531_v17 = vpop.xlane.xlu2 %3530 }
 0x54a   :  { %v3532_v12 = vcvt.f32.s32 %v3531_v17 }
 0x54c   :  { %v3535_v22 = vadd.s32 %v3534_v19, %v3532_v12 }
 0x54e   :  { %vm3536_vm11 = vcmp.eq.s32.totalorder %v3490_v58, %v3535_v22 }
 0x54f   :  { %v5237_v44 = vsel %vm3536_vm11, 1.0, %v5918_v20 }
 0x550   :  { %v3539_v26 = vmax.f32 %v3515_v24, %v5237_v44 }
 0x552   :  { %3542 = vst [vmem:[#allocation16 + $0x10] sm:$0xff] %v3539_v26 }
 0x553   :  { %3553 = dma.vmem_to_hbm [thread:$0]  %s3549_s19, 384, %s3551_s22, [#allocation4]  }
 0x554   :  { %5902 = dma.done.wait [#allocation4], 384  }
 0x555   :  { %5903 = vsyncadd [#allocation4], 4294966912 }
 0x556   :  { %3558 = vsyncpa [#allocation3], 1 }
 0x557   :  { %3559 = vsyncpa [#allocation6], 1 }
 0x558   :  { %3560 = vsyncpa [#allocation9], 1 }
 0x559   :  { %3561 = vsyncpa [#allocation12], 1 }
 0x55a   :  { %3562 = vsyncpa [#allocation15], 1 }
 0x55b   :  { %3563 = vsyncpa [#allocation4], 1 }

</bundles_post_ra>
